<compile_context>
chip_gen: v7x
topology: tpu7x:2x2x1
jax: 0.10.0
libtpu: 0.0.40
codegen_flags: <defaults>
</compile_context>

<pallas_src>
import functools

import numpy as np

import jax
import jax.numpy as jnp
from jax.experimental import pallas as pl
from jax.experimental.pallas import tpu as pltpu


def _pick_vmem_limit():
    """Generation-aware scoped-VMEM limit (v7x has only 64 MiB per TensorCore)."""
    try:
        cap = getattr(pltpu.get_tpu_info(), "vmem_capacity_bytes", None)
    except Exception:
        cap = None
    if cap is not None and cap <= 64 * 1024 * 1024:
        return 36 * 1024 * 1024
    return 48 * 1024 * 1024


VMEM_LIMIT = _pick_vmem_limit()


def _cout_tile(cout):
    """Cout tile: full Cout when small, else the largest 128-aligned divisor <= 256."""
    if cout <= 256:
        return cout
    for t in (256, 128):
        if cout % t == 0:
            return t
    return cout


# ----------------------------- GroupNorm + SiLU (writes zero-padded bf16 output) --- #

def _gn_silu_pad_kernel(x_ref, cmap_ref, bmap_ref, gamma_ref, beta_ref, o_ref, *, eps):
    """GroupNorm + SiLU for one sample; output is zero-haloed to (H+2, W+2, C) bf16 so the
    following 3x3 conv kernel can read halo'd windows without an extra XLA pad pass.
    Two-pass statistics (mean, then centered variance) in f32."""
    x = x_ref[0].astype(jnp.float32)                              # (H, W, C)
    H, W, C = x.shape
    s1 = jnp.sum(x, axis=(0, 1))[None, :]                         # (1, C)
    # per-group mean -> broadcast back to channels (cmap already includes 1/(H*W*cg))
    mu = jnp.dot(jnp.dot(s1, cmap_ref[...], preferred_element_type=jnp.float32),
                 bmap_ref[...], preferred_element_type=jnp.float32)          # (1, C)
    d = x - mu
    s2 = jnp.sum(d * d, axis=(0, 1))[None, :]                     # (1, C) centered
    var = jnp.dot(jnp.dot(s2, cmap_ref[...], preferred_element_type=jnp.float32),
                  bmap_ref[...], preferred_element_type=jnp.float32)         # (1, C)
    inv = jax.lax.rsqrt(var + eps)
    y = d * (inv * gamma_ref[...]) + beta_ref[...]
    y = y * jax.nn.sigmoid(y)                                     # SiLU fused
    # interior + 4 thin border strips only (no full-block zero fill)
    o_ref[0, 1:H + 1, 1:W + 1, :] = y.astype(o_ref.dtype)
    zrow = jnp.zeros((1, W + 2, C), o_ref.dtype)
    zcol = jnp.zeros((H, 1, C), o_ref.dtype)
    o_ref[0, 0:1, :, :] = zrow
    o_ref[0, H + 1:H + 2, :, :] = zrow
    o_ref[0, 1:H + 1, 0:1, :] = zcol
    o_ref[0, 1:H + 1, W + 1:W + 2, :] = zcol


def group_norm_silu_pad(x, gamma, beta, num_groups, eps):
    """x: (N, H, W, C) bf16 -> GroupNorm(num_groups)+SiLU, zero-padded (N, H+2, W+2, C) bf16."""
    N, H, W, C = x.shape
    cg = C // num_groups
    gid = np.arange(C) // cg
    onehot = (gid[:, None] == np.arange(num_groups)[None, :])
    cmap = jnp.asarray(onehot.astype(np.float32) / float(H * W * cg))        # (C, G)
    bmap = jnp.asarray(onehot.T.astype(np.float32))                          # (G, C)
    kernel = functools.partial(_gn_silu_pad_kernel, eps=eps)
    return pl.pallas_call(
        kernel,
        out_shape=jax.ShapeDtypeStruct((N, H + 2, W + 2, C), jnp.bfloat16),
        grid_spec=pltpu.PrefetchScalarGridSpec(
            num_scalar_prefetch=0,
            grid=(N,),
            in_specs=[
                pl.BlockSpec((1, H, W, C), lambda i: (i, 0, 0, 0)),
                pl.BlockSpec((C, num_groups), lambda i: (0, 0)),
                pl.BlockSpec((num_groups, C), lambda i: (0, 0)),
                pl.BlockSpec((1, C), lambda i: (0, 0)),
                pl.BlockSpec((1, C), lambda i: (0, 0)),
            ],
            out_specs=pl.BlockSpec((1, H + 2, W + 2, C), lambda i: (i, 0, 0, 0)),
        ),
        compiler_params=pltpu.CompilerParams(
            dimension_semantics=("parallel",), vmem_limit_bytes=VMEM_LIMIT),
    )(x, cmap, bmap, gamma, beta)


# ----------------------------- fused 3x3 convolutions ------------------------------ #

def _halo_lhs(x_ref, H, W):
    """Concatenated-tap lhs (H*W, 9*Cin) bf16 from a zero-haloed (1, H+2, W+2, Cin) block.
    One deep-K MXU dot replaces nine skinny K=Cin dots; the block is already bf16, so
    there is no per-tap cast."""
    taps = [x_ref[0, dh:dh + H, dw:dw + W, :] for dh in range(3) for dw in range(3)]
    cin = x_ref.shape[-1]
    return jnp.concatenate(taps, axis=-1).reshape(H * W, 9 * cin)


def _conv1_kernel(x_ref, w_ref, b_ref, t_ref, o_ref, *, H, W):
    """conv1: 3x3 conv + bias + per-sample time-embedding add, fused. Single deep-K dot."""
    lhs = _halo_lhs(x_ref, H, W)
    acc = jnp.dot(lhs, w_ref[...], preferred_element_type=jnp.float32)
    y = acc + b_ref[...] + t_ref[0]
    o_ref[0] = y.reshape(H, W, -1).astype(o_ref.dtype)


def _conv2_sc_kernel(x_ref, w_ref, b_ref, xin_ref, wsc_ref, bsc_ref, o_ref,
                     *, H, W, inv_scale):
    """conv2: 3x3 conv + bias + 1x1-conv shortcut + 1/output_scale_factor, fused."""
    lhs = _halo_lhs(x_ref, H, W)
    acc = jnp.dot(lhs, w_ref[...], preferred_element_type=jnp.float32)
    xin = xin_ref[0].reshape(H * W, xin_ref.shape[-1])              # bf16 residual input
    sc = jnp.dot(xin, wsc_ref[...], preferred_element_type=jnp.float32) + bsc_ref[...]
    y = (acc + b_ref[...] + sc) * inv_scale
    o_ref[0] = y.reshape(H, W, -1).astype(o_ref.dtype)


def _conv2_id_kernel(x_ref, w_ref, b_ref, xin_ref, o_ref, *, H, W, inv_scale):
    """conv2 variant when in/out channels match: identity shortcut."""
    lhs = _halo_lhs(x_ref, H, W)
    acc = jnp.dot(lhs, w_ref[...], preferred_element_type=jnp.float32)
    sc = xin_ref[0].reshape(H * W, -1).astype(jnp.float32)
    y = (acc + b_ref[...] + sc) * inv_scale
    o_ref[0] = y.reshape(H, W, -1).astype(o_ref.dtype)


def conv3x3_temb(x_pad, wk, b, t):
    """x_pad: (N, H+2, W+2, Cin) bf16 (zero halo); wk: (9*Cin, Cout) bf16; b: (1, Cout) f32;
    t: (N, Cout) f32 time-embedding bias. Returns (N, H, W, Cout) bf16."""
    N, Hp, Wp, Cin = x_pad.shape
    H, W = Hp - 2, Wp - 2
    Cout = wk.shape[-1]
    co_t = _cout_tile(Cout)
    kernel = functools.partial(_conv1_kernel, H=H, W=W)
    return pl.pallas_call(
        kernel,
        out_shape=jax.ShapeDtypeStruct((N, H, W, Cout), jnp.bfloat16),
        grid_spec=pltpu.PrefetchScalarGridSpec(
            num_scalar_prefetch=0,
            grid=(N, Cout // co_t),
            in_specs=[
                pl.BlockSpec((1, Hp, Wp, Cin), lambda i, j: (i, 0, 0, 0)),
                pl.BlockSpec((9 * Cin, co_t), lambda i, j: (0, j)),
                pl.BlockSpec((1, co_t), lambda i, j: (0, j)),
                pl.BlockSpec((1, 1, co_t), lambda i, j: (i, 0, j)),
            ],
            out_specs=pl.BlockSpec((1, H, W, co_t), lambda i, j: (i, 0, 0, j)),
        ),
        compiler_params=pltpu.CompilerParams(
            dimension_semantics=("parallel", "parallel"), vmem_limit_bytes=VMEM_LIMIT),
    )(x_pad, wk, b, t.reshape(N, 1, Cout))


def conv3x3_residual(x_pad, wk, b, x_in, sc_w=None, sc_b=None, *, scale=1.0):
    """conv2 + residual: (conv3x3(x_pad) + b + shortcut(x_in)) / scale.
    x_pad: (N, H+2, W+2, Cmid) bf16; x_in: (N, H, W, Cin) bf16 (original block input);
    sc_w: (Cin, Cout) bf16 or None (identity shortcut). Returns (N, H, W, Cout) bf16."""
    N, Hp, Wp, Cmid = x_pad.shape
    H, W = Hp - 2, Wp - 2
    Cout = wk.shape[-1]
    Cin = x_in.shape[-1]
    co_t = _cout_tile(Cout)
    inv_scale = 1.0 / float(scale)

    base_specs = [
        pl.BlockSpec((1, Hp, Wp, Cmid), lambda i, j: (i, 0, 0, 0)),
        pl.BlockSpec((9 * Cmid, co_t), lambda i, j: (0, j)),
        pl.BlockSpec((1, co_t), lambda i, j: (0, j)),
    ]
    if sc_w is not None:
        kernel = functools.partial(_conv2_sc_kernel, H=H, W=W, inv_scale=inv_scale)
        extra_in = [x_in, sc_w, sc_b]
        extra_specs = [
            pl.BlockSpec((1, H, W, Cin), lambda i, j: (i, 0, 0, 0)),
            pl.BlockSpec((Cin, co_t), lambda i, j: (0, j)),
            pl.BlockSpec((1, co_t), lambda i, j: (0, j)),
        ]
    else:
        kernel = functools.partial(_conv2_id_kernel, H=H, W=W, inv_scale=inv_scale)
        extra_in = [x_in]
        extra_specs = [pl.BlockSpec((1, H, W, co_t), lambda i, j: (i, 0, 0, j))]

    return pl.pallas_call(
        kernel,
        out_shape=jax.ShapeDtypeStruct((N, H, W, Cout), jnp.bfloat16),
        grid_spec=pltpu.PrefetchScalarGridSpec(
            num_scalar_prefetch=0,
            grid=(N, Cout // co_t),
            in_specs=base_specs + extra_specs,
            out_specs=pl.BlockSpec((1, H, W, co_t), lambda i, j: (i, 0, 0, j)),
        ),
        compiler_params=pltpu.CompilerParams(
            dimension_semantics=("parallel", "parallel"), vmem_limit_bytes=VMEM_LIMIT),
    )(x_pad, wk, b, *extra_in)


# ----------------------------- stride-2 downsample conv ---------------------------- #

def _conv3x3_s2_kernel(xp_ref, w_ref, b_ref, o_ref, *, Ho, Wo):
    """3x3 stride-2 conv over parity planes: plane p=2a+b holds x_pad[2m+a, 2n+b], stacked
    along the row axis, so every tap is a contiguous (Ho, Wo) window of one plane. All 9
    taps are concatenated along K for a single deep-K MXU dot."""
    cin = xp_ref.shape[-1]
    taps = []
    for dh in range(3):
        for dw in range(3):
            p = (dh % 2) * 2 + (dw % 2)
            r0 = p * (Ho + 1) + dh // 2
            c0 = dw // 2
            taps.append(xp_ref[0, r0:r0 + Ho, c0:c0 + Wo, :])
    lhs = jnp.concatenate(taps, axis=-1).reshape(Ho * Wo, 9 * cin)
    acc = jnp.dot(lhs, w_ref[...], preferred_element_type=jnp.float32)
    y = acc + b_ref[...]
    o_ref[0] = y.reshape(Ho, Wo, -1).astype(o_ref.dtype)


def conv3x3_stride2(x, wk, b):
    """Downsample: 3x3 conv, stride 2, pad 1. x: (N, H, W, C) bf16, H and W even."""
    N, H, W, C = x.shape
    Cout = wk.shape[-1]
    Ho, Wo = H // 2, W // 2
    co_t = _cout_tile(Cout)
    xp = jnp.pad(x, ((0, 0), (1, 1), (1, 1), (0, 0)))
    # parity planes stacked along rows (bf16): plane(a,b)[m, n] = xp[2m+a, 2n+b]
    planes = jnp.concatenate(
        [xp[:, a::2, b::2, :] for a in (0, 1) for b in (0, 1)], axis=1)  # (N, 4*(Ho+1), Wo+1, C)
    kernel = functools.partial(_conv3x3_s2_kernel, Ho=Ho, Wo=Wo)
    return pl.pallas_call(
        kernel,
        out_shape=jax.ShapeDtypeStruct((N, Ho, Wo, Cout), jnp.bfloat16),
        grid_spec=pltpu.PrefetchScalarGridSpec(
            num_scalar_prefetch=0,
            grid=(N, Cout // co_t),
            in_specs=[
                pl.BlockSpec((1, 4 * (Ho + 1), Wo + 1, C), lambda i, j: (i, 0, 0, 0)),
                pl.BlockSpec((9 * C, co_t), lambda i, j: (0, j)),
                pl.BlockSpec((1, co_t), lambda i, j: (0, j)),
            ],
            out_specs=pl.BlockSpec((1, Ho, Wo, co_t), lambda i, j: (i, 0, 0, j)),
        ),
        compiler_params=pltpu.CompilerParams(
            dimension_semantics=("parallel", "parallel"), vmem_limit_bytes=VMEM_LIMIT),
    )(planes, wk, b)


# ----------------------------- parameter preparation (outside jit) ----------------- #

def _fold_w3x3(w_oihw):
    """OIHW conv weight -> (9*Cin, Cout) bf16, rows ordered (kh, kw, cin)."""
    cout, cin, kh, kw = w_oihw.shape
    return jnp.transpose(w_oihw, (2, 3, 1, 0)).reshape(kh * kw * cin, cout).astype(jnp.bfloat16)


def prepare_params(params):
    """Convert torch-layout params to kernel-ready layout ONCE (outside the jitted fwd):
    folded-tap bf16 conv weights, transposed 1x1 shortcut / time-emb Linear, (1, C) biases."""
    prepped = {"resnets": [], "downsample": None}
    for p in params["resnets"]:
        cout, cin = p["conv1_w"].shape[0], p["conv1_w"].shape[1]
        q = {
            "norm1_g": p["norm1_g"].reshape(1, cin).astype(jnp.float32),
            "norm1_b": p["norm1_b"].reshape(1, cin).astype(jnp.float32),
            "conv1_w": _fold_w3x3(p["conv1_w"]),
            "conv1_b": p["conv1_b"].reshape(1, cout).astype(jnp.float32),
            "temb_w": p["temb_w"].T.astype(jnp.float32),          # (Ctemb, Cout)
            "temb_b": p["temb_b"].astype(jnp.float32),
            "norm2_g": p["norm2_g"].reshape(1, cout).astype(jnp.float32),
            "norm2_b": p["norm2_b"].reshape(1, cout).astype(jnp.float32),
            "conv2_w": _fold_w3x3(p["conv2_w"]),
            "conv2_b": p["conv2_b"].reshape(1, cout).astype(jnp.float32),
        }
        if "shortcut_w" in p:
            q["shortcut_w"] = p["shortcut_w"].reshape(cout, cin).T.astype(jnp.bfloat16)
            q["shortcut_b"] = p["shortcut_b"].reshape(1, cout).astype(jnp.float32)
        prepped["resnets"].append(q)
    if params["downsample"] is not None:
        dp = params["downsample"]
        cout = dp["w"].shape[0]
        prepped["downsample"] = {"w": _fold_w3x3(dp["w"]),
                                 "b": dp["b"].reshape(1, cout).astype(jnp.float32)}
    return prepped


# ----------------------------- ResnetBlock / DownBlock3D --------------------------- #

def resnet_block(x_nhwc, temb, q, *, groups, eps, scale):
    # norm1 -> SiLU (two-pass f32 stats), output already zero-haloed bf16 for conv1
    h_pad = group_norm_silu_pad(x_nhwc, q["norm1_g"], q["norm1_b"], groups, eps)

    # time embedding projection: Linear(silu(temb)) — tiny (N x Ctemb), plain XLA
    t = jax.nn.silu(temb.astype(jnp.float32)) @ q["temb_w"] + q["temb_b"]      # (N, Cout)

    # conv1 (+bias +time-emb) fused, single deep-K bf16 MXU dot / f32 accumulation
    h = conv3x3_temb(h_pad, q["conv1_w"], q["conv1_b"], t)                     # bf16

    # norm2 -> SiLU, zero-haloed for conv2; dropout(p=0.0) is the identity
    h_pad2 = group_norm_silu_pad(h, q["norm2_g"], q["norm2_b"], groups, eps)

    # conv2 (+bias +shortcut +1/output_scale_factor) fused
    return conv3x3_residual(h_pad2, q["conv2_w"], q["conv2_b"], x_nhwc,
                            q.get("shortcut_w"), q.get("shortcut_b"), scale=scale)


def down_block_3d(x_nchw, temb, prepped, *, groups=32, eps=1e-6, scale=1.0):
    """Forward of DownBlock3D. Returns (hidden_states, output_states), NCHW f32 like PyTorch."""
    h = jnp.transpose(x_nchw, (0, 2, 3, 1)).astype(jnp.bfloat16)               # NCHW -> NHWC bf16
    output_states = ()
    for q in prepped["resnets"]:
        h = resnet_block(h, temb, q, groups=groups, eps=eps, scale=scale)
        output_states += (jnp.transpose(h, (0, 3, 1, 2)).astype(jnp.float32),)
    if prepped["downsample"] is not None:
        dp = prepped["downsample"]
        h = conv3x3_stride2(h, dp["w"], dp["b"])
        output_states += (jnp.transpose(h, (0, 3, 1, 2)).astype(jnp.float32),)
    hidden = (output_states[-1] if output_states
              else jnp.transpose(h, (0, 3, 1, 2)).astype(jnp.float32))
    return hidden, output_states


# ----------------------------- deterministic params -------------------------------- #

def init_params(key, in_c, out_c, temb_c, *, num_layers=1, add_downsample=True):
    keys = iter(jax.random.split(key, 64))

    def rand(shape, s=0.05):
        return jax.random.normal(next(keys), shape, dtype=jnp.float32) * s

    resnets = []
    cin = in_c
    for _ in range(num_layers):
        p = {
            "norm1_g": jnp.ones((cin,), jnp.float32) + rand((cin,)),
            "norm1_b": rand((cin,)),
            "conv1_w": rand((out_c, cin, 3, 3)),
            "conv1_b": rand((out_c,)),
            "temb_w": rand((out_c, temb_c)),          # torch.nn.Linear weight (out, in)
            "temb_b": rand((out_c,)),
            "norm2_g": jnp.ones((out_c,), jnp.float32) + rand((out_c,)),
            "norm2_b": rand((out_c,)),
            "conv2_w": rand((out_c, out_c, 3, 3)),
            "conv2_b": rand((out_c,)),
        }
        if cin != out_c:
            p["shortcut_w"] = rand((out_c, cin, 1, 1))
            p["shortcut_b"] = rand((out_c,))
        resnets.append(p)
        cin = out_c
    return {
        "resnets": resnets,
        "downsample": {"w": rand((out_c, out_c, 3, 3)), "b": rand((out_c,))}
        if add_downsample else None,
    }


# ----------------------------- demo ------------------------------------------------- #

if __name__ == "__main__":
    key = jax.random.PRNGKey(0)
    k1, k2, k3 = jax.random.split(key, 3)

    # channels chosen to respect the default resnet_groups=32 GroupNorm constraint
    N, Cin, Cout, Ctemb, H, W = 2, 32, 64, 128, 16, 16
    x = jax.random.normal(k1, (N, Cin, H, W), dtype=jnp.float32)          # NCHW like PyTorch
    temb = jax.random.normal(k2, (N, Ctemb), dtype=jnp.float32)

    params = init_params(k3, Cin, Cout, Ctemb, num_layers=1, add_downsample=True)
    prepped = prepare_params(params)                                       # one-time weight prep

    fwd = jax.jit(functools.partial(down_block_3d, groups=32, eps=1e-6, scale=1.0))
    hidden, states = fwd(x, temb, prepped)
    jax.block_until_ready(hidden)
    for s in states:
        jax.block_until_ready(s)

    assert hidden.shape == (N, Cout, H // 2, W // 2)
    assert states[0].shape == (N, Cout, H, W)
    assert states[1].shape == (N, Cout, H // 2, W // 2)
    assert jnp.all(jnp.isfinite(hidden))
    assert all(bool(jnp.all(jnp.isfinite(s))) for s in states)
    print("KERNEL_OK")
</pallas_src>

<mosaic_0001>
module attributes {stable_mosaic.version = 11 : i64} {
  func.func @_conv2_sc_kernel(%arg0: i32, %arg1: i32, %arg2: memref<1x18x18x64xbf16, #tpu.memory_space<vmem>>, %arg3: memref<576x64xbf16, #tpu.memory_space<vmem>>, %arg4: memref<1x64xf32, #tpu.memory_space<vmem>>, %arg5: memref<1x16x16x32xbf16, #tpu.memory_space<vmem>>, %arg6: memref<32x64xbf16, #tpu.memory_space<vmem>>, %arg7: memref<1x64xf32, #tpu.memory_space<vmem>>, %arg8: memref<1x16x16x64xbf16, #tpu.memory_space<vmem>>) attributes {dimension_semantics = [#tpu.dimension_semantics<parallel>, #tpu.dimension_semantics<parallel>], iteration_bounds = array<i64: 2, 1>, scalar_prefetch = 0 : i64, scratch_operands = 0 : i64, tpu.core_type = #tpu.core_type<tc>, window_params = [{transform_indices = @transform_0, window_bounds = array<i64: 1, 18, 18, 64>}, {transform_indices = @transform_1, window_bounds = array<i64: 576, 64>}, {transform_indices = @transform_2, window_bounds = array<i64: 1, 64>}, {transform_indices = @transform_3, window_bounds = array<i64: 1, 16, 16, 32>}, {transform_indices = @transform_4, window_bounds = array<i64: 32, 64>}, {transform_indices = @transform_5, window_bounds = array<i64: 1, 64>}, {transform_indices = @transform_6, window_bounds = array<i64: 1, 16, 16, 64>}]} {
    %c0 = arith.constant 0 : index
    %c0_0 = arith.constant 0 : index
    %c0_1 = arith.constant 0 : index
    %c0_2 = arith.constant 0 : index
    %0 = vector.load %arg2[%c0, %c0_0, %c0_1, %c0_2] : memref<1x18x18x64xbf16, #tpu.memory_space<vmem>>, vector<1x16x16x64xbf16>
    %1 = vector.shape_cast %0 : vector<1x16x16x64xbf16> to vector<16x16x64xbf16>
    %c0_3 = arith.constant 0 : index
    %c0_4 = arith.constant 0 : index
    %c1 = arith.constant 1 : index
    %c0_5 = arith.constant 0 : index
    %2 = vector.load %arg2[%c0_3, %c0_4, %c1, %c0_5] : memref<1x18x18x64xbf16, #tpu.memory_space<vmem>>, vector<1x16x16x64xbf16>
    %3 = vector.shape_cast %2 : vector<1x16x16x64xbf16> to vector<16x16x64xbf16>
    %c0_6 = arith.constant 0 : index
    %c0_7 = arith.constant 0 : index
    %c2 = arith.constant 2 : index
    %c0_8 = arith.constant 0 : index
    %4 = vector.load %arg2[%c0_6, %c0_7, %c2, %c0_8] : memref<1x18x18x64xbf16, #tpu.memory_space<vmem>>, vector<1x16x16x64xbf16>
    %5 = vector.shape_cast %4 : vector<1x16x16x64xbf16> to vector<16x16x64xbf16>
    %c0_9 = arith.constant 0 : index
    %c1_10 = arith.constant 1 : index
    %c0_11 = arith.constant 0 : index
    %c0_12 = arith.constant 0 : index
    %6 = vector.load %arg2[%c0_9, %c1_10, %c0_11, %c0_12] : memref<1x18x18x64xbf16, #tpu.memory_space<vmem>>, vector<1x16x16x64xbf16>
    %7 = vector.shape_cast %6 : vector<1x16x16x64xbf16> to vector<16x16x64xbf16>
    %c0_13 = arith.constant 0 : index
    %c1_14 = arith.constant 1 : index
    %c1_15 = arith.constant 1 : index
    %c0_16 = arith.constant 0 : index
    %8 = vector.load %arg2[%c0_13, %c1_14, %c1_15, %c0_16] : memref<1x18x18x64xbf16, #tpu.memory_space<vmem>>, vector<1x16x16x64xbf16>
    %9 = vector.shape_cast %8 : vector<1x16x16x64xbf16> to vector<16x16x64xbf16>
    %c0_17 = arith.constant 0 : index
    %c1_18 = arith.constant 1 : index
    %c2_19 = arith.constant 2 : index
    %c0_20 = arith.constant 0 : index
    %10 = vector.load %arg2[%c0_17, %c1_18, %c2_19, %c0_20] : memref<1x18x18x64xbf16, #tpu.memory_space<vmem>>, vector<1x16x16x64xbf16>
    %11 = vector.shape_cast %10 : vector<1x16x16x64xbf16> to vector<16x16x64xbf16>
    %c0_21 = arith.constant 0 : index
    %c2_22 = arith.constant 2 : index
    %c0_23 = arith.constant 0 : index
    %c0_24 = arith.constant 0 : index
    %12 = vector.load %arg2[%c0_21, %c2_22, %c0_23, %c0_24] : memref<1x18x18x64xbf16, #tpu.memory_space<vmem>>, vector<1x16x16x64xbf16>
    %13 = vector.shape_cast %12 : vector<1x16x16x64xbf16> to vector<16x16x64xbf16>
    %c0_25 = arith.constant 0 : index
    %c2_26 = arith.constant 2 : index
    %c1_27 = arith.constant 1 : index
    %c0_28 = arith.constant 0 : index
    %14 = vector.load %arg2[%c0_25, %c2_26, %c1_27, %c0_28] : memref<1x18x18x64xbf16, #tpu.memory_space<vmem>>, vector<1x16x16x64xbf16>
    %15 = vector.shape_cast %14 : vector<1x16x16x64xbf16> to vector<16x16x64xbf16>
    %c0_29 = arith.constant 0 : index
    %c2_30 = arith.constant 2 : index
    %c2_31 = arith.constant 2 : index
    %c0_32 = arith.constant 0 : index
    %16 = vector.load %arg2[%c0_29, %c2_30, %c2_31, %c0_32] : memref<1x18x18x64xbf16, #tpu.memory_space<vmem>>, vector<1x16x16x64xbf16>
    %17 = vector.shape_cast %16 : vector<1x16x16x64xbf16> to vector<16x16x64xbf16>
    %18 = tpu.concatenate %1, %3, %5, %7, %9, %11, %13, %15, %17 in 2 : vector<16x16x64xbf16>, vector<16x16x64xbf16>, vector<16x16x64xbf16>, vector<16x16x64xbf16>, vector<16x16x64xbf16>, vector<16x16x64xbf16>, vector<16x16x64xbf16>, vector<16x16x64xbf16>, vector<16x16x64xbf16> -> vector<16x16x576xbf16>
    %19 = vector.shape_cast %18 : vector<16x16x576xbf16> to vector<256x576xbf16>
    %c0_33 = arith.constant 0 : index
    %c0_34 = arith.constant 0 : index
    %20 = vector.load %arg3[%c0_33, %c0_34] : memref<576x64xbf16, #tpu.memory_space<vmem>>, vector<576x64xbf16>
    %cst = arith.constant dense<0.000000e+00> : vector<256x64xf32>
    %21 = tpu.matmul %19, %20, %cst {dimension_numbers = #tpu.dot_dimension_numbers<[1], [0], [0], [1], [0, 0, 1, 1], [], []>} : vector<256x576xbf16>, vector<576x64xbf16>, vector<256x64xf32> -> vector<256x64xf32>
    %c0_35 = arith.constant 0 : index
    %c0_36 = arith.constant 0 : index
    %c0_37 = arith.constant 0 : index
    %c0_38 = arith.constant 0 : index
    %22 = vector.load %arg5[%c0_35, %c0_36, %c0_37, %c0_38] : memref<1x16x16x32xbf16, #tpu.memory_space<vmem>>, vector<1x16x16x32xbf16>
    %23 = vector.shape_cast %22 : vector<1x16x16x32xbf16> to vector<16x16x32xbf16>
    %24 = vector.shape_cast %23 : vector<16x16x32xbf16> to vector<256x32xbf16>
    %c0_39 = arith.constant 0 : index
    %c0_40 = arith.constant 0 : index
    %25 = vector.load %arg6[%c0_39, %c0_40] : memref<32x64xbf16, #tpu.memory_space<vmem>>, vector<32x64xbf16>
    %cst_41 = arith.constant dense<0.000000e+00> : vector<256x64xf32>
    %26 = tpu.matmul %24, %25, %cst_41 {dimension_numbers = #tpu.dot_dimension_numbers<[1], [0], [0], [1], [0, 0, 1, 1], [], []>} : vector<256x32xbf16>, vector<32x64xbf16>, vector<256x64xf32> -> vector<256x64xf32>
    %c0_42 = arith.constant 0 : index
    %c0_43 = arith.constant 0 : index
    %27 = vector.load %arg7[%c0_42, %c0_43] : memref<1x64xf32, #tpu.memory_space<vmem>>, vector<1x64xf32>
    %28 = vector.broadcast %27 : vector<1x64xf32> to vector<256x64xf32>
    %29 = arith.addf %26, %28 : vector<256x64xf32>
    %c0_44 = arith.constant 0 : index
    %c0_45 = arith.constant 0 : index
    %30 = vector.load %arg4[%c0_44, %c0_45] : memref<1x64xf32, #tpu.memory_space<vmem>>, vector<1x64xf32>
    %31 = vector.broadcast %30 : vector<1x64xf32> to vector<256x64xf32>
    %32 = arith.addf %21, %31 : vector<256x64xf32>
    %33 = arith.addf %32, %29 : vector<256x64xf32>
    %cst_46 = arith.constant 1.000000e+00 : f32
    %34 = vector.broadcast %cst_46 : f32 to vector<256x64xf32>
    %35 = arith.mulf %33, %34 : vector<256x64xf32>
    %36 = vector.shape_cast %35 : vector<256x64xf32> to vector<16x16x64xf32>
    %37 = arith.truncf %36 : vector<16x16x64xf32> to vector<16x16x64xbf16>
    %c0_47 = arith.constant 0 : index
    %c0_48 = arith.constant 0 : index
    %c0_49 = arith.constant 0 : index
    %c0_50 = arith.constant 0 : index
    %38 = vector.load %arg8[%c0_47, %c0_48, %c0_49, %c0_50] : memref<1x16x16x64xbf16, #tpu.memory_space<vmem>>, vector<1x16x16x64xbf16>
    %39 = vector.shape_cast %38 : vector<1x16x16x64xbf16> to vector<16x16x64xbf16>
    %40 = vector.shape_cast %37 : vector<16x16x64xbf16> to vector<1x16x16x64xbf16>
    tpu.vector_store %arg8[%c0_47, %c0_48, %c0_49, %c0_50], %40 {strides = array<i32>} : memref<1x16x16x64xbf16, #tpu.memory_space<vmem>>, vector<1x16x16x64xbf16>,
    return
  }
  func.func @transform_0(%arg0: i32, %arg1: i32) -> (i32, i32, i32, i32) {
    %c0_i32 = arith.constant 0 : i32
    %c0_i32_0 = arith.constant 0 : i32
    %c0_i32_1 = arith.constant 0 : i32
    %c0_i32_2 = arith.constant 0 : i32
    return %arg0, %c0_i32, %c0_i32_0, %c0_i32_1 : i32, i32, i32, i32
  }
  func.func @transform_1(%arg0: i32, %arg1: i32) -> (i32, i32) {
    %c0_i32 = arith.constant 0 : i32
    %c0_i32_0 = arith.constant 0 : i32
    return %c0_i32, %arg1 : i32, i32
  }
  func.func @transform_2(%arg0: i32, %arg1: i32) -> (i32, i32) {
    %c0_i32 = arith.constant 0 : i32
    %c0_i32_0 = arith.constant 0 : i32
    return %c0_i32, %arg1 : i32, i32
  }
  func.func @transform_3(%arg0: i32, %arg1: i32) -> (i32, i32, i32, i32) {
    %c0_i32 = arith.constant 0 : i32
    %c0_i32_0 = arith.constant 0 : i32
    %c0_i32_1 = arith.constant 0 : i32
    %c0_i32_2 = arith.constant 0 : i32
    return %arg0, %c0_i32, %c0_i32_0, %c0_i32_1 : i32, i32, i32, i32
  }
  func.func @transform_4(%arg0: i32, %arg1: i32) -> (i32, i32) {
    %c0_i32 = arith.constant 0 : i32
    %c0_i32_0 = arith.constant 0 : i32
    return %c0_i32, %arg1 : i32, i32
  }
  func.func @transform_5(%arg0: i32, %arg1: i32) -> (i32, i32) {
    %c0_i32 = arith.constant 0 : i32
    %c0_i32_0 = arith.constant 0 : i32
    return %c0_i32, %arg1 : i32, i32
  }
  func.func @transform_6(%arg0: i32, %arg1: i32) -> (i32, i32, i32, i32) {
    %c0_i32 = arith.constant 0 : i32
    %c0_i32_0 = arith.constant 0 : i32
    %c0_i32_1 = arith.constant 0 : i32
    return %arg0, %c0_i32, %c0_i32_0, %arg1 : i32, i32, i32, i32
  }
}

module attributes {stable_mosaic.version = 11 : i64} {
  func.func @_gn_silu_pad_kernel(%arg0: i32, %arg1: memref<1x16x16x32xbf16, #tpu.memory_space<vmem>>, %arg2: memref<32x32xf32, #tpu.memory_space<vmem>>, %arg3: memref<32x32xf32, #tpu.memory_space<vmem>>, %arg4: memref<1x32xf32, #tpu.memory_space<vmem>>, %arg5: memref<1x32xf32, #tpu.memory_space<vmem>>, %arg6: memref<1x18x18x32xbf16, #tpu.memory_space<vmem>>) attributes {dimension_semantics = [#tpu.dimension_semantics<parallel>], iteration_bounds = array<i64: 2>, scalar_prefetch = 0 : i64, scratch_operands = 0 : i64, tpu.core_type = #tpu.core_type<tc>, window_params = [{transform_indices = @transform_0, window_bounds = array<i64: 1, 16, 16, 32>}, {pipeline_mode = #tpu.pipeline_mode<synchronous>, transform_indices = @transform_1, window_bounds = array<i64: 32, 32>}, {pipeline_mode = #tpu.pipeline_mode<synchronous>, transform_indices = @transform_2, window_bounds = array<i64: 32, 32>}, {pipeline_mode = #tpu.pipeline_mode<synchronous>, transform_indices = @transform_3, window_bounds = array<i64: 1, 32>}, {pipeline_mode = #tpu.pipeline_mode<synchronous>, transform_indices = @transform_4, window_bounds = array<i64: 1, 32>}, {transform_indices = @transform_5, window_bounds = array<i64: 1, 18, 18, 32>}]} {
    %c0 = arith.constant 0 : index
    %c0_0 = arith.constant 0 : index
    %c0_1 = arith.constant 0 : index
    %c0_2 = arith.constant 0 : index
    %0 = vector.load %arg1[%c0, %c0_0, %c0_1, %c0_2] : memref<1x16x16x32xbf16, #tpu.memory_space<vmem>>, vector<1x16x16x32xbf16>
    %1 = vector.shape_cast %0 : vector<1x16x16x32xbf16> to vector<16x16x32xbf16>
    %2 = arith.extf %1 : vector<16x16x32xbf16> to vector<16x16x32xf32>
    %cst = arith.constant dense<0.000000e+00> : vector<32xf32>
    %3 = vector.multi_reduction <add>, %2, %cst [0, 1] : vector<16x16x32xf32> to vector<32xf32>
    %4 = vector.shape_cast %3 : vector<32xf32> to vector<1x32xf32>
    %c0_3 = arith.constant 0 : index
    %c0_4 = arith.constant 0 : index
    %5 = vector.load %arg2[%c0_3, %c0_4] : memref<32x32xf32, #tpu.memory_space<vmem>>, vector<32x32xf32>
    %cst_5 = arith.constant dense<0.000000e+00> : vector<1x32xf32>
    %6 = tpu.matmul %4, %5, %cst_5 {dimension_numbers = #tpu.dot_dimension_numbers<[1], [0], [0], [1], [0, 0, 1, 1], [], []>} : vector<1x32xf32>, vector<32x32xf32>, vector<1x32xf32> -> vector<1x32xf32>
    %c0_6 = arith.constant 0 : index
    %c0_7 = arith.constant 0 : index
    %7 = vector.load %arg3[%c0_6, %c0_7] : memref<32x32xf32, #tpu.memory_space<vmem>>, vector<32x32xf32>
    %cst_8 = arith.constant dense<0.000000e+00> : vector<1x32xf32>
    %8 = tpu.matmul %6, %7, %cst_8 {dimension_numbers = #tpu.dot_dimension_numbers<[1], [0], [0], [1], [0, 0, 1, 1], [], []>} : vector<1x32xf32>, vector<32x32xf32>, vector<1x32xf32> -> vector<1x32xf32>
    %9 = vector.shape_cast %8 : vector<1x32xf32> to vector<1x1x32xf32>
    %10 = vector.broadcast %9 : vector<1x1x32xf32> to vector<16x16x32xf32>
    %11 = arith.subf %2, %10 : vector<16x16x32xf32>
    %12 = arith.mulf %11, %11 : vector<16x16x32xf32>
    %cst_9 = arith.constant dense<0.000000e+00> : vector<32xf32>
    %13 = vector.multi_reduction <add>, %12, %cst_9 [0, 1] : vector<16x16x32xf32> to vector<32xf32>
    %14 = vector.shape_cast %13 : vector<32xf32> to vector<1x32xf32>
    %c0_10 = arith.constant 0 : index
    %c0_11 = arith.constant 0 : index
    %15 = vector.load %arg2[%c0_10, %c0_11] : memref<32x32xf32, #tpu.memory_space<vmem>>, vector<32x32xf32>
    %cst_12 = arith.constant dense<0.000000e+00> : vector<1x32xf32>
    %16 = tpu.matmul %14, %15, %cst_12 {dimension_numbers = #tpu.dot_dimension_numbers<[1], [0], [0], [1], [0, 0, 1, 1], [], []>} : vector<1x32xf32>, vector<32x32xf32>, vector<1x32xf32> -> vector<1x32xf32>
    %c0_13 = arith.constant 0 : index
    %c0_14 = arith.constant 0 : index
    %17 = vector.load %arg3[%c0_13, %c0_14] : memref<32x32xf32, #tpu.memory_space<vmem>>, vector<32x32xf32>
    %cst_15 = arith.constant dense<0.000000e+00> : vector<1x32xf32>
    %18 = tpu.matmul %16, %17, %cst_15 {dimension_numbers = #tpu.dot_dimension_numbers<[1], [0], [0], [1], [0, 0, 1, 1], [], []>} : vector<1x32xf32>, vector<32x32xf32>, vector<1x32xf32> -> vector<1x32xf32>
    %cst_16 = arith.constant 9.99999997E-7 : f32
    %19 = vector.broadcast %cst_16 : f32 to vector<1x32xf32>
    %20 = arith.addf %18, %19 : vector<1x32xf32>
    %21 = math.rsqrt %20 : vector<1x32xf32>
    %c0_17 = arith.constant 0 : index
    %c0_18 = arith.constant 0 : index
    %22 = vector.load %arg4[%c0_17, %c0_18] : memref<1x32xf32, #tpu.memory_space<vmem>>, vector<1x32xf32>
    %23 = arith.mulf %21, %22 : vector<1x32xf32>
    %24 = vector.shape_cast %23 : vector<1x32xf32> to vector<1x1x32xf32>
    %25 = vector.broadcast %24 : vector<1x1x32xf32> to vector<16x16x32xf32>
    %26 = arith.mulf %11, %25 : vector<16x16x32xf32>
    %c0_19 = arith.constant 0 : index
    %c0_20 = arith.constant 0 : index
    %27 = vector.load %arg5[%c0_19, %c0_20] : memref<1x32xf32, #tpu.memory_space<vmem>>, vector<1x32xf32>
    %28 = vector.shape_cast %27 : vector<1x32xf32> to vector<1x1x32xf32>
    %29 = vector.broadcast %28 : vector<1x1x32xf32> to vector<16x16x32xf32>
    %30 = arith.addf %26, %29 : vector<16x16x32xf32>
    %31 = arith.negf %30 : vector<16x16x32xf32>
    %32 = math.exp %31 : vector<16x16x32xf32>
    %cst_21 = arith.constant 1.000000e+00 : f32
    %33 = vector.broadcast %cst_21 : f32 to vector<16x16x32xf32>
    %34 = arith.addf %33, %32 : vector<16x16x32xf32>
    %35 = arith.divf %33, %34 : vector<16x16x32xf32>
    %36 = arith.mulf %30, %35 : vector<16x16x32xf32>
    %37 = arith.truncf %36 : vector<16x16x32xf32> to vector<16x16x32xbf16>
    %c0_22 = arith.constant 0 : index
    %c1 = arith.constant 1 : index
    %c1_23 = arith.constant 1 : index
    %c0_24 = arith.constant 0 : index
    %38 = vector.load %arg6[%c0_22, %c1, %c1_23, %c0_24] : memref<1x18x18x32xbf16, #tpu.memory_space<vmem>>, vector<1x16x16x32xbf16>
    %39 = vector.shape_cast %38 : vector<1x16x16x32xbf16> to vector<16x16x32xbf16>
    %40 = vector.shape_cast %37 : vector<16x16x32xbf16> to vector<1x16x16x32xbf16>
    tpu.vector_store %arg6[%c0_22, %c1, %c1_23, %c0_24], %40 {strides = array<i32>} : memref<1x18x18x32xbf16, #tpu.memory_space<vmem>>, vector<1x16x16x32xbf16>,
    %cst_25 = arith.constant 0.000000e+00 : bf16
    %41 = vector.broadcast %cst_25 : bf16 to vector<1x18x32xbf16>
    %cst_26 = arith.constant 0.000000e+00 : bf16
    %42 = vector.broadcast %cst_26 : bf16 to vector<16x1x32xbf16>
    %c0_27 = arith.constant 0 : index
    %c0_28 = arith.constant 0 : index
    %c0_29 = arith.constant 0 : index
    %c0_30 = arith.constant 0 : index
    %43 = vector.load %arg6[%c0_27, %c0_28, %c0_29, %c0_30] : memref<1x18x18x32xbf16, #tpu.memory_space<vmem>>, vector<1x1x18x32xbf16>
    %44 = vector.shape_cast %43 : vector<1x1x18x32xbf16> to vector<1x18x32xbf16>
    %45 = vector.shape_cast %41 : vector<1x18x32xbf16> to vector<1x1x18x32xbf16>
    tpu.vector_store %arg6[%c0_27, %c0_28, %c0_29, %c0_30], %45 {strides = array<i32>} : memref<1x18x18x32xbf16, #tpu.memory_space<vmem>>, vector<1x1x18x32xbf16>,
    %c0_31 = arith.constant 0 : index
    %c17 = arith.constant 17 : index
    %c0_32 = arith.constant 0 : index
    %c0_33 = arith.constant 0 : index
    %46 = vector.load %arg6[%c0_31, %c17, %c0_32, %c0_33] : memref<1x18x18x32xbf16, #tpu.memory_space<vmem>>, vector<1x1x18x32xbf16>
    %47 = vector.shape_cast %46 : vector<1x1x18x32xbf16> to vector<1x18x32xbf16>
    %48 = vector.shape_cast %41 : vector<1x18x32xbf16> to vector<1x1x18x32xbf16>
    tpu.vector_store %arg6[%c0_31, %c17, %c0_32, %c0_33], %48 {strides = array<i32>} : memref<1x18x18x32xbf16, #tpu.memory_space<vmem>>, vector<1x1x18x32xbf16>,
    %c0_34 = arith.constant 0 : index
    %c1_35 = arith.constant 1 : index
    %c0_36 = arith.constant 0 : index
    %c0_37 = arith.constant 0 : index
    %49 = vector.load %arg6[%c0_34, %c1_35, %c0_36, %c0_37] : memref<1x18x18x32xbf16, #tpu.memory_space<vmem>>, vector<1x16x1x32xbf16>
    %50 = vector.shape_cast %49 : vector<1x16x1x32xbf16> to vector<16x1x32xbf16>
    %51 = vector.shape_cast %42 : vector<16x1x32xbf16> to vector<1x16x1x32xbf16>
    tpu.vector_store %arg6[%c0_34, %c1_35, %c0_36, %c0_37], %51 {strides = array<i32>} : memref<1x18x18x32xbf16, #tpu.memory_space<vmem>>, vector<1x16x1x32xbf16>,
    %c0_38 = arith.constant 0 : index
    %c1_39 = arith.constant 1 : index
    %c17_40 = arith.constant 17 : index
    %c0_41 = arith.constant 0 : index
    %52 = vector.load %arg6[%c0_38, %c1_39, %c17_40, %c0_41] : memref<1x18x18x32xbf16, #tpu.memory_space<vmem>>, vector<1x16x1x32xbf16>
    %53 = vector.shape_cast %52 : vector<1x16x1x32xbf16> to vector<16x1x32xbf16>
    %54 = vector.shape_cast %42 : vector<16x1x32xbf16> to vector<1x16x1x32xbf16>
    tpu.vector_store %arg6[%c0_38, %c1_39, %c17_40, %c0_41], %54 {strides = array<i32>} : memref<1x18x18x32xbf16, #tpu.memory_space<vmem>>, vector<1x16x1x32xbf16>,
    return
  }
  func.func @transform_0(%arg0: i32) -> (i32, i32, i32, i32) {
    %c0_i32 = arith.constant 0 : i32
    %c0_i32_0 = arith.constant 0 : i32
    %c0_i32_1 = arith.constant 0 : i32
    %c0_i32_2 = arith.constant 0 : i32
    return %arg0, %c0_i32, %c0_i32_0, %c0_i32_1 : i32, i32, i32, i32
  }
  func.func @transform_1(%arg0: i32) -> (i32, i32) {
    %c0_i32 = arith.constant 0 : i32
    %c0_i32_0 = arith.constant 0 : i32
    %c0_i32_1 = arith.constant 0 : i32
    return %c0_i32, %c0_i32_0 : i32, i32
  }
  func.func @transform_2(%arg0: i32) -> (i32, i32) {
    %c0_i32 = arith.constant 0 : i32
    %c0_i32_0 = arith.constant 0 : i32
    %c0_i32_1 = arith.constant 0 : i32
    return %c0_i32, %c0_i32_0 : i32, i32
  }
  func.func @transform_3(%arg0: i32) -> (i32, i32) {
    %c0_i32 = arith.constant 0 : i32
    %c0_i32_0 = arith.constant 0 : i32
    %c0_i32_1 = arith.constant 0 : i32
    return %c0_i32, %c0_i32_0 : i32, i32
  }
  func.func @transform_4(%arg0: i32) -> (i32, i32) {
    %c0_i32 = arith.constant 0 : i32
    %c0_i32_0 = arith.constant 0 : i32
    %c0_i32_1 = arith.constant 0 : i32
    return %c0_i32, %c0_i32_0 : i32, i32
  }
  func.func @transform_5(%arg0: i32) -> (i32, i32, i32, i32) {
    %c0_i32 = arith.constant 0 : i32
    %c0_i32_0 = arith.constant 0 : i32
    %c0_i32_1 = arith.constant 0 : i32
    %c0_i32_2 = arith.constant 0 : i32
    return %arg0, %c0_i32, %c0_i32_0, %c0_i32_1 : i32, i32, i32, i32
  }
}

module attributes {stable_mosaic.version = 11 : i64} {
  func.func @_conv1_kernel(%arg0: i32, %arg1: i32, %arg2: memref<1x18x18x32xbf16, #tpu.memory_space<vmem>>, %arg3: memref<288x64xbf16, #tpu.memory_space<vmem>>, %arg4: memref<1x64xf32, #tpu.memory_space<vmem>>, %arg5: memref<1x1x64xf32, #tpu.memory_space<vmem>>, %arg6: memref<1x16x16x64xbf16, #tpu.memory_space<vmem>>) attributes {dimension_semantics = [#tpu.dimension_semantics<parallel>, #tpu.dimension_semantics<parallel>], iteration_bounds = array<i64: 2, 1>, scalar_prefetch = 0 : i64, scratch_operands = 0 : i64, tpu.core_type = #tpu.core_type<tc>, window_params = [{transform_indices = @transform_0, window_bounds = array<i64: 1, 18, 18, 32>}, {transform_indices = @transform_1, window_bounds = array<i64: 288, 64>}, {transform_indices = @transform_2, window_bounds = array<i64: 1, 64>}, {transform_indices = @transform_3, window_bounds = array<i64: 1, 1, 64>}, {transform_indices = @transform_4, window_bounds = array<i64: 1, 16, 16, 64>}]} {
    %c0 = arith.constant 0 : index
    %c0_0 = arith.constant 0 : index
    %c0_1 = arith.constant 0 : index
    %c0_2 = arith.constant 0 : index
    %0 = vector.load %arg2[%c0, %c0_0, %c0_1, %c0_2] : memref<1x18x18x32xbf16, #tpu.memory_space<vmem>>, vector<1x16x16x32xbf16>
    %1 = vector.shape_cast %0 : vector<1x16x16x32xbf16> to vector<16x16x32xbf16>
    %c0_3 = arith.constant 0 : index
    %c0_4 = arith.constant 0 : index
    %c1 = arith.constant 1 : index
    %c0_5 = arith.constant 0 : index
    %2 = vector.load %arg2[%c0_3, %c0_4, %c1, %c0_5] : memref<1x18x18x32xbf16, #tpu.memory_space<vmem>>, vector<1x16x16x32xbf16>
    %3 = vector.shape_cast %2 : vector<1x16x16x32xbf16> to vector<16x16x32xbf16>
    %c0_6 = arith.constant 0 : index
    %c0_7 = arith.constant 0 : index
    %c2 = arith.constant 2 : index
    %c0_8 = arith.constant 0 : index
    %4 = vector.load %arg2[%c0_6, %c0_7, %c2, %c0_8] : memref<1x18x18x32xbf16, #tpu.memory_space<vmem>>, vector<1x16x16x32xbf16>
    %5 = vector.shape_cast %4 : vector<1x16x16x32xbf16> to vector<16x16x32xbf16>
    %c0_9 = arith.constant 0 : index
    %c1_10 = arith.constant 1 : index
    %c0_11 = arith.constant 0 : index
    %c0_12 = arith.constant 0 : index
    %6 = vector.load %arg2[%c0_9, %c1_10, %c0_11, %c0_12] : memref<1x18x18x32xbf16, #tpu.memory_space<vmem>>, vector<1x16x16x32xbf16>
    %7 = vector.shape_cast %6 : vector<1x16x16x32xbf16> to vector<16x16x32xbf16>
    %c0_13 = arith.constant 0 : index
    %c1_14 = arith.constant 1 : index
    %c1_15 = arith.constant 1 : index
    %c0_16 = arith.constant 0 : index
    %8 = vector.load %arg2[%c0_13, %c1_14, %c1_15, %c0_16] : memref<1x18x18x32xbf16, #tpu.memory_space<vmem>>, vector<1x16x16x32xbf16>
    %9 = vector.shape_cast %8 : vector<1x16x16x32xbf16> to vector<16x16x32xbf16>
    %c0_17 = arith.constant 0 : index
    %c1_18 = arith.constant 1 : index
    %c2_19 = arith.constant 2 : index
    %c0_20 = arith.constant 0 : index
    %10 = vector.load %arg2[%c0_17, %c1_18, %c2_19, %c0_20] : memref<1x18x18x32xbf16, #tpu.memory_space<vmem>>, vector<1x16x16x32xbf16>
    %11 = vector.shape_cast %10 : vector<1x16x16x32xbf16> to vector<16x16x32xbf16>
    %c0_21 = arith.constant 0 : index
    %c2_22 = arith.constant 2 : index
    %c0_23 = arith.constant 0 : index
    %c0_24 = arith.constant 0 : index
    %12 = vector.load %arg2[%c0_21, %c2_22, %c0_23, %c0_24] : memref<1x18x18x32xbf16, #tpu.memory_space<vmem>>, vector<1x16x16x32xbf16>
    %13 = vector.shape_cast %12 : vector<1x16x16x32xbf16> to vector<16x16x32xbf16>
    %c0_25 = arith.constant 0 : index
    %c2_26 = arith.constant 2 : index
    %c1_27 = arith.constant 1 : index
    %c0_28 = arith.constant 0 : index
    %14 = vector.load %arg2[%c0_25, %c2_26, %c1_27, %c0_28] : memref<1x18x18x32xbf16, #tpu.memory_space<vmem>>, vector<1x16x16x32xbf16>
    %15 = vector.shape_cast %14 : vector<1x16x16x32xbf16> to vector<16x16x32xbf16>
    %c0_29 = arith.constant 0 : index
    %c2_30 = arith.constant 2 : index
    %c2_31 = arith.constant 2 : index
    %c0_32 = arith.constant 0 : index
    %16 = vector.load %arg2[%c0_29, %c2_30, %c2_31, %c0_32] : memref<1x18x18x32xbf16, #tpu.memory_space<vmem>>, vector<1x16x16x32xbf16>
    %17 = vector.shape_cast %16 : vector<1x16x16x32xbf16> to vector<16x16x32xbf16>
    %18 = tpu.concatenate %1, %3, %5, %7, %9, %11, %13, %15, %17 in 2 : vector<16x16x32xbf16>, vector<16x16x32xbf16>, vector<16x16x32xbf16>, vector<16x16x32xbf16>, vector<16x16x32xbf16>, vector<16x16x32xbf16>, vector<16x16x32xbf16>, vector<16x16x32xbf16>, vector<16x16x32xbf16> -> vector<16x16x288xbf16>
    %19 = vector.shape_cast %18 : vector<16x16x288xbf16> to vector<256x288xbf16>
    %c0_33 = arith.constant 0 : index
    %c0_34 = arith.constant 0 : index
    %20 = vector.load %arg3[%c0_33, %c0_34] : memref<288x64xbf16, #tpu.memory_space<vmem>>, vector<288x64xbf16>
    %cst = arith.constant dense<0.000000e+00> : vector<256x64xf32>
    %21 = tpu.matmul %19, %20, %cst {dimension_numbers = #tpu.dot_dimension_numbers<[1], [0], [0], [1], [0, 0, 1, 1], [], []>} : vector<256x288xbf16>, vector<288x64xbf16>, vector<256x64xf32> -> vector<256x64xf32>
    %c0_35 = arith.constant 0 : index
    %c0_36 = arith.constant 0 : index
    %22 = vector.load %arg4[%c0_35, %c0_36] : memref<1x64xf32, #tpu.memory_space<vmem>>, vector<1x64xf32>
    %23 = vector.broadcast %22 : vector<1x64xf32> to vector<256x64xf32>
    %24 = arith.addf %21, %23 : vector<256x64xf32>
    %c0_37 = arith.constant 0 : index
    %c0_38 = arith.constant 0 : index
    %c0_39 = arith.constant 0 : index
    %25 = vector.load %arg5[%c0_37, %c0_38, %c0_39] : memref<1x1x64xf32, #tpu.memory_space<vmem>>, vector<1x1x64xf32>
    %26 = vector.shape_cast %25 : vector<1x1x64xf32> to vector<1x64xf32>
    %27 = vector.broadcast %26 : vector<1x64xf32> to vector<256x64xf32>
    %28 = arith.addf %24, %27 : vector<256x64xf32>
    %29 = vector.shape_cast %28 : vector<256x64xf32> to vector<16x16x64xf32>
    %30 = arith.truncf %29 : vector<16x16x64xf32> to vector<16x16x64xbf16>
    %c0_40 = arith.constant 0 : index
    %c0_41 = arith.constant 0 : index
    %c0_42 = arith.constant 0 : index
    %c0_43 = arith.constant 0 : index
    %31 = vector.load %arg6[%c0_40, %c0_41, %c0_42, %c0_43] : memref<1x16x16x64xbf16, #tpu.memory_space<vmem>>, vector<1x16x16x64xbf16>
    %32 = vector.shape_cast %31 : vector<1x16x16x64xbf16> to vector<16x16x64xbf16>
    %33 = vector.shape_cast %30 : vector<16x16x64xbf16> to vector<1x16x16x64xbf16>
    tpu.vector_store %arg6[%c0_40, %c0_41, %c0_42, %c0_43], %33 {strides = array<i32>} : memref<1x16x16x64xbf16, #tpu.memory_space<vmem>>, vector<1x16x16x64xbf16>,
    return
  }
  func.func @transform_0(%arg0: i32, %arg1: i32) -> (i32, i32, i32, i32) {
    %c0_i32 = arith.constant 0 : i32
    %c0_i32_0 = arith.constant 0 : i32
    %c0_i32_1 = arith.constant 0 : i32
    %c0_i32_2 = arith.constant 0 : i32
    return %arg0, %c0_i32, %c0_i32_0, %c0_i32_1 : i32, i32, i32, i32
  }
  func.func @transform_1(%arg0: i32, %arg1: i32) -> (i32, i32) {
    %c0_i32 = arith.constant 0 : i32
    %c0_i32_0 = arith.constant 0 : i32
    return %c0_i32, %arg1 : i32, i32
  }
  func.func @transform_2(%arg0: i32, %arg1: i32) -> (i32, i32) {
    %c0_i32 = arith.constant 0 : i32
    %c0_i32_0 = arith.constant 0 : i32
    return %c0_i32, %arg1 : i32, i32
  }
  func.func @transform_3(%arg0: i32, %arg1: i32) -> (i32, i32, i32) {
    %c0_i32 = arith.constant 0 : i32
    %c0_i32_0 = arith.constant 0 : i32
    return %arg0, %c0_i32, %arg1 : i32, i32, i32
  }
  func.func @transform_4(%arg0: i32, %arg1: i32) -> (i32, i32, i32, i32) {
    %c0_i32 = arith.constant 0 : i32
    %c0_i32_0 = arith.constant 0 : i32
    %c0_i32_1 = arith.constant 0 : i32
    return %arg0, %c0_i32, %c0_i32_0, %arg1 : i32, i32, i32, i32
  }
}

module attributes {stable_mosaic.version = 11 : i64} {
  func.func @_gn_silu_pad_kernel(%arg0: i32, %arg1: memref<1x16x16x64xbf16, #tpu.memory_space<vmem>>, %arg2: memref<64x32xf32, #tpu.memory_space<vmem>>, %arg3: memref<32x64xf32, #tpu.memory_space<vmem>>, %arg4: memref<1x64xf32, #tpu.memory_space<vmem>>, %arg5: memref<1x64xf32, #tpu.memory_space<vmem>>, %arg6: memref<1x18x18x64xbf16, #tpu.memory_space<vmem>>) attributes {dimension_semantics = [#tpu.dimension_semantics<parallel>], iteration_bounds = array<i64: 2>, scalar_prefetch = 0 : i64, scratch_operands = 0 : i64, tpu.core_type = #tpu.core_type<tc>, window_params = [{transform_indices = @transform_0, window_bounds = array<i64: 1, 16, 16, 64>}, {pipeline_mode = #tpu.pipeline_mode<synchronous>, transform_indices = @transform_1, window_bounds = array<i64: 64, 32>}, {pipeline_mode = #tpu.pipeline_mode<synchronous>, transform_indices = @transform_2, window_bounds = array<i64: 32, 64>}, {pipeline_mode = #tpu.pipeline_mode<synchronous>, transform_indices = @transform_3, window_bounds = array<i64: 1, 64>}, {pipeline_mode = #tpu.pipeline_mode<synchronous>, transform_indices = @transform_4, window_bounds = array<i64: 1, 64>}, {transform_indices = @transform_5, window_bounds = array<i64: 1, 18, 18, 64>}]} {
    %c0 = arith.constant 0 : index
    %c0_0 = arith.constant 0 : index
    %c0_1 = arith.constant 0 : index
    %c0_2 = arith.constant 0 : index
    %0 = vector.load %arg1[%c0, %c0_0, %c0_1, %c0_2] : memref<1x16x16x64xbf16, #tpu.memory_space<vmem>>, vector<1x16x16x64xbf16>
    %1 = vector.shape_cast %0 : vector<1x16x16x64xbf16> to vector<16x16x64xbf16>
    %2 = arith.extf %1 : vector<16x16x64xbf16> to vector<16x16x64xf32>
    %cst = arith.constant dense<0.000000e+00> : vector<64xf32>
    %3 = vector.multi_reduction <add>, %2, %cst [0, 1] : vector<16x16x64xf32> to vector<64xf32>
    %4 = vector.shape_cast %3 : vector<64xf32> to vector<1x64xf32>
    %c0_3 = arith.constant 0 : index
    %c0_4 = arith.constant 0 : index
    %5 = vector.load %arg2[%c0_3, %c0_4] : memref<64x32xf32, #tpu.memory_space<vmem>>, vector<64x32xf32>
    %cst_5 = arith.constant dense<0.000000e+00> : vector<1x32xf32>
    %6 = tpu.matmul %4, %5, %cst_5 {dimension_numbers = #tpu.dot_dimension_numbers<[1], [0], [0], [1], [0, 0, 1, 1], [], []>} : vector<1x64xf32>, vector<64x32xf32>, vector<1x32xf32> -> vector<1x32xf32>
    %c0_6 = arith.constant 0 : index
    %c0_7 = arith.constant 0 : index
    %7 = vector.load %arg3[%c0_6, %c0_7] : memref<32x64xf32, #tpu.memory_space<vmem>>, vector<32x64xf32>
    %cst_8 = arith.constant dense<0.000000e+00> : vector<1x64xf32>
    %8 = tpu.matmul %6, %7, %cst_8 {dimension_numbers = #tpu.dot_dimension_numbers<[1], [0], [0], [1], [0, 0, 1, 1], [], []>} : vector<1x32xf32>, vector<32x64xf32>, vector<1x64xf32> -> vector<1x64xf32>
    %9 = vector.shape_cast %8 : vector<1x64xf32> to vector<1x1x64xf32>
    %10 = vector.broadcast %9 : vector<1x1x64xf32> to vector<16x16x64xf32>
    %11 = arith.subf %2, %10 : vector<16x16x64xf32>
    %12 = arith.mulf %11, %11 : vector<16x16x64xf32>
    %cst_9 = arith.constant dense<0.000000e+00> : vector<64xf32>
    %13 = vector.multi_reduction <add>, %12, %cst_9 [0, 1] : vector<16x16x64xf32> to vector<64xf32>
    %14 = vector.shape_cast %13 : vector<64xf32> to vector<1x64xf32>
    %c0_10 = arith.constant 0 : index
    %c0_11 = arith.constant 0 : index
    %15 = vector.load %arg2[%c0_10, %c0_11] : memref<64x32xf32, #tpu.memory_space<vmem>>, vector<64x32xf32>
    %cst_12 = arith.constant dense<0.000000e+00> : vector<1x32xf32>
    %16 = tpu.matmul %14, %15, %cst_12 {dimension_numbers = #tpu.dot_dimension_numbers<[1], [0], [0], [1], [0, 0, 1, 1], [], []>} : vector<1x64xf32>, vector<64x32xf32>, vector<1x32xf32> -> vector<1x32xf32>
    %c0_13 = arith.constant 0 : index
    %c0_14 = arith.constant 0 : index
    %17 = vector.load %arg3[%c0_13, %c0_14] : memref<32x64xf32, #tpu.memory_space<vmem>>, vector<32x64xf32>
    %cst_15 = arith.constant dense<0.000000e+00> : vector<1x64xf32>
    %18 = tpu.matmul %16, %17, %cst_15 {dimension_numbers = #tpu.dot_dimension_numbers<[1], [0], [0], [1], [0, 0, 1, 1], [], []>} : vector<1x32xf32>, vector<32x64xf32>, vector<1x64xf32> -> vector<1x64xf32>
    %cst_16 = arith.constant 9.99999997E-7 : f32
    %19 = vector.broadcast %cst_16 : f32 to vector<1x64xf32>
    %20 = arith.addf %18, %19 : vector<1x64xf32>
    %21 = math.rsqrt %20 : vector<1x64xf32>
    %c0_17 = arith.constant 0 : index
    %c0_18 = arith.constant 0 : index
    %22 = vector.load %arg4[%c0_17, %c0_18] : memref<1x64xf32, #tpu.memory_space<vmem>>, vector<1x64xf32>
    %23 = arith.mulf %21, %22 : vector<1x64xf32>
    %24 = vector.shape_cast %23 : vector<1x64xf32> to vector<1x1x64xf32>
    %25 = vector.broadcast %24 : vector<1x1x64xf32> to vector<16x16x64xf32>
    %26 = arith.mulf %11, %25 : vector<16x16x64xf32>
    %c0_19 = arith.constant 0 : index
    %c0_20 = arith.constant 0 : index
    %27 = vector.load %arg5[%c0_19, %c0_20] : memref<1x64xf32, #tpu.memory_space<vmem>>, vector<1x64xf32>
    %28 = vector.shape_cast %27 : vector<1x64xf32> to vector<1x1x64xf32>
    %29 = vector.broadcast %28 : vector<1x1x64xf32> to vector<16x16x64xf32>
    %30 = arith.addf %26, %29 : vector<16x16x64xf32>
    %31 = arith.negf %30 : vector<16x16x64xf32>
    %32 = math.exp %31 : vector<16x16x64xf32>
    %cst_21 = arith.constant 1.000000e+00 : f32
    %33 = vector.broadcast %cst_21 : f32 to vector<16x16x64xf32>
    %34 = arith.addf %33, %32 : vector<16x16x64xf32>
    %35 = arith.divf %33, %34 : vector<16x16x64xf32>
    %36 = arith.mulf %30, %35 : vector<16x16x64xf32>
    %37 = arith.truncf %36 : vector<16x16x64xf32> to vector<16x16x64xbf16>
    %c0_22 = arith.constant 0 : index
    %c1 = arith.constant 1 : index
    %c1_23 = arith.constant 1 : index
    %c0_24 = arith.constant 0 : index
    %38 = vector.load %arg6[%c0_22, %c1, %c1_23, %c0_24] : memref<1x18x18x64xbf16, #tpu.memory_space<vmem>>, vector<1x16x16x64xbf16>
    %39 = vector.shape_cast %38 : vector<1x16x16x64xbf16> to vector<16x16x64xbf16>
    %40 = vector.shape_cast %37 : vector<16x16x64xbf16> to vector<1x16x16x64xbf16>
    tpu.vector_store %arg6[%c0_22, %c1, %c1_23, %c0_24], %40 {strides = array<i32>} : memref<1x18x18x64xbf16, #tpu.memory_space<vmem>>, vector<1x16x16x64xbf16>,
    %cst_25 = arith.constant 0.000000e+00 : bf16
    %41 = vector.broadcast %cst_25 : bf16 to vector<1x18x64xbf16>
    %cst_26 = arith.constant 0.000000e+00 : bf16
    %42 = vector.broadcast %cst_26 : bf16 to vector<16x1x64xbf16>
    %c0_27 = arith.constant 0 : index
    %c0_28 = arith.constant 0 : index
    %c0_29 = arith.constant 0 : index
    %c0_30 = arith.constant 0 : index
    %43 = vector.load %arg6[%c0_27, %c0_28, %c0_29, %c0_30] : memref<1x18x18x64xbf16, #tpu.memory_space<vmem>>, vector<1x1x18x64xbf16>
    %44 = vector.shape_cast %43 : vector<1x1x18x64xbf16> to vector<1x18x64xbf16>
    %45 = vector.shape_cast %41 : vector<1x18x64xbf16> to vector<1x1x18x64xbf16>
    tpu.vector_store %arg6[%c0_27, %c0_28, %c0_29, %c0_30], %45 {strides = array<i32>} : memref<1x18x18x64xbf16, #tpu.memory_space<vmem>>, vector<1x1x18x64xbf16>,
    %c0_31 = arith.constant 0 : index
    %c17 = arith.constant 17 : index
    %c0_32 = arith.constant 0 : index
    %c0_33 = arith.constant 0 : index
    %46 = vector.load %arg6[%c0_31, %c17, %c0_32, %c0_33] : memref<1x18x18x64xbf16, #tpu.memory_space<vmem>>, vector<1x1x18x64xbf16>
    %47 = vector.shape_cast %46 : vector<1x1x18x64xbf16> to vector<1x18x64xbf16>
    %48 = vector.shape_cast %41 : vector<1x18x64xbf16> to vector<1x1x18x64xbf16>
    tpu.vector_store %arg6[%c0_31, %c17, %c0_32, %c0_33], %48 {strides = array<i32>} : memref<1x18x18x64xbf16, #tpu.memory_space<vmem>>, vector<1x1x18x64xbf16>,
    %c0_34 = arith.constant 0 : index
    %c1_35 = arith.constant 1 : index
    %c0_36 = arith.constant 0 : index
    %c0_37 = arith.constant 0 : index
    %49 = vector.load %arg6[%c0_34, %c1_35, %c0_36, %c0_37] : memref<1x18x18x64xbf16, #tpu.memory_space<vmem>>, vector<1x16x1x64xbf16>
    %50 = vector.shape_cast %49 : vector<1x16x1x64xbf16> to vector<16x1x64xbf16>
    %51 = vector.shape_cast %42 : vector<16x1x64xbf16> to vector<1x16x1x64xbf16>
    tpu.vector_store %arg6[%c0_34, %c1_35, %c0_36, %c0_37], %51 {strides = array<i32>} : memref<1x18x18x64xbf16, #tpu.memory_space<vmem>>, vector<1x16x1x64xbf16>,
    %c0_38 = arith.constant 0 : index
    %c1_39 = arith.constant 1 : index
    %c17_40 = arith.constant 17 : index
    %c0_41 = arith.constant 0 : index
    %52 = vector.load %arg6[%c0_38, %c1_39, %c17_40, %c0_41] : memref<1x18x18x64xbf16, #tpu.memory_space<vmem>>, vector<1x16x1x64xbf16>
    %53 = vector.shape_cast %52 : vector<1x16x1x64xbf16> to vector<16x1x64xbf16>
    %54 = vector.shape_cast %42 : vector<16x1x64xbf16> to vector<1x16x1x64xbf16>
    tpu.vector_store %arg6[%c0_38, %c1_39, %c17_40, %c0_41], %54 {strides = array<i32>} : memref<1x18x18x64xbf16, #tpu.memory_space<vmem>>, vector<1x16x1x64xbf16>,
    return
  }
  func.func @transform_0(%arg0: i32) -> (i32, i32, i32, i32) {
    %c0_i32 = arith.constant 0 : i32
    %c0_i32_0 = arith.constant 0 : i32
    %c0_i32_1 = arith.constant 0 : i32
    %c0_i32_2 = arith.constant 0 : i32
    return %arg0, %c0_i32, %c0_i32_0, %c0_i32_1 : i32, i32, i32, i32
  }
  func.func @transform_1(%arg0: i32) -> (i32, i32) {
    %c0_i32 = arith.constant 0 : i32
    %c0_i32_0 = arith.constant 0 : i32
    %c0_i32_1 = arith.constant 0 : i32
    return %c0_i32, %c0_i32_0 : i32, i32
  }
  func.func @transform_2(%arg0: i32) -> (i32, i32) {
    %c0_i32 = arith.constant 0 : i32
    %c0_i32_0 = arith.constant 0 : i32
    %c0_i32_1 = arith.constant 0 : i32
    return %c0_i32, %c0_i32_0 : i32, i32
  }
  func.func @transform_3(%arg0: i32) -> (i32, i32) {
    %c0_i32 = arith.constant 0 : i32
    %c0_i32_0 = arith.constant 0 : i32
    %c0_i32_1 = arith.constant 0 : i32
    return %c0_i32, %c0_i32_0 : i32, i32
  }
  func.func @transform_4(%arg0: i32) -> (i32, i32) {
    %c0_i32 = arith.constant 0 : i32
    %c0_i32_0 = arith.constant 0 : i32
    %c0_i32_1 = arith.constant 0 : i32
    return %c0_i32, %c0_i32_0 : i32, i32
  }
  func.func @transform_5(%arg0: i32) -> (i32, i32, i32, i32) {
    %c0_i32 = arith.constant 0 : i32
    %c0_i32_0 = arith.constant 0 : i32
    %c0_i32_1 = arith.constant 0 : i32
    %c0_i32_2 = arith.constant 0 : i32
    return %arg0, %c0_i32, %c0_i32_0, %c0_i32_1 : i32, i32, i32, i32
  }
}

module attributes {stable_mosaic.version = 11 : i64} {
  func.func @_conv3x3_s2_kernel(%arg0: i32, %arg1: i32, %arg2: memref<1x36x9x64xbf16, #tpu.memory_space<vmem>>, %arg3: memref<576x64xbf16, #tpu.memory_space<vmem>>, %arg4: memref<1x64xf32, #tpu.memory_space<vmem>>, %arg5: memref<1x8x8x64xbf16, #tpu.memory_space<vmem>>) attributes {dimension_semantics = [#tpu.dimension_semantics<parallel>, #tpu.dimension_semantics<parallel>], iteration_bounds = array<i64: 2, 1>, scalar_prefetch = 0 : i64, scratch_operands = 0 : i64, tpu.core_type = #tpu.core_type<tc>, window_params = [{transform_indices = @transform_0, window_bounds = array<i64: 1, 36, 9, 64>}, {transform_indices = @transform_1, window_bounds = array<i64: 576, 64>}, {transform_indices = @transform_2, window_bounds = array<i64: 1, 64>}, {transform_indices = @transform_3, window_bounds = array<i64: 1, 8, 8, 64>}]} {
    %c0 = arith.constant 0 : index
    %c0_0 = arith.constant 0 : index
    %c0_1 = arith.constant 0 : index
    %c0_2 = arith.constant 0 : index
    %0 = vector.load %arg2[%c0, %c0_0, %c0_1, %c0_2] : memref<1x36x9x64xbf16, #tpu.memory_space<vmem>>, vector<1x8x8x64xbf16>
    %1 = vector.shape_cast %0 : vector<1x8x8x64xbf16> to vector<8x8x64xbf16>
    %c0_3 = arith.constant 0 : index
    %c9 = arith.constant 9 : index
    %c0_4 = arith.constant 0 : index
    %c0_5 = arith.constant 0 : index
    %2 = vector.load %arg2[%c0_3, %c9, %c0_4, %c0_5] : memref<1x36x9x64xbf16, #tpu.memory_space<vmem>>, vector<1x8x8x64xbf16>
    %3 = vector.shape_cast %2 : vector<1x8x8x64xbf16> to vector<8x8x64xbf16>
    %c0_6 = arith.constant 0 : index
    %c0_7 = arith.constant 0 : index
    %c1 = arith.constant 1 : index
    %c0_8 = arith.constant 0 : index
    %4 = vector.load %arg2[%c0_6, %c0_7, %c1, %c0_8] : memref<1x36x9x64xbf16, #tpu.memory_space<vmem>>, vector<1x8x8x64xbf16>
    %5 = vector.shape_cast %4 : vector<1x8x8x64xbf16> to vector<8x8x64xbf16>
    %c0_9 = arith.constant 0 : index
    %c18 = arith.constant 18 : index
    %c0_10 = arith.constant 0 : index
    %c0_11 = arith.constant 0 : index
    %6 = vector.load %arg2[%c0_9, %c18, %c0_10, %c0_11] : memref<1x36x9x64xbf16, #tpu.memory_space<vmem>>, vector<1x8x8x64xbf16>
    %7 = vector.shape_cast %6 : vector<1x8x8x64xbf16> to vector<8x8x64xbf16>
    %c0_12 = arith.constant 0 : index
    %c27 = arith.constant 27 : index
    %c0_13 = arith.constant 0 : index
    %c0_14 = arith.constant 0 : index
    %8 = vector.load %arg2[%c0_12, %c27, %c0_13, %c0_14] : memref<1x36x9x64xbf16, #tpu.memory_space<vmem>>, vector<1x8x8x64xbf16>
    %9 = vector.shape_cast %8 : vector<1x8x8x64xbf16> to vector<8x8x64xbf16>
    %c0_15 = arith.constant 0 : index
    %c18_16 = arith.constant 18 : index
    %c1_17 = arith.constant 1 : index
    %c0_18 = arith.constant 0 : index
    %10 = vector.load %arg2[%c0_15, %c18_16, %c1_17, %c0_18] : memref<1x36x9x64xbf16, #tpu.memory_space<vmem>>, vector<1x8x8x64xbf16>
    %11 = vector.shape_cast %10 : vector<1x8x8x64xbf16> to vector<8x8x64xbf16>
    %c0_19 = arith.constant 0 : index
    %c1_20 = arith.constant 1 : index
    %c0_21 = arith.constant 0 : index
    %c0_22 = arith.constant 0 : index
    %12 = vector.load %arg2[%c0_19, %c1_20, %c0_21, %c0_22] : memref<1x36x9x64xbf16, #tpu.memory_space<vmem>>, vector<1x8x8x64xbf16>
    %13 = vector.shape_cast %12 : vector<1x8x8x64xbf16> to vector<8x8x64xbf16>
    %c0_23 = arith.constant 0 : index
    %c10 = arith.constant 10 : index
    %c0_24 = arith.constant 0 : index
    %c0_25 = arith.constant 0 : index
    %14 = vector.load %arg2[%c0_23, %c10, %c0_24, %c0_25] : memref<1x36x9x64xbf16, #tpu.memory_space<vmem>>, vector<1x8x8x64xbf16>
    %15 = vector.shape_cast %14 : vector<1x8x8x64xbf16> to vector<8x8x64xbf16>
    %c0_26 = arith.constant 0 : index
    %c1_27 = arith.constant 1 : index
    %c1_28 = arith.constant 1 : index
    %c0_29 = arith.constant 0 : index
    %16 = vector.load %arg2[%c0_26, %c1_27, %c1_28, %c0_29] : memref<1x36x9x64xbf16, #tpu.memory_space<vmem>>, vector<1x8x8x64xbf16>
    %17 = vector.shape_cast %16 : vector<1x8x8x64xbf16> to vector<8x8x64xbf16>
    %18 = tpu.concatenate %1, %3, %5, %7, %9, %11, %13, %15, %17 in 2 : vector<8x8x64xbf16>, vector<8x8x64xbf16>, vector<8x8x64xbf16>, vector<8x8x64xbf16>, vector<8x8x64xbf16>, vector<8x8x64xbf16>, vector<8x8x64xbf16>, vector<8x8x64xbf16>, vector<8x8x64xbf16> -> vector<8x8x576xbf16>
    %19 = vector.shape_cast %18 : vector<8x8x576xbf16> to vector<64x576xbf16>
    %c0_30 = arith.constant 0 : index
    %c0_31 = arith.constant 0 : index
    %20 = vector.load %arg3[%c0_30, %c0_31] : memref<576x64xbf16, #tpu.memory_space<vmem>>, vector<576x64xbf16>
    %cst = arith.constant dense<0.000000e+00> : vector<64x64xf32>
    %21 = tpu.matmul %19, %20, %cst {dimension_numbers = #tpu.dot_dimension_numbers<[1], [0], [0], [1], [0, 0, 1, 1], [], []>} : vector<64x576xbf16>, vector<576x64xbf16>, vector<64x64xf32> -> vector<64x64xf32>
    %c0_32 = arith.constant 0 : index
    %c0_33 = arith.constant 0 : index
    %22 = vector.load %arg4[%c0_32, %c0_33] : memref<1x64xf32, #tpu.memory_space<vmem>>, vector<1x64xf32>
    %23 = vector.broadcast %22 : vector<1x64xf32> to vector<64x64xf32>
    %24 = arith.addf %21, %23 : vector<64x64xf32>
    %25 = vector.shape_cast %24 : vector<64x64xf32> to vector<8x8x64xf32>
    %26 = arith.truncf %25 : vector<8x8x64xf32> to vector<8x8x64xbf16>
    %c0_34 = arith.constant 0 : index
    %c0_35 = arith.constant 0 : index
    %c0_36 = arith.constant 0 : index
    %c0_37 = arith.constant 0 : index
    %27 = vector.load %arg5[%c0_34, %c0_35, %c0_36, %c0_37] : memref<1x8x8x64xbf16, #tpu.memory_space<vmem>>, vector<1x8x8x64xbf16>
    %28 = vector.shape_cast %27 : vector<1x8x8x64xbf16> to vector<8x8x64xbf16>
    %29 = vector.shape_cast %26 : vector<8x8x64xbf16> to vector<1x8x8x64xbf16>
    tpu.vector_store %arg5[%c0_34, %c0_35, %c0_36, %c0_37], %29 {strides = array<i32>} : memref<1x8x8x64xbf16, #tpu.memory_space<vmem>>, vector<1x8x8x64xbf16>,
    return
  }
  func.func @transform_0(%arg0: i32, %arg1: i32) -> (i32, i32, i32, i32) {
    %c0_i32 = arith.constant 0 : i32
    %c0_i32_0 = arith.constant 0 : i32
    %c0_i32_1 = arith.constant 0 : i32
    %c0_i32_2 = arith.constant 0 : i32
    return %arg0, %c0_i32, %c0_i32_0, %c0_i32_1 : i32, i32, i32, i32
  }
  func.func @transform_1(%arg0: i32, %arg1: i32) -> (i32, i32) {
    %c0_i32 = arith.constant 0 : i32
    %c0_i32_0 = arith.constant 0 : i32
    return %c0_i32, %arg1 : i32, i32
  }
  func.func @transform_2(%arg0: i32, %arg1: i32) -> (i32, i32) {
    %c0_i32 = arith.constant 0 : i32
    %c0_i32_0 = arith.constant 0 : i32
    return %c0_i32, %arg1 : i32, i32
  }
  func.func @transform_3(%arg0: i32, %arg1: i32) -> (i32, i32, i32, i32) {
    %c0_i32 = arith.constant 0 : i32
    %c0_i32_0 = arith.constant 0 : i32
    %c0_i32_1 = arith.constant 0 : i32
    return %arg0, %c0_i32, %c0_i32_0, %arg1 : i32, i32, i32, i32
  }
}

</mosaic_0001>

<bundles_post_ra>
// kernel: down_block_3d.7
= control target key start
LH: loop header
LB: loop body
LE: loop exit
PB: predicated region body
PF: predicated region fallthrough
CT: control target
= control target key end

     0   :  { %s2449_s18 = smov 0   ;;  %s3907_s0 = inlined_call_operand.vmem [shape: bf16[2,16,16,64], index: 0, kind: input, shape index: {}]   ;;  %s3908_s1 = inlined_call_operand.vmem [shape: f32[64,32], index: 1, kind: input, shape index: {}]   ;;  %s3909_s2 = inlined_call_operand.vmem [shape: f32[32,64], index: 2, kind: input, shape index: {}]   ;;  %s3910_s3 = inlined_call_operand.vmem [shape: f32[1,64], index: 3, kind: input, shape index: {}]   ;;  %s3911_s4 = inlined_call_operand.vmem [shape: f32[1,64], index: 4, kind: input, shape index: {}]   ;;  %s3912_s5 = inlined_call_operand.vmem [shape: bf16[2,18,18,64], index: 5, kind: output, shape index: {}]  }
   0x1 LB: > { %s1802_s19 = sadd.s32 4294967295, %s2413_s18   ;;  %p1806_p0 = scmp.ge.s32.totalorder %s2413_s18, 1  ;;  %s2413_s18 = sphi %s2449_s18, %s15_s18  }
   0x2   : > { %p187_p1 = scmp.lt.s32.totalorder %s2413_s18, 3 }
   0x4   : > { %p188_p2 = pnand %p1806_p0, %p187_p1 }
   0x6   : > { %191 = sbr.rel (%p188_p2) target bundleno = 1203 (0x4b3), region = 40 }
   0xd   : > { %v360_v0 = vld [vmem:[%s3908_s1] sm:$0xff]  ;;  %v361_v1 = vld [vmem:[%s3908_s1 + $0x8] sm:$0xff]  ;;  %v362_v2 = vld [vmem:[%s3908_s1 + $0x10] sm:$0xff]  ;;  %v2415_v3 = vmov 0.0|0.0   ;;  %vm2416_vm0 = vmmov 0   ;;  %v2417_v6 = vmov 0.0  }
   0xe   : > { %2228 = vmatprep.subr.bf16.mxu0 %v2415_v3  ;;  %v2467_v4 = vpack.c.bf16 %v361_v1, %v360_v0  ;;  %v363_v5 = vld [vmem:[%s3908_s1 + $0x18] sm:$0xff]  ;;  %2184 = vmatprep.mubr.msk.f32.mxu0 %vm2416_vm0, %v2417_v6  ;;  %p215_p3 = scmp.lt.s32.totalorder %s1802_s19, 1  ;;  %v441_v7 = vld [vmem:[%s3909_s2] sm:$0xff]  ;;  %v442_v9 = vld [vmem:[%s3909_s2 + $0x8] sm:$0xff]  ;;  %vm290_vm1 = vcmask 523264   ;;  %vm445_vm2 = vcmask 261120  }
   0xf   : > { %2240 = vmatprep.subr.bf16.mxu1 %v2415_v3  ;;  %2195 = vmatprep.mubr.msk.f32.mxu1 %vm2416_vm0, %v2417_v6  ;;  %v2481_v8 = vpack.c.bf16 %v363_v5, %v362_v2  ;;  %v443_v10 = vld [vmem:[%s3909_s2 + $0x10] sm:$0xff]  ;;  %v444_v11 = vld [vmem:[%s3909_s2 + $0x18] sm:$0xff]  ;;  %v364_v12 = vld [vmem:[%s3908_s1 + $0x20] sm:$0xff]  ;;  %v2501_v14 = vpack.c.bf16 %v442_v9, %v441_v7  ;;  %vm1524_vm3 = vcmask 519168   ;;  %vm1532_vm4 = vcmask 516096  }
  0x10   : > { %2230 = vmatpush3.bf16.msra.mxu0 %v2467_v4  ;;  %s3968_s19 = smov (!%p215_p3, %s1802_s19), 1  ;;  %v365_v13 = vld [vmem:[%s3908_s1 + $0x28] sm:$0xff]  ;;  %v2510_v15 = vpack.c.bf16 %v444_v11, %v443_v10  ;;  %v366_v17 = vld [vmem:[%s3908_s1 + $0x30] sm:$0xff]  ;;  %v367_v18 = vld [vmem:[%s3908_s1 + $0x38] sm:$0xff]  ;;  %vm1200_vm5 = vsmask.f32 256 }
  0x11   : > { %2231 = vmatprep.subr.bf16.mxu0 %v2415_v3  ;;  %s2028_s15 = sshll.u32 %s3968_s19, 7  ;;  %2242 = vmatpush3.bf16.msra.mxu1 %v2501_v14  ;;  %v2513_v16 = vpack.c.bf16 %v365_v13, %v364_v12  ;;  %v2531_v21 = vpack.c.bf16 %v367_v18, %v366_v17  ;;  %s2264_s29 = smul.u32 216, %s3968_s19  ;;  %vm1201_vm6 = vsmask.f32 4368  ;;  %vm1525_vm8 = vsmask.f32 7938  ;;  %vm3575_vm10 = vmand %vm1532_vm4, %vm1200_vm5 }
  0x12   : > { %s2507_s20 = scalar_lea.vmem %s3907_s0, %s2028_s15  ;;  %2243 = vmatprep.subr.bf16.mxu1 %v2415_v3  ;;  %vm3293_vm7 = vmor %vm1200_vm5, %vm1201_vm6 }
  0x13   : > { %v2524_v19 = vld [vmem:[%s2507_s20] sm:$0xff]   ;;  %v2527_v20 = vld [vmem:[%s2507_s20 + $0x8] sm:$0xff]   ;;  %v2539_v25 = vld [vmem:[%s2507_s20 + $0x10] sm:$0xff]   ;;  %s3116_s6 = scalar_lea.vmem %s3912_s5, %s2264_s29 }
  0x14   : > { %2233 = vmatpush3.bf16.msra.mxu0 %v2481_v8  ;;  %v2063_v22 = vunpack.c.l.bf16 %v2524_v19  ;;  %v2064_v23 = vunpack.c.h.bf16 %v2524_v19  ;;  %v2067_v24 = vunpack.c.l.bf16 %v2527_v20  ;;  %v2068_v26 = vunpack.c.h.bf16 %v2527_v20  ;;  %v2555_v31 = vld [vmem:[%s2507_s20 + $0x18] sm:$0xff]   ;;  %v2566_v38 = vld [vmem:[%s2507_s20 + $0x20] sm:$0xff]   ;;  %v2577_v45 = vld [vmem:[%s2507_s20 + $0x28] sm:$0xff]  }
  0x15   : > { %2234 = vmatprep.subr.bf16.mxu0 %v2415_v3  ;;  %2245 = vmatpush3.bf16.msra.mxu1 %v2510_v15  ;;  %v2071_v27 = vunpack.c.l.bf16 %v2539_v25  ;;  %v2072_v33 = vunpack.c.h.bf16 %v2539_v25  ;;  %v2075_v36 = vunpack.c.l.bf16 %v2555_v31  ;;  %v2076_v40 = vunpack.c.h.bf16 %v2555_v31  ;;  %v2588_v52 = vld [vmem:[%s2507_s20 + $0x30] sm:$0xff]   ;;  %v2599_v59 = vld [vmem:[%s2507_s20 + $0x38] sm:$0xff]   ;;  %v2610_v2 = vld [vmem:[%s2507_s20 + $0x40] sm:$0xff]  }
  0x16   : > { %2246 = vmatprep.subr.bf16.mxu1 %v2415_v3  ;;  %v291_v28 = vsel %vm290_vm1, %v2063_v22, 0.0  ;;  %v292_v29 = vsel %vm290_vm1, %v2064_v23, 0.0  ;;  %v294_v30 = vsel %vm290_vm1, %v2067_v24, 0.0  ;;  %v296_v34 = vsel %vm290_vm1, %v2068_v26, 0.0  ;;  %v2621_v13 = vld [vmem:[%s2507_s20 + $0x48] sm:$0xff]   ;;  %vm3562_vm9 = vmand %vm1524_vm3, %vm1525_vm8 }
  0x17   : > { %v293_v32 = vadd.f32 %v292_v29, %v291_v28  ;;  %v298_v37 = vsel %vm290_vm1, %v2071_v27, 0.0  ;;  %v300_v41 = vsel %vm290_vm1, %v2072_v33, 0.0  ;;  %v2079_v43 = vunpack.c.l.bf16 %v2566_v38  ;;  %vm3736_vm11 = vmand %vm1532_vm4, %vm1525_vm8 }
  0x18   : > { %2236 = vmatpush3.bf16.msra.mxu0 %v2513_v16  ;;  %v302_v44 = vsel %vm290_vm1, %v2075_v36, 0.0  ;;  %v2080_v47 = vunpack.c.h.bf16 %v2566_v38  ;;  %v304_v48 = vsel %vm290_vm1, %v2076_v40, 0.0  ;;  %v2083_v50 = vunpack.c.l.bf16 %v2577_v45 }
  0x19   : > { %2237 = vmatprep.subr.bf16.mxu0 %v2415_v3  ;;  %v295_v35 = vadd.f32 %v294_v30, %v293_v32  ;;  %v306_v51 = vsel %vm290_vm1, %v2079_v43, 0.0  ;;  %v2084_v54 = vunpack.c.h.bf16 %v2577_v45  ;;  %v2087_v57 = vunpack.c.l.bf16 %v2588_v52 }
  0x1a   : > { %v308_v55 = vsel %vm290_vm1, %v2080_v47, 0.0  ;;  %v310_v58 = vsel %vm290_vm1, %v2083_v50, 0.0  ;;  %v2088_v61 = vunpack.c.h.bf16 %v2588_v52  ;;  %v2091_v0 = vunpack.c.l.bf16 %v2599_v59 }
  0x1b   : > { %v297_v39 = vadd.f32 %v296_v34, %v295_v35  ;;  %v312_v62 = vsel %vm290_vm1, %v2084_v54, 0.0  ;;  %v314_v1 = vsel %vm290_vm1, %v2087_v57, 0.0  ;;  %v2092_v7 = vunpack.c.h.bf16 %v2599_v59  ;;  %v2632_v34 = vld [vmem:[%s2507_s20 + $0x50] sm:$0xff]  }
  0x1c   : > { %2239 = vmatpush3.bf16.msra.mxu0 %v2531_v21  ;;  %v316_v9 = vsel %vm290_vm1, %v2088_v61, 0.0  ;;  %v2095_v11 = vunpack.c.l.bf16 %v2610_v2  ;;  %v318_v12 = vsel %vm290_vm1, %v2091_v0, 0.0  ;;  %v2096_v18 = vunpack.c.h.bf16 %v2610_v2 }
  0x1d   : > { %2258 = vmatprep.subr.bf16.mxu0 %v2415_v3  ;;  %v299_v42 = vadd.f32 %v298_v37, %v297_v39  ;;  %v320_v28 = vsel %vm290_vm1, %v2092_v7, 0.0  ;;  %v2099_v30 = vunpack.c.l.bf16 %v2621_v13  ;;  %v2100_v37 = vunpack.c.h.bf16 %v2621_v13 }
  0x1e   : > { %v322_v32 = vsel %vm290_vm1, %v2095_v11, 0.0  ;;  %v324_v39 = vsel %vm290_vm1, %v2096_v18, 0.0 }
  0x1f   : > { %v301_v46 = vadd.f32 %v300_v41, %v299_v42  ;;  %v2103_v42 = vunpack.c.l.bf16 %v2632_v34 }
  0x21   : > { %v303_v49 = vadd.f32 %v302_v44, %v301_v46  ;;  %v326_v44 = vsel %vm290_vm1, %v2099_v30, 0.0  ;;  %v2643_v46 = vld [vmem:[%s2507_s20 + $0x58] sm:$0xff]  }
  0x23   : > { %v305_v53 = vadd.f32 %v304_v48, %v303_v49  ;;  %v2104_v49 = vunpack.c.h.bf16 %v2632_v34  ;;  %v3928_v34 = vunpack.c.h.bf16 %v2643_v46 }
  0x25   : > { %v307_v56 = vadd.f32 %v306_v51, %v305_v53  ;;  %v328_v51 = vsel %vm290_vm1, %v2100_v37, 0.0 }
  0x27   : > { %v309_v60 = vadd.f32 %v308_v55, %v307_v56  ;;  %v3919_v55 = vunpack.c.l.bf16 %v2643_v46  ;;  %v330_v56 = vsel %vm290_vm1, %v2103_v42, 0.0 }
  0x29   : > { %v311_v63 = vadd.f32 %v310_v58, %v309_v60  ;;  %v2654_v58 = vld [vmem:[%s2507_s20 + $0x60] sm:$0xff]  }
  0x2b   : > { %v313_v5 = vadd.f32 %v312_v62, %v311_v63  ;;  %v3918_v62 = vunpack.c.h.bf16 %v2643_v46  ;;  %v332_v63 = vsel %vm290_vm1, %v2104_v49, 0.0 }
  0x2d   : > { %v315_v10 = vadd.f32 %v314_v1, %v313_v5  ;;  %v3917_v5 = vunpack.c.l.bf16 %v2654_v58 }
  0x2f   : > { %v317_v17 = vadd.f32 %v316_v9, %v315_v10  ;;  %v334_v9 = vsel %vm290_vm1, %v3919_v55, 0.0  ;;  %v2665_v10 = vld [vmem:[%s2507_s20 + $0x68] sm:$0xff]  }
  0x31   : > { %v319_v29 = vadd.f32 %v318_v12, %v317_v17  ;;  %v3915_v17 = vunpack.c.h.bf16 %v2654_v58 }
  0x33   : > { %v321_v35 = vadd.f32 %v320_v28, %v319_v29  ;;  %v336_v28 = vsel %vm290_vm1, %v3918_v62, 0.0 }
  0x35   : > { %v323_v41 = vadd.f32 %v322_v32, %v321_v35  ;;  %v3913_v32 = vunpack.c.l.bf16 %v2665_v10  ;;  %v338_v35 = vsel %vm290_vm1, %v3917_v5, 0.0 }
  0x37   : > { %v325_v48 = vadd.f32 %v324_v39, %v323_v41  ;;  %v2676_v39 = vld [vmem:[%s2507_s20 + $0x70] sm:$0xff]  }
  0x39   : > { %v327_v53 = vadd.f32 %v326_v44, %v325_v48  ;;  %v3914_v44 = vunpack.c.h.bf16 %v2665_v10  ;;  %v340_v48 = vsel %vm290_vm1, %v3915_v17, 0.0 }
  0x3b   : > { %v329_v60 = vadd.f32 %v328_v51, %v327_v53  ;;  %v3916_v53 = vunpack.c.l.bf16 %v2676_v39 }
  0x3d   : > { %v331_v1 = vadd.f32 %v330_v56, %v329_v60  ;;  %v342_v56 = vsel %vm290_vm1, %v3913_v32, 0.0  ;;  %v2687_v60 = vld [vmem:[%s2507_s20 + $0x78] sm:$0xff]  }
  0x3f   : > { %v333_v12 = vadd.f32 %v332_v63, %v331_v1  ;;  %v2120_v1 = vunpack.c.h.bf16 %v2676_v39 }
  0x41   : > { %v335_v29 = vadd.f32 %v334_v9, %v333_v12  ;;  %v344_v9 = vsel %vm290_vm1, %v3914_v44, 0.0 }
  0x43   : > { %v337_v41 = vadd.f32 %v336_v28, %v335_v29  ;;  %v2123_v28 = vunpack.c.l.bf16 %v2687_v60  ;;  %v346_v29 = vsel %vm290_vm1, %v3916_v53, 0.0 }
  0x45   : > { %v339_v51 = vadd.f32 %v338_v35, %v337_v41  ;;  %v2124_v41 = vunpack.c.h.bf16 %v2687_v60  ;;  %v350_v32 = vsel %vm290_vm1, %v2123_v28, 0.0 }
  0x47   : > { %v341_v63 = vadd.f32 %v340_v48, %v339_v51  ;;  %v348_v48 = vsel %vm290_vm1, %v2120_v1, 0.0 }
  0x49   : > { %v343_v12 = vadd.f32 %v342_v56, %v341_v63  ;;  %v352_v56 = vsel %vm290_vm1, %v2124_v41, 0.0 }
  0x4b   : > { %v345_v35 = vadd.f32 %v344_v9, %v343_v12 }
  0x4d   : > { %v347_v51 = vadd.f32 %v346_v29, %v345_v35 }
  0x4f   : > { %v349_v44 = vadd.f32 %v348_v48, %v347_v51 }
  0x51   : > { %v351_v63 = vadd.f32 %v350_v32, %v349_v44 }
  0x53   : > { %v353_v17 = vadd.f32 %v352_v56, %v351_v63 }
  0x55   : > { %v354_v53 = vrot.slane %v353_v17, 4 }
  0x57   : > { %v355_v9 = vadd.f32 %v354_v53, %v353_v17 }
  0x59   : > { %v356_v12 = vrot.slane %v355_v9, 2 }
  0x5b   : > { %v357_v5 = vadd.f32 %v356_v12, %v355_v9 }
  0x5d   : > { %v358_v62 = vrot.slane %v357_v5, 1 }
  0x5f   : > { %v359_v55 = vadd.f32 %v358_v62, %v357_v5 }
  0x61   : > { %2185 = vmatmul.mubr.msk.f32.vlgmr.msra.gmra.mrb[0].mxu0 %vm290_vm1, %v359_v55 }
  0x62   : > { %2260 = vmatpush3.bf16.msra.mxu0 %v2501_v14  ;;  %2225 = vmatprep.mubr.msk.f32.mxu0 %vm2416_vm0, %v2417_v6  ;;  %v519_v14 = vlaneseq }
  0x63   : > { %2261 = vmatprep.subr.bf16.mxu0 %v2415_v3 }
  0x66   : > { %2263 = vmatpush3.bf16.msra.mxu0 %v2510_v15  ;;  %v2723_v15 = vshrl.u32 %v519_v14, 7 }
  0x68   : > { %v521_v62 = vsub.s32 0, %v2723_v15 }
 0x134   : > { %v437_v32 = vpop.f32.mrb[0].mxu0 }
 0x135   : > { %v2186_v44 = vpop.f32.mrb[1].mxu0  ;;  %2196 = vmatmul.mubr.msk.f32.vlgmr.msra.gmra.mrb[0].mxu1 %vm445_vm2, %v437_v32 }
 0x136   : > { %2248 = vmatpush3.bf16.msra.mxu1 %v2467_v4  ;;  %2214 = vmatprep.mubr.msk.f32.mxu1 %vm2416_vm0, %v2417_v6 }
 0x137   : > { %2249 = vmatprep.subr.bf16.mxu1 %v2415_v3 }
 0x13a   : > { %2251 = vmatpush3.bf16.msra.mxu1 %v2481_v8 }
 0x13b   : > { %2252 = vmatprep.subr.bf16.mxu1 %v2415_v3 }
 0x13e   : > { %2254 = vmatpush3.bf16.msra.mxu1 %v2513_v16 }
 0x13f   : > { %2255 = vmatprep.subr.bf16.mxu1 %v2415_v3 }
 0x142   : > { %2257 = vmatpush3.bf16.msra.mxu1 %v2531_v21 }
 0x208   : > { %v515_v55 = vpop.f32.mrb[0].mxu1 }
 0x209   : > { %v2197_v4 = vpop.f32.mrb[1].mxu1  ;;  %v2728_v6 = vrot.slane %v515_v55, %v521_v62 }
 0x20b   : > { %v2733_v8 = vsub.f32 %v2063_v22, %v2728_v6  ;;  %v2738_v3 = vsub.f32 %v2064_v23, %v2728_v6  ;;  %v2743_v16 = vsub.f32 %v2067_v24, %v2728_v6  ;;  %v2748_v21 = vsub.f32 %v2068_v26, %v2728_v6 }
 0x20c   : > { %v2757_v19 = vsub.f32 %v2071_v27, %v2728_v6  ;;  %v2764_v20 = vsub.f32 %v2072_v33, %v2728_v6  ;;  %v2773_v27 = vsub.f32 %v2075_v36, %v2728_v6  ;;  %v2781_v35 = vsub.f32 %v2076_v40, %v2728_v6 }
 0x20d   : > { %v555_v5 = vmul.f32 %v2733_v8, %v2733_v8  ;;  %v556_v22 = vmul.f32 %v2738_v3, %v2738_v3  ;;  %v557_v23 = vmul.f32 %v2743_v16, %v2743_v16  ;;  %v558_v24 = vmul.f32 %v2748_v21, %v2748_v21 }
 0x20e   : > { %v559_v29 = vmul.f32 %v2757_v19, %v2757_v19  ;;  %v560_v48 = vmul.f32 %v2764_v20, %v2764_v20  ;;  %v2789_v36 = vsub.f32 %v2079_v43, %v2728_v6  ;;  %v561_v63 = vmul.f32 %v2773_v27, %v2773_v27 }
 0x20f   : > { %v587_v26 = vsel %vm290_vm1, %v555_v5, 0.0  ;;  %v588_v17 = vsel %vm290_vm1, %v556_v22, 0.0  ;;  %v590_v25 = vsel %vm290_vm1, %v557_v23, 0.0  ;;  %v592_v51 = vsel %vm290_vm1, %v558_v24, 0.0 }
 0x210   : > { %v589_v53 = vadd.f32 %v588_v17, %v587_v26  ;;  %v594_v9 = vsel %vm290_vm1, %v559_v29, 0.0  ;;  %v2797_v31 = vsub.f32 %v2080_v47, %v2728_v6  ;;  %v562_v40 = vmul.f32 %v2781_v35, %v2781_v35 }
 0x211   : > { %v596_v32 = vsel %vm290_vm1, %v560_v48, 0.0  ;;  %v2805_v43 = vsub.f32 %v2083_v50, %v2728_v6  ;;  %v563_v14 = vmul.f32 %v2789_v36, %v2789_v36  ;;  %v598_v55 = vsel %vm290_vm1, %v561_v63, 0.0 }
 0x212   : > { %v591_v33 = vadd.f32 %v590_v25, %v589_v53  ;;  %v2813_v38 = vsub.f32 %v2084_v54, %v2728_v6  ;;  %v564_v47 = vmul.f32 %v2797_v31, %v2797_v31  ;;  %v600_v5 = vsel %vm290_vm1, %v562_v40, 0.0 }
 0x213   : > { %v2821_v50 = vsub.f32 %v2087_v57, %v2728_v6  ;;  %v565_v23 = vmul.f32 %v2805_v43, %v2805_v43  ;;  %v602_v24 = vsel %vm290_vm1, %v563_v14, 0.0  ;;  %v2829_v45 = vsub.f32 %v2088_v61, %v2728_v6 }
 0x214   : > { %v593_v56 = vadd.f32 %v592_v51, %v591_v33  ;;  %v566_v54 = vmul.f32 %v2813_v38, %v2813_v38  ;;  %v604_v17 = vsel %vm290_vm1, %v564_v47, 0.0  ;;  %v2837_v57 = vsub.f32 %v2091_v0, %v2728_v6 }
 0x215   : > { %v567_v29 = vmul.f32 %v2821_v50, %v2821_v50  ;;  %v606_v25 = vsel %vm290_vm1, %v565_v23, 0.0  ;;  %v2845_v52 = vsub.f32 %v2092_v7, %v2728_v6  ;;  %v568_v61 = vmul.f32 %v2829_v45, %v2829_v45 }
 0x216   : > { %v595_v12 = vadd.f32 %v594_v9, %v593_v56  ;;  %v608_v48 = vsel %vm290_vm1, %v566_v54, 0.0  ;;  %v2853_v0 = vsub.f32 %v2095_v11, %v2728_v6  ;;  %v569_v56 = vmul.f32 %v2837_v57, %v2837_v57 }
 0x217   : > { %v610_v63 = vsel %vm290_vm1, %v567_v29, 0.0  ;;  %v2861_v59 = vsub.f32 %v2096_v18, %v2728_v6  ;;  %v570_v7 = vmul.f32 %v2845_v52, %v2845_v52  ;;  %v2869_v11 = vsub.f32 %v2099_v30, %v2728_v6 }
 0x218   : > { %v597_v44 = vadd.f32 %v596_v32, %v595_v12  ;;  %v612_v12 = vsel %vm290_vm1, %v568_v61, 0.0  ;;  %v571_v32 = vmul.f32 %v2853_v0, %v2853_v0  ;;  %v2877_v2 = vsub.f32 %v2100_v37, %v2728_v6 }
 0x219   : > { %v572_v18 = vmul.f32 %v2861_v59, %v2861_v59  ;;  %v2885_v30 = vsub.f32 %v2103_v42, %v2728_v6  ;;  %v573_v47 = vmul.f32 %v2869_v11, %v2869_v11  ;;  %v2893_v13 = vsub.f32 %v2104_v49, %v2728_v6 }
 0x21a   : > { %v599_v4 = vadd.f32 %v598_v55, %v597_v44  ;;  %v614_v44 = vsel %vm290_vm1, %v569_v56, 0.0  ;;  %v616_v55 = vsel %vm290_vm1, %v570_v7, 0.0  ;;  %v574_v37 = vmul.f32 %v2877_v2, %v2877_v2 }
 0x21b   : > { %v620_v23 = vsel %vm290_vm1, %v572_v18, 0.0  ;;  %v3927_v42 = vunpack.c.l.bf16 %v2643_v46  ;;  %v575_v54 = vmul.f32 %v2885_v30, %v2885_v30  ;;  %v2909_v49 = vsub.f32 %v3928_v34, %v2728_v6 }
 0x21c   : > { %v601_v22 = vadd.f32 %v600_v5, %v599_v4  ;;  %v618_v5 = vsel %vm290_vm1, %v571_v32, 0.0  ;;  %v576_v29 = vmul.f32 %v2893_v13, %v2893_v13  ;;  %v3929_v61 = vunpack.c.l.bf16 %v2654_v58 }
 0x21d   : > { %v626_v56 = vsel %vm290_vm1, %v575_v54, 0.0  ;;  %v3930_v46 = vunpack.c.h.bf16 %v2654_v58  ;;  %v578_v7 = vmul.f32 %v2909_v49, %v2909_v49  ;;  %v3931_v32 = vunpack.c.l.bf16 %v2665_v10 }
 0x21e   : > { %v603_v26 = vadd.f32 %v602_v24, %v601_v22  ;;  %v3932_v58 = vunpack.c.h.bf16 %v2665_v10  ;;  %v2957_v10 = vsub.f32 %v2120_v1, %v2728_v6 }
 0x220   : > { %v605_v53 = vadd.f32 %v604_v17, %v603_v26  ;;  %v2901_v26 = vsub.f32 %v3927_v42, %v2728_v6  ;;  %v622_v17 = vsel %vm290_vm1, %v573_v47, 0.0  ;;  %v584_v1 = vmul.f32 %v2957_v10, %v2957_v10 }
 0x222   : > { %v607_v33 = vadd.f32 %v606_v25, %v605_v53  ;;  %v624_v25 = vsel %vm290_vm1, %v574_v37, 0.0  ;;  %v3933_v37 = vunpack.c.l.bf16 %v2676_v39  ;;  %v2973_v39 = vsub.f32 %v2124_v41, %v2728_v6 }
 0x224   : > { %v609_v51 = vadd.f32 %v608_v48, %v607_v33  ;;  %v2917_v48 = vsub.f32 %v3929_v61, %v2728_v6 }
 0x226   : > { %v611_v9 = vadd.f32 %v610_v63, %v609_v51  ;;  %v577_v51 = vmul.f32 %v2901_v26, %v2901_v26 }
 0x228   : > { %v613_v40 = vadd.f32 %v612_v12, %v611_v9  ;;  %v2925_v9 = vsub.f32 %v3930_v46, %v2728_v6  ;;  %v628_v12 = vsel %vm290_vm1, %v576_v29, 0.0  ;;  %v630_v18 = vsel %vm290_vm1, %v577_v51, 0.0 }
 0x229   : > { %v2965_v29 = vsub.f32 %v2123_v28, %v2728_v6 }
 0x22a   : > { %v615_v14 = vadd.f32 %v614_v44, %v613_v40  ;;  %v2933_v44 = vsub.f32 %v3931_v32, %v2728_v6  ;;  %v580_v47 = vmul.f32 %v2925_v9, %v2925_v9 }
 0x22b   : > { %v585_v28 = vmul.f32 %v2965_v29, %v2965_v29 }
 0x22c   : > { %v617_v4 = vadd.f32 %v616_v55, %v615_v14  ;;  %v579_v14 = vmul.f32 %v2917_v48, %v2917_v48 }
 0x22d   : > { %v646_v41 = vsel %vm290_vm1, %v585_v28, 0.0 }
 0x22e   : > { %v619_v22 = vadd.f32 %v618_v5, %v617_v4  ;;  %v2941_v4 = vsub.f32 %v3932_v58, %v2728_v6  ;;  %v632_v5 = vsel %vm290_vm1, %v578_v7, 0.0  ;;  %v634_v42 = vsel %vm290_vm1, %v579_v14, 0.0 }
 0x22f   : > { %v586_v7 = vmul.f32 %v2973_v39, %v2973_v39 }
 0x230   : > { %v621_v24 = vadd.f32 %v620_v23, %v619_v22  ;;  %v2949_v23 = vsub.f32 %v3933_v37, %v2728_v6 }
 0x232   : > { %v623_v53 = vadd.f32 %v622_v17, %v621_v24  ;;  %v581_v24 = vmul.f32 %v2933_v44, %v2933_v44  ;;  %v582_v17 = vmul.f32 %v2941_v4, %v2941_v4 }
 0x234   : > { %v625_v33 = vadd.f32 %v624_v25, %v623_v53  ;;  %v636_v53 = vsel %vm290_vm1, %v580_v47, 0.0  ;;  %v583_v25 = vmul.f32 %v2949_v23, %v2949_v23  ;;  %v640_v51 = vsel %vm290_vm1, %v582_v17, 0.0 }
 0x236   : > { %v627_v63 = vadd.f32 %v626_v56, %v625_v33  ;;  %v638_v33 = vsel %vm290_vm1, %v581_v24, 0.0 }
 0x238   : > { %v629_v40 = vadd.f32 %v628_v12, %v627_v63  ;;  %v642_v63 = vsel %vm290_vm1, %v583_v25, 0.0  ;;  %v644_v12 = vsel %vm290_vm1, %v584_v1, 0.0 }
 0x23a   : > { %v631_v55 = vadd.f32 %v630_v18, %v629_v40  ;;  %v648_v40 = vsel %vm290_vm1, %v586_v7, 0.0 }
 0x23c   : > { %v633_v22 = vadd.f32 %v632_v5, %v631_v55 }
 0x23e   : > { %v635_v54 = vadd.f32 %v634_v42, %v633_v22 }
 0x240   : > { %v637_v34 = vadd.f32 %v636_v53, %v635_v54  ;;  %v803_v53 = vld [vmem:[%s3910_s3] sm:$0x1] }
 0x242   : > { %v639_v61 = vadd.f32 %v638_v33, %v637_v34 }
 0x244   : > { %v641_v56 = vadd.f32 %v640_v51, %v639_v61 }
 0x246   : > { %v643_v46 = vadd.f32 %v642_v63, %v641_v56  ;;  %v3006_v56 = vld [vmem:[%s3911_s4] ss:$0 sm:$0xff] }
 0x248   : > { %v645_v60 = vadd.f32 %v644_v12, %v643_v46 }
 0x24a   : > { %v647_v6 = vadd.f32 %v646_v41, %v645_v60 }
 0x24c   : > { %v649_v32 = vadd.f32 %v648_v40, %v647_v6 }
 0x24e   : > { %v650_v14 = vrot.slane %v649_v32, 4 }
 0x250   : > { %v651_v18 = vadd.f32 %v650_v14, %v649_v32 }
 0x252   : > { %v652_v55 = vrot.slane %v651_v18, 2 }
 0x254   : > { %v653_v58 = vadd.f32 %v652_v55, %v651_v18 }
 0x256   : > { %v654_v47 = vrot.slane %v653_v58, 1 }
 0x258   : > { %v655_v5 = vadd.f32 %v654_v47, %v653_v58 }
 0x25a   : > { %2215 = vmatmul.mubr.msk.f32.vlgmr.msra.gmra.mrb[2].mxu1 %vm290_vm1, %v655_v5 }
 0x32d   : > { %v725_v22 = vpop.f32.mrb[2].mxu1 }
 0x32e   : > { %v2216_v37 = vpop.f32.mrb[3].mxu1  ;;  %2226 = vmatmul.mubr.msk.f32.vlgmr.msra.gmra.mrb[2].mxu0 %vm445_vm2, %v725_v22 }
 0x401   : > { %v798_v24 = vpop.f32.mrb[2].mxu0 }
 0x402   : > { %v799_v42 = vadd.f32 1e-06, %v798_v24  ;;  %v2227_v54 = vpop.f32.mrb[3].mxu0 }
 0x404   : > { %2277 = vrsqrt.f32 %v799_v42 }
 0x40e   : > { %v2278_v17 = vpop.eup %2277 }
 0x40f   : > { %v804_v34 = vmul.f32 %v2278_v17, %v803_v53 }
 0x411   : > { %v2993_v25 = vrot.slane %v804_v34, %v521_v62 }
 0x413   : > { %v809_v33 = vmul.f32 %v2993_v25, %v2733_v8  ;;  %v810_v61 = vmul.f32 %v2993_v25, %v2738_v3  ;;  %v811_v1 = vmul.f32 %v2993_v25, %v2743_v16  ;;  %v812_v51 = vmul.f32 %v2993_v25, %v2748_v21 }
 0x414   : > { %v813_v15 = vmul.f32 %v2993_v25, %v2757_v19  ;;  %v814_v62 = vmul.f32 %v2993_v25, %v2764_v20  ;;  %v815_v8 = vmul.f32 %v2993_v25, %v2773_v27  ;;  %v816_v28 = vmul.f32 %v2993_v25, %v2781_v35 }
 0x415   : > { %v3015_v3 = vadd.f32 %v3006_v56, %v809_v33  ;;  %v3018_v16 = vadd.f32 %v3006_v56, %v810_v61  ;;  %v3021_v21 = vadd.f32 %v3006_v56, %v811_v1  ;;  %v3026_v19 = vadd.f32 %v3006_v56, %v812_v51 }
 0x416   : > { %v817_v20 = vmul.f32 %v2993_v25, %v2789_v36  ;;  %v818_v27 = vmul.f32 %v2993_v25, %v2797_v31  ;;  %v3033_v63 = vadd.f32 %v3006_v56, %v813_v15  ;;  %v819_v46 = vmul.f32 %v2993_v25, %v2805_v43 }
 0x417   : > { %v820_v7 = vmul.f32 %v2993_v25, %v2813_v38  ;;  %v821_v35 = vmul.f32 %v2993_v25, %v2821_v50  ;;  %v3042_v12 = vadd.f32 %v3006_v56, %v814_v62  ;;  %v3045_v36 = vadd.f32 %v3006_v56, %v815_v8 }
 0x418   : > { %v1815_v31 = vmul.f32 -1.442695, %v3015_v3  ;;  %v1816_v60 = vmul.f32 -1.442695, %v3018_v16  ;;  %v1817_v41 = vmul.f32 -1.442695, %v3021_v21  ;;  %v822_v43 = vmul.f32 %v2993_v25, %v2829_v45 }
 0x419   : > { %v823_v38 = vmul.f32 %v2993_v25, %v2837_v57  ;;  %v3055_v50 = vadd.f32 %v3006_v56, %v816_v28  ;;  %v1818_v6 = vmul.f32 -1.442695, %v3026_v19  ;;  %v824_v40 = vmul.f32 %v2993_v25, %v2845_v52 }
 0x41a   : > { %v3061_v32 = vadd.f32 %v3006_v56, %v817_v20  ;;  %2279 = vpow2.f32 %v1815_v31  ;;  %v1819_v14 = vmul.f32 -1.442695, %v3033_v63  ;;  %v825_v45 = vmul.f32 %v2993_v25, %v2853_v0 }
 0x41b   : > { %v3067_v57 = vadd.f32 %v3006_v56, %v818_v27  ;;  %2281 = vpow2.f32 %v1816_v60  ;;  %v1820_v18 = vmul.f32 -1.442695, %v3042_v12  ;;  %v826_v55 = vmul.f32 %v2993_v25, %v2861_v59 }
 0x41c   : > { %v3073_v52 = vadd.f32 %v3006_v56, %v819_v46  ;;  %2283 = vpow2.f32 %v1817_v41  ;;  %v1821_v58 = vmul.f32 -1.442695, %v3045_v36  ;;  %v827_v47 = vmul.f32 %v2993_v25, %v2869_v11 }
 0x41d   : > { %v3079_v0 = vadd.f32 %v3006_v56, %v820_v7  ;;  %2285 = vpow2.f32 %v1818_v6  ;;  %v1822_v5 = vmul.f32 -1.442695, %v3055_v50  ;;  %v3083_v22 = vadd.f32 %v3006_v56, %v821_v35 }
 0x41e   : > { %v3086_v59 = vadd.f32 %v3006_v56, %v822_v43  ;;  %2287 = vpow2.f32 %v1819_v14  ;;  %v1823_v37 = vmul.f32 -1.442695, %v3061_v32  ;;  %v828_v24 = vmul.f32 %v2993_v25, %v2877_v2 }
 0x41f   : > { %v829_v11 = vmul.f32 %v2993_v25, %v2885_v30  ;;  %2289 = vpow2.f32 %v1820_v18  ;;  %v1824_v42 = vmul.f32 -1.442695, %v3067_v57  ;;  %v830_v54 = vmul.f32 %v2993_v25, %v2893_v13 }
 0x420   : > { %v3098_v17 = vadd.f32 %v3006_v56, %v823_v38  ;;  %2291 = vpow2.f32 %v1821_v58  ;;  %v1825_v53 = vmul.f32 -1.442695, %v3073_v52  ;;  %v3102_v34 = vadd.f32 %v3006_v56, %v824_v40 }
 0x421   : > { %v3105_v2 = vadd.f32 %v3006_v56, %v825_v45  ;;  %2293 = vpow2.f32 %v1822_v5  ;;  %v1826_v30 = vmul.f32 -1.442695, %v3079_v0  ;;  %v3109_v33 = vadd.f32 %v3006_v56, %v826_v55 }
 0x422   : > { %2295 = vpow2.f32 %v1823_v37  ;;  %v1827_v13 = vmul.f32 -1.442695, %v3083_v22  ;;  %v1828_v61 = vmul.f32 -1.442695, %v3086_v59  ;;  %v831_v51 = vmul.f32 %v2993_v25, %v2901_v26 }
 0x423   : > { %2297 = vpow2.f32 %v1824_v42  ;;  %v3123_v15 = vadd.f32 %v3006_v56, %v827_v47  ;;  %v1829_v62 = vmul.f32 -1.442695, %v3098_v17  ;;  %v2418_v8 = vmov 0  }
 0x424   : > { %v3118_v1 = vpop.eup %2279  ;;  %2299 = vpow2.f32 %v1825_v53  ;;  %1642 = vst.msk [vmem:[%s3116_s6] sm:$0xf] %vm1524_vm3, %v2418_v8  ;;  %1643 = vst.msk [vmem:[%s3116_s6 + $0x4] sm:$0xf] %vm1524_vm3, %v2418_v8  ;;  %v832_v28 = vmul.f32 %v2993_v25, %v2909_v49  ;;  %v3143_v20 = vadd.f32 %v3006_v56, %v828_v24  ;;  %v1830_v27 = vmul.f32 -1.442695, %v3102_v34 }
 0x425   : > { %1645 = vst.msk [vmem:[%s3116_s6 + $0x8] sm:$0x1] %vm1532_vm4, %v2418_v8  ;;  %1961 = vst.msk [vmem:[%s3116_s6 + $0xd4] sm:$0x1] %vm1532_vm4, %v2418_v8  ;;  %v3138_v26 = vpop.eup %2281  ;;  %2301 = vpow2.f32 %v1826_v30  ;;  %v833_v7 = vmul.f32 %v2993_v25, %v2917_v48  ;;  %v3151_v35 = vadd.f32 %v3006_v56, %v829_v11  ;;  %v1831_v31 = vmul.f32 -1.442695, %v3105_v2 }
 0x426   : > { %1959 = vst.msk [vmem:[%s3116_s6 + $0xcc] sm:$0xf] %vm1524_vm3, %v2418_v8  ;;  %1960 = vst.msk [vmem:[%s3116_s6 + $0xd0] sm:$0xf] %vm1524_vm3, %v2418_v8  ;;  %v3146_v46 = vpop.eup %2283  ;;  %2303 = vpow2.f32 %v1827_v13  ;;  %v834_v49 = vmul.f32 %v2993_v25, %v2925_v9  ;;  %v3159_v41 = vadd.f32 %v3006_v56, %v830_v54  ;;  %v1832_v43 = vmul.f32 -1.442695, %v3109_v33 }
 0x427   : > { %v3154_v60 = vpop.eup %2285  ;;  %2305 = vpow2.f32 %v1828_v61  ;;  %v835_v48 = vmul.f32 %v2993_v25, %v2933_v44  ;;  %v3167_v6 = vadd.f32 %v3006_v56, %v831_v51  ;;  %v1833_v40 = vmul.f32 -1.442695, %v3123_v15 }
 0x428   : > { %v3162_v38 = vpop.eup %2287  ;;  %2307 = vpow2.f32 %v1829_v62  ;;  %v836_v9 = vmul.f32 %v2993_v25, %v2941_v4  ;;  %v3175_v45 = vadd.f32 %v3006_v56, %v832_v28  ;;  %v1834_v18 = vmul.f32 -1.442695, %v3143_v20 }
 0x429   : > { %v3170_v14 = vpop.eup %2289  ;;  %2309 = vpow2.f32 %v1830_v27  ;;  %v837_v44 = vmul.f32 %v2993_v25, %v2949_v23  ;;  %v3183_v58 = vadd.f32 %v3006_v56, %v833_v7  ;;  %v1835_v47 = vmul.f32 -1.442695, %v3151_v35 }
 0x42a   : > { %v3178_v55 = vpop.eup %2291  ;;  %2311 = vpow2.f32 %v1831_v31  ;;  %v838_v4 = vmul.f32 %v2993_v25, %v2957_v10  ;;  %v3191_v37 = vadd.f32 %v3006_v56, %v834_v49  ;;  %v1836_v24 = vmul.f32 -1.442695, %v3159_v41 }
 0x42b   : > { %v3186_v5 = vpop.eup %2293  ;;  %2313 = vpow2.f32 %v1832_v43  ;;  %v839_v23 = vmul.f32 %v2993_v25, %v2965_v29  ;;  %v3197_v42 = vadd.f32 %v3006_v56, %v835_v48  ;;  %v1837_v54 = vmul.f32 -1.442695, %v3167_v6 }
 0x42c   : > { %3934 = vst [vmem:[#allocation2_spill] sm:$0xff] %v3191_v37  ;;  %v2296_v11 = vpop.eup %2295  ;;  %2315 = vpow2.f32 %v1833_v40  ;;  %v840_v10 = vmul.f32 %v2993_v25, %v2973_v39  ;;  %v3203_v30 = vadd.f32 %v3006_v56, %v836_v9  ;;  %v1838_v13 = vmul.f32 -1.442695, %v3175_v45 }
 0x42d   : > { %3935 = vst [vmem:[#allocation3_spill] sm:$0xff] %v3197_v42  ;;  %v2298_v53 = vpop.eup %2297  ;;  %2317 = vpow2.f32 %v1834_v18  ;;  %v3207_v51 = vadd.f32 %v3006_v56, %v837_v44  ;;  %v1839_v29 = vmul.f32 -1.442695, %v3183_v58  ;;  %v3211_v8 = vadd.f32 %v3006_v56, %v838_v4 }
 0x42e   : > { %3936 = vst [vmem:[#allocation4_spill] sm:$0xff] %v3203_v30  ;;  %v2300_v61 = vpop.eup %2299  ;;  %2319 = vpow2.f32 %v1835_v47  ;;  %v1840_v39 = vmul.f32 -1.442695, %v3191_v37  ;;  %v3215_v28 = vadd.f32 %v3006_v56, %v839_v23  ;;  %v1841_v27 = vmul.f32 -1.442695, %v3197_v42 }
 0x42f   : > { %3937 = vst [vmem:[#allocation5_spill] sm:$0xff] %v3207_v51  ;;  %v2302_v62 = vpop.eup %2301  ;;  %3938 = vst [vmem:[#allocation6_spill] sm:$0xff] %v3211_v8  ;;  %2321 = vpow2.f32 %v1836_v24  ;;  %v3219_v31 = vadd.f32 %v3006_v56, %v840_v10  ;;  %v1842_v49 = vmul.f32 -1.442695, %v3203_v30  ;;  %v1843_v48 = vmul.f32 -1.442695, %v3207_v51 }
 0x430   : > { %v2304_v25 = vpop.eup %2303  ;;  %3939 = vst [vmem:[#allocation7_spill] sm:$0xff] %v3215_v28  ;;  %2323 = vpow2.f32 %v1837_v54  ;;  %v1844_v9 = vmul.f32 -1.442695, %v3211_v8  ;;  %v1845_v44 = vmul.f32 -1.442695, %v3215_v28  ;;  %v976_v24 = vadd.f32 1.0, %v3118_v1 }
 0x431   : > { %v2306_v7 = vpop.eup %2305  ;;  %3940 = vst [vmem:[#allocation8_spill] sm:$0xff] %v3219_v31  ;;  %2325 = vpow2.f32 %v1838_v13  ;;  %v1846_v56 = vmul.f32 -1.442695, %v3219_v31  ;;  %v977_v54 = vadd.f32 1.0, %v3138_v26  ;;  %v978_v13 = vadd.f32 1.0, %v3146_v46 }
 0x432   : > { %v2308_v43 = vpop.eup %2307  ;;  %2327 = vpow2.f32 %v1839_v29  ;;  %v985_v28 = vadd.f32 1.0, %v2298_v53  ;;  %v986_v8 = vadd.f32 1.0, %v2300_v61  ;;  %v988_v51 = vadd.f32 1.0, %v2304_v25 }
 0x433   : > { %v2310_v40 = vpop.eup %2309  ;;  %2329 = vpow2.f32 %v1840_v39  ;;  %v979_v39 = vadd.f32 1.0, %v3154_v60  ;;  %v990_v30 = vadd.f32 1.0, %v2308_v43 }
 0x434   : > { %v2312_v18 = vpop.eup %2311  ;;  %2331 = vpow2.f32 %v1841_v27 }
 0x435   : > { %v2314_v47 = vpop.eup %2313  ;;  %2333 = vpow2.f32 %v1842_v49  ;;  %v980_v49 = vadd.f32 1.0, %v3162_v38 }
 0x436   : > { %v2316_v4 = vpop.eup %2315  ;;  %2335 = vpow2.f32 %v1843_v48  ;;  %v981_v48 = vadd.f32 1.0, %v3170_v14  ;;  %v989_v14 = vadd.f32 1.0, %v2306_v7 }
 0x437   : > { %v2318_v23 = vpop.eup %2317  ;;  %2337 = vpow2.f32 %v1844_v9  ;;  %v982_v9 = vadd.f32 1.0, %v3178_v55  ;;  %v991_v55 = vadd.f32 1.0, %v2310_v40 }
 0x438   : > { %v2320_v10 = vpop.eup %2319  ;;  %2339 = vpow2.f32 %v1845_v44  ;;  %v983_v44 = vadd.f32 1.0, %v3186_v5  ;;  %v993_v5 = vadd.f32 1.0, %v2314_v47  ;;  %v995_v37 = vadd.f32 1.0, %v2318_v23 }
 0x439   : > { %v2322_v29 = vpop.eup %2321  ;;  %2341 = vpow2.f32 %v1846_v56  ;;  %v984_v56 = vadd.f32 1.0, %v2296_v11 }
 0x43a   : > { %v2324_v27 = vpop.eup %2323  ;;  %2343 = vrcp.f32 %v976_v24  ;;  %v987_v24 = vadd.f32 1.0, %v2302_v62  ;;  %v997_v53 = vadd.f32 1.0, %v2322_v29 }
 0x43b   : > { %v2326_v31 = vpop.eup %2325  ;;  %2345 = vrcp.f32 %v977_v54  ;;  %v3234_v61 = vadd.f32 1.0, %v2324_v27 }
 0x43c   : > { %v2328_v1 = vpop.eup %2327  ;;  %2347 = vrcp.f32 %v978_v13  ;;  %v992_v13 = vadd.f32 1.0, %v2312_v18  ;;  %v3236_v25 = vadd.f32 1.0, %v2326_v31 }
 0x43d   : > { %v2330_v26 = vpop.eup %2329  ;;  %2349 = vrcp.f32 %v979_v39  ;;  %v994_v39 = vadd.f32 1.0, %v2316_v4  ;;  %v3238_v7 = vadd.f32 1.0, %v2328_v1 }
 0x43e   : > { %v2332_v46 = vpop.eup %2331  ;;  %2351 = vrcp.f32 %v980_v49  ;;  %v996_v49 = vadd.f32 1.0, %v2320_v10  ;;  %v3240_v43 = vadd.f32 1.0, %v2330_v26 }
 0x43f   : > { %v2334_v60 = vpop.eup %2333  ;;  %2353 = vrcp.f32 %v981_v48  ;;  %v3242_v18 = vadd.f32 1.0, %v2332_v46 }
 0x440   : > { %v2336_v38 = vpop.eup %2335  ;;  %2355 = vrcp.f32 %v982_v9  ;;  %v3244_v47 = vadd.f32 1.0, %v2334_v60 }
 0x441   : > { %v2338_v54 = vpop.eup %2337  ;;  %2357 = vrcp.f32 %v983_v44  ;;  %v3247_v10 = vadd.f32 1.0, %v2336_v38 }
 0x442   : > { %v2340_v42 = vpop.eup %2339  ;;  %2359 = vrcp.f32 %v984_v56 }
 0x443   : > { %v2342_v11 = vpop.eup %2341  ;;  %2361 = vrcp.f32 %v985_v28  ;;  %v3249_v28 = vadd.f32 1.0, %v2338_v54 }
 0x444   : > { %v2344_v62 = vpop.eup %2343  ;;  %2363 = vrcp.f32 %v986_v8  ;;  %v3252_v8 = vadd.f32 1.0, %v2340_v42  ;;  %v3255_v9 = vadd.f32 1.0, %v2342_v11 }
 0x445   : > { %v2346_v40 = vpop.eup %2345  ;;  %2365 = vrcp.f32 %v987_v24  ;;  %v1072_v4 = vmul.f32 %v2344_v62, %v3015_v3 }
 0x446   : > { %v2348_v23 = vpop.eup %2347  ;;  %2367 = vrcp.f32 %v988_v51  ;;  %v1073_v31 = vmul.f32 %v2346_v40, %v3018_v16 }
 0x447   : > { %v2350_v29 = vpop.eup %2349  ;;  %2369 = vrcp.f32 %v989_v14  ;;  %v1074_v27 = vmul.f32 %v2348_v23, %v3021_v21  ;;  %v2029_v48 = vpack.c.bf16 %v1072_v4, %v1072_v4 }
 0x448   : > { %v2352_v1 = vpop.eup %2351  ;;  %2371 = vrcp.f32 %v990_v30  ;;  %v1075_v3 = vmul.f32 %v2350_v29, %v3026_v19  ;;  %v2030_v26 = vpack.c.bf16 %v1073_v31, %v1073_v31 }
 0x449   : > { %v2354_v44 = vpop.eup %2353  ;;  %2373 = vrcp.f32 %v991_v55  ;;  %v1076_v16 = vmul.f32 %v2352_v1, %v3033_v63  ;;  %v3259_v51 = vpack.c.bf16 %v1074_v27, %v1074_v27  ;;  %v1204_v46 = vshrl.u32 %v2029_v48, 16 }
 0x44a   : > { %v2356_v42 = vpop.eup %2355  ;;  %2375 = vrcp.f32 %v992_v13  ;;  %v1077_v56 = vmul.f32 %v2354_v44, %v3042_v12  ;;  %v3262_v21 = vpack.c.bf16 %v1075_v3, %v1075_v3  ;;  %v1207_v60 = vshll.u32 %v2029_v48, 16 }
 0x44b   : > { %v2358_v38 = vpop.eup %2357  ;;  %2377 = vrcp.f32 %v993_v5  ;;  %v1078_v30 = vmul.f32 %v2356_v42, %v3045_v36  ;;  %v3265_v19 = vpack.c.bf16 %v1076_v16, %v1076_v16  ;;  %v1206_v24 = vrot.slane %v1204_v46, 7 }
 0x44c   : > { %v2360_v14 = vpop.eup %2359  ;;  %2379 = vrcp.f32 %v994_v39  ;;  %v1079_v63 = vmul.f32 %v2358_v38, %v3055_v50  ;;  %v3268_v54 = vpack.c.bf16 %v1077_v56, %v1077_v56  ;;  %v1212_v55 = vshrl.u32 %v2030_v26, 16 }
 0x44d   : > { %v2362_v13 = vpop.eup %2361  ;;  %2381 = vrcp.f32 %v995_v37  ;;  %v1080_v12 = vmul.f32 %v2360_v14, %v3061_v32  ;;  %v3271_v11 = vpack.c.bf16 %v1078_v30, %v1078_v30  ;;  %v3273_v62 = vor.u32 %v1207_v60, %v1206_v24 }
 0x44e   : > { %v2364_v5 = vpop.eup %2363  ;;  %2383 = vrcp.f32 %v996_v49  ;;  %v1081_v36 = vmul.f32 %v2362_v13, %v3067_v57  ;;  %v3276_v40 = vpack.c.bf16 %v1079_v63, %v1079_v63  ;;  %v1210_v39 = vrot.slane %v1206_v24, 4 }
 0x44f   : > { %v2366_v4 = vpop.eup %2365  ;;  %2385 = vrcp.f32 %v997_v53  ;;  %v1082_v50 = vmul.f32 %v2364_v5, %v3073_v52  ;;  %v3279_v23 = vpack.c.bf16 %v1080_v12, %v1080_v12  ;;  %v3281_v37 = vrot.slane %v1212_v55, 7 }
 0x450   : > { %v2368_v32 = vpop.eup %2367  ;;  %2387 = vrcp.f32 %v3234_v61  ;;  %v1083_v31 = vmul.f32 %v2366_v4, %v3079_v0  ;;  %v3285_v29 = vpack.c.bf16 %v1081_v36, %v1081_v36  ;;  %v1215_v49 = vshll.u32 %v2030_v26, 16 }
 0x451   : > { %v2370_v57 = vpop.eup %2369  ;;  %2389 = vrcp.f32 %v3236_v25  ;;  %v1084_v27 = vmul.f32 %v2368_v32, %v3083_v22  ;;  %v3289_v53 = vpack.c.bf16 %v1082_v50, %v1082_v50  ;;  %v1219_v61 = vrot.slane %v3281_v37, 4 }
 0x452   : > { %v2372_v48 = vpop.eup %2371  ;;  %2391 = vrcp.f32 %v3238_v7  ;;  %v1085_v0 = vmul.f32 %v2370_v57, %v3086_v59  ;;  %v3300_v1 = vpack.c.bf16 %v1083_v31, %v1083_v31  ;;  %v1217_v25 = vor.u32 %v1215_v49, %v3281_v37 }
 0x453   : > { %v2374_v22 = vpop.eup %2373  ;;  %2393 = vrcp.f32 %v3240_v43  ;;  %v1086_v3 = vmul.f32 %v2372_v48, %v3098_v17  ;;  %v3305_v26 = vpack.c.bf16 %v1084_v27, %v1084_v27  ;;  %v1221_v44 = vshrl.u32 %v3259_v51, 16 }
 0x454   : > { %v2376_v16 = vpop.eup %2375  ;;  %2395 = vrcp.f32 %v3242_v18  ;;  %v1087_v7 = vmul.f32 %v2374_v22, %v3102_v34  ;;  %v3310_v59 = vpack.c.bf16 %v1085_v0, %v1085_v0  ;;  %v1218_v46 = vsel %vm3293_vm7, %v1210_v39, %v1217_v25 }
 0x455   : > { %v2378_v42 = vpop.eup %2377  ;;  %2397 = vrcp.f32 %v3244_v47  ;;  %v1088_v43 = vmul.f32 %v2376_v16, %v3105_v2  ;;  %v3316_v17 = vpack.c.bf16 %v1086_v3, %v1086_v3  ;;  %v1223_v56 = vrot.slane %v1221_v44, 7  ;;  %1881 = vst.msk [vmem:[%s3116_s6 + $0x10] sm:$0xf] %vm1524_vm3, %v1218_v46  ;;  %v3944_v16 = vld [vmem:[#allocation3_spill] sm:$0xff] }
 0x456   : > { %v2380_v60 = vpop.eup %2379  ;;  %2399 = vrcp.f32 %v3247_v10  ;;  %v1089_v34 = vmul.f32 %v2378_v42, %v3109_v33  ;;  %v3322_v18 = vpack.c.bf16 %v1087_v7, %v1087_v7  ;;  %v1224_v38 = vshll.u32 %v3259_v51, 16 }
 0x457   : > { %v2382_v30 = vpop.eup %2381  ;;  %2401 = vrcp.f32 %v3249_v28  ;;  %v1090_v47 = vmul.f32 %v2380_v60, %v3123_v15  ;;  %v3327_v2 = vpack.c.bf16 %v1088_v43, %v1088_v43  ;;  %v1227_v24 = vrot.slane %v1223_v56, 4 }
 0x458   : > { %v2384_v14 = vpop.eup %2383  ;;  %2403 = vrcp.f32 %v3252_v8  ;;  %v1091_v63 = vmul.f32 %v2382_v30, %v3143_v20  ;;  %v3331_v10 = vpack.c.bf16 %v1089_v34, %v1089_v34  ;;  %v3333_v33 = vor.u32 %v1224_v38, %v1223_v56  ;;  %v3945_v56 = vld [vmem:[#allocation4_spill] sm:$0xff] }
 0x459   : > { %v2386_v55 = vpop.eup %2385  ;;  %2405 = vrcp.f32 %v3255_v9  ;;  %v1092_v51 = vmul.f32 %v2384_v14, %v3151_v35  ;;  %v3337_v28 = vpack.c.bf16 %v1090_v47, %v1090_v47  ;;  %v1229_v15 = vshrl.u32 %v3262_v21, 16  ;;  %v3946_v14 = vld [vmem:[#allocation5_spill] sm:$0xff] }
 0x45a   : > { %v2388_v13 = vpop.eup %2387  ;;  %v1093_v12 = vmul.f32 %v2386_v55, %v3159_v41  ;;  %v3341_v5 = vpack.c.bf16 %v1091_v63, %v1091_v63  ;;  %v1232_v20 = vshll.u32 %v3262_v21, 16  ;;  %v1238_v8 = vshrl.u32 %v3265_v19, 16 }
 0x45b   : > { %v2390_v36 = vpop.eup %2389  ;;  %v1094_v39 = vmul.f32 %v2388_v13, %v3167_v6  ;;  %v3346_v4 = vpack.c.bf16 %v1092_v51, %v1092_v51  ;;  %v3348_v9 = vrot.slane %v1229_v15, 7  ;;  %v1241_v35 = vshll.u32 %v3265_v19, 16  ;;  %v3943_v19 = vld [vmem:[#allocation2_spill] sm:$0xff] }
 0x45c   : > { %v2392_v50 = vpop.eup %2391  ;;  %v1095_v32 = vmul.f32 %v2390_v36, %v3175_v45  ;;  %v3352_v31 = vpack.c.bf16 %v1093_v12, %v1093_v12  ;;  %v1240_v41 = vrot.slane %v1238_v8, 7  ;;  %v1246_v49 = vshrl.u32 %v3268_v54, 16  ;;  %v3947_v13 = vld [vmem:[#allocation6_spill] sm:$0xff] }
 0x45d   : > { %v2394_v21 = vpop.eup %2393  ;;  %v1096_v57 = vmul.f32 %v2392_v50, %v3183_v58  ;;  %v3356_v27 = vpack.c.bf16 %v1094_v39, %v1094_v39  ;;  %v1234_v6 = vor.u32 %v1232_v20, %v3348_v9  ;;  %v1236_v48 = vrot.slane %v3348_v9, 4  ;;  %v3948_v39 = vld [vmem:[#allocation7_spill] sm:$0xff]  ;;  %v1924_v9 = vld [vmem:[%s3116_s6 + $0x78] sm:$0xf] }
 0x45e   : > { %v2396_v0 = vpop.eup %2395  ;;  %v1097_v25 = vmul.f32 %v2394_v21, %v3943_v19  ;;  %v3361_v22 = vpack.c.bf16 %v1095_v32, %v1095_v32  ;;  %v3363_v45 = vor.u32 %v1241_v35, %v1240_v41  ;;  %v1244_v3 = vrot.slane %v1240_v41, 4 }
 0x45f   : > { %v2398_v44 = vpop.eup %2397  ;;  %v1098_v7 = vmul.f32 %v2396_v0, %v3944_v16  ;;  %v3366_v46 = vpack.c.bf16 %v1096_v57, %v1096_v57  ;;  %v1235_v58 = vsel %vm3293_vm7, %v1227_v24, %v1234_v6  ;;  %v3370_v42 = vrot.slane %v1246_v49, 7  ;;  %v3949_v49 = vld [vmem:[#allocation8_spill] sm:$0xff] }
 0x460   : > { %v2400_v43 = vpop.eup %2399  ;;  %v1099_v60 = vmul.f32 %v2398_v44, %v3945_v56  ;;  %v3373_v34 = vpack.c.bf16 %v1097_v25, %v1097_v25  ;;  %v1249_v38 = vshll.u32 %v3268_v54, 16  ;;  %v1255_v30 = vshrl.u32 %v3271_v11, 16  ;;  %1886 = vst.msk [vmem:[%s3116_s6 + $0x1c] sm:$0xf] %vm1524_vm3, %v1235_v58 }
 0x461   : > { %v2402_v47 = vpop.eup %2401  ;;  %v1100_v63 = vmul.f32 %v2400_v43, %v3946_v14  ;;  %v3380_v55 = vpack.c.bf16 %v1098_v7, %v1098_v7  ;;  %v1253_v24 = vrot.slane %v3370_v42, 4  ;;  %v1258_v51 = vshll.u32 %v3271_v11, 16 }
 0x462   : > { %v2404_v15 = vpop.eup %2403  ;;  %v1101_v12 = vmul.f32 %v2402_v47, %v3947_v13  ;;  %v3385_v20 = vpack.c.bf16 %v1099_v60, %v1099_v60  ;;  %v1251_v54 = vor.u32 %v1249_v38, %v3370_v42  ;;  %v1257_v8 = vrot.slane %v1255_v30, 7 }
 0x463   : > { %v2406_v36 = vpop.eup %2405  ;;  %v1102_v35 = vmul.f32 %v2404_v15, %v3948_v39  ;;  %v3389_v50 = vpack.c.bf16 %v1100_v63, %v1100_v63  ;;  %v1263_v32 = vshrl.u32 %v3276_v40, 16  ;;  %v1266_v41 = vshll.u32 %v3276_v40, 16 }
 0x464   : > { %v1103_v11 = vmul.f32 %v2406_v36, %v3949_v49  ;;  %v3394_v21 = vpack.c.bf16 %v1101_v12, %v1101_v12  ;;  %v1252_v57 = vsel %vm3293_vm7, %v1244_v3, %v1251_v54  ;;  %v3398_v6 = vor.u32 %v1258_v51, %v1257_v8 }
 0x465   : > { %v3400_v0 = vpack.c.bf16 %v1102_v35, %v1102_v35  ;;  %v1261_v19 = vrot.slane %v1257_v8, 4  ;;  %v3402_v25 = vrot.slane %v1263_v32, 7  ;;  %v1272_v44 = vshrl.u32 %v3279_v23, 16  ;;  %1891 = vst.msk [vmem:[%s3116_s6 + $0x28] sm:$0xf] %vm1524_vm3, %v1252_v57 }
 0x466   : > { %v3407_v16 = vpack.c.bf16 %v1103_v11, %v1103_v11  ;;  %v1275_v40 = vshll.u32 %v3279_v23, 16  ;;  %v1280_v7 = vshrl.u32 %v3285_v29, 16  ;;  %v1283_v58 = vshll.u32 %v3285_v29, 16 }
 0x467   : > { %v1268_v3 = vor.u32 %v1266_v41, %v3402_v25  ;;  %v1274_v56 = vrot.slane %v1272_v44, 7  ;;  %v1289_v60 = vshrl.u32 %v3289_v53, 16  ;;  %v1292_v30 = vshll.u32 %v3289_v53, 16 }
 0x468   : > { %v3415_v38 = vrot.slane %v1280_v7, 7  ;;  %v1297_v47 = vshrl.u32 %v3300_v1, 16  ;;  %v1300_v23 = vshll.u32 %v3300_v1, 16  ;;  %v1306_v53 = vshrl.u32 %v3305_v26, 16 }
 0x469   : > { %v1269_v14 = vsel %vm3293_vm7, %v1261_v19, %v1268_v3  ;;  %v3422_v29 = vor.u32 %v1275_v40, %v1274_v56  ;;  %v1278_v63 = vrot.slane %v1274_v56, 4  ;;  %v1291_v51 = vrot.slane %v1289_v60, 7  ;;  %v1909_v3 = vld [vmem:[%s3116_s6 + $0x54] sm:$0xf] }
 0x46a   : > { %v1285_v15 = vor.u32 %v1283_v58, %v3415_v38  ;;  %v3426_v12 = vrot.slane %v1297_v47, 7  ;;  %1896 = vst.msk [vmem:[%s3116_s6 + $0x34] sm:$0xf] %vm1524_vm3, %v1269_v14  ;;  %v1309_v8 = vshll.u32 %v3305_v26, 16  ;;  %v1314_v36 = vshrl.u32 %v3310_v59, 16 }
 0x46b   : > { %v3431_v54 = vor.u32 %v1292_v30, %v1291_v51  ;;  %v1295_v1 = vrot.slane %v1291_v51, 4  ;;  %v1308_v41 = vrot.slane %v1306_v53, 7  ;;  %v1317_v11 = vshll.u32 %v3310_v59, 16 }
 0x46c   : > { %v1286_v39 = vsel %vm3293_vm7, %v1278_v63, %v1285_v15  ;;  %v1302_v35 = vor.u32 %v1300_v23, %v3426_v12  ;;  %v3439_v49 = vrot.slane %v1314_v36, 7  ;;  %v1323_v57 = vshrl.u32 %v3316_v17, 16  ;;  %v1907_v15 = vld [vmem:[%s3116_s6 + $0x50] sm:$0x1] }
 0x46d   : > { %v1326_v19 = vshll.u32 %v3316_v17, 16  ;;  %1901 = vst.msk [vmem:[%s3116_s6 + $0x40] sm:$0xf] %vm1524_vm3, %v1286_v39  ;;  %v3448_v44 = vor.u32 %v1309_v8, %v1308_v41  ;;  %v1312_v40 = vrot.slane %v1308_v41, 4  ;;  %v1331_v7 = vshrl.u32 %v3322_v18, 16 }
 0x46e   : > { %v1303_v26 = vsel %vm3293_vm7, %v1295_v1, %v1302_v35  ;;  %v1319_v58 = vor.u32 %v1317_v11, %v3439_v49  ;;  %v1325_v59 = vrot.slane %v1323_v57, 7  ;;  %v1334_v56 = vshll.u32 %v3322_v18, 16  ;;  %v1904_v57 = vld [vmem:[%s3116_s6 + $0x48] sm:$0xf] }
 0x46f   : > { %1906 = vst.msk [vmem:[%s3116_s6 + $0x4c] sm:$0xf] %vm1524_vm3, %v1303_v26  ;;  %v3456_v17 = vrot.slane %v1331_v7, 7  ;;  %v1340_v60 = vshrl.u32 %v3327_v2, 16  ;;  %v1343_v30 = vshll.u32 %v3327_v2, 16  ;;  %v1348_v47 = vshrl.u32 %v3331_v10, 16 }
 0x470   : > { %v1320_v23 = vsel %vm3293_vm7, %v1312_v40, %v1319_v58  ;;  %v3463_v14 = vor.u32 %v1326_v19, %v1325_v59  ;;  %v1329_v63 = vrot.slane %v1325_v59, 4  ;;  %v1351_v51 = vshll.u32 %v3331_v10, 16 }
 0x471   : > { %v1336_v18 = vor.u32 %v1334_v56, %v3456_v17  ;;  %v1342_v53 = vrot.slane %v1340_v60, 7  ;;  %v3468_v1 = vrot.slane %v1348_v47, 7  ;;  %1911 = vst.msk [vmem:[%s3116_s6 + $0x58] sm:$0xf] %vm1524_vm3, %v1320_v23  ;;  %v1357_v2 = vshrl.u32 %v3337_v28, 16 }
 0x472   : > { %v1360_v8 = vshll.u32 %v3337_v28, 16  ;;  %v1365_v36 = vshrl.u32 %v3341_v5, 16  ;;  %v1368_v39 = vshll.u32 %v3341_v5, 16  ;;  %v1374_v28 = vshrl.u32 %v3346_v4, 16 }
 0x473   : > { %v1337_v10 = vsel %vm3293_vm7, %v1329_v63, %v1336_v18  ;;  %v3478_v35 = vor.u32 %v1343_v30, %v1342_v53  ;;  %v1346_v41 = vrot.slane %v1342_v53, 4  ;;  %v1353_v11 = vor.u32 %v1351_v51, %v3468_v1 }
 0x474   : > { %v1359_v19 = vrot.slane %v1357_v2, 7  ;;  %v3482_v26 = vrot.slane %v1365_v36, 7  ;;  %1916 = vst.msk [vmem:[%s3116_s6 + $0x64] sm:$0xf] %vm1524_vm3, %v1337_v10  ;;  %v1377_v40 = vshll.u32 %v3346_v4, 16  ;;  %v1382_v7 = vshrl.u32 %v3352_v31, 16 }
 0x475   : > { %v1354_v5 = vsel %vm3293_vm7, %v1346_v41, %v1353_v11  ;;  %v1385_v58 = vshll.u32 %v3352_v31, 16  ;;  %v1376_v47 = vrot.slane %v1374_v28, 7  ;;  %v1391_v63 = vshrl.u32 %v3356_v27, 16 }
 0x476   : > { %v3492_v59 = vor.u32 %v1360_v8, %v1359_v19  ;;  %v1363_v56 = vrot.slane %v1359_v19, 4  ;;  %v1370_v60 = vor.u32 %v1368_v39, %v3482_v26  ;;  %1921 = vst.msk [vmem:[%s3116_s6 + $0x70] sm:$0xf] %vm1524_vm3, %v1354_v5  ;;  %v3498_v23 = vrot.slane %v1382_v7, 7  ;;  %v1899_v39 = vld [vmem:[%s3116_s6 + $0x3c] sm:$0xf] }
 0x477   : > { %v1394_v4 = vshll.u32 %v3356_v27, 16  ;;  %v1399_v51 = vshrl.u32 %v3361_v22, 16  ;;  %v1402_v18 = vshll.u32 %v3361_v22, 16  ;;  %v1408_v53 = vshrl.u32 %v3366_v46, 16 }
 0x478   : > { %v1371_v31 = vsel %vm3293_vm7, %v1363_v56, %v1370_v60  ;;  %v3507_v2 = vor.u32 %v1377_v40, %v1376_v47  ;;  %v1380_v8 = vrot.slane %v1376_v47, 4  ;;  %v1387_v36 = vor.u32 %v1385_v58, %v3498_v23  ;;  %v1897_v56 = vld [vmem:[%s3116_s6 + $0x38] sm:$0x1] }
 0x479   : > { %1926 = vst.msk [vmem:[%s3116_s6 + $0x7c] sm:$0xf] %vm1524_vm3, %v1371_v31  ;;  %v1393_v27 = vrot.slane %v1391_v63, 7  ;;  %v3513_v10 = vrot.slane %v1399_v51, 7  ;;  %v1410_v41 = vrot.slane %v1408_v53, 7  ;;  %v1411_v11 = vshll.u32 %v3366_v46, 16 }
 0x47a   : > { %v1388_v22 = vsel %vm3293_vm7, %v1380_v8, %v1387_v36  ;;  %v1416_v19 = vshrl.u32 %v3373_v34, 16  ;;  %v1419_v28 = vshll.u32 %v3373_v34, 16  ;;  %v1425_v5 = vshrl.u32 %v3380_v55, 16  ;;  %v1894_v53 = vld [vmem:[%s3116_s6 + $0x30] sm:$0xf] }
 0x47b   : > { %v3521_v40 = vor.u32 %v1394_v4, %v1393_v27  ;;  %v1397_v7 = vrot.slane %v1393_v27, 4  ;;  %v1404_v58 = vor.u32 %v1402_v18, %v3513_v10  ;;  %1931 = vst.msk [vmem:[%s3116_s6 + $0x88] sm:$0xf] %vm1524_vm3, %v1388_v22  ;;  %v3527_v46 = vor.u32 %v1411_v11, %v1410_v41  ;;  %v1879_v11 = vld [vmem:[%s3116_s6 + $0xc] sm:$0xf] }
 0x47c   : > { %v1414_v60 = vrot.slane %v1410_v41, 4  ;;  %v3529_v47 = vrot.slane %v1416_v19, 7  ;;  %v1427_v63 = vrot.slane %v1425_v5, 7  ;;  %v1428_v4 = vshll.u32 %v3380_v55, 16 }
 0x47d   : > { %v1405_v34 = vsel %vm3293_vm7, %v1397_v7, %v1404_v58  ;;  %v1433_v31 = vshrl.u32 %v3385_v20, 16  ;;  %v1436_v51 = vshll.u32 %v3385_v20, 16  ;;  %v1442_v36 = vshrl.u32 %v3389_v50, 16  ;;  %v1882_v7 = vld [vmem:[%s3116_s6 + $0x14] sm:$0x1] }
 0x47e   : > { %v1421_v18 = vor.u32 %v1419_v28, %v3529_v47  ;;  %v1431_v8 = vrot.slane %v1427_v63, 4  ;;  %1936 = vst.msk [vmem:[%s3116_s6 + $0x94] sm:$0xf] %vm1524_vm3, %v1405_v34  ;;  %v3541_v27 = vor.u32 %v1428_v4, %v1427_v63  ;;  %v1445_v55 = vshll.u32 %v3389_v50, 16  ;;  %v1884_v58 = vld [vmem:[%s3116_s6 + $0x18] sm:$0xf] }
 0x47f   : > { %v3543_v41 = vrot.slane %v1433_v31, 7  ;;  %v1450_v20 = vshrl.u32 %v3394_v21, 16  ;;  %v1444_v19 = vrot.slane %v1442_v36, 7  ;;  %v1453_v28 = vshll.u32 %v3394_v21, 16  ;;  %v1887_v63 = vld [vmem:[%s3116_s6 + $0x20] sm:$0x1] }
 0x480   : > { %v1422_v22 = vsel %vm3293_vm7, %v1414_v60, %v1421_v18  ;;  %v1459_v5 = vshrl.u32 %v3400_v0, 16  ;;  %v1462_v60 = vshll.u32 %v3400_v0, 16  ;;  %v1889_v31 = vld [vmem:[%s3116_s6 + $0x24] sm:$0xf]  ;;  %v1892_v18 = vld [vmem:[%s3116_s6 + $0x2c] sm:$0x1]  ;;  %v1573_v52 = vsel %vm3562_vm9, %v3448_v44, %v1909_v3 }
 0x481   : > { %v1438_v50 = vor.u32 %v1436_v51, %v3543_v41  ;;  %v3557_v4 = vrot.slane %v1450_v20, 7  ;;  %1941 = vst.msk [vmem:[%s3116_s6 + $0xa0] sm:$0xf] %vm1524_vm3, %v1422_v22  ;;  %v3570_v51 = vor.u32 %v1445_v55, %v1444_v19  ;;  %v1448_v36 = vrot.slane %v1444_v19, 4  ;;  %v1902_v22 = vld [vmem:[%s3116_s6 + $0x44] sm:$0x1] }
 0x482   : > { %v1461_v20 = vrot.slane %v1459_v5, 7  ;;  %v1467_v34 = vshrl.u32 %v3407_v16, 16  ;;  %v1470_v30 = vshll.u32 %v3407_v16, 16  ;;  %v1914_v16 = vld [vmem:[%s3116_s6 + $0x60] sm:$0xf]  ;;  %v3958_v44 = vrot.slane %v3456_v17, 4 }
 0x483   : > { %v1439_v55 = vsel %vm3293_vm7, %v1431_v8, %v1438_v50  ;;  %v1455_v19 = vor.u32 %v1453_v28, %v3557_v4  ;;  %v1457_v5 = vrot.slane %v3557_v4, 4  ;;  %v1528_v8 = vsel %vm3562_vm9, %v3273_v62, %v1879_v11  ;;  %v1912_v28 = vld [vmem:[%s3116_s6 + $0x5c] sm:$0x1]  ;;  %1910 = vst [vmem:[%s3116_s6 + $0x54] sm:$0xf] %v1573_v52 }
 0x484   : > { %v3591_v32 = vor.u32 %v1462_v60, %v1461_v20  ;;  %v1465_v13 = vrot.slane %v1461_v20, 4  ;;  %v3593_v43 = vrot.slane %v1467_v34, 7  ;;  %1946 = vst.msk [vmem:[%s3116_s6 + $0xac] sm:$0xf] %vm1524_vm3, %v1439_v55  ;;  %1880 = vst [vmem:[%s3116_s6 + $0xc] sm:$0xf] %v1528_v8  ;;  %v1535_v34 = vsel %vm3575_vm10, %v1219_v61, %v1882_v7 }
 0x485   : > { %v1456_v50 = vsel %vm3293_vm7, %v1448_v36, %v1455_v19  ;;  %v1538_v62 = vsel %vm3562_vm9, %v3333_v33, %v1884_v58  ;;  %v1542_v11 = vsel %vm3575_vm10, %v1236_v48, %v1887_v63  ;;  %v1917_v60 = vld [vmem:[%s3116_s6 + $0x68] sm:$0x1]  ;;  %v1919_v36 = vld [vmem:[%s3116_s6 + $0x6c] sm:$0xf]  ;;  %v1922_v20 = vld [vmem:[%s3116_s6 + $0x74] sm:$0x1]  ;;  %v1545_v61 = vsel %vm3562_vm9, %v3363_v45, %v1889_v31 }
 0x486   : > { %v1472_v37 = vor.u32 %v1470_v30, %v3593_v43  ;;  %v1474_v55 = vrot.slane %v3593_v43, 4  ;;  %1883 = vst [vmem:[%s3116_s6 + $0x14] sm:$0x1] %v1535_v34  ;;  %1885 = vst [vmem:[%s3116_s6 + $0x18] sm:$0xf] %v1538_v62  ;;  %v1549_v33 = vsel %vm3575_vm10, %v1253_v24, %v1892_v18  ;;  %v1552_v30 = vsel %vm3562_vm9, %v3398_v6, %v1894_v53 }
 0x487   : > { %1888 = vst [vmem:[%s3116_s6 + $0x20] sm:$0x1] %v1542_v11  ;;  %v1927_v48 = vld [vmem:[%s3116_s6 + $0x80] sm:$0x1]  ;;  %1951 = vst.msk [vmem:[%s3116_s6 + $0xb8] sm:$0xf] %vm1524_vm3, %v1456_v50  ;;  %v1559_v24 = vsel %vm3562_vm9, %v3422_v29, %v1899_v39  ;;  %v1584_v3 = vsel %vm3575_vm10, %v3958_v44, %v1917_v60 }
 0x488   : > { %1890 = vst [vmem:[%s3116_s6 + $0x24] sm:$0xf] %v1545_v61  ;;  %1893 = vst [vmem:[%s3116_s6 + $0x2c] sm:$0x1] %v1549_v33  ;;  %v3954_v45 = vrot.slane %v3402_v25, 4  ;;  %v3955_v7 = vrot.slane %v3415_v38, 4  ;;  %v1473_v53 = vsel %vm3293_vm7, %v1465_v13, %v1472_v37  ;;  %v1566_v38 = vsel %vm3562_vm9, %v3431_v54, %v1904_v57 }
 0x489   : > { %v1929_v63 = vld [vmem:[%s3116_s6 + $0x84] sm:$0xf]  ;;  %v1932_v6 = vld [vmem:[%s3116_s6 + $0x8c] sm:$0x1]  ;;  %v1934_v25 = vld [vmem:[%s3116_s6 + $0x90] sm:$0xf]  ;;  %v1587_v57 = vsel %vm3562_vm9, %v3478_v35, %v1919_v36  ;;  %v1594_v35 = vsel %vm3562_vm9, %v3492_v59, %v1924_v9 }
 0x48a   : > { %v1556_v42 = vsel %vm3575_vm10, %v3954_v45, %v1897_v56  ;;  %v1563_v58 = vsel %vm3575_vm10, %v3955_v7, %v1902_v22  ;;  %1895 = vst [vmem:[%s3116_s6 + $0x30] sm:$0xf] %v1552_v30  ;;  %1900 = vst [vmem:[%s3116_s6 + $0x3c] sm:$0xf] %v1559_v24  ;;  %v3956_v29 = vrot.slane %v3426_v12, 4  ;;  %v3957_v12 = vrot.slane %v3439_v49, 4 }
 0x48b   : > { %1898 = vst [vmem:[%s3116_s6 + $0x38] sm:$0x1] %v1556_v42  ;;  %1903 = vst [vmem:[%s3116_s6 + $0x44] sm:$0x1] %v1563_v58  ;;  %v1937_v13 = vld [vmem:[%s3116_s6 + $0x98] sm:$0x1] }
 0x48c   : > { %v1570_v39 = vsel %vm3575_vm10, %v3956_v29, %v1907_v15  ;;  %v1939_v56 = vld [vmem:[%s3116_s6 + $0x9c] sm:$0xf]  ;;  %v1942_v31 = vld [vmem:[%s3116_s6 + $0xa4] sm:$0x1]  ;;  %1905 = vst [vmem:[%s3116_s6 + $0x48] sm:$0xf] %v1566_v38  ;;  %v1577_v54 = vsel %vm3575_vm10, %v3957_v12, %v1912_v28  ;;  %v1580_v15 = vsel %vm3562_vm9, %v3463_v14, %v1914_v16  ;;  %v1601_v28 = vsel %vm3562_vm9, %v3507_v2, %v1929_v63 }
 0x48d   : > { %1908 = vst [vmem:[%s3116_s6 + $0x50] sm:$0x1] %v1570_v39  ;;  %v1944_v49 = vld [vmem:[%s3116_s6 + $0xa8] sm:$0xf]  ;;  %v1947_v18 = vld [vmem:[%s3116_s6 + $0xb0] sm:$0x1]  ;;  %v1608_v2 = vsel %vm3562_vm9, %v3521_v40, %v1934_v25  ;;  %v1615_v11 = vsel %vm3562_vm9, %v3527_v46, %v1939_v56 }
 0x48e   : > { %v1949_v22 = vld [vmem:[%s3116_s6 + $0xb4] sm:$0xf]  ;;  %1956 = vst.msk [vmem:[%s3116_s6 + $0xc4] sm:$0xf] %vm1524_vm3, %v1473_v53  ;;  %1913 = vst [vmem:[%s3116_s6 + $0x5c] sm:$0x1] %v1577_v54  ;;  %v1622_v46 = vsel %vm3562_vm9, %v3541_v27, %v1944_v49 }
 0x48f   : > { %1915 = vst [vmem:[%s3116_s6 + $0x60] sm:$0xf] %v1580_v15  ;;  %1918 = vst [vmem:[%s3116_s6 + $0x68] sm:$0x1] %v1584_v3  ;;  %v3959_v17 = vrot.slane %v3468_v1, 4  ;;  %v3960_v19 = vrot.slane %v3482_v26, 4 }
 0x490   : > { %1920 = vst [vmem:[%s3116_s6 + $0x6c] sm:$0xf] %v1587_v57  ;;  %v1952_v1 = vld [vmem:[%s3116_s6 + $0xbc] sm:$0x1]  ;;  %v1954_v16 = vld [vmem:[%s3116_s6 + $0xc0] sm:$0xf] }
 0x491   : > { %v1591_v14 = vsel %vm3575_vm10, %v3959_v17, %v1922_v20  ;;  %v1598_v8 = vsel %vm3575_vm10, %v3960_v19, %v1927_v48  ;;  %v1957_v50 = vld [vmem:[%s3116_s6 + $0xc8] sm:$0x1]  ;;  %1925 = vst [vmem:[%s3116_s6 + $0x78] sm:$0xf] %v1594_v35  ;;  %1930 = vst [vmem:[%s3116_s6 + $0x84] sm:$0xf] %v1601_v28  ;;  %v1633_v27 = vsel %vm3575_vm10, %v1457_v5, %v1952_v1 }
 0x492   : > { %1923 = vst [vmem:[%s3116_s6 + $0x74] sm:$0x1] %v1591_v14  ;;  %1928 = vst [vmem:[%s3116_s6 + $0x80] sm:$0x1] %v1598_v8  ;;  %v3961_v26 = vrot.slane %v3498_v23, 4  ;;  %v3962_v34 = vrot.slane %v3513_v10, 4 }
 0x493   : > { %1935 = vst [vmem:[%s3116_s6 + $0x90] sm:$0xf] %v1608_v2  ;;  %1940 = vst [vmem:[%s3116_s6 + $0x9c] sm:$0xf] %v1615_v11  ;;  %v3965_v10 = vrot.slane %v3529_v47, 4  ;;  %v3966_v60 = vrot.slane %v3543_v41, 4  ;;  %v1629_v47 = vsel %vm3562_vm9, %v3570_v51, %v1949_v22  ;;  %v1636_v41 = vsel %vm3562_vm9, %v3591_v32, %v1954_v16 }
 0x494   : > { %v1605_v59 = vsel %vm3575_vm10, %v3961_v26, %v1932_v6  ;;  %v1612_v62 = vsel %vm3575_vm10, %v3962_v34, %v1937_v13  ;;  %v1962_v20 = vld [vmem:[%s3116_s6 + $0xc] sm:$0x1]  ;;  %1945 = vst [vmem:[%s3116_s6 + $0xa8] sm:$0xf] %v1622_v46  ;;  %1950 = vst [vmem:[%s3116_s6 + $0xb4] sm:$0xf] %v1629_v47  ;;  %v1640_v51 = vsel %vm3575_vm10, %v1474_v55, %v1957_v50 }
 0x495   : > { %1933 = vst [vmem:[%s3116_s6 + $0x8c] sm:$0x1] %v1605_v59  ;;  %1938 = vst [vmem:[%s3116_s6 + $0x98] sm:$0x1] %v1612_v62  ;;  %v1619_v40 = vsel %vm3575_vm10, %v3965_v10, %v1942_v31  ;;  %v1626_v36 = vsel %vm3575_vm10, %v3966_v60, %v1947_v18  ;;  %v1651_v37 = vsel %vm3575_vm10, 0, %v1962_v20 }
 0x496   : > { %1943 = vst [vmem:[%s3116_s6 + $0xa4] sm:$0x1] %v1619_v40  ;;  %1948 = vst [vmem:[%s3116_s6 + $0xb0] sm:$0x1] %v1626_v36  ;;  %v1964_v61 = vld [vmem:[%s3116_s6 + $0x18] sm:$0x1] }
 0x497   : > { %v1994_v4 = vld [vmem:[%s3116_s6 + $0x14] sm:$0x1]  ;;  %1953 = vst [vmem:[%s3116_s6 + $0xbc] sm:$0x1] %v1633_v27  ;;  %1955 = vst [vmem:[%s3116_s6 + $0xc0] sm:$0xf] %v1636_v41 }
 0x498   : > { %1958 = vst [vmem:[%s3116_s6 + $0xc8] sm:$0x1] %v1640_v51  ;;  %1963 = vst [vmem:[%s3116_s6 + $0xc] sm:$0x1] %v1651_v37  ;;  %v1654_v43 = vsel %vm3575_vm10, 0, %v1964_v61  ;;  %v1700_v21 = vsel %vm3736_vm11, 0, %v1994_v4 }
 0x499   : > { %v1966_v32 = vld [vmem:[%s3116_s6 + $0x24] sm:$0x1]  ;;  %v1996_v5 = vld [vmem:[%s3116_s6 + $0x20] sm:$0x1]  ;;  %1965 = vst [vmem:[%s3116_s6 + $0x18] sm:$0x1] %v1654_v43 }
 0x49a   : > { %v1657_v55 = vsel %vm3575_vm10, 0, %v1966_v32  ;;  %v1968_v33 = vld [vmem:[%s3116_s6 + $0x30] sm:$0x1]  ;;  %v1970_v9 = vld [vmem:[%s3116_s6 + $0x3c] sm:$0x1]  ;;  %v1703_v48 = vsel %vm3736_vm11, 0, %v1996_v5 }
 0x49b   : > { %1995 = vst [vmem:[%s3116_s6 + $0x14] sm:$0x1] %v1700_v21  ;;  %1967 = vst [vmem:[%s3116_s6 + $0x24] sm:$0x1] %v1657_v55  ;;  %v1660_v30 = vsel %vm3575_vm10, 0, %v1968_v33  ;;  %v1663_v45 = vsel %vm3575_vm10, 0, %v1970_v9 }
 0x49c   : > { %v1972_v42 = vld [vmem:[%s3116_s6 + $0x48] sm:$0x1]  ;;  %v1974_v24 = vld [vmem:[%s3116_s6 + $0x54] sm:$0x1]  ;;  %1997 = vst [vmem:[%s3116_s6 + $0x20] sm:$0x1] %v1703_v48 }
 0x49d   : > { %1969 = vst [vmem:[%s3116_s6 + $0x30] sm:$0x1] %v1660_v30  ;;  %1971 = vst [vmem:[%s3116_s6 + $0x3c] sm:$0x1] %v1663_v45  ;;  %v1666_v7 = vsel %vm3575_vm10, 0, %v1972_v42  ;;  %v1669_v58 = vsel %vm3575_vm10, 0, %v1974_v24 }
 0x49e   : > { %v1976_v63 = vld [vmem:[%s3116_s6 + $0x60] sm:$0x1]  ;;  %v1978_v6 = vld [vmem:[%s3116_s6 + $0x6c] sm:$0x1]  ;;  %1973 = vst [vmem:[%s3116_s6 + $0x48] sm:$0x1] %v1666_v7 }
 0x49f   : > { %1975 = vst [vmem:[%s3116_s6 + $0x54] sm:$0x1] %v1669_v58  ;;  %v1672_v25 = vsel %vm3575_vm10, 0, %v1976_v63  ;;  %v1675_v53 = vsel %vm3575_vm10, 0, %v1978_v6  ;;  %v1980_v38 = vld [vmem:[%s3116_s6 + $0x78] sm:$0x1] }
 0x4a0   : > { %v1982_v29 = vld [vmem:[%s3116_s6 + $0x84] sm:$0x1]  ;;  %1977 = vst [vmem:[%s3116_s6 + $0x60] sm:$0x1] %v1672_v25  ;;  %1979 = vst [vmem:[%s3116_s6 + $0x6c] sm:$0x1] %v1675_v53 }
 0x4a1   : > { %v1678_v39 = vsel %vm3575_vm10, 0, %v1980_v38  ;;  %v1681_v52 = vsel %vm3575_vm10, 0, %v1982_v29  ;;  %v1984_v13 = vld [vmem:[%s3116_s6 + $0x90] sm:$0x1]  ;;  %v1986_v56 = vld [vmem:[%s3116_s6 + $0x9c] sm:$0x1] }
 0x4a2   : > { %1981 = vst [vmem:[%s3116_s6 + $0x78] sm:$0x1] %v1678_v39  ;;  %1983 = vst [vmem:[%s3116_s6 + $0x84] sm:$0x1] %v1681_v52  ;;  %v1684_v31 = vsel %vm3575_vm10, 0, %v1984_v13  ;;  %v1687_v12 = vsel %vm3575_vm10, 0, %v1986_v56 }
 0x4a3   : > { %v1988_v54 = vld [vmem:[%s3116_s6 + $0xa8] sm:$0x1]  ;;  %v1990_v15 = vld [vmem:[%s3116_s6 + $0xb4] sm:$0x1]  ;;  %1985 = vst [vmem:[%s3116_s6 + $0x90] sm:$0x1] %v1684_v31 }
 0x4a4   : > { %1987 = vst [vmem:[%s3116_s6 + $0x9c] sm:$0x1] %v1687_v12  ;;  %v1690_v44 = vsel %vm3575_vm10, 0, %v1988_v54  ;;  %v1693_v3 = vsel %vm3575_vm10, 0, %v1990_v15  ;;  %v1992_v57 = vld [vmem:[%s3116_s6 + $0xc0] sm:$0x1] }
 0x4a5   : > { %v1998_v49 = vld [vmem:[%s3116_s6 + $0x2c] sm:$0x1]  ;;  %1989 = vst [vmem:[%s3116_s6 + $0xa8] sm:$0x1] %v1690_v44  ;;  %1991 = vst [vmem:[%s3116_s6 + $0xb4] sm:$0x1] %v1693_v3 }
 0x4a6   : > { %v1696_v18 = vsel %vm3575_vm10, 0, %v1992_v57  ;;  %v1706_v22 = vsel %vm3736_vm11, 0, %v1998_v49  ;;  %v2000_v17 = vld [vmem:[%s3116_s6 + $0x38] sm:$0x1]  ;;  %v2002_v14 = vld [vmem:[%s3116_s6 + $0x44] sm:$0x1] }
 0x4a7   : > { %1993 = vst [vmem:[%s3116_s6 + $0xc0] sm:$0x1] %v1696_v18  ;;  %1999 = vst [vmem:[%s3116_s6 + $0x2c] sm:$0x1] %v1706_v22  ;;  %v1709_v35 = vsel %vm3736_vm11, 0, %v2000_v17  ;;  %v1712_v0 = vsel %vm3736_vm11, 0, %v2002_v14 }
 0x4a8   : > { %v2004_v19 = vld [vmem:[%s3116_s6 + $0x50] sm:$0x1]  ;;  %v2006_v8 = vld [vmem:[%s3116_s6 + $0x5c] sm:$0x1]  ;;  %2001 = vst [vmem:[%s3116_s6 + $0x38] sm:$0x1] %v1709_v35 }
 0x4a9   : > { %2003 = vst [vmem:[%s3116_s6 + $0x44] sm:$0x1] %v1712_v0  ;;  %v1715_v28 = vsel %vm3736_vm11, 0, %v2004_v19  ;;  %v1718_v1 = vsel %vm3736_vm11, 0, %v2006_v8  ;;  %v2008_v16 = vld [vmem:[%s3116_s6 + $0x68] sm:$0x1] }
 0x4aa   : > { %v2010_v50 = vld [vmem:[%s3116_s6 + $0x74] sm:$0x1]  ;;  %2005 = vst [vmem:[%s3116_s6 + $0x50] sm:$0x1] %v1715_v28  ;;  %2007 = vst [vmem:[%s3116_s6 + $0x5c] sm:$0x1] %v1718_v1 }
 0x4ab   : > { %v1721_v26 = vsel %vm3736_vm11, 0, %v2008_v16  ;;  %v1724_v59 = vsel %vm3736_vm11, 0, %v2010_v50  ;;  %v2012_v2 = vld [vmem:[%s3116_s6 + $0x80] sm:$0x1]  ;;  %v2014_v34 = vld [vmem:[%s3116_s6 + $0x8c] sm:$0x1] }
 0x4ac   : > { %2009 = vst [vmem:[%s3116_s6 + $0x68] sm:$0x1] %v1721_v26  ;;  %2011 = vst [vmem:[%s3116_s6 + $0x74] sm:$0x1] %v1724_v59  ;;  %v1727_v62 = vsel %vm3736_vm11, 0, %v2012_v2  ;;  %v1730_v11 = vsel %vm3736_vm11, 0, %v2014_v34 }
 0x4ad   : > { %v2016_v10 = vld [vmem:[%s3116_s6 + $0x98] sm:$0x1]  ;;  %v2018_v40 = vld [vmem:[%s3116_s6 + $0xa4] sm:$0x1]  ;;  %2013 = vst [vmem:[%s3116_s6 + $0x80] sm:$0x1] %v1727_v62 }
 0x4ae   : > { %2015 = vst [vmem:[%s3116_s6 + $0x8c] sm:$0x1] %v1730_v11  ;;  %v1733_v46 = vsel %vm3736_vm11, 0, %v2016_v10  ;;  %v1736_v60 = vsel %vm3736_vm11, 0, %v2018_v40  ;;  %v2020_v36 = vld [vmem:[%s3116_s6 + $0xb0] sm:$0x1] }
 0x4af   : > { %v2022_v47 = vld [vmem:[%s3116_s6 + $0xbc] sm:$0x1]  ;;  %2017 = vst [vmem:[%s3116_s6 + $0x98] sm:$0x1] %v1733_v46  ;;  %2019 = vst [vmem:[%s3116_s6 + $0xa4] sm:$0x1] %v1736_v60 }
 0x4b0   : > { %v1739_v20 = vsel %vm3736_vm11, 0, %v2020_v36  ;;  %v1742_v27 = vsel %vm3736_vm11, 0, %v2022_v47  ;;  %v2024_v41 = vld [vmem:[%s3116_s6 + $0xc8] sm:$0x1] }
 0x4b1   : > { %2021 = vst [vmem:[%s3116_s6 + $0xb0] sm:$0x1] %v1739_v20  ;;  %2023 = vst [vmem:[%s3116_s6 + $0xbc] sm:$0x1] %v1742_v27  ;;  %v1745_v51 = vsel %vm3736_vm11, 0, %v2024_v41 }
 0x4b2   : > { %2025 = vst [vmem:[%s3116_s6 + $0xc8] sm:$0x1] %v1745_v51 }
 0x4b3 PF: > { %s15_s18 = sadd.s32 1, %s2413_s18  }
 0x4b4   : > { %p12_p4 = scmp.ge.s32.totalorder %s15_s18, 4  }
 0x4b6   :  { %14 = sbr.rel (!%p12_p4) target bundleno = 1 (0x1), region = 72 }

// kernel: down_block_3d.5
= control target key start
LH: loop header
LB: loop body
LE: loop exit
PB: predicated region body
PF: predicated region fallthrough
CT: control target
= control target key end

     0   :  { %s2408_s18 = smov 0   ;;  %s3842_s0 = inlined_call_operand.vmem [shape: bf16[2,16,16,32], index: 0, kind: input, shape index: {}]   ;;  %s3843_s1 = inlined_call_operand.vmem [shape: f32[32,32], index: 1, kind: input, shape index: {}]   ;;  %s3844_s2 = inlined_call_operand.vmem [shape: f32[32,32], index: 2, kind: input, shape index: {}]   ;;  %s3845_s3 = inlined_call_operand.vmem [shape: f32[1,32], index: 3, kind: input, shape index: {}]   ;;  %s3846_s4 = inlined_call_operand.vmem [shape: f32[1,32], index: 4, kind: input, shape index: {}]   ;;  %s3847_s5 = inlined_call_operand.vmem [shape: bf16[2,18,18,32], index: 5, kind: output, shape index: {}]  }
   0x1 LB: > { %s1797_s19 = sadd.s32 4294967295, %s2372_s18   ;;  %p1801_p0 = scmp.ge.s32.totalorder %s2372_s18, 1  ;;  %s2372_s18 = sphi %s2408_s18, %s15_s18  }
   0x2   : > { %p187_p1 = scmp.lt.s32.totalorder %s2372_s18, 3 }
   0x4   : > { %p188_p2 = pnand %p1801_p0, %p187_p1 }
   0x6   : > { %191 = sbr.rel (%p188_p2) target bundleno = 1203 (0x4b3), region = 40 }
   0xd   : > { %v360_v0 = vld [vmem:[%s3843_s1] sm:$0xff]  ;;  %v361_v1 = vld [vmem:[%s3843_s1 + $0x8] sm:$0xff]  ;;  %v362_v2 = vld [vmem:[%s3843_s1 + $0x10] sm:$0xff]  ;;  %v2374_v3 = vmov 0.0|0.0   ;;  %vm2375_vm0 = vmmov 0   ;;  %v2376_v6 = vmov 0.0  }
   0xe   : > { %2199 = vmatprep.subr.bf16.mxu0 %v2374_v3  ;;  %v2426_v4 = vpack.c.bf16 %v361_v1, %v360_v0  ;;  %v363_v5 = vld [vmem:[%s3843_s1 + $0x18] sm:$0xff]  ;;  %2163 = vmatprep.mubr.msk.f32.mxu0 %vm2375_vm0, %v2376_v6  ;;  %p215_p3 = scmp.lt.s32.totalorder %s1797_s19, 1  ;;  %v437_v7 = vld [vmem:[%s3844_s2] sm:$0xff]  ;;  %v438_v8 = vld [vmem:[%s3844_s2 + $0x8] sm:$0xff]  ;;  %vm290_vm1 = vcmask 261120   ;;  %vm1519_vm2 = vcmask 257024  }
   0xf   : > { %2205 = vmatprep.subr.bf16.mxu1 %v2374_v3  ;;  %v2440_v9 = vpack.c.bf16 %v438_v8, %v437_v7  ;;  %v439_v10 = vld [vmem:[%s3844_s2 + $0x10] sm:$0xff]  ;;  %v440_v11 = vld [vmem:[%s3844_s2 + $0x18] sm:$0xff]  ;;  %2174 = vmatprep.mubr.msk.f32.mxu1 %vm2375_vm0, %v2376_v6  ;;  %v2451_v12 = vpack.c.bf16 %v363_v5, %v362_v2  ;;  %vm1527_vm3 = vcmask 253952   ;;  %vm1195_vm4 = vsmask.f32 256 }
  0x10   : > { %2201 = vmatpush3.bf16.msra.mxu0 %v2426_v4  ;;  %s3899_s19 = smov (!%p215_p3, %s1797_s19), 1  ;;  %v2457_v13 = vpack.c.bf16 %v440_v11, %v439_v10  ;;  %vm1196_vm5 = vsmask.f32 4368  ;;  %vm1520_vm7 = vsmask.f32 7938  ;;  %vm3510_vm9 = vmand %vm1527_vm3, %vm1195_vm4 }
  0x11   : > { %2202 = vmatprep.subr.bf16.mxu0 %v2374_v3  ;;  %2207 = vmatpush3.bf16.msra.mxu1 %v2440_v9  ;;  %s2023_s11 = sshll.u32 %s3899_s19, 7  ;;  %s2223_s21 = smul.u32 216, %s3899_s19  ;;  %vm3228_vm6 = vmor %vm1195_vm4, %vm1196_vm5 }
  0x12   : > { %2208 = vmatprep.subr.bf16.mxu1 %v2374_v3  ;;  %s2464_s14 = scalar_lea.vmem %s3842_s0, %s2023_s11  ;;  %vm3497_vm8 = vmand %vm1519_vm2, %vm1520_vm7 }
  0x13   : > { %v2470_v14 = vld [vmem:[%s2464_s14] sm:$0xff]   ;;  %v2473_v15 = vld [vmem:[%s2464_s14 + $0x8] sm:$0xff]   ;;  %v2480_v19 = vld [vmem:[%s2464_s14 + $0x10] sm:$0xff]   ;;  %s3051_s23 = scalar_lea.vmem %s3847_s5, %s2223_s21 }
  0x14   : > { %2204 = vmatpush3.bf16.msra.mxu0 %v2451_v12  ;;  %v2058_v16 = vunpack.c.l.bf16 %v2470_v14  ;;  %v2059_v17 = vunpack.c.h.bf16 %v2470_v14  ;;  %v2062_v18 = vunpack.c.l.bf16 %v2473_v15  ;;  %v2063_v20 = vunpack.c.h.bf16 %v2473_v15  ;;  %v2494_v25 = vld [vmem:[%s2464_s14 + $0x18] sm:$0xff]   ;;  %v2505_v32 = vld [vmem:[%s2464_s14 + $0x20] sm:$0xff]   ;;  %v2516_v39 = vld [vmem:[%s2464_s14 + $0x28] sm:$0xff]  }
  0x15   : > { %2210 = vmatpush3.bf16.msra.mxu1 %v2457_v13  ;;  %2211 = vmatprep.subr.bf16.mxu0 %v2374_v3  ;;  %v2066_v21 = vunpack.c.l.bf16 %v2480_v19  ;;  %v2067_v27 = vunpack.c.h.bf16 %v2480_v19  ;;  %v2070_v30 = vunpack.c.l.bf16 %v2494_v25  ;;  %v2071_v34 = vunpack.c.h.bf16 %v2494_v25  ;;  %v2527_v46 = vld [vmem:[%s2464_s14 + $0x30] sm:$0xff]   ;;  %v2538_v53 = vld [vmem:[%s2464_s14 + $0x38] sm:$0xff]   ;;  %v2549_v60 = vld [vmem:[%s2464_s14 + $0x40] sm:$0xff]  }
  0x16   : > { %2217 = vmatprep.subr.bf16.mxu1 %v2374_v3  ;;  %v291_v22 = vsel %vm290_vm1, %v2058_v16, 0.0  ;;  %v292_v23 = vsel %vm290_vm1, %v2059_v17, 0.0  ;;  %v294_v24 = vsel %vm290_vm1, %v2062_v18, 0.0  ;;  %v296_v28 = vsel %vm290_vm1, %v2063_v20, 0.0  ;;  %v2560_v5 = vld [vmem:[%s2464_s14 + $0x48] sm:$0xff]   ;;  %vm3671_vm10 = vmand %vm1527_vm3, %vm1520_vm7 }
  0x17   : > { %v293_v26 = vadd.f32 %v292_v23, %v291_v22  ;;  %v298_v31 = vsel %vm290_vm1, %v2066_v21, 0.0  ;;  %v300_v35 = vsel %vm290_vm1, %v2067_v27, 0.0  ;;  %v2074_v37 = vunpack.c.l.bf16 %v2505_v32 }
  0x18   : > { %v302_v38 = vsel %vm290_vm1, %v2070_v30, 0.0  ;;  %v2075_v41 = vunpack.c.h.bf16 %v2505_v32  ;;  %v304_v42 = vsel %vm290_vm1, %v2071_v34, 0.0  ;;  %v2078_v44 = vunpack.c.l.bf16 %v2516_v39 }
  0x19   : > { %v295_v29 = vadd.f32 %v294_v24, %v293_v26  ;;  %v306_v45 = vsel %vm290_vm1, %v2074_v37, 0.0  ;;  %v2079_v48 = vunpack.c.h.bf16 %v2516_v39  ;;  %v2082_v51 = vunpack.c.l.bf16 %v2527_v46  ;;  %v2571_v24 = vld [vmem:[%s2464_s14 + $0x50] sm:$0xff]  }
  0x1a   : > { %v308_v49 = vsel %vm290_vm1, %v2075_v41, 0.0  ;;  %v310_v52 = vsel %vm290_vm1, %v2078_v44, 0.0  ;;  %v2083_v55 = vunpack.c.h.bf16 %v2527_v46  ;;  %v2086_v58 = vunpack.c.l.bf16 %v2538_v53 }
  0x1b   : > { %v297_v33 = vadd.f32 %v296_v28, %v295_v29  ;;  %v312_v56 = vsel %vm290_vm1, %v2079_v48, 0.0  ;;  %v314_v59 = vsel %vm290_vm1, %v2082_v51, 0.0  ;;  %v2087_v62 = vunpack.c.h.bf16 %v2538_v53 }
  0x1c   : > { %v316_v63 = vsel %vm290_vm1, %v2083_v55, 0.0  ;;  %v2090_v1 = vunpack.c.l.bf16 %v2549_v60  ;;  %v318_v2 = vsel %vm290_vm1, %v2086_v58, 0.0  ;;  %v2091_v8 = vunpack.c.h.bf16 %v2549_v60 }
  0x1d   : > { %v299_v36 = vadd.f32 %v298_v31, %v297_v33  ;;  %v320_v10 = vsel %vm290_vm1, %v2087_v62, 0.0  ;;  %v2094_v22 = vunpack.c.l.bf16 %v2560_v5  ;;  %v2095_v28 = vunpack.c.h.bf16 %v2560_v5 }
  0x1e   : > { %v322_v23 = vsel %vm290_vm1, %v2090_v1, 0.0  ;;  %v324_v29 = vsel %vm290_vm1, %v2091_v8, 0.0  ;;  %v2098_v33 = vunpack.c.l.bf16 %v2571_v24 }
  0x1f   : > { %v301_v40 = vadd.f32 %v300_v35, %v299_v36  ;;  %v326_v35 = vsel %vm290_vm1, %v2094_v22, 0.0  ;;  %v2582_v36 = vld [vmem:[%s2464_s14 + $0x58] sm:$0xff]  }
  0x21   : > { %v303_v43 = vadd.f32 %v302_v38, %v301_v40  ;;  %v2099_v40 = vunpack.c.h.bf16 %v2571_v24 }
  0x23   : > { %v305_v47 = vadd.f32 %v304_v42, %v303_v43  ;;  %v328_v42 = vsel %vm290_vm1, %v2095_v28, 0.0 }
  0x25   : > { %v307_v50 = vadd.f32 %v306_v45, %v305_v47  ;;  %v2102_v45 = vunpack.c.l.bf16 %v2582_v36  ;;  %v330_v47 = vsel %vm290_vm1, %v2098_v33, 0.0 }
  0x27   : > { %v309_v54 = vadd.f32 %v308_v49, %v307_v50  ;;  %v2593_v49 = vld [vmem:[%s2464_s14 + $0x60] sm:$0xff]  }
  0x29   : > { %v311_v57 = vadd.f32 %v310_v52, %v309_v54  ;;  %v2103_v52 = vunpack.c.h.bf16 %v2582_v36  ;;  %v332_v54 = vsel %vm290_vm1, %v2099_v40, 0.0  ;;  %v3861_v36 = vunpack.c.h.bf16 %v2593_v49 }
  0x2b   : > { %v313_v61 = vadd.f32 %v312_v56, %v311_v57  ;;  %v3852_v57 = vunpack.c.l.bf16 %v2593_v49 }
  0x2d   : > { %v315_v0 = vadd.f32 %v314_v59, %v313_v61  ;;  %v334_v59 = vsel %vm290_vm1, %v2102_v45, 0.0  ;;  %v2604_v61 = vld [vmem:[%s2464_s14 + $0x68] sm:$0xff]  }
  0x2f   : > { %v317_v7 = vadd.f32 %v316_v63, %v315_v0  ;;  %v3851_v0 = vunpack.c.h.bf16 %v2593_v49 }
  0x31   : > { %v319_v11 = vadd.f32 %v318_v2, %v317_v7  ;;  %v336_v2 = vsel %vm290_vm1, %v2103_v52, 0.0 }
  0x33   : > { %v321_v26 = vadd.f32 %v320_v10, %v319_v11  ;;  %v3850_v10 = vunpack.c.l.bf16 %v2604_v61  ;;  %v338_v11 = vsel %vm290_vm1, %v3852_v57, 0.0 }
  0x35   : > { %v323_v31 = vadd.f32 %v322_v23, %v321_v26  ;;  %v2615_v23 = vld [vmem:[%s2464_s14 + $0x70] sm:$0xff]  }
  0x37   : > { %v325_v38 = vadd.f32 %v324_v29, %v323_v31  ;;  %v3848_v29 = vunpack.c.h.bf16 %v2604_v61  ;;  %v340_v31 = vsel %vm290_vm1, %v3851_v0, 0.0 }
  0x39   : > { %v327_v43 = vadd.f32 %v326_v35, %v325_v38  ;;  %v3849_v38 = vunpack.c.l.bf16 %v2615_v23 }
  0x3b   : > { %v329_v50 = vadd.f32 %v328_v42, %v327_v43  ;;  %v342_v42 = vsel %vm290_vm1, %v3850_v10, 0.0  ;;  %v2626_v43 = vld [vmem:[%s2464_s14 + $0x78] sm:$0xff]  }
  0x3d   : > { %v331_v56 = vadd.f32 %v330_v47, %v329_v50  ;;  %v2115_v50 = vunpack.c.h.bf16 %v2615_v23 }
  0x3f   : > { %v333_v63 = vadd.f32 %v332_v54, %v331_v56  ;;  %v344_v54 = vsel %vm290_vm1, %v3848_v29, 0.0 }
  0x41   : > { %v335_v7 = vadd.f32 %v334_v59, %v333_v63  ;;  %v2118_v59 = vunpack.c.l.bf16 %v2626_v43  ;;  %v346_v63 = vsel %vm290_vm1, %v3849_v38, 0.0 }
  0x43   : > { %v337_v26 = vadd.f32 %v336_v2, %v335_v7  ;;  %v2119_v7 = vunpack.c.h.bf16 %v2626_v43 }
  0x45   : > { %v339_v35 = vadd.f32 %v338_v11, %v337_v26  ;;  %v348_v11 = vsel %vm290_vm1, %v2115_v50, 0.0 }
  0x47   : > { %v341_v47 = vadd.f32 %v340_v31, %v339_v35  ;;  %v350_v31 = vsel %vm290_vm1, %v2118_v59, 0.0 }
  0x49   : > { %v343_v56 = vadd.f32 %v342_v42, %v341_v47  ;;  %v352_v42 = vsel %vm290_vm1, %v2119_v7, 0.0 }
  0x4b   : > { %v345_v2 = vadd.f32 %v344_v54, %v343_v56 }
  0x4d   : > { %v347_v26 = vadd.f32 %v346_v63, %v345_v2 }
  0x4f   : > { %v349_v35 = vadd.f32 %v348_v11, %v347_v26 }
  0x51   : > { %v351_v47 = vadd.f32 %v350_v31, %v349_v35 }
  0x53   : > { %v353_v29 = vadd.f32 %v352_v42, %v351_v47 }
  0x55   : > { %v354_v38 = vrot.slane %v353_v29, 4 }
  0x57   : > { %v355_v54 = vadd.f32 %v354_v38, %v353_v29 }
  0x59   : > { %v356_v56 = vrot.slane %v355_v54, 2 }
  0x5b   : > { %v357_v10 = vadd.f32 %v356_v56, %v355_v54 }
  0x5d   : > { %v358_v0 = vrot.slane %v357_v10, 1 }
  0x5f   : > { %v359_v57 = vadd.f32 %v358_v0, %v357_v10 }
  0x61   : > { %2164 = vmatmul.mubr.msk.f32.vlgmr.msra.gmra.mrb[0].mxu0 %vm290_vm1, %v359_v57 }
  0x62   : > { %2213 = vmatpush3.bf16.msra.mxu0 %v2426_v4  ;;  %2185 = vmatprep.mubr.msk.f32.mxu0 %vm2375_vm0, %v2376_v6  ;;  %v514_v4 = vlaneseq }
  0x63   : > { %2214 = vmatprep.subr.bf16.mxu0 %v2374_v3 }
  0x64   : > { %v2658_v57 = vshrl.u32 %v514_v4, 7 }
  0x66   : > { %2216 = vmatpush3.bf16.msra.mxu0 %v2451_v12  ;;  %v516_v12 = vsub.s32 0, %v2658_v57 }
 0x134   : > { %v433_v63 = vpop.f32.mrb[0].mxu0 }
 0x135   : > { %v2165_v2 = vpop.f32.mrb[1].mxu0  ;;  %2175 = vmatmul.mubr.msk.f32.vlgmr.msra.gmra.mrb[0].mxu1 %vm290_vm1, %v433_v63 }
 0x136   : > { %2219 = vmatpush3.bf16.msra.mxu1 %v2440_v9  ;;  %2196 = vmatprep.mubr.msk.f32.mxu1 %vm2375_vm0, %v2376_v6 }
 0x137   : > { %2220 = vmatprep.subr.bf16.mxu1 %v2374_v3 }
 0x13a   : > { %2222 = vmatpush3.bf16.msra.mxu1 %v2457_v13 }
 0x208   : > { %v510_v0 = vpop.f32.mrb[0].mxu1 }
 0x209   : > { %v2176_v10 = vpop.f32.mrb[1].mxu1  ;;  %v2663_v29 = vrot.slane %v510_v0, %v516_v12 }
 0x20b   : > { %v2668_v9 = vsub.f32 %v2058_v16, %v2663_v29  ;;  %v2673_v3 = vsub.f32 %v2059_v17, %v2663_v29  ;;  %v2678_v6 = vsub.f32 %v2062_v18, %v2663_v29  ;;  %v2683_v13 = vsub.f32 %v2063_v20, %v2663_v29 }
 0x20c   : > { %v2692_v14 = vsub.f32 %v2066_v21, %v2663_v29  ;;  %v2699_v15 = vsub.f32 %v2067_v27, %v2663_v29  ;;  %v2708_v21 = vsub.f32 %v2070_v30, %v2663_v29  ;;  %v2716_v35 = vsub.f32 %v2071_v34, %v2663_v29 }
 0x20d   : > { %v550_v38 = vmul.f32 %v2668_v9, %v2668_v9  ;;  %v551_v16 = vmul.f32 %v2673_v3, %v2673_v3  ;;  %v552_v17 = vmul.f32 %v2678_v6, %v2678_v6  ;;  %v553_v18 = vmul.f32 %v2683_v13, %v2683_v13 }
 0x20e   : > { %v554_v31 = vmul.f32 %v2692_v14, %v2692_v14  ;;  %v555_v42 = vmul.f32 %v2699_v15, %v2699_v15  ;;  %v2724_v30 = vsub.f32 %v2074_v37, %v2663_v29  ;;  %v556_v56 = vmul.f32 %v2708_v21, %v2708_v21 }
 0x20f   : > { %v582_v20 = vsel %vm290_vm1, %v550_v38, 0.0  ;;  %v583_v11 = vsel %vm290_vm1, %v551_v16, 0.0  ;;  %v585_v19 = vsel %vm290_vm1, %v552_v17, 0.0  ;;  %v587_v47 = vsel %vm290_vm1, %v553_v18, 0.0 }
 0x210   : > { %v584_v26 = vadd.f32 %v583_v11, %v582_v20  ;;  %v589_v63 = vsel %vm290_vm1, %v554_v31, 0.0  ;;  %v2732_v25 = vsub.f32 %v2075_v41, %v2663_v29  ;;  %v557_v34 = vmul.f32 %v2716_v35, %v2716_v35 }
 0x211   : > { %v591_v4 = vsel %vm290_vm1, %v555_v42, 0.0  ;;  %v2740_v37 = vsub.f32 %v2078_v44, %v2663_v29  ;;  %v558_v10 = vmul.f32 %v2724_v30, %v2724_v30  ;;  %v593_v38 = vsel %vm290_vm1, %v556_v56, 0.0 }
 0x212   : > { %v586_v27 = vadd.f32 %v585_v19, %v584_v26  ;;  %v2748_v32 = vsub.f32 %v2079_v48, %v2663_v29  ;;  %v559_v41 = vmul.f32 %v2732_v25, %v2732_v25  ;;  %v595_v17 = vsel %vm290_vm1, %v557_v34, 0.0 }
 0x213   : > { %v2756_v44 = vsub.f32 %v2082_v51, %v2663_v29  ;;  %v560_v20 = vmul.f32 %v2740_v37, %v2740_v37  ;;  %v597_v11 = vsel %vm290_vm1, %v558_v10, 0.0  ;;  %v2764_v39 = vsub.f32 %v2083_v55, %v2663_v29 }
 0x214   : > { %v588_v54 = vadd.f32 %v587_v47, %v586_v27  ;;  %v561_v48 = vmul.f32 %v2748_v32, %v2748_v32  ;;  %v599_v31 = vsel %vm290_vm1, %v559_v41, 0.0  ;;  %v2772_v51 = vsub.f32 %v2086_v58, %v2663_v29 }
 0x215   : > { %v562_v27 = vmul.f32 %v2756_v44, %v2756_v44  ;;  %v601_v42 = vsel %vm290_vm1, %v560_v20, 0.0  ;;  %v2780_v46 = vsub.f32 %v2087_v62, %v2663_v29  ;;  %v563_v55 = vmul.f32 %v2764_v39, %v2764_v39 }
 0x216   : > { %v590_v2 = vadd.f32 %v589_v63, %v588_v54  ;;  %v603_v54 = vsel %vm290_vm1, %v561_v48, 0.0  ;;  %v2788_v58 = vsub.f32 %v2090_v1, %v2663_v29  ;;  %v564_v63 = vmul.f32 %v2772_v51, %v2772_v51 }
 0x217   : > { %v2796_v53 = vsub.f32 %v2091_v8, %v2663_v29  ;;  %v565_v62 = vmul.f32 %v2780_v46, %v2780_v46  ;;  %v2804_v1 = vsub.f32 %v2094_v22, %v2663_v29  ;;  %v2812_v60 = vsub.f32 %v2095_v28, %v2663_v29 }
 0x218   : > { %v592_v0 = vadd.f32 %v591_v4, %v590_v2  ;;  %v605_v2 = vsel %vm290_vm1, %v562_v27, 0.0  ;;  %v607_v4 = vsel %vm290_vm1, %v563_v55, 0.0  ;;  %v566_v10 = vmul.f32 %v2788_v58, %v2788_v58 }
 0x219   : > { %v567_v8 = vmul.f32 %v2796_v53, %v2796_v53  ;;  %v611_v41 = vsel %vm290_vm1, %v565_v62, 0.0  ;;  %v2820_v22 = vsub.f32 %v2098_v33, %v2663_v29  ;;  %v2828_v5 = vsub.f32 %v2099_v40, %v2663_v29 }
 0x21a   : > { %v594_v16 = vadd.f32 %v593_v38, %v592_v0  ;;  %v609_v38 = vsel %vm290_vm1, %v564_v63, 0.0  ;;  %v613_v20 = vsel %vm290_vm1, %v566_v10, 0.0  ;;  %v569_v28 = vmul.f32 %v2812_v60, %v2812_v60 }
 0x21b   : > { %v2836_v33 = vsub.f32 %v2102_v45, %v2663_v29  ;;  %v2844_v24 = vsub.f32 %v2103_v52, %v2663_v29  ;;  %v571_v40 = vmul.f32 %v2828_v5, %v2828_v5  ;;  %v3860_v45 = vunpack.c.l.bf16 %v2593_v49 }
 0x21c   : > { %v596_v18 = vadd.f32 %v595_v17, %v594_v16  ;;  %v2860_v52 = vsub.f32 %v3861_v36, %v2663_v29  ;;  %v3863_v49 = vunpack.c.h.bf16 %v2604_v61 }
 0x21d   : > { %v2852_v55 = vsub.f32 %v3860_v45, %v2663_v29 }
 0x21e   : > { %v598_v26 = vadd.f32 %v597_v11, %v596_v18  ;;  %v568_v18 = vmul.f32 %v2804_v1, %v2804_v1 }
 0x21f   : > { %v574_v10 = vmul.f32 %v2852_v55, %v2852_v55 }
 0x220   : > { %v600_v19 = vadd.f32 %v599_v31, %v598_v26  ;;  %v615_v26 = vsel %vm290_vm1, %v567_v8, 0.0  ;;  %v570_v31 = vmul.f32 %v2820_v22, %v2820_v22  ;;  %v2876_v8 = vsub.f32 %v3863_v49, %v2663_v29 }
 0x222   : > { %v602_v47 = vadd.f32 %v601_v42, %v600_v19  ;;  %v617_v19 = vsel %vm290_vm1, %v568_v18, 0.0  ;;  %v619_v42 = vsel %vm290_vm1, %v569_v28, 0.0 }
 0x224   : > { %v604_v56 = vadd.f32 %v603_v54, %v602_v47  ;;  %v572_v54 = vmul.f32 %v2836_v33, %v2836_v33 }
 0x226   : > { %v606_v34 = vadd.f32 %v605_v2, %v604_v56  ;;  %v621_v56 = vsel %vm290_vm1, %v570_v31, 0.0  ;;  %v573_v2 = vmul.f32 %v2844_v24, %v2844_v24  ;;  %v577_v31 = vmul.f32 %v2876_v8, %v2876_v8 }
 0x228   : > { %v608_v0 = vadd.f32 %v607_v4, %v606_v34  ;;  %v623_v34 = vsel %vm290_vm1, %v571_v40, 0.0  ;;  %v3862_v4 = vunpack.c.l.bf16 %v2604_v61  ;;  %v2892_v61 = vsub.f32 %v2115_v50, %v2663_v29 }
 0x229   : > { %v2900_v40 = vsub.f32 %v2118_v59, %v2663_v29 }
 0x22a   : > { %v610_v16 = vadd.f32 %v609_v38, %v608_v0  ;;  %v2868_v0 = vsub.f32 %v3862_v4, %v2663_v29  ;;  %v625_v38 = vsel %vm290_vm1, %v572_v54, 0.0  ;;  %v579_v50 = vmul.f32 %v2892_v61, %v2892_v61 }
 0x22b   : > { %v635_v54 = vsel %vm290_vm1, %v577_v31, 0.0  ;;  %v580_v59 = vmul.f32 %v2900_v40, %v2900_v40 }
 0x22c   : > { %v612_v17 = vadd.f32 %v611_v41, %v610_v16  ;;  %v575_v41 = vmul.f32 %v2860_v52, %v2860_v52  ;;  %v576_v28 = vmul.f32 %v2868_v0, %v2868_v0 }
 0x22e   : > { %v614_v11 = vadd.f32 %v613_v20, %v612_v17  ;;  %v627_v17 = vsel %vm290_vm1, %v573_v2, 0.0  ;;  %v3864_v20 = vunpack.c.l.bf16 %v2615_v23  ;;  %v2908_v23 = vsub.f32 %v2119_v7, %v2663_v29 }
 0x22f   : > { %v641_v7 = vsel %vm290_vm1, %v580_v59, 0.0 }
 0x230   : > { %v616_v48 = vadd.f32 %v615_v26, %v614_v11  ;;  %v2884_v11 = vsub.f32 %v3864_v20, %v2663_v29  ;;  %v629_v26 = vsel %vm290_vm1, %v574_v10, 0.0  ;;  %v581_v2 = vmul.f32 %v2908_v23, %v2908_v23 }
 0x232   : > { %v618_v27 = vadd.f32 %v617_v19, %v616_v48  ;;  %v631_v19 = vsel %vm290_vm1, %v575_v41, 0.0 }
 0x234   : > { %v620_v47 = vadd.f32 %v619_v42, %v618_v27  ;;  %v578_v42 = vmul.f32 %v2884_v11, %v2884_v11 }
 0x236   : > { %v622_v63 = vadd.f32 %v621_v56, %v620_v47  ;;  %v633_v47 = vsel %vm290_vm1, %v576_v28, 0.0 }
 0x238   : > { %v624_v62 = vadd.f32 %v623_v34, %v622_v63  ;;  %v637_v63 = vsel %vm290_vm1, %v578_v42, 0.0  ;;  %v639_v34 = vsel %vm290_vm1, %v579_v50, 0.0 }
 0x23a   : > { %v626_v16 = vadd.f32 %v625_v38, %v624_v62  ;;  %v643_v62 = vsel %vm290_vm1, %v581_v2, 0.0 }
 0x23c   : > { %v628_v18 = vadd.f32 %v627_v17, %v626_v16 }
 0x23e   : > { %v630_v48 = vadd.f32 %v629_v26, %v628_v18 }
 0x240   : > { %v632_v27 = vadd.f32 %v631_v19, %v630_v48  ;;  %v798_v19 = vld [vmem:[%s3845_s3] sm:$0x1] }
 0x242   : > { %v634_v45 = vadd.f32 %v633_v47, %v632_v27 }
 0x244   : > { %v636_v56 = vadd.f32 %v635_v54, %v634_v45 }
 0x246   : > { %v638_v36 = vadd.f32 %v637_v63, %v636_v56  ;;  %v2941_v56 = vld [vmem:[%s3846_s4] ss:$0 sm:$0xff] }
 0x248   : > { %v640_v43 = vadd.f32 %v639_v34, %v638_v36 }
 0x24a   : > { %v642_v29 = vadd.f32 %v641_v7, %v640_v43 }
 0x24c   : > { %v644_v4 = vadd.f32 %v643_v62, %v642_v29 }
 0x24e   : > { %v645_v10 = vrot.slane %v644_v4, 4 }
 0x250   : > { %v646_v38 = vadd.f32 %v645_v10, %v644_v4 }
 0x252   : > { %v647_v16 = vrot.slane %v646_v38, 2 }
 0x254   : > { %v648_v49 = vadd.f32 %v647_v16, %v646_v38 }
 0x256   : > { %v649_v41 = vrot.slane %v648_v49, 1 }
 0x258   : > { %v650_v17 = vadd.f32 %v649_v41, %v648_v49 }
 0x25a   : > { %2186 = vmatmul.mubr.msk.f32.vlgmr.msra.gmra.mrb[2].mxu0 %vm290_vm1, %v650_v17 }
 0x32d   : > { %v720_v18 = vpop.f32.mrb[2].mxu0 }
 0x32e   : > { %v2187_v20 = vpop.f32.mrb[3].mxu0  ;;  %2197 = vmatmul.mubr.msk.f32.vlgmr.msra.gmra.mrb[2].mxu1 %vm290_vm1, %v720_v18 }
 0x401   : > { %v793_v28 = vpop.f32.mrb[2].mxu1 }
 0x402   : > { %v794_v26 = vadd.f32 1e-06, %v793_v28  ;;  %v2198_v48 = vpop.f32.mrb[3].mxu1 }
 0x404   : > { %2236 = vrsqrt.f32 %v794_v26 }
 0x40e   : > { %v2237_v31 = vpop.eup %2236 }
 0x40f   : > { %v799_v27 = vmul.f32 %v2237_v31, %v798_v19 }
 0x411   : > { %v2928_v42 = vrot.slane %v799_v27, %v516_v12 }
 0x413   : > { %v804_v47 = vmul.f32 %v2928_v42, %v2668_v9  ;;  %v805_v45 = vmul.f32 %v2928_v42, %v2673_v3  ;;  %v806_v50 = vmul.f32 %v2928_v42, %v2678_v6  ;;  %v807_v54 = vmul.f32 %v2928_v42, %v2683_v13 }
 0x414   : > { %v808_v57 = vmul.f32 %v2928_v42, %v2692_v14  ;;  %v809_v12 = vmul.f32 %v2928_v42, %v2699_v15  ;;  %v810_v9 = vmul.f32 %v2928_v42, %v2708_v21  ;;  %v811_v59 = vmul.f32 %v2928_v42, %v2716_v35 }
 0x415   : > { %v2950_v3 = vadd.f32 %v2941_v56, %v804_v47  ;;  %v2953_v6 = vadd.f32 %v2941_v56, %v805_v45  ;;  %v2956_v13 = vadd.f32 %v2941_v56, %v806_v50  ;;  %v2961_v14 = vadd.f32 %v2941_v56, %v807_v54 }
 0x416   : > { %v812_v15 = vmul.f32 %v2928_v42, %v2724_v30  ;;  %v813_v21 = vmul.f32 %v2928_v42, %v2732_v25  ;;  %v2968_v63 = vadd.f32 %v2941_v56, %v808_v57  ;;  %v814_v36 = vmul.f32 %v2928_v42, %v2740_v37 }
 0x417   : > { %v815_v2 = vmul.f32 %v2928_v42, %v2748_v32  ;;  %v816_v35 = vmul.f32 %v2928_v42, %v2756_v44  ;;  %v2977_v34 = vadd.f32 %v2941_v56, %v809_v12  ;;  %v2980_v30 = vadd.f32 %v2941_v56, %v810_v9 }
 0x418   : > { %v1810_v25 = vmul.f32 -1.442695, %v2950_v3  ;;  %v1811_v43 = vmul.f32 -1.442695, %v2953_v6  ;;  %v1812_v7 = vmul.f32 -1.442695, %v2956_v13  ;;  %v817_v37 = vmul.f32 %v2928_v42, %v2764_v39 }
 0x419   : > { %v818_v32 = vmul.f32 %v2928_v42, %v2772_v51  ;;  %v2990_v44 = vadd.f32 %v2941_v56, %v811_v59  ;;  %v1813_v29 = vmul.f32 -1.442695, %v2961_v14  ;;  %v819_v62 = vmul.f32 %v2928_v42, %v2780_v46 }
 0x41a   : > { %v2996_v4 = vadd.f32 %v2941_v56, %v812_v15  ;;  %2238 = vpow2.f32 %v1810_v25  ;;  %v1814_v10 = vmul.f32 -1.442695, %v2968_v63  ;;  %v820_v39 = vmul.f32 %v2928_v42, %v2788_v58 }
 0x41b   : > { %v3002_v51 = vadd.f32 %v2941_v56, %v813_v21  ;;  %2240 = vpow2.f32 %v1811_v43  ;;  %v1815_v38 = vmul.f32 -1.442695, %v2977_v34  ;;  %v821_v16 = vmul.f32 %v2928_v42, %v2796_v53 }
 0x41c   : > { %v3008_v46 = vadd.f32 %v2941_v56, %v814_v36  ;;  %2242 = vpow2.f32 %v1812_v7  ;;  %v1816_v49 = vmul.f32 -1.442695, %v2980_v30  ;;  %v822_v41 = vmul.f32 %v2928_v42, %v2804_v1 }
 0x41d   : > { %v3014_v58 = vadd.f32 %v2941_v56, %v815_v2  ;;  %2244 = vpow2.f32 %v1813_v29  ;;  %v1817_v17 = vmul.f32 -1.442695, %v2990_v44  ;;  %v3018_v18 = vadd.f32 %v2941_v56, %v816_v35 }
 0x41e   : > { %v3021_v53 = vadd.f32 %v2941_v56, %v817_v37  ;;  %2246 = vpow2.f32 %v1814_v10  ;;  %v1818_v20 = vmul.f32 -1.442695, %v2996_v4  ;;  %v823_v28 = vmul.f32 %v2928_v42, %v2812_v60 }
 0x41f   : > { %v824_v1 = vmul.f32 %v2928_v42, %v2820_v22  ;;  %2248 = vpow2.f32 %v1815_v38  ;;  %v1819_v26 = vmul.f32 -1.442695, %v3002_v51  ;;  %v825_v48 = vmul.f32 %v2928_v42, %v2828_v5 }
 0x420   : > { %v3033_v31 = vadd.f32 %v2941_v56, %v818_v32  ;;  %2250 = vpow2.f32 %v1816_v49  ;;  %v1820_v19 = vmul.f32 -1.442695, %v3008_v46  ;;  %v3037_v27 = vadd.f32 %v2941_v56, %v819_v62 }
 0x421   : > { %v3040_v60 = vadd.f32 %v2941_v56, %v820_v39  ;;  %2252 = vpow2.f32 %v1817_v17  ;;  %v1821_v22 = vmul.f32 -1.442695, %v3014_v58  ;;  %v3044_v47 = vadd.f32 %v2941_v56, %v821_v16 }
 0x422   : > { %2254 = vpow2.f32 %v1818_v20  ;;  %v1822_v5 = vmul.f32 -1.442695, %v3018_v18  ;;  %v1823_v45 = vmul.f32 -1.442695, %v3021_v53  ;;  %v826_v54 = vmul.f32 %v2928_v42, %v2836_v33 }
 0x423   : > { %2256 = vpow2.f32 %v1819_v26  ;;  %v3058_v57 = vadd.f32 %v2941_v56, %v822_v41  ;;  %v1824_v12 = vmul.f32 -1.442695, %v3033_v31  ;;  %v2377_v9 = vmov 0  }
 0x424   : > { %v3053_v50 = vpop.eup %2238  ;;  %2258 = vpow2.f32 %v1820_v19  ;;  %1637 = vst.msk [vmem:[%s3051_s23] sm:$0xf] %vm1519_vm2, %v2377_v9  ;;  %1638 = vst.msk [vmem:[%s3051_s23 + $0x4] sm:$0xf] %vm1519_vm2, %v2377_v9  ;;  %v827_v59 = vmul.f32 %v2928_v42, %v2844_v24  ;;  %v3078_v15 = vadd.f32 %v2941_v56, %v823_v28  ;;  %v1825_v21 = vmul.f32 -1.442695, %v3037_v27 }
 0x425   : > { %1640 = vst.msk [vmem:[%s3051_s23 + $0x8] sm:$0x1] %vm1527_vm3, %v2377_v9  ;;  %1956 = vst.msk [vmem:[%s3051_s23 + $0xd4] sm:$0x1] %vm1527_vm3, %v2377_v9  ;;  %v3073_v33 = vpop.eup %2240  ;;  %2260 = vpow2.f32 %v1821_v22  ;;  %v828_v2 = vmul.f32 %v2928_v42, %v2852_v55  ;;  %v3086_v35 = vadd.f32 %v2941_v56, %v824_v1  ;;  %v1826_v25 = vmul.f32 -1.442695, %v3040_v60 }
 0x426   : > { %1954 = vst.msk [vmem:[%s3051_s23 + $0xcc] sm:$0xf] %vm1519_vm2, %v2377_v9  ;;  %1955 = vst.msk [vmem:[%s3051_s23 + $0xd0] sm:$0xf] %vm1519_vm2, %v2377_v9  ;;  %v3081_v36 = vpop.eup %2242  ;;  %2262 = vpow2.f32 %v1822_v5  ;;  %v829_v24 = vmul.f32 %v2928_v42, %v2860_v52  ;;  %v3094_v7 = vadd.f32 %v2941_v56, %v825_v48  ;;  %v1827_v37 = vmul.f32 -1.442695, %v3044_v47 }
 0x427   : > { %v3089_v43 = vpop.eup %2244  ;;  %2264 = vpow2.f32 %v1823_v45  ;;  %v830_v55 = vmul.f32 %v2928_v42, %v2868_v0  ;;  %v3102_v29 = vadd.f32 %v2941_v56, %v826_v54  ;;  %v1828_v62 = vmul.f32 -1.442695, %v3058_v57 }
 0x428   : > { %v3097_v32 = vpop.eup %2246  ;;  %2266 = vpow2.f32 %v1824_v12  ;;  %v831_v52 = vmul.f32 %v2928_v42, %v2876_v8  ;;  %v3110_v39 = vadd.f32 %v2941_v56, %v827_v59  ;;  %v1829_v38 = vmul.f32 -1.442695, %v3078_v15 }
 0x429   : > { %v3105_v10 = vpop.eup %2248  ;;  %2268 = vpow2.f32 %v1825_v21  ;;  %v832_v0 = vmul.f32 %v2928_v42, %v2884_v11  ;;  %v3118_v49 = vadd.f32 %v2941_v56, %v828_v2  ;;  %v1830_v41 = vmul.f32 -1.442695, %v3086_v35 }
 0x42a   : > { %v3113_v16 = vpop.eup %2250  ;;  %2270 = vpow2.f32 %v1826_v25  ;;  %v833_v8 = vmul.f32 %v2928_v42, %v2892_v61  ;;  %v3126_v20 = vadd.f32 %v2941_v56, %v829_v24  ;;  %v1831_v28 = vmul.f32 -1.442695, %v3094_v7 }
 0x42b   : > { %v3121_v17 = vpop.eup %2252  ;;  %2272 = vpow2.f32 %v1827_v37  ;;  %v834_v11 = vmul.f32 %v2928_v42, %v2900_v40  ;;  %v3132_v26 = vadd.f32 %v2941_v56, %v830_v55  ;;  %v1832_v48 = vmul.f32 -1.442695, %v3102_v29 }
 0x42c   : > { %3865 = vst [vmem:[#allocation2_spill] sm:$0xff] %v3126_v20  ;;  %v2255_v1 = vpop.eup %2254  ;;  %2274 = vpow2.f32 %v1828_v62  ;;  %v835_v61 = vmul.f32 %v2928_v42, %v2908_v23  ;;  %v3138_v22 = vadd.f32 %v2941_v56, %v831_v52  ;;  %v1833_v5 = vmul.f32 -1.442695, %v3110_v39 }
 0x42d   : > { %3866 = vst [vmem:[#allocation3_spill] sm:$0xff] %v3132_v26  ;;  %v2257_v19 = vpop.eup %2256  ;;  %2276 = vpow2.f32 %v1829_v38  ;;  %v3142_v54 = vadd.f32 %v2941_v56, %v832_v0  ;;  %v1834_v40 = vmul.f32 -1.442695, %v3118_v49  ;;  %v3146_v9 = vadd.f32 %v2941_v56, %v833_v8 }
 0x42e   : > { %3867 = vst [vmem:[#allocation4_spill] sm:$0xff] %v3138_v22  ;;  %v2259_v45 = vpop.eup %2258  ;;  %2278 = vpow2.f32 %v1830_v41  ;;  %v1835_v23 = vmul.f32 -1.442695, %v3126_v20  ;;  %v3150_v59 = vadd.f32 %v2941_v56, %v834_v11  ;;  %v1836_v21 = vmul.f32 -1.442695, %v3132_v26 }
 0x42f   : > { %3868 = vst [vmem:[#allocation5_spill] sm:$0xff] %v3142_v54  ;;  %v2261_v12 = vpop.eup %2260  ;;  %3869 = vst [vmem:[#allocation6_spill] sm:$0xff] %v3146_v9  ;;  %2280 = vpow2.f32 %v1831_v28  ;;  %v3154_v25 = vadd.f32 %v2941_v56, %v835_v61  ;;  %v1837_v24 = vmul.f32 -1.442695, %v3138_v22  ;;  %v1838_v55 = vmul.f32 -1.442695, %v3142_v54 }
 0x430   : > { %v2263_v42 = vpop.eup %2262  ;;  %3870 = vst [vmem:[#allocation7_spill] sm:$0xff] %v3150_v59  ;;  %2282 = vpow2.f32 %v1832_v48  ;;  %v1839_v52 = vmul.f32 -1.442695, %v3146_v9  ;;  %v1840_v0 = vmul.f32 -1.442695, %v3150_v59  ;;  %v971_v28 = vadd.f32 1.0, %v3053_v50 }
 0x431   : > { %v2265_v2 = vpop.eup %2264  ;;  %3871 = vst [vmem:[#allocation8_spill] sm:$0xff] %v3154_v25  ;;  %2284 = vpow2.f32 %v1833_v5  ;;  %v1841_v56 = vmul.f32 -1.442695, %v3154_v25  ;;  %v972_v48 = vadd.f32 1.0, %v3073_v33  ;;  %v973_v5 = vadd.f32 1.0, %v3081_v36 }
 0x432   : > { %v2267_v37 = vpop.eup %2266  ;;  %2286 = vpow2.f32 %v1834_v40  ;;  %v980_v59 = vadd.f32 1.0, %v2257_v19  ;;  %v981_v9 = vadd.f32 1.0, %v2259_v45  ;;  %v983_v54 = vadd.f32 1.0, %v2263_v42 }
 0x433   : > { %v2269_v62 = vpop.eup %2268  ;;  %2288 = vpow2.f32 %v1835_v23  ;;  %v974_v23 = vadd.f32 1.0, %v3089_v43  ;;  %v985_v22 = vadd.f32 1.0, %v2267_v37 }
 0x434   : > { %v2271_v38 = vpop.eup %2270  ;;  %2290 = vpow2.f32 %v1836_v21 }
 0x435   : > { %v2273_v41 = vpop.eup %2272  ;;  %2292 = vpow2.f32 %v1837_v24  ;;  %v975_v24 = vadd.f32 1.0, %v3097_v32 }
 0x436   : > { %v2275_v8 = vpop.eup %2274  ;;  %2294 = vpow2.f32 %v1838_v55  ;;  %v976_v55 = vadd.f32 1.0, %v3105_v10  ;;  %v984_v10 = vadd.f32 1.0, %v2265_v2 }
 0x437   : > { %v2277_v11 = vpop.eup %2276  ;;  %2296 = vpow2.f32 %v1839_v52  ;;  %v977_v52 = vadd.f32 1.0, %v3113_v16  ;;  %v986_v16 = vadd.f32 1.0, %v2269_v62 }
 0x438   : > { %v2279_v61 = vpop.eup %2278  ;;  %2298 = vpow2.f32 %v1840_v0  ;;  %v978_v0 = vadd.f32 1.0, %v3121_v17  ;;  %v988_v17 = vadd.f32 1.0, %v2273_v41  ;;  %v990_v20 = vadd.f32 1.0, %v2277_v11 }
 0x439   : > { %v2281_v40 = vpop.eup %2280  ;;  %2300 = vpow2.f32 %v1841_v56  ;;  %v979_v56 = vadd.f32 1.0, %v2255_v1 }
 0x43a   : > { %v2283_v21 = vpop.eup %2282  ;;  %2302 = vrcp.f32 %v971_v28  ;;  %v982_v28 = vadd.f32 1.0, %v2261_v12  ;;  %v992_v19 = vadd.f32 1.0, %v2281_v40 }
 0x43b   : > { %v2285_v25 = vpop.eup %2284  ;;  %2304 = vrcp.f32 %v972_v48  ;;  %v3169_v45 = vadd.f32 1.0, %v2283_v21 }
 0x43c   : > { %v2287_v50 = vpop.eup %2286  ;;  %2306 = vrcp.f32 %v973_v5  ;;  %v987_v5 = vadd.f32 1.0, %v2271_v38  ;;  %v3171_v42 = vadd.f32 1.0, %v2285_v25 }
 0x43d   : > { %v2289_v33 = vpop.eup %2288  ;;  %2308 = vrcp.f32 %v974_v23  ;;  %v989_v23 = vadd.f32 1.0, %v2275_v8  ;;  %v3173_v2 = vadd.f32 1.0, %v2287_v50 }
 0x43e   : > { %v2291_v36 = vpop.eup %2290  ;;  %2310 = vrcp.f32 %v975_v24  ;;  %v991_v24 = vadd.f32 1.0, %v2279_v61  ;;  %v3175_v37 = vadd.f32 1.0, %v2289_v33 }
 0x43f   : > { %v2293_v43 = vpop.eup %2292  ;;  %2312 = vrcp.f32 %v976_v55  ;;  %v3177_v38 = vadd.f32 1.0, %v2291_v36 }
 0x440   : > { %v2295_v32 = vpop.eup %2294  ;;  %2314 = vrcp.f32 %v977_v52  ;;  %v3179_v41 = vadd.f32 1.0, %v2293_v43 }
 0x441   : > { %v2297_v48 = vpop.eup %2296  ;;  %2316 = vrcp.f32 %v978_v0  ;;  %v3182_v61 = vadd.f32 1.0, %v2295_v32 }
 0x442   : > { %v2299_v26 = vpop.eup %2298  ;;  %2318 = vrcp.f32 %v979_v56 }
 0x443   : > { %v2301_v1 = vpop.eup %2300  ;;  %2320 = vrcp.f32 %v980_v59  ;;  %v3184_v59 = vadd.f32 1.0, %v2297_v48 }
 0x444   : > { %v2303_v12 = vpop.eup %2302  ;;  %2322 = vrcp.f32 %v981_v9  ;;  %v3187_v9 = vadd.f32 1.0, %v2299_v26  ;;  %v3190_v52 = vadd.f32 1.0, %v2301_v1 }
 0x445   : > { %v2305_v62 = vpop.eup %2304  ;;  %2324 = vrcp.f32 %v982_v28  ;;  %v1067_v8 = vmul.f32 %v2303_v12, %v2950_v3 }
 0x446   : > { %v2307_v11 = vpop.eup %2306  ;;  %2326 = vrcp.f32 %v983_v54  ;;  %v1068_v25 = vmul.f32 %v2305_v62, %v2953_v6 }
 0x447   : > { %v2309_v40 = vpop.eup %2308  ;;  %2328 = vrcp.f32 %v984_v10  ;;  %v1069_v21 = vmul.f32 %v2307_v11, %v2956_v13  ;;  %v2024_v55 = vpack.c.bf16 %v1067_v8, %v1067_v8 }
 0x448   : > { %v2311_v50 = vpop.eup %2310  ;;  %2330 = vrcp.f32 %v985_v22  ;;  %v1070_v3 = vmul.f32 %v2309_v40, %v2961_v14  ;;  %v2025_v33 = vpack.c.bf16 %v1068_v25, %v1068_v25 }
 0x449   : > { %v2313_v0 = vpop.eup %2312  ;;  %2332 = vrcp.f32 %v986_v16  ;;  %v1071_v6 = vmul.f32 %v2311_v50, %v2968_v63  ;;  %v3194_v54 = vpack.c.bf16 %v1069_v21, %v1069_v21  ;;  %v1199_v36 = vshrl.u32 %v2024_v55, 16 }
 0x44a   : > { %v2315_v26 = vpop.eup %2314  ;;  %2334 = vrcp.f32 %v987_v5  ;;  %v1072_v56 = vmul.f32 %v2313_v0, %v2977_v34  ;;  %v3197_v13 = vpack.c.bf16 %v1070_v3, %v1070_v3  ;;  %v1202_v43 = vshll.u32 %v2024_v55, 16 }
 0x44b   : > { %v2317_v32 = vpop.eup %2316  ;;  %2336 = vrcp.f32 %v988_v17  ;;  %v1073_v22 = vmul.f32 %v2315_v26, %v2980_v30  ;;  %v3200_v14 = vpack.c.bf16 %v1071_v6, %v1071_v6  ;;  %v1201_v28 = vrot.slane %v1199_v36, 7 }
 0x44c   : > { %v2319_v10 = vpop.eup %2318  ;;  %2338 = vrcp.f32 %v989_v23  ;;  %v1074_v63 = vmul.f32 %v2317_v32, %v2990_v44  ;;  %v3203_v48 = vpack.c.bf16 %v1072_v56, %v1072_v56  ;;  %v1207_v16 = vshrl.u32 %v2025_v33, 16 }
 0x44d   : > { %v2321_v5 = vpop.eup %2320  ;;  %2340 = vrcp.f32 %v990_v20  ;;  %v1075_v34 = vmul.f32 %v2319_v10, %v2996_v4  ;;  %v3206_v1 = vpack.c.bf16 %v1073_v22, %v1073_v22  ;;  %v3208_v12 = vor.u32 %v1202_v43, %v1201_v28 }
 0x44e   : > { %v2323_v17 = vpop.eup %2322  ;;  %2342 = vrcp.f32 %v991_v24  ;;  %v1076_v30 = vmul.f32 %v2321_v5, %v3002_v51  ;;  %v3211_v62 = vpack.c.bf16 %v1074_v63, %v1074_v63  ;;  %v1205_v23 = vrot.slane %v1201_v28, 4 }
 0x44f   : > { %v2325_v8 = vpop.eup %2324  ;;  %2344 = vrcp.f32 %v992_v19  ;;  %v1077_v44 = vmul.f32 %v2323_v17, %v3008_v46  ;;  %v3214_v11 = vpack.c.bf16 %v1075_v34, %v1075_v34  ;;  %v3216_v20 = vrot.slane %v1207_v16, 7 }
 0x450   : > { %v2327_v4 = vpop.eup %2326  ;;  %2346 = vrcp.f32 %v3169_v45  ;;  %v1078_v25 = vmul.f32 %v2325_v8, %v3014_v58  ;;  %v3220_v40 = vpack.c.bf16 %v1076_v30, %v1076_v30  ;;  %v1210_v24 = vshll.u32 %v2025_v33, 16 }
 0x451   : > { %v2329_v51 = vpop.eup %2328  ;;  %2348 = vrcp.f32 %v3171_v42  ;;  %v1079_v21 = vmul.f32 %v2327_v4, %v3018_v18  ;;  %v3224_v19 = vpack.c.bf16 %v1077_v44, %v1077_v44  ;;  %v1214_v45 = vrot.slane %v3216_v20, 4 }
 0x452   : > { %v2331_v55 = vpop.eup %2330  ;;  %2350 = vrcp.f32 %v3173_v2  ;;  %v1080_v58 = vmul.f32 %v2329_v51, %v3021_v53  ;;  %v3235_v50 = vpack.c.bf16 %v1078_v25, %v1078_v25  ;;  %v1212_v42 = vor.u32 %v1210_v24, %v3216_v20 }
 0x453   : > { %v2333_v18 = vpop.eup %2332  ;;  %2352 = vrcp.f32 %v3175_v37  ;;  %v1081_v3 = vmul.f32 %v2331_v55, %v3033_v31  ;;  %v3240_v33 = vpack.c.bf16 %v1079_v21, %v1079_v21  ;;  %v1216_v0 = vshrl.u32 %v3194_v54, 16 }
 0x454   : > { %v2335_v6 = vpop.eup %2334  ;;  %2354 = vrcp.f32 %v3177_v38  ;;  %v1082_v2 = vmul.f32 %v2333_v18, %v3037_v27  ;;  %v3245_v53 = vpack.c.bf16 %v1080_v58, %v1080_v58  ;;  %v1213_v36 = vsel %vm3228_vm6, %v1205_v23, %v1212_v42 }
 0x455   : > { %v2337_v26 = vpop.eup %2336  ;;  %2356 = vrcp.f32 %v3179_v41  ;;  %v1083_v37 = vmul.f32 %v2335_v6, %v3040_v60  ;;  %v3251_v31 = vpack.c.bf16 %v1081_v3, %v1081_v3  ;;  %v1218_v56 = vrot.slane %v1216_v0, 7  ;;  %1876 = vst.msk [vmem:[%s3051_s23 + $0x10] sm:$0xf] %vm1519_vm2, %v1213_v36  ;;  %v3875_v6 = vld [vmem:[#allocation3_spill] sm:$0xff] }
 0x456   : > { %v2339_v43 = vpop.eup %2338  ;;  %2358 = vrcp.f32 %v3182_v61  ;;  %v1084_v27 = vmul.f32 %v2337_v26, %v3044_v47  ;;  %v3257_v38 = vpack.c.bf16 %v1082_v2, %v1082_v2  ;;  %v1219_v32 = vshll.u32 %v3194_v54, 16 }
 0x457   : > { %v2341_v22 = vpop.eup %2340  ;;  %2360 = vrcp.f32 %v3184_v59  ;;  %v1085_v41 = vmul.f32 %v2339_v43, %v3058_v57  ;;  %v3262_v60 = vpack.c.bf16 %v1083_v37, %v1083_v37  ;;  %v1222_v28 = vrot.slane %v1218_v56, 4 }
 0x458   : > { %v2343_v10 = vpop.eup %2342  ;;  %2362 = vrcp.f32 %v3187_v9  ;;  %v1086_v63 = vmul.f32 %v2341_v22, %v3078_v15  ;;  %v3266_v61 = vpack.c.bf16 %v1084_v27, %v1084_v27  ;;  %v3268_v47 = vor.u32 %v1219_v32, %v1218_v56  ;;  %v3876_v56 = vld [vmem:[#allocation4_spill] sm:$0xff] }
 0x459   : > { %v2345_v16 = vpop.eup %2344  ;;  %2364 = vrcp.f32 %v3190_v52  ;;  %v1087_v54 = vmul.f32 %v2343_v10, %v3086_v35  ;;  %v3272_v59 = vpack.c.bf16 %v1085_v41, %v1085_v41  ;;  %v1224_v57 = vshrl.u32 %v3197_v13, 16  ;;  %v3877_v10 = vld [vmem:[#allocation5_spill] sm:$0xff] }
 0x45a   : > { %v2347_v5 = vpop.eup %2346  ;;  %v1088_v34 = vmul.f32 %v2345_v16, %v3094_v7  ;;  %v3276_v17 = vpack.c.bf16 %v1086_v63, %v1086_v63  ;;  %v1227_v15 = vshll.u32 %v3197_v13, 16  ;;  %v1233_v9 = vshrl.u32 %v3200_v14, 16 }
 0x45b   : > { %v2349_v30 = vpop.eup %2348  ;;  %v1089_v23 = vmul.f32 %v2347_v5, %v3102_v29  ;;  %v3281_v8 = vpack.c.bf16 %v1087_v54, %v1087_v54  ;;  %v3283_v52 = vrot.slane %v1224_v57, 7  ;;  %v1236_v35 = vshll.u32 %v3200_v14, 16  ;;  %v3874_v14 = vld [vmem:[#allocation2_spill] sm:$0xff] }
 0x45c   : > { %v2351_v44 = vpop.eup %2350  ;;  %v1090_v4 = vmul.f32 %v2349_v30, %v3110_v39  ;;  %v3287_v25 = vpack.c.bf16 %v1088_v34, %v1088_v34  ;;  %v1235_v7 = vrot.slane %v1233_v9, 7  ;;  %v1241_v24 = vshrl.u32 %v3203_v48, 16  ;;  %v3878_v5 = vld [vmem:[#allocation6_spill] sm:$0xff] }
 0x45d   : > { %v2353_v13 = vpop.eup %2352  ;;  %v1091_v51 = vmul.f32 %v2351_v44, %v3118_v49  ;;  %v3291_v21 = vpack.c.bf16 %v1089_v23, %v1089_v23  ;;  %v1229_v29 = vor.u32 %v1227_v15, %v3283_v52  ;;  %v1231_v55 = vrot.slane %v3283_v52, 4  ;;  %v3879_v23 = vld [vmem:[#allocation7_spill] sm:$0xff]  ;;  %v1919_v52 = vld [vmem:[%s3051_s23 + $0x78] sm:$0xf] }
 0x45e   : > { %v2355_v58 = vpop.eup %2354  ;;  %v1092_v42 = vmul.f32 %v2353_v13, %v3874_v14  ;;  %v3296_v18 = vpack.c.bf16 %v1090_v4, %v1090_v4  ;;  %v3298_v39 = vor.u32 %v1236_v35, %v1235_v7  ;;  %v1239_v3 = vrot.slane %v1235_v7, 4 }
 0x45f   : > { %v2357_v0 = vpop.eup %2356  ;;  %v1093_v2 = vmul.f32 %v2355_v58, %v3875_v6  ;;  %v3301_v36 = vpack.c.bf16 %v1091_v51, %v1091_v51  ;;  %v1230_v49 = vsel %vm3228_vm6, %v1222_v28, %v1229_v29  ;;  %v3305_v26 = vrot.slane %v1241_v24, 7  ;;  %v3880_v24 = vld [vmem:[#allocation8_spill] sm:$0xff] }
 0x460   : > { %v2359_v37 = vpop.eup %2358  ;;  %v1094_v43 = vmul.f32 %v2357_v0, %v3876_v56  ;;  %v3308_v27 = vpack.c.bf16 %v1092_v42, %v1092_v42  ;;  %v1244_v32 = vshll.u32 %v3203_v48, 16  ;;  %v1250_v22 = vshrl.u32 %v3206_v1, 16  ;;  %1881 = vst.msk [vmem:[%s3051_s23 + $0x1c] sm:$0xf] %vm1519_vm2, %v1230_v49 }
 0x461   : > { %v2361_v41 = vpop.eup %2360  ;;  %v1095_v63 = vmul.f32 %v2359_v37, %v3877_v10  ;;  %v3315_v16 = vpack.c.bf16 %v1093_v2, %v1093_v2  ;;  %v1248_v28 = vrot.slane %v3305_v26, 4  ;;  %v1253_v54 = vshll.u32 %v3206_v1, 16 }
 0x462   : > { %v2363_v57 = vpop.eup %2362  ;;  %v1096_v34 = vmul.f32 %v2361_v41, %v3878_v5  ;;  %v3320_v15 = vpack.c.bf16 %v1094_v43, %v1094_v43  ;;  %v1246_v48 = vor.u32 %v1244_v32, %v3305_v26  ;;  %v1252_v9 = vrot.slane %v1250_v22, 7 }
 0x463   : > { %v2365_v30 = vpop.eup %2364  ;;  %v1097_v35 = vmul.f32 %v2363_v57, %v3879_v23  ;;  %v3324_v44 = vpack.c.bf16 %v1095_v63, %v1095_v63  ;;  %v1258_v4 = vshrl.u32 %v3211_v62, 16  ;;  %v1261_v7 = vshll.u32 %v3211_v62, 16 }
 0x464   : > { %v1098_v1 = vmul.f32 %v2365_v30, %v3880_v24  ;;  %v3329_v13 = vpack.c.bf16 %v1096_v34, %v1096_v34  ;;  %v1247_v51 = vsel %vm3228_vm6, %v1239_v3, %v1246_v48  ;;  %v3333_v29 = vor.u32 %v1253_v54, %v1252_v9 }
 0x465   : > { %v3335_v58 = vpack.c.bf16 %v1097_v35, %v1097_v35  ;;  %v1256_v14 = vrot.slane %v1252_v9, 4  ;;  %v3337_v42 = vrot.slane %v1258_v4, 7  ;;  %v1267_v0 = vshrl.u32 %v3214_v11, 16  ;;  %1886 = vst.msk [vmem:[%s3051_s23 + $0x28] sm:$0xf] %vm1519_vm2, %v1247_v51 }
 0x466   : > { %v3342_v6 = vpack.c.bf16 %v1098_v1, %v1098_v1  ;;  %v1270_v62 = vshll.u32 %v3214_v11, 16  ;;  %v1275_v2 = vshrl.u32 %v3220_v40, 16  ;;  %v1278_v49 = vshll.u32 %v3220_v40, 16 }
 0x467   : > { %v1263_v3 = vor.u32 %v1261_v7, %v3337_v42  ;;  %v1269_v56 = vrot.slane %v1267_v0, 7  ;;  %v1284_v43 = vshrl.u32 %v3224_v19, 16  ;;  %v1287_v22 = vshll.u32 %v3224_v19, 16 }
 0x468   : > { %v3350_v32 = vrot.slane %v1275_v2, 7  ;;  %v1292_v41 = vshrl.u32 %v3235_v50, 16  ;;  %v1295_v11 = vshll.u32 %v3235_v50, 16  ;;  %v1301_v19 = vshrl.u32 %v3240_v33, 16 }
 0x469   : > { %v1264_v10 = vsel %vm3228_vm6, %v1256_v14, %v1263_v3  ;;  %v3357_v40 = vor.u32 %v1270_v62, %v1269_v56  ;;  %v1273_v63 = vrot.slane %v1269_v56, 4  ;;  %v1286_v54 = vrot.slane %v1284_v43, 7  ;;  %v1904_v3 = vld [vmem:[%s3051_s23 + $0x54] sm:$0xf] }
 0x46a   : > { %v1280_v57 = vor.u32 %v1278_v49, %v3350_v32  ;;  %v3361_v34 = vrot.slane %v1292_v41, 7  ;;  %1891 = vst.msk [vmem:[%s3051_s23 + $0x34] sm:$0xf] %vm1519_vm2, %v1264_v10  ;;  %v1304_v9 = vshll.u32 %v3240_v33, 16  ;;  %v1309_v30 = vshrl.u32 %v3245_v53, 16 }
 0x46b   : > { %v3366_v48 = vor.u32 %v1287_v22, %v1286_v54  ;;  %v1290_v50 = vrot.slane %v1286_v54, 4  ;;  %v1303_v7 = vrot.slane %v1301_v19, 7  ;;  %v1312_v1 = vshll.u32 %v3245_v53, 16 }
 0x46c   : > { %v1281_v23 = vsel %vm3228_vm6, %v1273_v63, %v1280_v57  ;;  %v1297_v35 = vor.u32 %v1295_v11, %v3361_v34  ;;  %v3374_v24 = vrot.slane %v1309_v30, 7  ;;  %v1318_v51 = vshrl.u32 %v3251_v31, 16  ;;  %v1902_v57 = vld [vmem:[%s3051_s23 + $0x50] sm:$0x1] }
 0x46d   : > { %v1321_v14 = vshll.u32 %v3251_v31, 16  ;;  %1896 = vst.msk [vmem:[%s3051_s23 + $0x40] sm:$0xf] %vm1519_vm2, %v1281_v23  ;;  %v3383_v0 = vor.u32 %v1304_v9, %v1303_v7  ;;  %v1307_v62 = vrot.slane %v1303_v7, 4  ;;  %v1326_v2 = vshrl.u32 %v3257_v38, 16 }
 0x46e   : > { %v1298_v33 = vsel %vm3228_vm6, %v1290_v50, %v1297_v35  ;;  %v1314_v49 = vor.u32 %v1312_v1, %v3374_v24  ;;  %v1320_v53 = vrot.slane %v1318_v51, 7  ;;  %v1329_v56 = vshll.u32 %v3257_v38, 16  ;;  %v1899_v51 = vld [vmem:[%s3051_s23 + $0x48] sm:$0xf] }
 0x46f   : > { %1901 = vst.msk [vmem:[%s3051_s23 + $0x4c] sm:$0xf] %vm1519_vm2, %v1298_v33  ;;  %v3391_v31 = vrot.slane %v1326_v2, 7  ;;  %v1335_v43 = vshrl.u32 %v3262_v60, 16  ;;  %v1338_v22 = vshll.u32 %v3262_v60, 16  ;;  %v1343_v41 = vshrl.u32 %v3266_v61, 16 }
 0x470   : > { %v1315_v11 = vsel %vm3228_vm6, %v1307_v62, %v1314_v49  ;;  %v3398_v10 = vor.u32 %v1321_v14, %v1320_v53  ;;  %v1324_v63 = vrot.slane %v1320_v53, 4  ;;  %v1346_v54 = vshll.u32 %v3266_v61, 16 }
 0x471   : > { %v1331_v38 = vor.u32 %v1329_v56, %v3391_v31  ;;  %v1337_v19 = vrot.slane %v1335_v43, 7  ;;  %v3403_v50 = vrot.slane %v1343_v41, 7  ;;  %1906 = vst.msk [vmem:[%s3051_s23 + $0x58] sm:$0xf] %vm1519_vm2, %v1315_v11  ;;  %v1352_v60 = vshrl.u32 %v3272_v59, 16 }
 0x472   : > { %v1355_v9 = vshll.u32 %v3272_v59, 16  ;;  %v1360_v30 = vshrl.u32 %v3276_v17, 16  ;;  %v1363_v23 = vshll.u32 %v3276_v17, 16  ;;  %v1369_v59 = vshrl.u32 %v3281_v8, 16 }
 0x473   : > { %v1332_v61 = vsel %vm3228_vm6, %v1324_v63, %v1331_v38  ;;  %v3413_v35 = vor.u32 %v1338_v22, %v1337_v19  ;;  %v1341_v7 = vrot.slane %v1337_v19, 4  ;;  %v1348_v1 = vor.u32 %v1346_v54, %v3403_v50 }
 0x474   : > { %v1354_v14 = vrot.slane %v1352_v60, 7  ;;  %v3417_v33 = vrot.slane %v1360_v30, 7  ;;  %1911 = vst.msk [vmem:[%s3051_s23 + $0x64] sm:$0xf] %vm1519_vm2, %v1332_v61  ;;  %v1372_v62 = vshll.u32 %v3281_v8, 16  ;;  %v1377_v2 = vshrl.u32 %v3287_v25, 16 }
 0x475   : > { %v1349_v17 = vsel %vm3228_vm6, %v1341_v7, %v1348_v1  ;;  %v1380_v49 = vshll.u32 %v3287_v25, 16  ;;  %v1371_v41 = vrot.slane %v1369_v59, 7  ;;  %v1386_v63 = vshrl.u32 %v3291_v21, 16 }
 0x476   : > { %v3427_v53 = vor.u32 %v1355_v9, %v1354_v14  ;;  %v1358_v56 = vrot.slane %v1354_v14, 4  ;;  %v1365_v43 = vor.u32 %v1363_v23, %v3417_v33  ;;  %1916 = vst.msk [vmem:[%s3051_s23 + $0x70] sm:$0xf] %vm1519_vm2, %v1349_v17  ;;  %v3433_v11 = vrot.slane %v1377_v2, 7  ;;  %v1894_v23 = vld [vmem:[%s3051_s23 + $0x3c] sm:$0xf] }
 0x477   : > { %v1389_v8 = vshll.u32 %v3291_v21, 16  ;;  %v1394_v54 = vshrl.u32 %v3296_v18, 16  ;;  %v1397_v38 = vshll.u32 %v3296_v18, 16  ;;  %v1403_v19 = vshrl.u32 %v3301_v36, 16 }
 0x478   : > { %v1366_v25 = vsel %vm3228_vm6, %v1358_v56, %v1365_v43  ;;  %v3442_v60 = vor.u32 %v1372_v62, %v1371_v41  ;;  %v1375_v9 = vrot.slane %v1371_v41, 4  ;;  %v1382_v30 = vor.u32 %v1380_v49, %v3433_v11  ;;  %v1892_v56 = vld [vmem:[%s3051_s23 + $0x38] sm:$0x1] }
 0x479   : > { %1921 = vst.msk [vmem:[%s3051_s23 + $0x7c] sm:$0xf] %vm1519_vm2, %v1366_v25  ;;  %v1388_v21 = vrot.slane %v1386_v63, 7  ;;  %v3448_v61 = vrot.slane %v1394_v54, 7  ;;  %v1405_v7 = vrot.slane %v1403_v19, 7  ;;  %v1406_v1 = vshll.u32 %v3301_v36, 16 }
 0x47a   : > { %v1383_v18 = vsel %vm3228_vm6, %v1375_v9, %v1382_v30  ;;  %v1411_v14 = vshrl.u32 %v3308_v27, 16  ;;  %v1414_v59 = vshll.u32 %v3308_v27, 16  ;;  %v1420_v17 = vshrl.u32 %v3315_v16, 16  ;;  %v1889_v19 = vld [vmem:[%s3051_s23 + $0x30] sm:$0xf] }
 0x47b   : > { %v3456_v62 = vor.u32 %v1389_v8, %v1388_v21  ;;  %v1392_v2 = vrot.slane %v1388_v21, 4  ;;  %v1399_v49 = vor.u32 %v1397_v38, %v3448_v61  ;;  %1926 = vst.msk [vmem:[%s3051_s23 + $0x88] sm:$0xf] %vm1519_vm2, %v1383_v18  ;;  %v3462_v36 = vor.u32 %v1406_v1, %v1405_v7  ;;  %v1874_v1 = vld [vmem:[%s3051_s23 + $0xc] sm:$0xf] }
 0x47c   : > { %v1409_v43 = vrot.slane %v1405_v7, 4  ;;  %v3464_v41 = vrot.slane %v1411_v14, 7  ;;  %v1422_v63 = vrot.slane %v1420_v17, 7  ;;  %v1423_v8 = vshll.u32 %v3315_v16, 16 }
 0x47d   : > { %v1400_v27 = vsel %vm3228_vm6, %v1392_v2, %v1399_v49  ;;  %v1428_v25 = vshrl.u32 %v3320_v15, 16  ;;  %v1431_v54 = vshll.u32 %v3320_v15, 16  ;;  %v1437_v30 = vshrl.u32 %v3324_v44, 16  ;;  %v1877_v2 = vld [vmem:[%s3051_s23 + $0x14] sm:$0x1] }
 0x47e   : > { %v1416_v38 = vor.u32 %v1414_v59, %v3464_v41  ;;  %v1426_v9 = vrot.slane %v1422_v63, 4  ;;  %1931 = vst.msk [vmem:[%s3051_s23 + $0x94] sm:$0xf] %vm1519_vm2, %v1400_v27  ;;  %v3476_v21 = vor.u32 %v1423_v8, %v1422_v63  ;;  %v1440_v16 = vshll.u32 %v3324_v44, 16  ;;  %v1879_v49 = vld [vmem:[%s3051_s23 + $0x18] sm:$0xf] }
 0x47f   : > { %v3478_v7 = vrot.slane %v1428_v25, 7  ;;  %v1445_v15 = vshrl.u32 %v3329_v13, 16  ;;  %v1439_v14 = vrot.slane %v1437_v30, 7  ;;  %v1448_v59 = vshll.u32 %v3329_v13, 16  ;;  %v1882_v63 = vld [vmem:[%s3051_s23 + $0x20] sm:$0x1] }
 0x480   : > { %v1417_v18 = vsel %vm3228_vm6, %v1409_v43, %v1416_v38  ;;  %v1454_v17 = vshrl.u32 %v3335_v58, 16  ;;  %v1457_v43 = vshll.u32 %v3335_v58, 16  ;;  %v1884_v25 = vld [vmem:[%s3051_s23 + $0x24] sm:$0xf]  ;;  %v1887_v38 = vld [vmem:[%s3051_s23 + $0x2c] sm:$0x1]  ;;  %v1568_v46 = vsel %vm3497_vm8, %v3383_v0, %v1904_v3 }
 0x481   : > { %v1433_v44 = vor.u32 %v1431_v54, %v3478_v7  ;;  %v3492_v8 = vrot.slane %v1445_v15, 7  ;;  %1936 = vst.msk [vmem:[%s3051_s23 + $0xa0] sm:$0xf] %vm1519_vm2, %v1417_v18  ;;  %v3505_v54 = vor.u32 %v1440_v16, %v1439_v14  ;;  %v1443_v30 = vrot.slane %v1439_v14, 4  ;;  %v1897_v18 = vld [vmem:[%s3051_s23 + $0x44] sm:$0x1] }
 0x482   : > { %v1456_v15 = vrot.slane %v1454_v17, 7  ;;  %v1462_v27 = vshrl.u32 %v3342_v6, 16  ;;  %v1465_v22 = vshll.u32 %v3342_v6, 16  ;;  %v1909_v6 = vld [vmem:[%s3051_s23 + $0x60] sm:$0xf]  ;;  %v3889_v0 = vrot.slane %v3391_v31, 4 }
 0x483   : > { %v1434_v16 = vsel %vm3228_vm6, %v1426_v9, %v1433_v44  ;;  %v1450_v14 = vor.u32 %v1448_v59, %v3492_v8  ;;  %v1452_v17 = vrot.slane %v3492_v8, 4  ;;  %v1523_v9 = vsel %vm3497_vm8, %v3208_v12, %v1874_v1  ;;  %v1907_v59 = vld [vmem:[%s3051_s23 + $0x5c] sm:$0x1]  ;;  %1905 = vst [vmem:[%s3051_s23 + $0x54] sm:$0xf] %v1568_v46 }
 0x484   : > { %v3526_v4 = vor.u32 %v1457_v43, %v1456_v15  ;;  %v1460_v5 = vrot.slane %v1456_v15, 4  ;;  %v3528_v37 = vrot.slane %v1462_v27, 7  ;;  %1941 = vst.msk [vmem:[%s3051_s23 + $0xac] sm:$0xf] %vm1519_vm2, %v1434_v16  ;;  %1875 = vst [vmem:[%s3051_s23 + $0xc] sm:$0xf] %v1523_v9  ;;  %v1530_v27 = vsel %vm3510_vm9, %v1214_v45, %v1877_v2 }
 0x485   : > { %v1451_v44 = vsel %vm3228_vm6, %v1443_v30, %v1450_v14  ;;  %v1533_v12 = vsel %vm3497_vm8, %v3268_v47, %v1879_v49  ;;  %v1537_v1 = vsel %vm3510_vm9, %v1231_v55, %v1882_v63  ;;  %v1912_v43 = vld [vmem:[%s3051_s23 + $0x68] sm:$0x1]  ;;  %v1914_v30 = vld [vmem:[%s3051_s23 + $0x6c] sm:$0xf]  ;;  %v1917_v15 = vld [vmem:[%s3051_s23 + $0x74] sm:$0x1]  ;;  %v1540_v45 = vsel %vm3497_vm8, %v3298_v39, %v1884_v25 }
 0x486   : > { %v1467_v20 = vor.u32 %v1465_v22, %v3528_v37  ;;  %v1469_v16 = vrot.slane %v3528_v37, 4  ;;  %1878 = vst [vmem:[%s3051_s23 + $0x14] sm:$0x1] %v1530_v27  ;;  %1880 = vst [vmem:[%s3051_s23 + $0x18] sm:$0xf] %v1533_v12  ;;  %v1544_v47 = vsel %vm3510_vm9, %v1248_v28, %v1887_v38  ;;  %v1547_v22 = vsel %vm3497_vm8, %v3333_v29, %v1889_v19 }
 0x487   : > { %1883 = vst [vmem:[%s3051_s23 + $0x20] sm:$0x1] %v1537_v1  ;;  %v1922_v55 = vld [vmem:[%s3051_s23 + $0x80] sm:$0x1]  ;;  %1946 = vst.msk [vmem:[%s3051_s23 + $0xb8] sm:$0xf] %vm1519_vm2, %v1451_v44  ;;  %v1554_v28 = vsel %vm3497_vm8, %v3357_v40, %v1894_v23  ;;  %v1579_v3 = vsel %vm3510_vm9, %v3889_v0, %v1912_v43 }
 0x488   : > { %1885 = vst [vmem:[%s3051_s23 + $0x24] sm:$0xf] %v1540_v45  ;;  %1888 = vst [vmem:[%s3051_s23 + $0x2c] sm:$0x1] %v1544_v47  ;;  %v3885_v39 = vrot.slane %v3337_v42, 4  ;;  %v3886_v2 = vrot.slane %v3350_v32, 4  ;;  %v1468_v19 = vsel %vm3228_vm6, %v1460_v5, %v1467_v20  ;;  %v1561_v32 = vsel %vm3497_vm8, %v3366_v48, %v1899_v51 }
 0x489   : > { %v1924_v63 = vld [vmem:[%s3051_s23 + $0x84] sm:$0xf]  ;;  %v1927_v29 = vld [vmem:[%s3051_s23 + $0x8c] sm:$0x1]  ;;  %v1929_v42 = vld [vmem:[%s3051_s23 + $0x90] sm:$0xf]  ;;  %v1582_v51 = vsel %vm3497_vm8, %v3413_v35, %v1914_v30  ;;  %v1589_v35 = vsel %vm3497_vm8, %v3427_v53, %v1919_v52 }
 0x48a   : > { %v1551_v26 = vsel %vm3510_vm9, %v3885_v39, %v1892_v56  ;;  %v1558_v49 = vsel %vm3510_vm9, %v3886_v2, %v1897_v18  ;;  %1890 = vst [vmem:[%s3051_s23 + $0x30] sm:$0xf] %v1547_v22  ;;  %1895 = vst [vmem:[%s3051_s23 + $0x3c] sm:$0xf] %v1554_v28  ;;  %v3887_v40 = vrot.slane %v3361_v34, 4  ;;  %v3888_v34 = vrot.slane %v3374_v24, 4 }
 0x48b   : > { %1893 = vst [vmem:[%s3051_s23 + $0x38] sm:$0x1] %v1551_v26  ;;  %1898 = vst [vmem:[%s3051_s23 + $0x44] sm:$0x1] %v1558_v49  ;;  %v1932_v5 = vld [vmem:[%s3051_s23 + $0x98] sm:$0x1] }
 0x48c   : > { %v1565_v23 = vsel %vm3510_vm9, %v3887_v40, %v1902_v57  ;;  %v1934_v56 = vld [vmem:[%s3051_s23 + $0x9c] sm:$0xf]  ;;  %v1937_v25 = vld [vmem:[%s3051_s23 + $0xa4] sm:$0x1]  ;;  %1900 = vst [vmem:[%s3051_s23 + $0x48] sm:$0xf] %v1561_v32  ;;  %v1572_v48 = vsel %vm3510_vm9, %v3888_v34, %v1907_v59  ;;  %v1575_v57 = vsel %vm3497_vm8, %v3398_v10, %v1909_v6  ;;  %v1596_v59 = vsel %vm3497_vm8, %v3442_v60, %v1924_v63 }
 0x48d   : > { %1903 = vst [vmem:[%s3051_s23 + $0x50] sm:$0x1] %v1565_v23  ;;  %v1939_v24 = vld [vmem:[%s3051_s23 + $0xa8] sm:$0xf]  ;;  %v1942_v38 = vld [vmem:[%s3051_s23 + $0xb0] sm:$0x1]  ;;  %v1603_v60 = vsel %vm3497_vm8, %v3456_v62, %v1929_v42  ;;  %v1610_v1 = vsel %vm3497_vm8, %v3462_v36, %v1934_v56 }
 0x48e   : > { %v1944_v18 = vld [vmem:[%s3051_s23 + $0xb4] sm:$0xf]  ;;  %1951 = vst.msk [vmem:[%s3051_s23 + $0xc4] sm:$0xf] %vm1519_vm2, %v1468_v19  ;;  %1908 = vst [vmem:[%s3051_s23 + $0x5c] sm:$0x1] %v1572_v48  ;;  %v1617_v36 = vsel %vm3497_vm8, %v3476_v21, %v1939_v24 }
 0x48f   : > { %1910 = vst [vmem:[%s3051_s23 + $0x60] sm:$0xf] %v1575_v57  ;;  %1913 = vst [vmem:[%s3051_s23 + $0x68] sm:$0x1] %v1579_v3  ;;  %v3890_v31 = vrot.slane %v3403_v50, 4  ;;  %v3891_v14 = vrot.slane %v3417_v33, 4 }
 0x490   : > { %1915 = vst [vmem:[%s3051_s23 + $0x6c] sm:$0xf] %v1582_v51  ;;  %v1947_v50 = vld [vmem:[%s3051_s23 + $0xbc] sm:$0x1]  ;;  %v1949_v6 = vld [vmem:[%s3051_s23 + $0xc0] sm:$0xf] }
 0x491   : > { %v1586_v10 = vsel %vm3510_vm9, %v3890_v31, %v1917_v15  ;;  %v1593_v9 = vsel %vm3510_vm9, %v3891_v14, %v1922_v55  ;;  %v1952_v44 = vld [vmem:[%s3051_s23 + $0xc8] sm:$0x1]  ;;  %1920 = vst [vmem:[%s3051_s23 + $0x78] sm:$0xf] %v1589_v35  ;;  %1925 = vst [vmem:[%s3051_s23 + $0x84] sm:$0xf] %v1596_v59  ;;  %v1628_v21 = vsel %vm3510_vm9, %v1452_v17, %v1947_v50 }
 0x492   : > { %1918 = vst [vmem:[%s3051_s23 + $0x74] sm:$0x1] %v1586_v10  ;;  %1923 = vst [vmem:[%s3051_s23 + $0x80] sm:$0x1] %v1593_v9  ;;  %v3892_v33 = vrot.slane %v3433_v11, 4  ;;  %v3893_v27 = vrot.slane %v3448_v61, 4 }
 0x493   : > { %1930 = vst [vmem:[%s3051_s23 + $0x90] sm:$0xf] %v1603_v60  ;;  %1935 = vst [vmem:[%s3051_s23 + $0x9c] sm:$0xf] %v1610_v1  ;;  %v3896_v61 = vrot.slane %v3464_v41, 4  ;;  %v3897_v43 = vrot.slane %v3478_v7, 4  ;;  %v1624_v41 = vsel %vm3497_vm8, %v3505_v54, %v1944_v18  ;;  %v1631_v7 = vsel %vm3497_vm8, %v3526_v4, %v1949_v6 }
 0x494   : > { %v1600_v53 = vsel %vm3510_vm9, %v3892_v33, %v1927_v29  ;;  %v1607_v12 = vsel %vm3510_vm9, %v3893_v27, %v1932_v5  ;;  %v1957_v15 = vld [vmem:[%s3051_s23 + $0xc] sm:$0x1]  ;;  %1940 = vst [vmem:[%s3051_s23 + $0xa8] sm:$0xf] %v1617_v36  ;;  %1945 = vst [vmem:[%s3051_s23 + $0xb4] sm:$0xf] %v1624_v41  ;;  %v1635_v54 = vsel %vm3510_vm9, %v1469_v16, %v1952_v44 }
 0x495   : > { %1928 = vst [vmem:[%s3051_s23 + $0x8c] sm:$0x1] %v1600_v53  ;;  %1933 = vst [vmem:[%s3051_s23 + $0x98] sm:$0x1] %v1607_v12  ;;  %v1614_v62 = vsel %vm3510_vm9, %v3896_v61, %v1937_v25  ;;  %v1621_v30 = vsel %vm3510_vm9, %v3897_v43, %v1942_v38  ;;  %v1646_v20 = vsel %vm3510_vm9, 0, %v1957_v15 }
 0x496   : > { %1938 = vst [vmem:[%s3051_s23 + $0xa4] sm:$0x1] %v1614_v62  ;;  %1943 = vst [vmem:[%s3051_s23 + $0xb0] sm:$0x1] %v1621_v30  ;;  %v1959_v45 = vld [vmem:[%s3051_s23 + $0x18] sm:$0x1] }
 0x497   : > { %v1989_v8 = vld [vmem:[%s3051_s23 + $0x14] sm:$0x1]  ;;  %1948 = vst [vmem:[%s3051_s23 + $0xbc] sm:$0x1] %v1628_v21  ;;  %1950 = vst [vmem:[%s3051_s23 + $0xc0] sm:$0xf] %v1631_v7 }
 0x498   : > { %1953 = vst [vmem:[%s3051_s23 + $0xc8] sm:$0x1] %v1635_v54  ;;  %1958 = vst [vmem:[%s3051_s23 + $0xc] sm:$0x1] %v1646_v20  ;;  %v1649_v37 = vsel %vm3510_vm9, 0, %v1959_v45  ;;  %v1695_v13 = vsel %vm3671_vm10, 0, %v1989_v8 }
 0x499   : > { %v1961_v4 = vld [vmem:[%s3051_s23 + $0x24] sm:$0x1]  ;;  %v1991_v17 = vld [vmem:[%s3051_s23 + $0x20] sm:$0x1]  ;;  %1960 = vst [vmem:[%s3051_s23 + $0x18] sm:$0x1] %v1649_v37 }
 0x49a   : > { %v1652_v16 = vsel %vm3510_vm9, 0, %v1961_v4  ;;  %v1963_v47 = vld [vmem:[%s3051_s23 + $0x30] sm:$0x1]  ;;  %v1965_v52 = vld [vmem:[%s3051_s23 + $0x3c] sm:$0x1]  ;;  %v1698_v55 = vsel %vm3671_vm10, 0, %v1991_v17 }
 0x49b   : > { %1990 = vst [vmem:[%s3051_s23 + $0x14] sm:$0x1] %v1695_v13  ;;  %1962 = vst [vmem:[%s3051_s23 + $0x24] sm:$0x1] %v1652_v16  ;;  %v1655_v22 = vsel %vm3510_vm9, 0, %v1963_v47  ;;  %v1658_v39 = vsel %vm3510_vm9, 0, %v1965_v52 }
 0x49c   : > { %v1967_v26 = vld [vmem:[%s3051_s23 + $0x48] sm:$0x1]  ;;  %v1969_v28 = vld [vmem:[%s3051_s23 + $0x54] sm:$0x1]  ;;  %1992 = vst [vmem:[%s3051_s23 + $0x20] sm:$0x1] %v1698_v55 }
 0x49d   : > { %1964 = vst [vmem:[%s3051_s23 + $0x30] sm:$0x1] %v1655_v22  ;;  %1966 = vst [vmem:[%s3051_s23 + $0x3c] sm:$0x1] %v1658_v39  ;;  %v1661_v2 = vsel %vm3510_vm9, 0, %v1967_v26  ;;  %v1664_v49 = vsel %vm3510_vm9, 0, %v1969_v28 }
 0x49e   : > { %v1971_v63 = vld [vmem:[%s3051_s23 + $0x60] sm:$0x1]  ;;  %v1973_v29 = vld [vmem:[%s3051_s23 + $0x6c] sm:$0x1]  ;;  %1968 = vst [vmem:[%s3051_s23 + $0x48] sm:$0x1] %v1661_v2 }
 0x49f   : > { %1970 = vst [vmem:[%s3051_s23 + $0x54] sm:$0x1] %v1664_v49  ;;  %v1667_v42 = vsel %vm3510_vm9, 0, %v1971_v63  ;;  %v1670_v19 = vsel %vm3510_vm9, 0, %v1973_v29  ;;  %v1975_v32 = vld [vmem:[%s3051_s23 + $0x78] sm:$0x1] }
 0x4a0   : > { %v1977_v40 = vld [vmem:[%s3051_s23 + $0x84] sm:$0x1]  ;;  %1972 = vst [vmem:[%s3051_s23 + $0x60] sm:$0x1] %v1667_v42  ;;  %1974 = vst [vmem:[%s3051_s23 + $0x6c] sm:$0x1] %v1670_v19 }
 0x4a1   : > { %v1673_v23 = vsel %vm3510_vm9, 0, %v1975_v32  ;;  %v1676_v46 = vsel %vm3510_vm9, 0, %v1977_v40  ;;  %v1979_v5 = vld [vmem:[%s3051_s23 + $0x90] sm:$0x1]  ;;  %v1981_v56 = vld [vmem:[%s3051_s23 + $0x9c] sm:$0x1] }
 0x4a2   : > { %1976 = vst [vmem:[%s3051_s23 + $0x78] sm:$0x1] %v1673_v23  ;;  %1978 = vst [vmem:[%s3051_s23 + $0x84] sm:$0x1] %v1676_v46  ;;  %v1679_v25 = vsel %vm3510_vm9, 0, %v1979_v5  ;;  %v1682_v34 = vsel %vm3510_vm9, 0, %v1981_v56 }
 0x4a3   : > { %v1983_v48 = vld [vmem:[%s3051_s23 + $0xa8] sm:$0x1]  ;;  %v1985_v57 = vld [vmem:[%s3051_s23 + $0xb4] sm:$0x1]  ;;  %1980 = vst [vmem:[%s3051_s23 + $0x90] sm:$0x1] %v1679_v25 }
 0x4a4   : > { %1982 = vst [vmem:[%s3051_s23 + $0x9c] sm:$0x1] %v1682_v34  ;;  %v1685_v0 = vsel %vm3510_vm9, 0, %v1983_v48  ;;  %v1688_v3 = vsel %vm3510_vm9, 0, %v1985_v57  ;;  %v1987_v51 = vld [vmem:[%s3051_s23 + $0xc0] sm:$0x1] }
 0x4a5   : > { %v1993_v24 = vld [vmem:[%s3051_s23 + $0x2c] sm:$0x1]  ;;  %1984 = vst [vmem:[%s3051_s23 + $0xa8] sm:$0x1] %v1685_v0  ;;  %1986 = vst [vmem:[%s3051_s23 + $0xb4] sm:$0x1] %v1688_v3 }
 0x4a6   : > { %v1691_v38 = vsel %vm3510_vm9, 0, %v1987_v51  ;;  %v1701_v18 = vsel %vm3671_vm10, 0, %v1993_v24  ;;  %v1995_v31 = vld [vmem:[%s3051_s23 + $0x38] sm:$0x1]  ;;  %v1997_v10 = vld [vmem:[%s3051_s23 + $0x44] sm:$0x1] }
 0x4a7   : > { %1988 = vst [vmem:[%s3051_s23 + $0xc0] sm:$0x1] %v1691_v38  ;;  %1994 = vst [vmem:[%s3051_s23 + $0x2c] sm:$0x1] %v1701_v18  ;;  %v1704_v35 = vsel %vm3671_vm10, 0, %v1995_v31  ;;  %v1707_v58 = vsel %vm3671_vm10, 0, %v1997_v10 }
 0x4a8   : > { %v1999_v14 = vld [vmem:[%s3051_s23 + $0x50] sm:$0x1]  ;;  %v2001_v9 = vld [vmem:[%s3051_s23 + $0x5c] sm:$0x1]  ;;  %1996 = vst [vmem:[%s3051_s23 + $0x38] sm:$0x1] %v1704_v35 }
 0x4a9   : > { %1998 = vst [vmem:[%s3051_s23 + $0x44] sm:$0x1] %v1707_v58  ;;  %v1710_v59 = vsel %vm3671_vm10, 0, %v1999_v14  ;;  %v1713_v50 = vsel %vm3671_vm10, 0, %v2001_v9  ;;  %v2003_v6 = vld [vmem:[%s3051_s23 + $0x68] sm:$0x1] }
 0x4aa   : > { %v2005_v44 = vld [vmem:[%s3051_s23 + $0x74] sm:$0x1]  ;;  %2000 = vst [vmem:[%s3051_s23 + $0x50] sm:$0x1] %v1710_v59  ;;  %2002 = vst [vmem:[%s3051_s23 + $0x5c] sm:$0x1] %v1713_v50 }
 0x4ab   : > { %v1716_v33 = vsel %vm3671_vm10, 0, %v2003_v6  ;;  %v1719_v53 = vsel %vm3671_vm10, 0, %v2005_v44  ;;  %v2007_v60 = vld [vmem:[%s3051_s23 + $0x80] sm:$0x1]  ;;  %v2009_v27 = vld [vmem:[%s3051_s23 + $0x8c] sm:$0x1] }
 0x4ac   : > { %2004 = vst [vmem:[%s3051_s23 + $0x68] sm:$0x1] %v1716_v33  ;;  %2006 = vst [vmem:[%s3051_s23 + $0x74] sm:$0x1] %v1719_v53  ;;  %v1722_v12 = vsel %vm3671_vm10, 0, %v2007_v60  ;;  %v1725_v1 = vsel %vm3671_vm10, 0, %v2009_v27 }
 0x4ad   : > { %v2011_v61 = vld [vmem:[%s3051_s23 + $0x98] sm:$0x1]  ;;  %v2013_v62 = vld [vmem:[%s3051_s23 + $0xa4] sm:$0x1]  ;;  %2008 = vst [vmem:[%s3051_s23 + $0x80] sm:$0x1] %v1722_v12 }
 0x4ae   : > { %2010 = vst [vmem:[%s3051_s23 + $0x8c] sm:$0x1] %v1725_v1  ;;  %v1728_v36 = vsel %vm3671_vm10, 0, %v2011_v61  ;;  %v1731_v43 = vsel %vm3671_vm10, 0, %v2013_v62  ;;  %v2015_v30 = vld [vmem:[%s3051_s23 + $0xb0] sm:$0x1] }
 0x4af   : > { %v2017_v41 = vld [vmem:[%s3051_s23 + $0xbc] sm:$0x1]  ;;  %2012 = vst [vmem:[%s3051_s23 + $0x98] sm:$0x1] %v1728_v36  ;;  %2014 = vst [vmem:[%s3051_s23 + $0xa4] sm:$0x1] %v1731_v43 }
 0x4b0   : > { %v1734_v15 = vsel %vm3671_vm10, 0, %v2015_v30  ;;  %v1737_v21 = vsel %vm3671_vm10, 0, %v2017_v41  ;;  %v2019_v7 = vld [vmem:[%s3051_s23 + $0xc8] sm:$0x1] }
 0x4b1   : > { %2016 = vst [vmem:[%s3051_s23 + $0xb0] sm:$0x1] %v1734_v15  ;;  %2018 = vst [vmem:[%s3051_s23 + $0xbc] sm:$0x1] %v1737_v21  ;;  %v1740_v54 = vsel %vm3671_vm10, 0, %v2019_v7 }
 0x4b2   : > { %2020 = vst [vmem:[%s3051_s23 + $0xc8] sm:$0x1] %v1740_v54 }
 0x4b3 PF: > { %s15_s18 = sadd.s32 1, %s2372_s18  }
 0x4b4   : > { %p12_p4 = scmp.ge.s32.totalorder %s15_s18, 4  }
 0x4b6   :  { %14 = sbr.rel (!%p12_p4) target bundleno = 1 (0x1), region = 72 }

// kernel: down_block_3d.6
= control target key start
LH: loop header
LB: loop body
LE: loop exit
PB: predicated region body
PF: predicated region fallthrough
CT: control target
= control target key end

     0   :  { %s3817_s15 = smov 0   ;;  %s3819_s16 = smov 0   ;;  %s5254_s0 = inlined_call_operand.vmem [shape: bf16[2,18,18,32], index: 0, kind: input, shape index: {}]   ;;  %s5255_s1 = inlined_call_operand.vmem [shape: bf16[288,64], index: 1, kind: input, shape index: {}]   ;;  %s5256_s2 = inlined_call_operand.vmem [shape: f32[1,64], index: 2, kind: input, shape index: {}]   ;;  %s5257_s3 = inlined_call_operand.vmem [shape: f32[2,1,64], index: 3, kind: input, shape index: {}]   ;;  %s5258_s4 = inlined_call_operand.vmem [shape: bf16[2,16,16,64], index: 4, kind: output, shape index: {}]  }
   0x1   :  { %s3821_s17 = smov 0  }
   0x2 LB: > { %s26_s18 = sadd.s32 1, %s3783_s16  ;;  %p2998_p0 = scmp.ge.s32.totalorder %s3787_s17, 1  ;;  %s3787_s17 = sphi %s3821_s17, %s14_s17   ;;  %s3783_s16 = sphi %s3819_s16, %s5306_s16   ;;  %s3779_s15 = sphi %s3817_s15, %s5305_s15  }
   0x3   : > { %p28_p1 = scmp.ge.s32.totalorder %s26_s18, 2  ;;  %p206_p2 = scmp.lt.s32.totalorder %s3787_s17, 3 }
   0x5   : > { %s5308_s18 = smov (%p28_p1, %s26_s18), 0  ;;  %p207_p3 = pnand %p2998_p0, %p206_p2 }
   0x7   : > { %210 = sbr.rel (%p207_p3) target bundleno = 556 (0x22c), region = 36 }
   0xe   : > { %p248_p4 = scmp.lt.s32.totalorder %s3779_s15, 1  ;;  %v3666_v0 = vld [vmem:[%s5255_s1 + $0x40] sm:$0xff]   ;;  %v3670_v2 = vld [vmem:[%s5255_s1 + $0x48] sm:$0xff]   ;;  %v3676_v4 = vld [vmem:[%s5255_s1 + $0x50] sm:$0xff]   ;;  %s3789_s9 = smov 64   ;;  %vm870_vm0 = vcmask 1046528  }
   0xf   : > { %3377 = vmatprep.subr.bf16.mxu0 %v3666_v0  ;;  %v3667_v1 = vld [vmem:[%s5255_s1] sm:$0xff]   ;;  %3543 = vmatprep.subr.bf16.mxu1 %v3666_v0  ;;  %v3671_v3 = vld [vmem:[%s5255_s1 + $0x8] sm:$0xff]   ;;  %v3677_v10 = vld [vmem:[%s5255_s1 + $0x10] sm:$0xff]   ;;  %vm597_vm1 = vsmask.f32 7424  ;;  %s3790_s10 = smov 32  }
  0x10   : > { %s5310_s15 = smov (!%p248_p4, %s3779_s15), 1  ;;  %3378 = vmatpush3.bf16.msra.mxu0 %v3667_v1  ;;  %3551 = vmatpush3.bf16.msra.mxu1 %v3667_v1  ;;  %s3791_s11 = smov 96   ;;  %vm1911_vm2 = vcmask 261120   ;;  %vm1944_vm3 = vcmask 523264   ;;  %vm1977_vm4 = vcmask 785408   ;;  %vm2842_vm5 = vcmask 519168  }
  0x11   : > { %s3559_s25 = smul.u32 216, %s5310_s15  ;;  %3379 = vmatprep.subr.bf16.mxu0 %v3670_v2  ;;  %3544 = vmatprep.subr.bf16.mxu1 %v3670_v2  ;;  %s3344_s23 = sshll.u32 %s5310_s15, 7 }
  0x12   : > { %s5087_s26 = scalar_lea.vmem %s5258_s4, %s3344_s23 }
  0x13   : > { %s3856_s6 = scalar_lea.vmem %s5254_s0, %s3559_s25 }
  0x14   : > { %v3090_v5 = vld [vmem:[%s3856_s6 + $0xa8] sm:$0xf]  ;;  %v3091_v6 = vld [vmem:[%s3856_s6 + $0xac] sm:$0xf]  ;;  %v3066_v8 = vld [vmem:[%s3856_s6 + $0x18] sm:$0xf]  ;;  %3380 = vmatpush3.bf16.msra.mxu0 %v3671_v3  ;;  %3552 = vmatpush3.bf16.msra.mxu1 %v3671_v3 }
  0x15   : > { %v3860_v7 = vcombine.low %v3090_v5, %v3091_v6  ;;  %v3067_v9 = vld [vmem:[%s3856_s6 + $0x1c] sm:$0xf]  ;;  %v3003_v12 = vld [vmem:[%s3856_s6 + $0x10] sm:$0xf]  ;;  %v3050_v13 = vld [vmem:[%s3856_s6 + $0xc] sm:$0xe]  ;;  %3381 = vmatprep.subr.bf16.mxu0 %v3676_v4  ;;  %3545 = vmatprep.subr.bf16.mxu1 %v3676_v4 }
  0x16   : > { %v3867_v11 = vcombine.low %v3066_v8, %v3067_v9  ;;  %v3874_v14 = vld [vmem:[%s3856_s6 + $0x14] ss:$0 sps:$4 sm:$0x11]   ;;  %v3210_v15 = vcombine.low %v3050_v13, %v3003_v12  ;;  %v3002_v18 = vld [vmem:[%s3856_s6 + $0xc] sm:$0xf]  ;;  %v3681_v13 = vld [vmem:[%s5255_s1 + $0x58] sm:$0xff]  }
  0x17   : > { %1535 = vrot.lane.b32.xlu0 %v3860_v7, %s3789_s9  ;;  %v1738_v16 = vshll.u32 %v3860_v7, 16  ;;  %v3882_v19 = vld [vmem:[%s3856_s6 + $0xa0] sm:$0xf]  ;;  %v1352_v21 = vrot.slane %v3874_v14, 1  ;;  %v3885_v22 = vcombine.low %v3002_v18, %v3003_v12  ;;  %v3062_v23 = vld [vmem:[%s3856_s6 + $0x9c] sm:$0xe] }
  0x18   : > { %1511 = vrot.lane.b32.xlu1 %v3867_v11, %s3789_s9  ;;  %v1594_v17 = vshll.u32 %v3867_v11, 16  ;;  %v1351_v20 = vrot.slane %v3210_v15, 1  ;;  %3382 = vmatpush3.bf16.msra.mxu0 %v3677_v10  ;;  %v3889_v24 = vld [vmem:[%s3856_s6 + $0xa4] ss:$0 sps:$4 sm:$0x11]   ;;  %v3222_v25 = vcombine.low %v3062_v23, %v3882_v19  ;;  %v1736_v29 = vshrl.u32 %v3860_v7, 16 }
  0x19   : > { %3553 = vmatpush3.bf16.msra.mxu1 %v3677_v10  ;;  %v276_v26 = vld [vmem:[%s3856_s6 + $0x4] sm:$0xf]  ;;  %v323_v28 = vld [vmem:[%s3856_s6] sm:$0xe]  ;;  %v1388_v31 = vrot.slane %v3889_v24, 1  ;;  %v1592_v34 = vshrl.u32 %v3867_v11, 16  ;;  %3383 = vmatprep.subr.bf16.mxu0 %v3681_v13 }
  0x1a   : > { %v1353_v27 = vsel %vm870_vm0, %v1351_v20, %v1352_v21  ;;  %v1387_v30 = vrot.slane %v3222_v25, 1  ;;  %v3596_v32 = vld [vmem:[%s3856_s6 + $0x8] ss:$0 sps:$4 sm:$0x11]   ;;  %v3162_v33 = vcombine.low %v323_v28, %v276_v26  ;;  %v275_v35 = vld [vmem:[%s3856_s6] sm:$0xf]  ;;  %3546 = vmatprep.subr.bf16.mxu1 %v3681_v13 }
  0x1b   : > { %1399 = vrot.lane.b32.xlu0 %v1353_v27, %s3790_s10  ;;  %v299_v36 = vld [vmem:[%s3856_s6 + $0x90] sm:$0xf]  ;;  %v1596_v37 = vrot.slane %v1594_v17, 1  ;;  %v1740_v38 = vrot.slane %v1738_v16, 1  ;;  %v872_v41 = vrot.slane %v3596_v32, 1  ;;  %v3905_v42 = vcombine.low %v275_v35, %v276_v26  ;;  %v3682_v21 = vld [vmem:[%s5255_s1 + $0x18] sm:$0xff]  }
  0x1c   : > { %1031 = vrot.lane.b32.xlu1 %v3885_v22, %s3791_s11  ;;  %v1389_v39 = vsel %vm870_vm0, %v1387_v30, %v1388_v31  ;;  %v871_v40 = vrot.slane %v3162_v33, 1  ;;  %v300_v43 = vld [vmem:[%s3856_s6 + $0x94] sm:$0xf]  ;;  %v335_v44 = vld [vmem:[%s3856_s6 + $0x90] sm:$0xe]  ;;  %v606_v47 = vshll.u32 %v3596_v32, 16  ;;  %3384 = vmatpush3.bf16.msra.mxu0 %v3682_v21 }
  0x1d   : > { %v3909_v45 = vcombine.low %v299_v36, %v300_v43  ;;  %v3600_v46 = vld [vmem:[%s3856_s6 + $0x98] ss:$0 sps:$4 sm:$0x11]   ;;  %v3174_v49 = vcombine.low %v335_v44, %v300_v43  ;;  %v599_v50 = vshrl.u32 %v3905_v42, 16  ;;  %v601_v51 = vshll.u32 %v3905_v42, 16  ;;  %3554 = vmatpush3.bf16.msra.mxu1 %v3682_v21 }
  0x1e   : > { %v873_v48 = vsel %vm870_vm0, %v871_v40, %v872_v41  ;;  %v908_v52 = vrot.slane %v3600_v46, 1  ;;  %v608_v53 = vrot.slane %v606_v47, 1  ;;  %v750_v58 = vshll.u32 %v3600_v46, 16  ;;  %v3602_v59 = vld [vmem:[%s3856_s6 + $0x20] ss:$0 sps:$4 sm:$0x11]  }
  0x1f   : > { %1423 = vrot.lane.b32.xlu0 %v1389_v39, %s3790_s10  ;;  %v743_v54 = vshrl.u32 %v3909_v45, 16  ;;  %v745_v55 = vshll.u32 %v3909_v45, 16  ;;  %v907_v56 = vrot.slane %v3174_v49, 1  ;;  %v603_v57 = vrot.slane %v601_v51, 1  ;;  %v277_v63 = vld [vmem:[%s3856_s6 + $0xc] sm:$0xf] }
  0x20   : > { %919 = vrot.lane.b32.xlu1 %v873_v48, %s3789_s9  ;;  %v1597_v61 = vor.u32 %v1596_v37, %v1592_v34  ;;  %v3604_v62 = vld [vmem:[%s3856_s6 + $0xb0] ss:$0 sps:$4 sm:$0x11]   ;;  %v752_v2 = vrot.slane %v750_v58, 1  ;;  %v1599_v3 = vshll.u32 %v3602_v59, 16  ;;  %v1741_v16 = vor.u32 %v1740_v38, %v1736_v29  ;;  %v3685_v29 = vld [vmem:[%s5255_s1 + $0x60] sm:$0xff]  }
  0x21   : > { %v747_v60 = vrot.slane %v745_v55, 1  ;;  %v909_v0 = vsel %vm870_vm0, %v907_v56, %v908_v52  ;;  %v604_v1 = vor.u32 %v603_v57, %v599_v50  ;;  %v278_v4 = vld [vmem:[%s3856_s6 + $0x10] sm:$0xf]  ;;  %v3026_v6 = vld [vmem:[%s3856_s6 + $0x9c] sm:$0xf]  ;;  %v1743_v7 = vshll.u32 %v3604_v62, 16  ;;  %3385 = vmatprep.subr.bf16.mxu0 %v3685_v29  ;;  %3547 = vmatprep.subr.bf16.mxu1 %v3685_v29 }
  0x22   : > { %v3927_v8 = vld [vmem:[%s3856_s6 + $0x14] ss:$0 sps:$4 sm:$0x11]   ;;  %v1601_v10 = vrot.slane %v1599_v3, 1  ;;  %v3930_v11 = vcombine.low %v277_v63, %v278_v4  ;;  %v3933_v12 = vld [vmem:[%s3856_s6 + $0x1c] sm:$0xf]  ;;  %v3957_v30 = vcombine.low %v3026_v6, %v3882_v19 }
  0x23   : > { %v748_v5 = vor.u32 %v747_v60, %v743_v54  ;;  %v609_v9 = vsel %vm597_vm1, %v604_v1, %v608_v53  ;;  %v1745_v17 = vrot.slane %v1743_v7, 1  ;;  %v618_v18 = vshll.u32 %v3927_v8, 16  ;;  %v3051_v20 = vld [vmem:[%s3856_s6 + $0x18] sm:$0xe]  ;;  %v324_v31 = vld [vmem:[%s3856_s6 + $0xc] sm:$0xe] }
  0x24   : > { %943 = vrot.lane.b32.xlu1 %v909_v0, %s3789_s9  ;;  %790 = vrot.lane.b32.xlu0 %v609_v9, %s3790_s10  ;;  %v1602_v23 = vsel %vm597_vm1, %v1597_v61, %v1601_v10  ;;  %v611_v25 = vshrl.u32 %v3930_v11, 16  ;;  %v613_v26 = vshll.u32 %v3930_v11, 16  ;;  %v3949_v27 = vld [vmem:[%s3856_s6 + $0x20] ss:$0 sps:$4 sm:$0x11]   ;;  %v3211_v28 = vcombine.low %v3051_v20, %v3933_v12  ;;  %v3691_v52 = vld [vmem:[%s5255_s1 + $0x68] sm:$0xff]  }
  0x25   : > { %v753_v15 = vsel %vm597_vm1, %v748_v5, %v752_v2  ;;  %v3068_v32 = vld [vmem:[%s3856_s6 + $0x24] sm:$0xf]  ;;  %v620_v34 = vrot.slane %v618_v18, 1  ;;  %v3163_v35 = vcombine.low %v324_v31, %v278_v4  ;;  %v3962_v36 = vld [vmem:[%s3856_s6 + $0x28] sm:$0xf]  ;;  %v1746_v39 = vsel %vm597_vm1, %v1741_v16, %v1745_v17 }
  0x26   : > { %v615_v33 = vrot.slane %v613_v26, 1  ;;  %v3686_v37 = vld [vmem:[%s5255_s1 + $0x20] sm:$0xff]   ;;  %v1354_v19 = vrot.slane %v3211_v28, 1  ;;  %v3227_v38 = vcombine.low %v3068_v32, %v3962_v36  ;;  %v1355_v41 = vrot.slane %v3949_v27, 1  ;;  %v301_v44 = vld [vmem:[%s3856_s6 + $0x9c] sm:$0xf] }
  0x27   : > { %v3972_v43 = vld [vmem:[%s3856_s6 + $0x2c] ss:$0 sps:$4 sm:$0x11]   ;;  %v302_v47 = vld [vmem:[%s3856_s6 + $0xa0] sm:$0xf]  ;;  %3386 = vmatpush3.bf16.msra.mxu0 %v3686_v37  ;;  %v874_v49 = vrot.slane %v3163_v35, 1  ;;  %3555 = vmatpush3.bf16.msra.mxu1 %v3686_v37 }
  0x28   : > { %814 = vrot.lane.b32.xlu1 %v753_v15, %s3790_s10  ;;  %1783 = vrot.lane.b32.xlu0 %v1602_v23, %s3791_s11  ;;  %v616_v40 = vor.u32 %v615_v33, %v611_v25  ;;  %v1606_v46 = vshll.u32 %v3227_v38, 16  ;;  %v875_v50 = vrot.slane %v3927_v8, 1  ;;  %v3981_v51 = vld [vmem:[%s3856_s6 + $0xa4] ss:$0 sps:$4 sm:$0x11]   ;;  %v1604_v53 = vshrl.u32 %v3227_v38, 16 }
  0x29   : > { %v1611_v55 = vshll.u32 %v3972_v43, 16  ;;  %v1114_v56 = vshll.u32 %v3885_v22, 16  ;;  %v1356_v57 = vsel %vm870_vm0, %v1354_v19, %v1355_v41  ;;  %v3990_v58 = vcombine.low %v301_v44, %v302_v47  ;;  %3387 = vmatprep.subr.bf16.mxu0 %v3691_v52  ;;  %3548 = vmatprep.subr.bf16.mxu1 %v3691_v52  ;;  %v3004_v59 = vld [vmem:[%s3856_s6 + $0x18] sm:$0xf]  ;;  %v3995_v60 = vld [vmem:[%s3856_s6 + $0xac] sm:$0xf] }
  0x2a   : > { %v621_v48 = vsel %vm597_vm1, %v616_v40, %v620_v34  ;;  %v1608_v54 = vrot.slane %v1606_v46, 1  ;;  %v3063_v61 = vld [vmem:[%s3856_s6 + $0xa8] sm:$0xe]  ;;  %v876_v62 = vsel %vm870_vm0, %v874_v49, %v875_v50  ;;  %v762_v1 = vshll.u32 %v3981_v51, 16  ;;  %v3092_v2 = vld [vmem:[%s3856_s6 + $0xb4] sm:$0xf] }
  0x2b   : > { %v755_v63 = vshrl.u32 %v3990_v58, 16  ;;  %v757_v0 = vshll.u32 %v3990_v58, 16  ;;  %v3692_v3 = vld [vmem:[%s5255_s1 + $0x28] sm:$0xff]   ;;  %v1613_v5 = vrot.slane %v1611_v55, 1  ;;  %v336_v6 = vld [vmem:[%s3856_s6 + $0x9c] sm:$0xe]  ;;  %v3223_v13 = vcombine.low %v3063_v61, %v3995_v60 }
  0x2c   : > { %1055 = vrot.lane.b32.xlu1 %v3957_v30, %s3791_s11  ;;  %1807 = vrot.lane.b32.xlu0 %v1746_v39, %s3791_s11  ;;  %v1609_v4 = vor.u32 %v1608_v54, %v1604_v53  ;;  %v3093_v7 = vld [vmem:[%s3856_s6 + $0xb8] sm:$0xf]  ;;  %v3696_v8 = vld [vmem:[%s5255_s1 + $0x70] sm:$0xff]   ;;  %v1112_v16 = vshrl.u32 %v3885_v22, 16  ;;  %v1116_v17 = vrot.slane %v1114_v56, 1  ;;  %v4021_v18 = vcombine.low %v3004_v59, %v3933_v12 }
  0x2d   : > { %v759_v9 = vrot.slane %v757_v0, 1  ;;  %v4013_v10 = vld [vmem:[%s3856_s6 + $0xb0] ss:$0 sps:$4 sm:$0x11]   ;;  %v4016_v15 = vcombine.low %v3092_v2, %v3093_v7  ;;  %3388 = vmatpush3.bf16.msra.mxu0 %v3692_v3  ;;  %3556 = vmatpush3.bf16.msra.mxu1 %v3692_v3  ;;  %v764_v21 = vrot.slane %v762_v1, 1  ;;  %v3175_v23 = vcombine.low %v336_v6, %v302_v47  ;;  %v3700_v56 = vld [vmem:[%s5255_s1 + $0x78] sm:$0xff]  }
  0x2e   : > { %3389 = vmatprep.subr.bf16.mxu0 %v3696_v8  ;;  %v279_v25 = vld [vmem:[%s3856_s6 + $0x18] sm:$0xf]  ;;  %v4025_v26 = vld [vmem:[%s3856_s6 + $0x1c] sm:$0xf]  ;;  %3549 = vmatprep.subr.bf16.mxu1 %v3696_v8  ;;  %v1614_v22 = vsel %vm597_vm1, %v1609_v4, %v1613_v5  ;;  %v1119_v28 = vshll.u32 %v3874_v14, 16  ;;  %v1390_v29 = vrot.slane %v3223_v13, 1  ;;  %v1117_v34 = vor.u32 %v1116_v17, %v1112_v16 }
  0x2f   : > { %v760_v20 = vor.u32 %v759_v9, %v755_v63  ;;  %v1391_v12 = vrot.slane %v4013_v10, 1  ;;  %v1750_v31 = vshll.u32 %v4016_v15, 16  ;;  %v3622_v32 = vld [vmem:[%s3856_s6 + $0xbc] ss:$0 sps:$4 sm:$0x11]   ;;  %v4034_v33 = vcombine.low %v279_v25, %v4025_v26 }
  0x30   : > { %792 = vrot.lane.b32.xlu1 %v621_v48, %s3790_s10  ;;  %1401 = vrot.lane.b32.xlu0 %v1356_v57, %s3790_s10  ;;  %v910_v37 = vrot.slane %v3175_v23, 1  ;;  %v911_v14 = vrot.slane %v3981_v51, 1  ;;  %v4041_v19 = vld [vmem:[%s3856_s6 + $0x20] ss:$0 sps:$4 sm:$0x11]   ;;  %v1258_v39 = vshll.u32 %v3957_v30, 16 }
  0x31   : > { %v765_v35 = vsel %vm597_vm1, %v760_v20, %v764_v21  ;;  %v3070_v40 = vld [vmem:[%s3856_s6 + $0x30] sm:$0xf]  ;;  %v1121_v41 = vrot.slane %v1119_v28, 1  ;;  %v1392_v44 = vsel %vm870_vm0, %v1390_v29, %v1391_v12  ;;  %v3028_v46 = vld [vmem:[%s3856_s6 + $0xa8] sm:$0xf]  ;;  %v1748_v47 = vshrl.u32 %v4016_v15, 16 }
  0x32   : > { %v1752_v48 = vrot.slane %v1750_v31, 1  ;;  %v1755_v49 = vshll.u32 %v3622_v32, 16  ;;  %v3071_v50 = vld [vmem:[%s3856_s6 + $0x34] sm:$0xf]  ;;  %v623_v52 = vshrl.u32 %v4034_v33, 16  ;;  %v912_v57 = vsel %vm870_vm0, %v910_v37, %v911_v14  ;;  %v3701_v1 = vld [vmem:[%s5255_s1 + $0x38] sm:$0xff]  }
  0x33   : > { %v3697_v51 = vld [vmem:[%s5255_s1 + $0x30] sm:$0xff]   ;;  %v4057_v53 = vld [vmem:[%s3856_s6 + $0x28] sm:$0xf]  ;;  %v3052_v54 = vld [vmem:[%s3856_s6 + $0x24] sm:$0xe]  ;;  %v4061_v55 = vsel %vm597_vm1, %v1117_v34, %v1121_v41  ;;  %v630_v61 = vshll.u32 %v4041_v19, 16  ;;  %v4069_v63 = vcombine.low %v3070_v40, %v3071_v50  ;;  %v4086_v9 = vcombine.low %v3028_v46, %v3995_v60 }
  0x34   : > { %921 = vrot.lane.b32.xlu1 %v876_v62, %s3789_s9  ;;  %1513 = vrot.lane.b32.xlu0 %v3227_v38, %s3789_s9  ;;  %v625_v38 = vshll.u32 %v4034_v33, 16  ;;  %v325_v62 = vld [vmem:[%s3856_s6 + $0x18] sm:$0xe]  ;;  %v303_v0 = vld [vmem:[%s3856_s6 + $0xa8] sm:$0xf]  ;;  %v1753_v2 = vor.u32 %v1752_v48, %v1748_v47  ;;  %v1757_v3 = vrot.slane %v1755_v49, 1  ;;  %v3212_v5 = vcombine.low %v3052_v54, %v4057_v53 }
  0x35   : > { %3390 = vmatpush3.bf16.msra.mxu0 %v3697_v51  ;;  %3557 = vmatpush3.bf16.msra.mxu1 %v3697_v51  ;;  %v4077_v4 = vld [vmem:[%s3856_s6 + $0x2c] ss:$0 sps:$4 sm:$0x11]   ;;  %v1256_v7 = vshrl.u32 %v3957_v30, 16  ;;  %v1260_v8 = vrot.slane %v1258_v39, 1  ;;  %v3164_v13 = vcombine.low %v325_v62, %v4025_v26  ;;  %v632_v17 = vrot.slane %v630_v61, 1 }
  0x36   : > { %v627_v59 = vrot.slane %v625_v38, 1  ;;  %3391 = vmatprep.subr.bf16.mxu0 %v3700_v56  ;;  %v4081_v6 = vld [vmem:[%s3856_s6 + $0xac] sm:$0xf]  ;;  %3550 = vmatprep.subr.bf16.mxu1 %v3700_v56  ;;  %v1618_v20 = vshll.u32 %v4069_v63, 16  ;;  %v1263_v23 = vshll.u32 %v3889_v24, 16  ;;  %v1758_v60 = vsel %vm597_vm1, %v1753_v2, %v1757_v3 }
  0x37   : > { %v4091_v21 = vcombine.low %v303_v0, %v4081_v6  ;;  %v3631_v30 = vld [vmem:[%s3856_s6 + $0x38] ss:$0 sps:$4 sm:$0x11]   ;;  %v1357_v25 = vrot.slane %v3212_v5, 1  ;;  %v1358_v26 = vrot.slane %v4077_v4, 1  ;;  %v877_v28 = vrot.slane %v3164_v13, 1 }
  0x38   : > { %1033 = vrot.lane.b32.xlu1 %v4021_v18, %s3791_s11  ;;  %1785 = vrot.lane.b32.xlu0 %v1614_v22, %s3791_s11  ;;  %v628_v16 = vor.u32 %v627_v59, %v623_v52  ;;  %v1126_v22 = vshll.u32 %v4021_v18, 16  ;;  %v1261_v29 = vor.u32 %v1260_v8, %v1256_v7  ;;  %v1616_v12 = vshrl.u32 %v4069_v63, 16  ;;  %v4106_v32 = vld [vmem:[%s3856_s6 + $0xb0] ss:$0 sps:$4 sm:$0x11]  }
  0x39   : > { %5268 = vst [vmem:[#allocation2_spill] sm:$0xff] %v4091_v21  ;;  %3392 = vmatpush3.bf16.msra.mxu0 %v3701_v1  ;;  %3558 = vmatpush3.bf16.msra.mxu1 %v3701_v1  ;;  %v1620_v31 = vrot.slane %v1618_v20, 1  ;;  %v769_v34 = vshll.u32 %v4091_v21, 16  ;;  %v3031_v37 = vld [vmem:[%s3856_s6 + $0xb8] sm:$0xf]  ;;  %v1265_v14 = vrot.slane %v1263_v23, 1  ;;  %v1359_v38 = vsel %vm870_vm0, %v1357_v25, %v1358_v26 }
  0x3a   : > { %v633_v24 = vsel %vm597_vm1, %v628_v16, %v632_v17  ;;  %v3094_v39 = vld [vmem:[%s3856_s6 + $0xc0] sm:$0xf]  ;;  %v3095_v40 = vld [vmem:[%s3856_s6 + $0xc4] sm:$0xf]  ;;  %v1124_v41 = vshrl.u32 %v4021_v18, 16  ;;  %v767_v46 = vshrl.u32 %v4091_v21, 16 }
  0x3b   : > { %v4120_v47 = vsel %vm597_vm1, %v1261_v29, %v1265_v14  ;;  %v771_v49 = vrot.slane %v769_v34, 1  ;;  %v774_v50 = vshll.u32 %v4106_v32, 16  ;;  %v337_v51 = vld [vmem:[%s3856_s6 + $0xa8] sm:$0xe]  ;;  %v1128_v52 = vrot.slane %v1126_v22, 1 }
  0x3c   : > { %816 = vrot.lane.b32.xlu1 %v765_v35, %s3790_s10  ;;  %1425 = vrot.lane.b32.xlu0 %v1392_v44, %s3790_s10  ;;  %v1623_v35 = vshll.u32 %v3631_v30, 16  ;;  %v3006_v44 = vld [vmem:[%s3856_s6 + $0x24] sm:$0xf]  ;;  %v1270_v18 = vshll.u32 %v4086_v9, 16  ;;  %v4127_v56 = vcombine.low %v3094_v39, %v3095_v40  ;;  %v4131_v59 = vld [vmem:[%s3856_s6 + $0x28] sm:$0xf]  ;;  %v1621_v61 = vor.u32 %v1620_v31, %v1616_v12 }
  0x3d   : > { %v4134_v0 = vld [vmem:[%s3856_s6 + $0xbc] ss:$0 sps:$4 sm:$0x11]   ;;  %v1268_v1 = vshrl.u32 %v4086_v9, 16  ;;  %v4139_v2 = vcombine.low %v3006_v44, %v4057_v53  ;;  %v3176_v3 = vcombine.low %v337_v51, %v4081_v6  ;;  %v3030_v5 = vld [vmem:[%s3856_s6 + $0xb4] sm:$0xf]  ;;  %v772_v8 = vor.u32 %v771_v49, %v767_v46 }
  0x3e   : > { %v1625_v62 = vrot.slane %v1623_v35, 1  ;;  %v3115_v7 = vld [vmem:[%s3856_s6 + $0x24] sm:$0xe]  ;;  %v776_v13 = vrot.slane %v774_v50, 1  ;;  %v1131_v17 = vshll.u32 %v3949_v27, 16  ;;  %v1272_v20 = vrot.slane %v1270_v18, 1 }
  0x3f   : > { %v1762_v53 = vshll.u32 %v4127_v56, 16  ;;  %v3640_v30 = vld [vmem:[%s3856_s6 + $0xc8] ss:$0 sps:$4 sm:$0x11]   ;;  %v1394_v6 = vrot.slane %v4134_v0, 1  ;;  %v1129_v26 = vor.u32 %v1128_v52, %v1124_v41  ;;  %v1138_v27 = vshll.u32 %v4139_v2, 16 }
  0x40   : > { %945 = vrot.lane.b32.xlu1 %v912_v57, %s3789_s9  ;;  %1537 = vrot.lane.b32.xlu0 %v4016_v15, %s3789_s9  ;;  %v878_v15 = vrot.slane %v4041_v19, 1  ;;  %v3064_v19 = vld [vmem:[%s3856_s6 + $0xb4] sm:$0xe]  ;;  %v281_v57 = vld [vmem:[%s3856_s6 + $0x24] sm:$0xf]  ;;  %v1626_v23 = vsel %vm597_vm1, %v1621_v61, %v1625_v62  ;;  %v914_v22 = vrot.slane %v4106_v32, 1  ;;  %v3259_v31 = vcombine.low %v3115_v7, %v3962_v36 }
  0x41   : > { %v3224_v54 = vcombine.low %v3064_v19, %v3031_v37  ;;  %v4145_v16 = vcombine.low %v281_v57, %v4131_v59  ;;  %v4157_v25 = vld [vmem:[%s3856_s6 + $0x2c] ss:$0 sps:$4 sm:$0x11]   ;;  %v1133_v12 = vrot.slane %v1131_v17, 1  ;;  %v1764_v34 = vrot.slane %v1762_v53, 1 }
  0x42   : > { %v879_v48 = vsel %vm870_vm0, %v877_v28, %v878_v15  ;;  %v1760_v28 = vshrl.u32 %v4127_v56, 16  ;;  %v777_v15 = vsel %vm597_vm1, %v772_v8, %v776_v13  ;;  %v1767_v35 = vshll.u32 %v3640_v30, 16  ;;  %v3009_v32 = vld [vmem:[%s3856_s6 + $0x34] sm:$0xf]  ;;  %v3053_v19 = vld [vmem:[%s3856_s6 + $0x30] sm:$0xe] }
  0x43   : > { %5269 = vst [vmem:[#allocation3_spill] sm:$0xff] %v4145_v16  ;;  %v635_v14 = vshrl.u32 %v4145_v16, 16  ;;  %v326_v39 = vld [vmem:[%s3856_s6 + $0x24] sm:$0xe]  ;;  %v3072_v40 = vld [vmem:[%s3856_s6 + $0x3c] sm:$0xf]  ;;  %v4179_v41 = vsel %vm597_vm1, %v1129_v26, %v1133_v12  ;;  %v3213_v57 = vcombine.low %v3053_v19, %v3009_v32 }
  0x44   : > { %1057 = vrot.lane.b32.xlu1 %v4086_v9, %s3791_s11  ;;  %1809 = vrot.lane.b32.xlu0 %v1758_v60, %s3791_s11  ;;  %v1393_v9 = vrot.slane %v3224_v54, 1  ;;  %v4154_v60 = vcombine.low %v3030_v5, %v3031_v37  ;;  %v3073_v36 = vld [vmem:[%s3856_s6 + $0x40] sm:$0xf]  ;;  %v4184_v49 = vld [vmem:[%s3856_s6 + $0xb8] sm:$0xf]  ;;  %v1275_v50 = vshll.u32 %v4013_v10, 16  ;;  %v1765_v52 = vor.u32 %v1764_v34, %v1760_v28 }
  0x45   : > { %v4187_v51 = vrot.slane %v3259_v31, 1  ;;  %v1769_v18 = vrot.slane %v1767_v35, 1  ;;  %v4191_v54 = vld [vmem:[%s3856_s6 + $0x38] ss:$0 sps:$4 sm:$0x11]   ;;  %v1867_v61 = vrot.slane %v3972_v43, 1  ;;  %v3165_v62 = vcombine.low %v326_v39, %v4131_v59 }
  0x46   : > { %v1282_v29 = vshll.u32 %v4154_v60, 16  ;;  %v1395_v37 = vsel %vm870_vm0, %v1393_v9, %v1394_v6  ;;  %v1273_v5 = vor.u32 %v1272_v20, %v1268_v1  ;;  %v1136_v7 = vshrl.u32 %v4139_v2, 16  ;;  %v3008_v13 = vld [vmem:[%s3856_s6 + $0x30] sm:$0xf]  ;;  %v3096_v34 = vld [vmem:[%s3856_s6 + $0xcc] sm:$0xf] }
  0x47   : > { %v1140_v8 = vrot.slane %v1138_v27, 1  ;;  %v1280_v10 = vshrl.u32 %v4154_v60, 16  ;;  %v1277_v59 = vrot.slane %v1275_v50, 1  ;;  %v1770_v1 = vsel %vm597_vm1, %v1765_v52, %v1769_v18  ;;  %v3032_v18 = vld [vmem:[%s3856_s6 + $0xc0] sm:$0xf] }
  0x48   : > { %794 = vrot.lane.b32.xlu1 %v633_v24, %s3790_s10  ;;  %1403 = vrot.lane.b32.xlu0 %v1359_v38, %s3790_s10  ;;  %v637_v24 = vshll.u32 %v4145_v16, 16  ;;  %v642_v38 = vshll.u32 %v4157_v25, 16  ;;  %v1284_v9 = vrot.slane %v1282_v29, 1  ;;  %v1361_v20 = vrot.slane %v4191_v54, 1  ;;  %v3033_v29 = vld [vmem:[%s3856_s6 + $0xc4] sm:$0xf] }
  0x49   : > { %v880_v6 = vrot.slane %v3165_v62, 1  ;;  %v4210_v27 = vcombine.low %v3008_v13, %v3009_v32  ;;  %v1143_v12 = vshll.u32 %v4077_v4, 16  ;;  %v1141_v35 = vor.u32 %v1140_v8, %v1136_v7  ;;  %v4247_v62 = vld [vmem:[%s3856_s6 + $0x34] sm:$0xf]  ;;  %v3018_v16 = vld [vmem:[%s3856_s6 + $0x6c] sm:$0xf] }
  0x4a   : > { %v639_v46 = vrot.slane %v637_v24, 1  ;;  %v644_v30 = vrot.slane %v642_v38, 1  ;;  %v3065_v24 = vld [vmem:[%s3856_s6 + $0xc0] sm:$0xe]  ;;  %v1285_v7 = vor.u32 %v1284_v9, %v1280_v10 }
  0x4b   : > { %v1148_v32 = vshrl.u32 %v4210_v27, 16  ;;  %v3225_v50 = vcombine.low %v3065_v24, %v3033_v29 }
  0x4c   : > { %923 = vrot.lane.b32.xlu1 %v879_v48, %s3789_s9  ;;  %1515 = vrot.lane.b32.xlu0 %v4069_v63, %s3789_s9  ;;  %v913_v63 = vrot.slane %v3176_v3, 1  ;;  %v305_v48 = vld [vmem:[%s3856_s6 + $0xb4] sm:$0xf]  ;;  %v4195_v3 = vcombine.low %v3072_v40, %v3073_v36  ;;  %v640_v53 = vor.u32 %v639_v46, %v635_v14  ;;  %v1145_v36 = vrot.slane %v1143_v12, 1  ;;  %v3074_v12 = vld [vmem:[%s3856_s6 + $0x48] sm:$0xf] }
  0x4d   : > { %v4202_v17 = vcombine.low %v305_v48, %v4184_v49  ;;  %v338_v40 = vld [vmem:[%s3856_s6 + $0xb4] sm:$0xe]  ;;  %v4239_v48 = vld [vmem:[%s3856_s6 + $0xc8] ss:$0 sps:$4 sm:$0x11]  }
  0x4e   : > { %v915_v44 = vsel %vm870_vm0, %v913_v63, %v914_v22  ;;  %v1630_v26 = vshll.u32 %v4195_v3, 16  ;;  %v3649_v63 = vld [vmem:[%s3856_s6 + $0x44] ss:$0 sps:$4 sm:$0x11]   ;;  %v4214_v22 = vsel %vm597_vm1, %v1273_v5, %v1277_v59  ;;  %v4250_v5 = vsel %vm597_vm1, %v1141_v35, %v1145_v36 }
  0x4f   : > { %5270 = vst [vmem:[#allocation4_spill] sm:$0xff] %v4202_v17  ;;  %v781_v28 = vshll.u32 %v4202_v17, 16  ;;  %v1635_v38 = vshll.u32 %v3649_v63, 16  ;;  %v779_v4 = vshrl.u32 %v4202_v17, 16  ;;  %v1397_v10 = vrot.slane %v4239_v48, 1 }
  0x50   : > { %1035 = vrot.lane.b32.xlu1 %v4139_v2, %s3791_s11  ;;  %1787 = vrot.lane.b32.xlu0 %v1626_v23, %s3791_s11  ;;  %v1360_v2 = vrot.slane %v3213_v57, 1  ;;  %v881_v23 = vrot.slane %v4157_v25, 1  ;;  %v645_v25 = vsel %vm597_vm1, %v640_v53, %v644_v30  ;;  %v1632_v14 = vrot.slane %v1630_v26, 1  ;;  %v283_v57 = vld [vmem:[%s3856_s6 + $0x30] sm:$0xf] }
  0x51   : > { %v783_v19 = vrot.slane %v781_v28, 1  ;;  %v1637_v13 = vrot.slane %v1635_v38, 1  ;;  %v3177_v53 = vcombine.low %v338_v40, %v4184_v49  ;;  %v3658_v59 = vld [vmem:[%s3856_s6 + $0xd4] ss:$0 sps:$4 sm:$0x11]   ;;  %v4262_v49 = vcombine.low %v283_v57, %v4247_v62 }
  0x52   : > { %v1362_v31 = vsel %vm870_vm0, %v1360_v2, %v1361_v20  ;;  %v4256_v20 = vcombine.low %v3032_v18, %v3033_v29  ;;  %v4268_v63 = vld [vmem:[%s3856_s6 + $0x38] ss:$0 sps:$4 sm:$0x11]   ;;  %v1779_v28 = vshll.u32 %v3658_v59, 16  ;;  %v3010_v40 = vld [vmem:[%s3856_s6 + $0x3c] sm:$0xf] }
  0x53   : > { %5271 = vst [vmem:[#allocation5_spill] sm:$0xff] %v4262_v49  ;;  %v916_v24 = vrot.slane %v3177_v53, 1  ;;  %v649_v35 = vshll.u32 %v4262_v49, 16  ;;  %v3669_v18 = vld [vmem:[%s3856_s6 + $0x50] ss:$0 sps:$4 sm:$0x11]  }
  0x54   : > { %818 = vrot.lane.b32.xlu1 %v777_v15, %s3790_s10  ;;  %1427 = vrot.lane.b32.xlu0 %v1395_v37, %s3790_s10  ;;  %v1150_v15 = vshll.u32 %v4210_v27, 16  ;;  %v1628_v37 = vshrl.u32 %v4195_v3, 16  ;;  %v1294_v26 = vshll.u32 %v4256_v20, 16  ;;  %v285_v57 = vld [vmem:[%s3856_s6 + $0x3c] sm:$0xf]  ;;  %v1155_v59 = vshll.u32 %v4191_v54, 16 }
  0x56   : > { %v1152_v46 = vrot.slane %v1150_v15, 1  ;;  %v1633_v8 = vor.u32 %v1632_v14, %v1628_v37  ;;  %v4282_v37 = vld [vmem:[%s3856_s6 + $0x44] ss:$0 sps:$4 sm:$0x11]   ;;  %v1296_v38 = vrot.slane %v1294_v26, 1 }
  0x57   : > { %v1364_v26 = vrot.slane %v4282_v37, 1 }
  0x58   : > { %947 = vrot.lane.b32.xlu1 %v915_v44, %s3789_s9  ;;  %1539 = vrot.lane.b32.xlu0 %v4127_v56, %s3789_s9  ;;  %v4219_v56 = vld [vmem:[%s3856_s6 + $0xbc] ss:$0 sps:$4 sm:$0x11]   ;;  %v882_v44 = vsel %vm870_vm0, %v880_v6, %v881_v23  ;;  %v1287_v23 = vshll.u32 %v4134_v0, 16  ;;  %v1396_v6 = vrot.slane %v3225_v50, 1  ;;  %v1638_v0 = vsel %vm597_vm1, %v1633_v8, %v1637_v13 }
  0x59   : > { %v786_v39 = vshll.u32 %v4219_v56, 16  ;;  %v917_v30 = vrot.slane %v4219_v56, 1  ;;  %v3011_v56 = vld [vmem:[%s3856_s6 + $0x40] sm:$0xf]  ;;  %v647_v13 = vshrl.u32 %v4262_v49, 16  ;;  %v1153_v53 = vor.u32 %v1152_v46, %v1148_v32 }
  0x5a   : > { %v1289_v15 = vrot.slane %v1287_v23, 1  ;;  %v1398_v36 = vsel %vm870_vm0, %v1396_v6, %v1397_v10  ;;  %v4297_v8 = vld [vmem:[%s3856_s6 + $0x40] sm:$0xf]  ;;  %v884_v6 = vrot.slane %v4268_v63, 1  ;;  %v4316_v46 = vcombine.low %v3010_v40, %v3011_v56  ;;  %v4351_v40 = vld [vmem:[%s3856_s6 + $0x58] sm:$0xf] }
  0x5b   : > { %v788_v2 = vrot.slane %v786_v39, 1  ;;  %v327_v39 = vld [vmem:[%s3856_s6 + $0x30] sm:$0xe]  ;;  %v3083_v49 = vld [vmem:[%s3856_s6 + $0x7c] sm:$0xf] }
  0x5c   : > { %1059 = vrot.lane.b32.xlu1 %v4154_v60, %s3791_s11  ;;  %1811 = vrot.lane.b32.xlu0 %v1770_v1, %s3791_s11  ;;  %v3097_v60 = vld [vmem:[%s3856_s6 + $0xd0] sm:$0xf]  ;;  %v784_v1 = vor.u32 %v783_v19, %v779_v4  ;;  %v4285_v14 = vsel %vm597_vm1, %v1285_v7, %v1289_v15  ;;  %v654_v4 = vshll.u32 %v4268_v63, 16  ;;  %v4302_v7 = vld [vmem:[%s5255_s1 + $0x80] sm:$0xff]   ;;  %v3166_v23 = vcombine.low %v327_v39, %v4247_v62 }
  0x5d   : > { %v4241_v52 = vcombine.low %v3096_v34, %v3097_v60  ;;  %v1292_v34 = vshrl.u32 %v4256_v20, 16  ;;  %5272 = vst [vmem:[#allocation6_spill] sm:$0xff] %v4285_v14  ;;  %3507 = vmatprep.subr.bf16.mxu1 %v4302_v7  ;;  %v4322_v62 = vld [vmem:[%s3856_s6 + $0x44] ss:$0 sps:$4 sm:$0x11]   ;;  %v1647_v15 = vshll.u32 %v3669_v18, 16 }
  0x5e   : > { %v789_v29 = vsel %vm597_vm1, %v784_v1, %v788_v2  ;;  %v918_v1 = vsel %vm870_vm0, %v916_v24, %v917_v30  ;;  %v651_v2 = vrot.slane %v649_v35, 1  ;;  %v656_v10 = vrot.slane %v654_v4, 1  ;;  %v3013_v24 = vld [vmem:[%s3856_s6 + $0x4c] sm:$0xf]  ;;  %v3055_v35 = vld [vmem:[%s3856_s6 + $0x48] sm:$0xe] }
  0x5f   : > { %v1774_v9 = vshll.u32 %v4241_v52, 16  ;;  %v4319_v30 = vcombine.low %v285_v57, %v4297_v8  ;;  %v666_v4 = vshll.u32 %v4322_v62, 16  ;;  %v3076_v39 = vld [vmem:[%s3856_s6 + $0x54] sm:$0xf]  ;;  %v1297_v18 = vor.u32 %v1296_v38, %v1292_v34 }
  0x60   : > { %796 = vrot.lane.b32.xlu1 %v645_v25, %s3790_s10  ;;  %1405 = vrot.lane.b32.xlu0 %v1362_v31, %s3790_s10  ;;  %v3054_v25 = vld [vmem:[%s3856_s6 + $0x3c] sm:$0xe]  ;;  %v3075_v31 = vld [vmem:[%s3856_s6 + $0x4c] sm:$0xf] }
  0x61   : > { %v1776_v60 = vrot.slane %v1774_v9, 1  ;;  %v3214_v19 = vcombine.low %v3054_v25, %v3011_v56  ;;  %v4292_v50 = vcombine.low %v3074_v12, %v3075_v31  ;;  %5273 = vst [vmem:[#allocation7_spill] sm:$0xff] %v4319_v30  ;;  %v1162_v25 = vshll.u32 %v4316_v46, 16 }
  0x62   : > { %v1160_v56 = vshrl.u32 %v4316_v46, 16 }
  0x63   : > { %v1363_v9 = vrot.slane %v3214_v19, 1  ;;  %v1642_v54 = vshll.u32 %v4292_v50, 16  ;;  %v1299_v19 = vshll.u32 %v4239_v48, 16  ;;  %v659_v48 = vshrl.u32 %v4319_v30, 16 }
  0x64   : > { %925 = vrot.lane.b32.xlu1 %v882_v44, %s3789_s9  ;;  %1517 = vrot.lane.b32.xlu0 %v4195_v3, %s3789_s9  ;;  %v1772_v3 = vshrl.u32 %v4241_v52, 16  ;;  %v1781_v44 = vrot.slane %v1779_v28, 1  ;;  %v883_v28 = vrot.slane %v3166_v23, 1  ;;  %v4367_v23 = vcombine.low %v3076_v39, %v4351_v40 }
  0x65   : > { %v1644_v31 = vrot.slane %v1642_v54, 1  ;;  %v1301_v34 = vrot.slane %v1299_v19, 1 }
  0x66   : > { %v1777_v32 = vor.u32 %v1776_v60, %v1772_v3  ;;  %v4338_v3 = vsel %vm870_vm0, %v4187_v51, %v1867_v61  ;;  %v661_v60 = vshll.u32 %v4319_v30, 16  ;;  %v1164_v51 = vrot.slane %v1162_v25, 1 }
  0x67   : > { %5275 = vst [vmem:[#allocation9_spill] sm:$0xff] %v4338_v3  ;;  %v1649_v61 = vrot.slane %v1647_v15, 1  ;;  %v885_v38 = vsel %vm870_vm0, %v883_v28, %v884_v6  ;;  %v4385_v28 = vld [vmem:[%s3856_s6 + $0x5c] ss:$0 sps:$4 sm:$0x11]  }
  0x68   : > { %1037 = vrot.lane.b32.xlu1 %v4210_v27, %s3791_s11  ;;  %1789 = vrot.lane.b32.xlu0 %v1638_v0, %s3791_s11  ;;  %v1157_v27 = vrot.slane %v1155_v59, 1  ;;  %v652_v0 = vor.u32 %v651_v2, %v647_v13  ;;  %v1782_v12 = vsel %vm597_vm1, %v1777_v32, %v1781_v44  ;;  %v663_v57 = vrot.slane %v661_v60, 1  ;;  %v4361_v13 = vld [vmem:[%s3856_s6 + $0x50] ss:$0 sps:$4 sm:$0x11]  }
  0x69   : > { %v887_v59 = vrot.slane %v4322_v62, 1  ;;  %v328_v2 = vld [vmem:[%s3856_s6 + $0x3c] sm:$0xe]  ;;  %v1367_v54 = vrot.slane %v4361_v13, 1  ;;  %v3119_v62 = vld [vmem:[%s3856_s6 + $0x54] sm:$0xe] }
  0x6a   : > { %v4326_v63 = vsel %vm597_vm1, %v1153_v53, %v1157_v27  ;;  %v657_v43 = vsel %vm597_vm1, %v652_v0, %v656_v10  ;;  %v3215_v53 = vcombine.low %v3055_v35, %v3013_v24  ;;  %v287_v10 = vld [vmem:[%s3856_s6 + $0x48] sm:$0xf]  ;;  %v3167_v6 = vcombine.low %v328_v2, %v4297_v8  ;;  %v3078_v60 = vld [vmem:[%s3856_s6 + $0x60] sm:$0xf]  ;;  %v4400_v35 = vld [vmem:[%s3856_s6 + $0x64] sm:$0xf] }
  0x6b   : > { %5274 = vst [vmem:[#allocation8_spill] sm:$0xff] %v4326_v63  ;;  %v1654_v0 = vshll.u32 %v4367_v23, 16  ;;  %v664_v25 = vor.u32 %v663_v57, %v659_v48  ;;  %v4419_v57 = vld [vmem:[%s3856_s6 + $0x5c] ss:$0 sps:$4 sm:$0x11]   ;;  %v1179_v2 = vshll.u32 %v4361_v13, 16 }
  0x6c   : > { %820 = vrot.lane.b32.xlu1 %v789_v29, %s3790_s10  ;;  %1429 = vrot.lane.b32.xlu0 %v1398_v36, %s3790_s10  ;;  %v1640_v29 = vshrl.u32 %v4292_v50, 16  ;;  %v1365_v36 = vsel %vm870_vm0, %v1363_v9, %v1364_v26  ;;  %v4374_v9 = vld [vmem:[%s3856_s6 + $0x4c] sm:$0xf]  ;;  %v4377_v26 = vsel %vm597_vm1, %v1297_v18, %v1301_v34  ;;  %v1366_v32 = vrot.slane %v3215_v53, 1  ;;  %v329_v18 = vld [vmem:[%s3856_s6 + $0x48] sm:$0xe] }
  0x6d   : > { %5276 = vst [vmem:[#allocation10_spill] sm:$0xff] %v4377_v26  ;;  %v1656_v39 = vrot.slane %v1654_v0, 1  ;;  %v4435_v0 = vld [vmem:[%s3856_s6 + $0x58] sm:$0xf] }
  0x6e   : > { %v1645_v27 = vor.u32 %v1644_v31, %v1640_v29  ;;  %v1167_v29 = vshll.u32 %v4282_v37, 16  ;;  %v4395_v31 = vld [vmem:[%s3856_s6 + $0x50] ss:$0 sps:$4 sm:$0x11]   ;;  %v886_v37 = vrot.slane %v3167_v6, 1 }
  0x6f   : > { %v678_v48 = vshll.u32 %v4395_v31, 16  ;;  %v289_v6 = vld [vmem:[%s3856_s6 + $0x54] sm:$0xf] }
  0x70   : > { %949 = vrot.lane.b32.xlu1 %v918_v1, %s3789_s9  ;;  %1541 = vrot.lane.b32.xlu0 %v4241_v52, %s3789_s9  ;;  %v3012_v52 = vld [vmem:[%s3856_s6 + $0x48] sm:$0xf]  ;;  %v668_v1 = vrot.slane %v666_v4, 1  ;;  %v1650_v8 = vsel %vm597_vm1, %v1645_v27, %v1649_v61  ;;  %v3263_v4 = vcombine.low %v3119_v62, %v4351_v40  ;;  %v1169_v19 = vrot.slane %v1167_v29, 1  ;;  %v3014_v27 = vld [vmem:[%s3856_s6 + $0x54] sm:$0xf] }
  0x71   : > { %v4355_v44 = vcombine.low %v3012_v52, %v3013_v24  ;;  %v4389_v24 = vcombine.low %v287_v10, %v4374_v9  ;;  %v1165_v52 = vor.u32 %v1164_v51, %v1160_v56  ;;  %v1659_v61 = vshll.u32 %v4385_v28, 16  ;;  %v3015_v56 = vld [vmem:[%s3856_s6 + $0x58] sm:$0xf]  ;;  %v3056_v51 = vld [vmem:[%s3856_s6 + $0x54] sm:$0xe] }
  0x72   : > { %v4415_v40 = vcombine.low %v3078_v60, %v4400_v35  ;;  %v4427_v34 = vrot.slane %v3263_v4, 1  ;;  %v3120_v10 = vld [vmem:[%s3856_s6 + $0x60] sm:$0xe]  ;;  %v3168_v62 = vcombine.low %v329_v18, %v4374_v9  ;;  %v1370_v60 = vrot.slane %v4419_v57, 1 }
  0x73   : > { %v1172_v15 = vshrl.u32 %v4355_v44, 16  ;;  %5277 = vst [vmem:[#allocation11_spill] sm:$0xff] %v4389_v24  ;;  %v4422_v53 = vsel %vm597_vm1, %v1165_v52, %v1169_v19  ;;  %v1661_v29 = vrot.slane %v1659_v61, 1  ;;  %v3264_v52 = vcombine.low %v3120_v10, %v4400_v35  ;;  %v4478_v10 = vld [vmem:[%s3856_s6 + $0x68] ss:$0 sps:$4 sm:$0x11]  }
  0x74   : > { %1061 = vrot.lane.b32.xlu1 %v4256_v20, %s3791_s11  ;;  %1813 = vrot.lane.b32.xlu0 %v1782_v12, %s3791_s11  ;;  %v1174_v20 = vshll.u32 %v4355_v44, 16  ;;  %5278 = vst [vmem:[#allocation12_spill] sm:$0xff] %v4422_v53  ;;  %v1666_v13 = vshll.u32 %v4415_v40, 16  ;;  %v4453_v4 = vcombine.low %v289_v6, %v4435_v0  ;;  %v889_v61 = vrot.slane %v3168_v62, 1  ;;  %v330_v62 = vld [vmem:[%s3856_s6 + $0x54] sm:$0xe] }
  0x75   : > { %v3121_v6 = vld [vmem:[%s3856_s6 + $0x6c] sm:$0xe]  ;;  %v3082_v53 = vld [vmem:[%s3856_s6 + $0x78] sm:$0xf] }
  0x76   : > { %v1176_v12 = vrot.slane %v1174_v20, 1  ;;  %v888_v20 = vsel %vm870_vm0, %v886_v37, %v887_v59  ;;  %v4440_v59 = vld [vmem:[%s3856_s6 + $0x68] ss:$0 sps:$4 sm:$0x11]   ;;  %v4450_v37 = vcombine.low %v3014_v27, %v3015_v56  ;;  %5280 = vst [vmem:[#allocation14_spill] sm:$0xff] %v4453_v4  ;;  %v4551_v63 = vcombine.low %v3082_v53, %v3083_v49 }
  0x78   : > { %798 = vrot.lane.b32.xlu1 %v657_v43, %s3790_s10  ;;  %1407 = vrot.lane.b32.xlu0 %v1365_v36, %s3790_s10  ;;  %v669_v43 = vsel %vm597_vm1, %v664_v25, %v668_v1  ;;  %v673_v36 = vshll.u32 %v4389_v24, 16  ;;  %v1177_v1 = vor.u32 %v1176_v12, %v1172_v15  ;;  %v1181_v25 = vrot.slane %v1179_v2, 1  ;;  %v3080_v2 = vld [vmem:[%s3856_s6 + $0x6c] sm:$0xf] }
  0x79   : > { %v680_v12 = vrot.slane %v678_v48, 1  ;;  %v1186_v35 = vshll.u32 %v4450_v37, 16  ;;  %v3017_v48 = vld [vmem:[%s3856_s6 + $0x64] sm:$0xf] }
  0x7c   : > { %927 = vrot.lane.b32.xlu1 %v885_v38, %s3789_s9  ;;  %1519 = vrot.lane.b32.xlu0 %v4292_v50, %s3789_s9  ;;  %v1652_v50 = vshrl.u32 %v4367_v23, 16  ;;  %v671_v38 = vshrl.u32 %v4389_v24, 16  ;;  %v4495_v24 = vrot.slane %v1186_v35, 1 }
  0x7e   : > { %v1657_v15 = vor.u32 %v1656_v39, %v1652_v50  ;;  %v4456_v50 = vld [vmem:[%s3856_s6 + $0x5c] ss:$0 sps:$4 sm:$0x11]  }
  0x80   : > { %1039 = vrot.lane.b32.xlu1 %v4316_v46, %s3791_s11  ;;  %1791 = vrot.lane.b32.xlu0 %v1650_v8, %s3791_s11  ;;  %v1368_v46 = vsel %vm870_vm0, %v1366_v32, %v1367_v54  ;;  %v675_v32 = vrot.slane %v673_v36, 1  ;;  %v3216_v54 = vcombine.low %v3056_v51, %v3015_v56  ;;  %v4443_v8 = vsel %vm597_vm1, %v1177_v1, %v1181_v25  ;;  %v3057_v1 = vld [vmem:[%s3856_s6 + $0x60] sm:$0xe] }
  0x81   : > { %5279 = vst [vmem:[#allocation13_spill] sm:$0xff] %v4443_v8  ;;  %v890_v36 = vrot.slane %v4395_v31, 1  ;;  %v1668_v56 = vrot.slane %v1666_v13, 1  ;;  %v1671_v51 = vshll.u32 %v4440_v59, 16  ;;  %v1662_v18 = vsel %vm597_vm1, %v1657_v15, %v1661_v29 }
  0x82   : > { %v1369_v39 = vrot.slane %v3216_v54, 1  ;;  %v685_v31 = vshll.u32 %v4453_v4, 16  ;;  %v4492_v29 = vld [vmem:[%s3856_s6 + $0x74] ss:$0 sps:$4 sm:$0x11]  }
  0x83   : > { %v1673_v30 = vrot.slane %v1671_v51, 1  ;;  %v1373_v51 = vrot.slane %v4478_v10, 1 }
  0x84   : > { %800 = vrot.lane.b32.xlu1 %v669_v43, %s3790_s10  ;;  %1409 = vrot.lane.b32.xlu0 %v1368_v46, %s3790_s10  ;;  %v676_v43 = vor.u32 %v675_v32, %v671_v38  ;;  %v1664_v46 = vshrl.u32 %v4415_v40, 16  ;;  %v690_v38 = vshll.u32 %v4456_v50, 16  ;;  %v1371_v25 = vsel %vm870_vm0, %v1369_v39, %v1370_v60 }
  0x85   : > { %v3217_v60 = vcombine.low %v3057_v1, %v3017_v48  ;;  %v3169_v39 = vcombine.low %v330_v62, %v4435_v0  ;;  %v687_v13 = vrot.slane %v685_v31, 1  ;;  %v4516_v31 = vld [vmem:[%s3856_s6 + $0x68] ss:$0 sps:$4 sm:$0x11]  }
  0x86   : > { %v681_v54 = vsel %vm597_vm1, %v676_v43, %v680_v12  ;;  %v1669_v8 = vor.u32 %v1668_v56, %v1664_v46  ;;  %v291_v12 = vld [vmem:[%s3856_s6 + $0x60] sm:$0xf]  ;;  %v4499_v43 = vld [vmem:[%s3856_s6 + $0x64] sm:$0xf] }
  0x87   : > { %v4521_v62 = vld [vmem:[%s3856_s6 + $0x74] ss:$0 sps:$4 sm:$0x11]  }
  0x88   : > { %929 = vrot.lane.b32.xlu1 %v888_v20, %s3789_s9  ;;  %1521 = vrot.lane.b32.xlu0 %v4367_v23, %s3789_s9  ;;  %v3081_v20 = vld [vmem:[%s3856_s6 + $0x70] sm:$0xf]  ;;  %v4473_v23 = vrot.slane %v3264_v52, 1  ;;  %v891_v52 = vsel %vm870_vm0, %v889_v61, %v890_v36  ;;  %v692_v61 = vrot.slane %v690_v38, 1  ;;  %v893_v36 = vrot.slane %v4456_v50, 1 }
  0x89   : > { %v4446_v9 = vpop.permute.xlu0 %1535  ;;  %v4489_v15 = vcombine.low %v3080_v2, %v3081_v20  ;;  %v3265_v35 = vcombine.low %v3121_v6, %v3081_v20  ;;  %v1683_v50 = vshll.u32 %v4492_v29, 16  ;;  %v1372_v20 = vrot.slane %v3217_v60, 1 }
  0x8a   : > { %v4458_v19 = vpop.permute.xlu1 %1511  ;;  %v892_v38 = vrot.slane %v3169_v39, 1 }
  0x8b   : > { %v1678_v1 = vshll.u32 %v4489_v15, 16 }
  0x8c   : > { %1041 = vrot.lane.b32.xlu1 %v4355_v44, %s3791_s11  ;;  %v3016_v44 = vld [vmem:[%s3856_s6 + $0x60] sm:$0xf]  ;;  %1793 = vrot.lane.b32.xlu0 %v1662_v18, %s3791_s11  ;;  %v683_v18 = vshrl.u32 %v4453_v4, 16  ;;  %v3058_v4 = vld [vmem:[%s3856_s6 + $0x6c] sm:$0xe] }
  0x8d   : > { %v1400_v27 = vpop.permute.xlu0 %1399  ;;  %v4504_v2 = vcombine.low %v3016_v44, %v3017_v48  ;;  %v4512_v48 = vcombine.low %v291_v12, %v4499_v43  ;;  %v4523_v44 = vrot.slane %v3265_v35, 1  ;;  %v3019_v12 = vld [vmem:[%s3856_s6 + $0x70] sm:$0xf]  ;;  %v1680_v60 = vrot.slane %v1678_v1, 1 }
  0x8e   : > { %v4480_v32 = vpop.permute.xlu1 %1031  ;;  %v688_v6 = vor.u32 %v687_v13, %v683_v18  ;;  %v4536_v18 = vrot.slane %v1683_v50, 1  ;;  %v3122_v50 = vld [vmem:[%s3856_s6 + $0x78] sm:$0xe]  ;;  %v3218_v17 = vcombine.low %v3058_v4, %v3019_v12  ;;  %v1374_v1 = vsel %vm870_vm0, %v1372_v20, %v1373_v51 }
  0x8f   : > { %v1198_v0 = vshll.u32 %v4504_v2, 16  ;;  %5281 = vst [vmem:[#allocation15_spill] sm:$0xff] %v4512_v48  ;;  %v697_v39 = vshll.u32 %v4512_v48, 16 }
  0x90   : > { %802 = vrot.lane.b32.xlu1 %v681_v54, %s3790_s10  ;;  %1411 = vrot.lane.b32.xlu0 %v1371_v25, %s3790_s10  ;;  %v1676_v54 = vshrl.u32 %v4489_v15, 16  ;;  %v331_v25 = vld [vmem:[%s3856_s6 + $0x60] sm:$0xe]  ;;  %v693_v35 = vsel %vm597_vm1, %v688_v6, %v692_v61  ;;  %v3266_v6 = vcombine.low %v3122_v50, %v3083_v49  ;;  %v1375_v49 = vrot.slane %v3218_v17, 1  ;;  %v332_v50 = vld [vmem:[%s3856_s6 + $0x6c] sm:$0xe] }
  0x91   : > { %v1424_v46 = vpop.permute.xlu0 %1423  ;;  %v4534_v13 = vrot.slane %v1198_v0, 1  ;;  %v894_v0 = vsel %vm870_vm0, %v892_v38, %v893_v36  ;;  %v699_v21 = vrot.slane %v697_v39, 1  ;;  %v1688_v39 = vshrl.u32 %v4551_v63, 16 }
  0x92   : > { %v920_v56 = vpop.permute.xlu1 %919  ;;  %v2064_v51 = vsel %vm1911_vm2, %v4120_v47, %v1424_v46  ;;  %v1690_v47 = vshll.u32 %v4551_v63, 16  ;;  %v3084_v46 = vld [vmem:[%s3856_s6 + $0x84] sm:$0xf] }
  0x94   : > { %931 = vrot.lane.b32.xlu1 %v891_v52, %s3789_s9  ;;  %1523 = vrot.lane.b32.xlu0 %v4415_v40, %s3789_s9  ;;  %v1674_v52 = vsel %vm597_vm1, %v1669_v8, %v1673_v30  ;;  %v702_v40 = vshll.u32 %v4516_v31, 16  ;;  %v2028_v30 = vsel %vm1911_vm2, %v4061_v55, %v1400_v27  ;;  %v293_v55 = vld [vmem:[%s3856_s6 + $0x6c] sm:$0xf]  ;;  %v4556_v27 = vld [vmem:[%s3856_s6 + $0x70] sm:$0xf] }
  0x95   : > { %v2075_v53 = vsel %vm1944_vm3, %v2028_v30, %v4458_v19  ;;  %v4578_v38 = vcombine.low %v293_v55, %v4556_v27  ;;  %v4581_v19 = vld [vmem:[%s3856_s6 + $0x74] ss:$0 sps:$4 sm:$0x11]   ;;  %v3123_v55 = vld [vmem:[%s3856_s6 + $0x84] sm:$0xe] }
  0x96   : > { %v944_v3 = vpop.permute.xlu1 %943  ;;  %v791_v8 = vpop.permute.xlu0 %790  ;;  %v4568_v61 = vrot.slane %v702_v40, 1  ;;  %v3748_v40 = vld [vmem:[%s5255_s1 + $0x88] sm:$0xff]  }
  0x97   : > { %v1913_v26 = vsel %vm1911_vm2, %v3905_v42, %v791_v8  ;;  %v3170_v42 = vcombine.low %v331_v25, %v4499_v43  ;;  %v4563_v8 = vld [vmem:[%s3856_s6 + $0x80] ss:$0 sps:$4 sm:$0x11]   ;;  %v4575_v43 = vcombine.low %v3018_v16, %v3019_v12  ;;  %5282 = vst [vmem:[#allocation16_spill] sm:$0xff] %v4578_v38  ;;  %v2099_v12 = vsel %vm1944_vm3, %v2064_v51, %v4446_v9 }
  0x98   : > { %1043 = vrot.lane.b32.xlu1 %v4450_v37, %s3791_s11  ;;  %1795 = vrot.lane.b32.xlu0 %v1674_v52, %s3791_s11  ;;  %v1946_v4 = vsel %vm1944_vm3, %v1913_v26, %v920_v56  ;;  %v1681_v56 = vor.u32 %v1680_v60, %v1676_v54  ;;  %v1695_v17 = vshll.u32 %v4563_v8, 16  ;;  %v4599_v60 = vrot.slane %v3266_v6, 1 }
  0x99   : > { %v1979_v16 = vsel %vm1977_vm4, %v1946_v4, %v4480_v32  ;;  %v4592_v25 = vrot.slane %v3170_v42, 1  ;;  %v1210_v54 = vshll.u32 %v4575_v43, 16  ;;  %v3021_v32 = vld [vmem:[%s3856_s6 + $0x7c] sm:$0xf]  ;;  %v709_v9 = vshll.u32 %v4578_v38, 16 }
  0x9a   : > { %v815_v14 = vpop.permute.xlu1 %814  ;;  %v1784_v20 = vpop.permute.xlu0 %1783  ;;  %v5283_v4 = vshrl.u32 %v4512_v48, 16  ;;  %v1692_v51 = vrot.slane %v1690_v47, 1  ;;  %v3171_v47 = vcombine.low %v332_v50, %v4556_v27  ;;  %v5284_v27 = vrot.slane %v4521_v62, 1  ;;  %v4649_v50 = vld [vmem:[%s3856_s6 + $0x8c] ss:$0 sps:$4 sm:$0x11]  }
  0x9b   : > { %v1937_v36 = vsel %vm1911_vm2, %v3909_v45, %v815_v14  ;;  %v2107_v26 = vsel %vm1977_vm4, %v2075_v53, %v1784_v20  ;;  %v4587_v45 = vld [vmem:[%s3856_s6 + $0x88] sm:$0xf] }
  0x9c   : > { %804 = vrot.lane.b32.xlu1 %v693_v35, %s3790_s10  ;;  %1413 = vrot.lane.b32.xlu0 %v1374_v1, %s3790_s10  ;;  %v1970_v52 = vsel %vm1944_vm3, %v1937_v36, %v944_v3  ;;  %v3059_v35 = vld [vmem:[%s3856_s6 + $0x78] sm:$0xe]  ;;  %v714_v3 = vshll.u32 %v4581_v19, 16  ;;  %v4614_v42 = vcombine.low %v3084_v46, %v4587_v45  ;;  %v700_v6 = vor.u32 %v699_v21, %v5283_v4 }
  0x9d   : > { %2385 = vmatprep.mubr.bf16.mxu0 %v2107_v26  ;;  %v3020_v36 = vld [vmem:[%s3856_s6 + $0x78] sm:$0xf]  ;;  %v4623_v26 = vrot.slane %v1210_v54, 1  ;;  %v1697_v46 = vrot.slane %v1695_v17, 1  ;;  %v1686_v21 = vsel %vm597_vm1, %v1681_v56, %v4536_v18  ;;  %v711_v17 = vrot.slane %v709_v9, 1 }
  0x9e   : > { %v1056_v14 = vpop.permute.xlu1 %1055  ;;  %2386 = vmatmul.mubr.bf16.vlgmr.msra.gmra.mrb[0].mxu0 %v1979_v16  ;;  %v1808_v30 = vpop.permute.xlu0 %1807  ;;  %v707_v16 = vshrl.u32 %v4578_v38, 16  ;;  %v705_v18 = vsel %vm597_vm1, %v700_v6, %v4568_v61  ;;  %v1377_v56 = vsel %vm870_vm0, %v1375_v49, %v5284_v27  ;;  %v5285_v9 = vshrl.u32 %v4450_v37, 16  ;;  %v3023_v27 = vld [vmem:[%s3856_s6 + $0x88] sm:$0xf]  ;;  %v4709_v38 = vld [vmem:[%s3856_s6 + $0xa0] sm:$0xf] }
  0x9f   : > { %v2015_v1 = vsel %vm1977_vm4, %v1970_v52, %v1056_v14  ;;  %v2143_v53 = vsel %vm1977_vm4, %v2099_v12, %v1808_v30  ;;  %v4627_v14 = vld [vmem:[%s3856_s6 + $0x80] ss:$0 sps:$4 sm:$0x11]   ;;  %v3219_v12 = vcombine.low %v3059_v35, %v3021_v32  ;;  %v295_v52 = vld [vmem:[%s3856_s6 + $0x78] sm:$0xf]  ;;  %v1702_v35 = vshll.u32 %v4614_v42, 16 }
  0xa0   : > { %933 = vrot.lane.b32.xlu1 %v894_v0, %s3789_s9  ;;  %1525 = vrot.lane.b32.xlu0 %v4489_v15, %s3789_s9  ;;  %v3267_v15 = vcombine.low %v3123_v55, %v4587_v45  ;;  %v4635_v30 = vld [vmem:[%s3856_s6 + $0x7c] sm:$0xf]  ;;  %v1693_v45 = vor.u32 %v1692_v51, %v1688_v39  ;;  %v4652_v55 = vld [vmem:[%s3856_s6 + $0x80] ss:$0 sps:$4 sm:$0x11]   ;;  %v898_v4 = vrot.slane %v3171_v47, 1 }
  0xa1   : > { %2481 = vmatprep.mubr.bf16.mxu1 %v2143_v53  ;;  %v716_v53 = vrot.slane %v714_v3, 1  ;;  %v1378_v61 = vrot.slane %v3219_v12, 1  ;;  %v1379_v3 = vrot.slane %v4627_v14, 1  ;;  %v4663_v39 = vcombine.low %v295_v52, %v4635_v30  ;;  %v3086_v52 = vld [vmem:[%s3856_s6 + $0x90] sm:$0xf] }
  0xa2   : > { %v793_v20 = vpop.permute.xlu1 %792  ;;  %2482 = vmatmul.mubr.bf16.vlgmr.msra.gmra.mrb[0].mxu1 %v2015_v1  ;;  %v1402_v54 = vpop.permute.xlu0 %1401  ;;  %v4640_v1 = vcombine.low %v3020_v36, %v3021_v32  ;;  %v4657_v32 = vor.u32 %v4495_v24, %v5285_v9  ;;  %v899_v37 = vrot.slane %v4581_v19, 1  ;;  %v4666_v24 = vrot.slane %v3267_v15, 1  ;;  %v3060_v19 = vld [vmem:[%s3856_s6 + $0x84] sm:$0xe]  ;;  %v3087_v0 = vld [vmem:[%s3856_s6 + $0x94] sm:$0xf] }
  0xa3   : > { %3508 = vmatpush3.bf16.msra.mxu1 %v4302_v7  ;;  %v1700_v6 = vshrl.u32 %v4614_v42, 16  ;;  %v5286_v36 = vrot.slane %v4516_v31, 1  ;;  %v1704_v47 = vrot.slane %v1702_v35, 1  ;;  %v1698_v15 = vsel %vm597_vm1, %v1693_v45, %v1697_v46  ;;  %v4681_v31 = vld [vmem:[%s3856_s6 + $0x78] sm:$0xe] }
  0xa4   : > { %1045 = vrot.lane.b32.xlu1 %v4504_v2, %s3791_s11  ;;  %3509 = vmatprep.subr.bf16.mxu1 %v3748_v40  ;;  %v1222_v49 = vshll.u32 %v4640_v1, 16  ;;  %v1707_v9 = vshll.u32 %v4649_v50, 16  ;;  %v1915_v35 = vsel %vm1911_vm2, %v3930_v11, %v793_v20  ;;  %v4693_v46 = vsel %vm870_vm0, %v1378_v61, %v1379_v3 }
  0xa5   : > { %1797 = vrot.lane.b32.xlu0 %v1686_v21, %s3791_s11  ;;  %v897_v12 = vsel %vm870_vm0, %v4592_v25, %v5286_v36  ;;  %v712_v21 = vor.u32 %v711_v17, %v707_v16  ;;  %v3124_v25 = vld [vmem:[%s3856_s6 + $0x90] sm:$0xe]  ;;  %v5287_v16 = vshrl.u32 %v4504_v2, 16  ;;  %v721_v36 = vshll.u32 %v4663_v39, 16  ;;  %v3125_v2 = vld [vmem:[%s3856_s6 + $0x9c] sm:$0xe] }
  0xa6   : > { %v922_v7 = vpop.permute.xlu1 %921  ;;  %v1514_v51 = vpop.permute.xlu0 %1513  ;;  %v4695_v45 = vrot.slane %v1222_v49, 1  ;;  %v4705_v11 = vsel %vm870_vm0, %v898_v4, %v899_v37  ;;  %v3220_v20 = vcombine.low %v3060_v19, %v3023_v27  ;;  %v3172_v4 = vcombine.low %v4681_v31, %v4635_v30 }
  0xa7   : > { %3510 = vmatpush3.bf16.msra.mxu1 %v3748_v40  ;;  %v4687_v17 = vor.u32 %v4534_v13, %v5287_v16  ;;  %v2031_v13 = vsel %vm1911_vm2, %v4179_v41, %v1402_v54  ;;  %v1948_v16 = vsel %vm1944_vm3, %v1915_v35, %v922_v7  ;;  %v717_v48 = vsel %vm597_vm1, %v712_v21, %v716_v53 }
  0xa8   : > { %806 = vrot.lane.b32.xlu1 %v705_v18, %s3790_s10  ;;  %v726_v18 = vshll.u32 %v4652_v55, 16  ;;  %v2077_v61 = vsel %vm1944_vm3, %v2031_v13, %v1514_v51  ;;  %v3268_v41 = vcombine.low %v3124_v25, %v3087_v0  ;;  %v4716_v7 = vor.u32 %v1704_v47, %v1700_v6  ;;  %v3024_v6 = vld [vmem:[%s3856_s6 + $0x90] sm:$0xf] }
  0xa9   : > { %1415 = vrot.lane.b32.xlu0 %v1377_v56, %s3790_s10  ;;  %v3022_v56 = vld [vmem:[%s3856_s6 + $0x84] sm:$0xf]  ;;  %v3269_v37 = vcombine.low %v3125_v2, %v4709_v38  ;;  %v719_v53 = vshrl.u32 %v4663_v39, 16  ;;  %v723_v47 = vrot.slane %v721_v36, 1  ;;  %v4731_v25 = vrot.slane %v3220_v20, 1 }
  0xaa   : > { %v1034_v40 = vpop.permute.xlu1 %1033  ;;  %v1786_v3 = vpop.permute.xlu0 %1785  ;;  %v4726_v21 = vrot.slane %v726_v18, 1  ;;  %v4728_v19 = vcombine.low %v3022_v56, %v3023_v27  ;;  %v4733_v35 = vcombine.low %v3086_v52, %v3087_v0  ;;  %v4740_v2 = vld [vmem:[%s3856_s6 + $0x94] sm:$0xf]  ;;  %v1191_v27 = vshll.u32 %v4419_v57, 16 }
  0xab   : > { %v1982_v49 = vsel %vm1977_vm4, %v1948_v16, %v1034_v40  ;;  %v2110_v54 = vsel %vm1977_vm4, %v2077_v61, %v1786_v3  ;;  %v1882_v36 = vrot.slane %v4440_v59, 1  ;;  %v1896_v0 = vrot.slane %v3269_v37, 1  ;;  %v4754_v20 = vld [vmem:[%s3856_s6 + $0x98] ss:$0 sps:$4 sm:$0x11]  }
  0xac   : > { %935 = vrot.lane.b32.xlu1 %v897_v12, %s3789_s9  ;;  %2393 = vmatprep.mubr.bf16.mxu0 %v2110_v54  ;;  %v4723_v12 = vrot.slane %v1707_v9, 1  ;;  %v1893_v9 = vrot.slane %v3268_v41, 1  ;;  %v1232_v18 = vshrl.u32 %v4728_v19, 16  ;;  %v1234_v13 = vshll.u32 %v4728_v19, 16 }
  0xad   : > { %1527 = vrot.lane.b32.xlu0 %v4551_v63, %s3789_s9  ;;  %2394 = vmatmul.mubr.bf16.gmra.mrb[4].mxu0 %v1982_v49  ;;  %v1879_v63 = vrot.slane %v4385_v28, 1  ;;  %v4746_v52 = vcombine.low %v3024_v6, %v4740_v2  ;;  %v1193_v56 = vrot.slane %v1191_v27, 1  ;;  %v4758_v57 = vsel %vm870_vm0, %v4473_v23, %v1882_v36  ;;  %v4766_v49 = vld [vmem:[%s3856_s6 + $0xa4] ss:$0 sps:$4 sm:$0x11]  }
  0xae   : > { %v817_v51 = vpop.permute.xlu1 %816  ;;  %v1426_v40 = vpop.permute.xlu0 %1425  ;;  %v1885_v59 = vrot.slane %v4492_v29, 1  ;;  %v1203_v61 = vshll.u32 %v4478_v10, 16  ;;  %v1891_v41 = vrot.slane %v4649_v50, 1  ;;  %v1894_v29 = vrot.slane %v4754_v20, 1  ;;  %v4796_v6 = vld [vmem:[%s3856_s6 + $0x88] sm:$0xf] }
  0xaf   : > { %v4750_v28 = vsel %vm870_vm0, %v4427_v34, %v1879_v63  ;;  %v1939_v3 = vsel %vm1911_vm2, %v3990_v58, %v817_v51  ;;  %v1246_v34 = vshll.u32 %v4746_v52, 16  ;;  %v4773_v23 = vsel %vm597_vm1, %v4657_v32, %v1193_v56  ;;  %v3731_v37 = vld [vmem:[%s3856_s6 + $0x8c] ss:$0 sps:$4 sm:$0x11]   ;;  %v297_v51 = vld [vmem:[%s3856_s6 + $0x84] sm:$0xf] }
  0xb0   : > { %1047 = vrot.lane.b32.xlu1 %v4575_v43, %s3791_s11  ;;  %v4777_v58 = vsel %vm870_vm0, %v4523_v44, %v1885_v59  ;;  %v1205_v10 = vrot.slane %v1203_v61, 1  ;;  %v1897_v32 = vrot.slane %v4766_v49, 1  ;;  %v5288_v63 = vshrl.u32 %v4575_v43, 16 }
  0xb1   : > { %1799 = vrot.lane.b32.xlu0 %v1698_v15, %s3791_s11  ;;  %v1888_v15 = vrot.slane %v4563_v8, 1  ;;  %v2067_v8 = vsel %vm1911_vm2, %v4214_v22, %v1426_v40  ;;  %v1215_v40 = vshll.u32 %v4521_v62, 16  ;;  %v1236_v36 = vrot.slane %v1234_v13, 1 }
  0xb2   : > { %v946_v16 = vpop.permute.xlu1 %945  ;;  %v1538_v54 = vpop.permute.xlu0 %1537  ;;  %v4800_v22 = vsel %vm597_vm1, %v4687_v17, %v1205_v10  ;;  %v4812_v56 = vsel %vm870_vm0, %v1896_v0, %v1897_v32  ;;  %v724_v13 = vor.u32 %v723_v47, %v719_v53  ;;  %v1382_v0 = vrot.slane %v3731_v37, 1 }
  0xb3   : > { %v4785_v50 = vsel %vm870_vm0, %v4599_v60, %v1888_v15  ;;  %v4803_v60 = vsel %vm870_vm0, %v1893_v9, %v1894_v29  ;;  %v1972_v27 = vsel %vm1944_vm3, %v1939_v3, %v946_v16  ;;  %v1217_v43 = vrot.slane %v1215_v40, 1  ;;  %v4830_v3 = vld [vmem:[%s3856_s6 + $0x98] ss:$0 sps:$4 sm:$0x11]   ;;  %v3088_v40 = vld [vmem:[%s3856_s6 + $0x9c] sm:$0xf] }
  0xb4   : > { %808 = vrot.lane.b32.xlu1 %v717_v48, %s3790_s10  ;;  %v4789_v48 = vsel %vm870_vm0, %v4666_v24, %v1891_v41  ;;  %v1213_v24 = vor.u32 %v4623_v26, %v5288_v63  ;;  %v5289_v26 = vshrl.u32 %v4640_v1, 16  ;;  %v1227_v16 = vshll.u32 %v4627_v14, 16 }
  0xb5   : > { %1417 = vrot.lane.b32.xlu0 %v4693_v46, %s3790_s10  ;;  %v2101_v46 = vsel %vm1944_vm3, %v2067_v8, %v1538_v54  ;;  %v4825_v61 = vcombine.low %v297_v51, %v4796_v6  ;;  %v1248_v14 = vrot.slane %v1246_v34, 1  ;;  %v1710_v53 = vsel %vm597_vm1, %v4716_v7, %v4723_v12  ;;  %v3739_v8 = vld [vmem:[%s3856_s6 + $0x8c] ss:$0 sps:$4 sm:$0x11]  }
  0xb6   : > { %v1058_v44 = vpop.permute.xlu1 %1057  ;;  %v1810_v17 = vpop.permute.xlu0 %1809  ;;  %v1225_v62 = vor.u32 %v4695_v45, %v5289_v26  ;;  %v1244_v45 = vshrl.u32 %v4746_v52, 16  ;;  %v4834_v15 = vsel %vm597_vm1, %v1213_v24, %v1217_v43  ;;  %v1229_v41 = vrot.slane %v1227_v16, 1 }
  0xb7   : > { %v2018_v9 = vsel %vm1977_vm4, %v1972_v27, %v1058_v44  ;;  %v2146_v59 = vsel %vm1977_vm4, %v2101_v46, %v1810_v17  ;;  %v1714_v47 = vshll.u32 %v4733_v35, 16  ;;  %v1239_v54 = vshll.u32 %v3731_v37, 16 }
  0xb8   : > { %937 = vrot.lane.b32.xlu1 %v4705_v11, %s3789_s9  ;;  %2489 = vmatprep.mubr.bf16.mxu1 %v2146_v59  ;;  %v901_v34 = vrot.slane %v3172_v4, 1  ;;  %v4848_v29 = vsel %vm597_vm1, %v1225_v62, %v1229_v41  ;;  %v1251_v7 = vshll.u32 %v4830_v3, 16  ;;  %v729_v12 = vsel %vm597_vm1, %v724_v13, %v4726_v21  ;;  %v334_v62 = vld [vmem:[%s3856_s6 + $0x84] sm:$0xe] }
  0xb9   : > { %1529 = vrot.lane.b32.xlu0 %v4614_v42, %s3789_s9  ;;  %2490 = vmatmul.mubr.bf16.gmra.mrb[4].mxu1 %v2018_v9  ;;  %v1237_v42 = vor.u32 %v1236_v36, %v1232_v18  ;;  %v902_v18 = vrot.slane %v4652_v55, 1  ;;  %v733_v37 = vshll.u32 %v4825_v61, 16  ;;  %v1719_v31 = vshll.u32 %v4754_v20, 16  ;;  %v3061_v55 = vld [vmem:[%s3856_s6 + $0x90] sm:$0xe] }
  0xba   : > { %v795_v11 = vpop.permute.xlu1 %794  ;;  %v1404_v10 = vpop.permute.xlu0 %1403  ;;  %v1249_v4 = vor.u32 %v1248_v14, %v1244_v45  ;;  %v1253_v32 = vrot.slane %v1251_v7, 1  ;;  %v1383_v44 = vsel %vm870_vm0, %v4731_v25, %v1382_v0  ;;  %v1712_v51 = vshrl.u32 %v4733_v35, 16 }
  0xbb   : > { %v1716_v21 = vrot.slane %v1714_v47, 1  ;;  %v903_v20 = vsel %vm870_vm0, %v901_v34, %v902_v18  ;;  %v731_v46 = vshrl.u32 %v4825_v61, 16  ;;  %v735_v25 = vrot.slane %v733_v37, 1 }
  0xbc   : > { %1049 = vrot.lane.b32.xlu1 %v4640_v1, %s3791_s11  ;;  %v1241_v1 = vrot.slane %v1239_v54, 1  ;;  %v4868_v27 = vsel %vm597_vm1, %v1249_v4, %v1253_v32  ;;  %v738_v36 = vshll.u32 %v3739_v8, 16  ;;  %v1917_v17 = vsel %vm1911_vm2, %v4034_v33, %v795_v11  ;;  %v5291_v4 = vld [vmem:[#allocation6_spill] sm:$0xff] }
  0xbd   : > { %1801 = vrot.lane.b32.xlu0 %v1710_v53, %s3791_s11  ;;  %v1721_v43 = vrot.slane %v1719_v31, 1  ;;  %v3221_v26 = vcombine.low %v3061_v55, %v4740_v2  ;;  %v2034_v16 = vsel %vm1911_vm2, %v4250_v5, %v1404_v10  ;;  %v1717_v13 = vor.u32 %v1716_v21, %v1712_v51  ;;  %v5290_v31 = vld [vmem:[#allocation2_spill] sm:$0xff] }
  0xbe   : > { %v924_v30 = vpop.permute.xlu1 %923  ;;  %v4863_v63 = vsel %vm597_vm1, %v1237_v42, %v1241_v1  ;;  %v1516_v24 = vpop.permute.xlu0 %1515  ;;  %v3237_v0 = vcombine.low %v3088_v40, %v4709_v38  ;;  %v736_v41 = vor.u32 %v735_v25, %v731_v46  ;;  %v740_v2 = vrot.slane %v738_v36, 1 }
  0xbf   : > { %v1950_v59 = vsel %vm1944_vm3, %v1917_v17, %v924_v30  ;;  %v2079_v45 = vsel %vm1944_vm3, %v2034_v16, %v1516_v24  ;;  %v3173_v53 = vcombine.low %v334_v62, %v4796_v6  ;;  %v1722_v38 = vsel %vm597_vm1, %v1717_v13, %v1721_v43  ;;  %v5293_v62 = vld [vmem:[#allocation8_spill] sm:$0xff] }
  0xc0   : > { %810 = vrot.lane.b32.xlu1 %v729_v12, %s3790_s10  ;;  %v1384_v47 = vrot.slane %v3221_v26, 1  ;;  %v1385_v42 = vrot.slane %v4830_v3, 1  ;;  %v1726_v54 = vshll.u32 %v3237_v0, 16  ;;  %v741_v34 = vsel %vm597_vm1, %v736_v41, %v740_v2  ;;  %v3749_v41 = vld [vmem:[%s3856_s6 + $0x1c] sm:$0xf] }
  0xc1   : > { %1419 = vrot.lane.b32.xlu0 %v1383_v44, %s3790_s10  ;;  %v904_v7 = vrot.slane %v3173_v53, 1  ;;  %v905_v6 = vrot.slane %v3739_v8, 1  ;;  %v1724_v18 = vshrl.u32 %v3237_v0, 16  ;;  %v1731_v1 = vshll.u32 %v4766_v49, 16 }
  0xc2   : > { %v1036_v9 = vpop.permute.xlu1 %1035  ;;  %v1788_v14 = vpop.permute.xlu0 %1787  ;;  %v1386_v12 = vsel %vm870_vm0, %v1384_v47, %v1385_v42  ;;  %v1728_v37 = vrot.slane %v1726_v54, 1  ;;  %v3750_v47 = vld [vmem:[%s3856_s6 + $0x20] ss:$0 sps:$4 sm:$0x11]   ;;  %v3116_v54 = vld [vmem:[%s3856_s6 + $0x30] sm:$0xe] }
  0xc3   : > { %v1985_v33 = vsel %vm1977_vm4, %v1950_v59, %v1036_v9  ;;  %v2113_v11 = vsel %vm1977_vm4, %v2079_v45, %v1788_v14  ;;  %v906_v3 = vsel %vm870_vm0, %v904_v7, %v905_v6  ;;  %v1733_v21 = vrot.slane %v1731_v1, 1  ;;  %v5292_v9 = vld [vmem:[#allocation3_spill] sm:$0xff]  ;;  %v3114_v14 = vld [vmem:[%s3856_s6 + $0x18] sm:$0xe]  ;;  %v5295_v6 = vld [vmem:[#allocation10_spill] sm:$0xff] }
  0xc4   : > { %939 = vrot.lane.b32.xlu1 %v903_v20, %s3789_s9  ;;  %2401 = vmatprep.mubr.bf16.mxu0 %v2113_v11  ;;  %v1729_v51 = vor.u32 %v1728_v37, %v1724_v18  ;;  %v3258_v2 = vcombine.low %v3114_v14, %v3749_v41  ;;  %v1864_v42 = vrot.slane %v3750_v47, 1  ;;  %v3755_v14 = vld [vmem:[%s3856_s6 + $0x44] ss:$0 sps:$4 sm:$0x11]  }
  0xc5   : > { %1531 = vrot.lane.b32.xlu0 %v4733_v35, %s3789_s9  ;;  %2402 = vmatmul.mubr.bf16.gmra.mrb[8].mxu0 %v1985_v33 }
  0xc6   : > { %v819_v5 = vpop.permute.xlu1 %818  ;;  %v1428_v10 = vpop.permute.xlu0 %1427  ;;  %v1734_v46 = vsel %vm597_vm1, %v1729_v51, %v1733_v21  ;;  %v3752_v51 = vld [vmem:[%s3856_s6 + $0x38] ss:$0 sps:$4 sm:$0x11]  }
  0xc7   : > { %v2070_v32 = vsel %vm1911_vm2, %v5291_v4, %v1428_v10  ;;  %v5294_v10 = vld [vmem:[#allocation4_spill] sm:$0xff]  ;;  %v1870_v21 = vrot.slane %v3752_v51, 1 }
  0xc8   : > { %1051 = vrot.lane.b32.xlu1 %v4728_v19, %s3791_s11  ;;  %v1941_v19 = vsel %vm1911_vm2, %v5290_v31, %v819_v5 }
  0xc9   : > { %1803 = vrot.lane.b32.xlu0 %v1722_v38, %s3791_s11  ;;  %v1863_v38 = vrot.slane %v3258_v2, 1  ;;  %v3756_v2 = vld [vmem:[%s3856_s6 + $0x50] ss:$0 sps:$4 sm:$0x11]  }
  0xca   : > { %v948_v35 = vpop.permute.xlu1 %947  ;;  %v1540_v30 = vpop.permute.xlu0 %1539 }
  0xcb   : > { %v1974_v44 = vsel %vm1944_vm3, %v1941_v19, %v948_v35  ;;  %v2103_v49 = vsel %vm1944_vm3, %v2070_v32, %v1540_v30  ;;  %v3751_v30 = vld [vmem:[%s3856_s6 + $0x34] sm:$0xf]  ;;  %v1865_v19 = vsel %vm870_vm0, %v1863_v38, %v1864_v42 }
  0xcc   : > { %812 = vrot.lane.b32.xlu1 %v741_v34, %s3790_s10 }
  0xcd   : > { %1421 = vrot.lane.b32.xlu0 %v1386_v12, %s3790_s10  ;;  %s265_s10 = scalar_lea.vmem %s5257_s3, %s5310_s15 }
  0xce   : > { %v1060_v8 = vpop.permute.xlu1 %1059  ;;  %v1812_v55 = vpop.permute.xlu0 %1811 }
  0xcf   : > { %v2021_v24 = vsel %vm1977_vm4, %v1974_v44, %v1060_v8  ;;  %v2149_v40 = vsel %vm1977_vm4, %v2103_v49, %v1812_v55  ;;  %v3117_v44 = vld [vmem:[%s3856_s6 + $0x3c] sm:$0xe]  ;;  %v3118_v49 = vld [vmem:[%s3856_s6 + $0x48] sm:$0xe] }
  0xd0   : > { %941 = vrot.lane.b32.xlu1 %v906_v3, %s3789_s9  ;;  %2497 = vmatprep.mubr.bf16.mxu1 %v2149_v40  ;;  %v3260_v3 = vcombine.low %v3116_v54, %v3751_v30 }
  0xd1   : > { %1533 = vrot.lane.b32.xlu0 %v3237_v0, %s3789_s9  ;;  %2498 = vmatmul.mubr.bf16.gmra.mrb[8].mxu1 %v2021_v24  ;;  %v3753_v24 = vld [vmem:[%s3856_s6 + $0x40] sm:$0xf] }
  0xd2   : > { %v797_v20 = vpop.permute.xlu1 %796  ;;  %v1406_v25 = vpop.permute.xlu0 %1405  ;;  %v1869_v32 = vrot.slane %v3260_v3, 1  ;;  %v3261_v40 = vcombine.low %v3117_v44, %v3753_v24 }
  0xd3   : > { %v1919_v43 = vsel %vm1911_vm2, %v5292_v9, %v797_v20  ;;  %v2037_v16 = vsel %vm1911_vm2, %v5293_v62, %v1406_v25 }
  0xd4   : > { %1053 = vrot.lane.b32.xlu1 %v4746_v52, %s3791_s11 }
  0xd5   : > { %1805 = vrot.lane.b32.xlu0 %v1734_v46, %s3791_s11  ;;  %v3754_v46 = vld [vmem:[%s3856_s6 + $0x4c] sm:$0xf] }
  0xd6   : > { %v926_v36 = vpop.permute.xlu1 %925  ;;  %v1518_v17 = vpop.permute.xlu0 %1517  ;;  %v3262_v25 = vcombine.low %v3118_v49, %v3754_v46 }
  0xd7   : > { %v1952_v59 = vsel %vm1944_vm3, %v1919_v43, %v926_v36  ;;  %v2081_v13 = vsel %vm1944_vm3, %v2037_v16, %v1518_v17  ;;  %v1871_v36 = vsel %vm870_vm0, %v1869_v32, %v1870_v21  ;;  %v5296_v17 = vld [vmem:[#allocation5_spill] sm:$0xff]  ;;  %v5301_v32 = vld [vmem:[#allocation11_spill] sm:$0xff] }
  0xda   : > { %v1038_v26 = vpop.permute.xlu1 %1037  ;;  %v1790_v0 = vpop.permute.xlu0 %1789 }
  0xdb   : > { %v1988_v52 = vsel %vm1977_vm4, %v1952_v59, %v1038_v26  ;;  %v2116_v45 = vsel %vm1977_vm4, %v2081_v13, %v1790_v0  ;;  %v5297_v26 = vld [vmem:[#allocation12_spill] sm:$0xff]  ;;  %v5298_v59 = vld [vmem:[#allocation9_spill] sm:$0xff]  ;;  %v1872_v13 = vrot.slane %v3261_v40, 1  ;;  %v3126_v40 = vld [vmem:[%s3856_s6 + $0xa8] sm:$0xe] }
  0xdc   : > { %2409 = vmatprep.mubr.bf16.mxu0 %v2116_v45 }
  0xdd   : > { %2410 = vmatmul.mubr.bf16.gmra.mrb[12].mxu0 %v1988_v52 }
  0xde   : > { %v821_v33 = vpop.permute.xlu1 %820  ;;  %v1430_v11 = vpop.permute.xlu0 %1429 }
  0xdf   : > { %v1943_v34 = vsel %vm1911_vm2, %v5294_v10, %v821_v33  ;;  %v2073_v35 = vsel %vm1911_vm2, %v5295_v6, %v1430_v11  ;;  %v1873_v33 = vrot.slane %v3755_v14, 1  ;;  %v1875_v11 = vrot.slane %v3262_v25, 1 }
  0xe1   : > { %v1874_v47 = vsel %vm870_vm0, %v1872_v13, %v1873_v33  ;;  %v3760_v33 = vld [vmem:[%s3856_s6 + $0xc4] sm:$0xf] }
  0xe2   : > { %v950_v53 = vpop.permute.xlu1 %949  ;;  %v1542_v5 = vpop.permute.xlu0 %1541 }
  0xe3   : > { %v1976_v12 = vsel %vm1944_vm3, %v1943_v34, %v950_v53  ;;  %v2105_v18 = vsel %vm1944_vm3, %v2073_v35, %v1542_v5  ;;  %v1876_v53 = vrot.slane %v3756_v2, 1  ;;  %v5299_v34 = vld [vmem:[#allocation7_spill] sm:$0xff]  ;;  %v5300_v35 = vld [vmem:[#allocation13_spill] sm:$0xff] }
  0xe5   : > { %v1877_v42 = vsel %vm870_vm0, %v1875_v11, %v1876_v53 }
  0xe6   : > { %v1062_v7 = vpop.permute.xlu1 %1061  ;;  %v1814_v37 = vpop.permute.xlu0 %1813 }
  0xe7   : > { %v2024_v1 = vsel %vm1977_vm4, %v1976_v12, %v1062_v7  ;;  %v2152_v31 = vsel %vm1977_vm4, %v2105_v18, %v1814_v37 }
  0xe8   : > { %2505 = vmatprep.mubr.bf16.mxu1 %v2152_v31 }
  0xe9   : > { %2506 = vmatmul.mubr.bf16.gmra.mrb[12].mxu1 %v2024_v1 }
  0xea   : > { %v799_v8 = vpop.permute.xlu1 %798  ;;  %v1408_v4 = vpop.permute.xlu0 %1407  ;;  %3511 = vmatprep.mubr.msk.bf16.mxu1 %vm1911_vm2, %v1865_v19 }
  0xeb   : > { %v1921_v9 = vsel %vm1911_vm2, %v5296_v17, %v799_v8  ;;  %v2040_v62 = vsel %vm1911_vm2, %v5297_v26, %v1408_v4  ;;  %v3127_v17 = vld [vmem:[%s3856_s6 + $0xb4] sm:$0xe]  ;;  %v3128_v26 = vld [vmem:[%s3856_s6 + $0xc0] sm:$0xe] }
  0xec   : > { %v3272_v11 = vcombine.low %v3128_v26, %v3760_v33 }
  0xee   : > { %v928_v55 = vpop.permute.xlu1 %927  ;;  %v1520_v20 = vpop.permute.xlu0 %1519 }
  0xef   : > { %v1954_v16 = vsel %vm1944_vm3, %v1921_v9, %v928_v55  ;;  %v2083_v0 = vsel %vm1944_vm3, %v2040_v62, %v1520_v20  ;;  %v3758_v9 = vld [vmem:[%s3856_s6 + $0xb0] ss:$0 sps:$4 sm:$0x11]   ;;  %v5302_v62 = vld [vmem:[#allocation14_spill] sm:$0xff] }
  0xf1   : > { %3512 = vmatmul.mubr.msk.bf16.vlgmr.msra.gmra.mrb[16].mxu1 %vm1911_vm2, %v5298_v59 }
  0xf2   : > { %v1040_v43 = vpop.permute.xlu1 %1039  ;;  %v1792_v52 = vpop.permute.xlu0 %1791  ;;  %3515 = vmatprep.mubr.msk.bf16.mxu1 %vm1911_vm2, %v1871_v36 }
  0xf3   : > { %v1991_v45 = vsel %vm1977_vm4, %v1954_v16, %v1040_v43  ;;  %v2119_v41 = vsel %vm1977_vm4, %v2083_v0, %v1792_v52  ;;  %v1900_v43 = vrot.slane %v3758_v9, 1 }
  0xf4   : > { %2417 = vmatprep.mubr.bf16.mxu0 %v2119_v41 }
  0xf5   : > { %2418 = vmatmul.mubr.bf16.gmra.mrb[16].mxu0 %v1991_v45 }
  0xf6   : > { %v801_v5 = vpop.permute.xlu1 %800  ;;  %v1410_v38 = vpop.permute.xlu0 %1409 }
  0xf7   : > { %v1923_v7 = vsel %vm1911_vm2, %v5299_v34, %v801_v5  ;;  %v2043_v12 = vsel %vm1911_vm2, %v5300_v35, %v1410_v38  ;;  %v3761_v38 = vld [vmem:[%s3856_s6 + $0xbc] ss:$0 sps:$4 sm:$0x11]  }
  0xf9   : > { %3516 = vmatmul.mubr.msk.bf16.gmra.mrb[20].mxu1 %vm1911_vm2, %v1874_v47  ;;  %v1903_v47 = vrot.slane %v3761_v38, 1 }
  0xfa   : > { %v930_v54 = vpop.permute.xlu1 %929  ;;  %v1522_v10 = vpop.permute.xlu0 %1521  ;;  %3519 = vmatprep.mubr.msk.bf16.mxu1 %vm1911_vm2, %v1877_v42  ;;  %v1905_v42 = vrot.slane %v3272_v11, 1 }
  0xfb   : > { %v1956_v18 = vsel %vm1944_vm3, %v1923_v7, %v930_v54  ;;  %v2085_v37 = vsel %vm1944_vm3, %v2043_v12, %v1522_v10  ;;  %v3129_v54 = vld [vmem:[%s3856_s6 + $0xcc] sm:$0xe]  ;;  %v3762_v10 = vld [vmem:[%s3856_s6 + $0xc8] ss:$0 sps:$4 sm:$0x11]  }
  0xfc   : > { %v1906_v34 = vrot.slane %v3762_v10, 1 }
  0xfe   : > { %v1042_v6 = vpop.permute.xlu1 %1041  ;;  %v1794_v1 = vpop.permute.xlu0 %1793 }
  0xff   : > { %v1994_v30 = vsel %vm1977_vm4, %v1956_v18, %v1042_v6  ;;  %v2122_v3 = vsel %vm1977_vm4, %v2085_v37, %v1794_v1  ;;  %v3763_v6 = vld [vmem:[%s3856_s6 + $0xd0] sm:$0xf]  ;;  %v1907_v37 = vsel %vm870_vm0, %v1905_v42, %v1906_v34 }
 0x100   : > { %2425 = vmatprep.mubr.bf16.mxu0 %v2122_v3  ;;  %v3273_v35 = vcombine.low %v3129_v54, %v3763_v6 }
 0x101   : > { %2426 = vmatmul.mubr.bf16.gmra.mrb[20].mxu0 %v1994_v30  ;;  %3520 = vmatmul.mubr.msk.bf16.gmra.mrb[24].mxu1 %vm1911_vm2, %v4750_v28 }
 0x102   : > { %v803_v31 = vpop.permute.xlu1 %802  ;;  %v1412_v19 = vpop.permute.xlu0 %1411  ;;  %3523 = vmatprep.mubr.msk.bf16.mxu1 %vm1911_vm2, %v4758_v57 }
 0x103   : > { %v1925_v44 = vsel %vm1911_vm2, %v5301_v32, %v803_v31  ;;  %v2046_v21 = vsel %vm1911_vm2, %v4773_v23, %v1412_v19  ;;  %v1908_v19 = vrot.slane %v3273_v35, 1 }
 0x106   : > { %v932_v8 = vpop.permute.xlu1 %931  ;;  %v1524_v4 = vpop.permute.xlu0 %1523 }
 0x107   : > { %v1958_v49 = vsel %vm1944_vm3, %v1925_v44, %v932_v8  ;;  %v2087_v28 = vsel %vm1944_vm3, %v2046_v21, %v1524_v4  ;;  %v3764_v44 = vld [vmem:[%s3856_s6 + $0xd4] ss:$0 sps:$4 sm:$0x11]  }
 0x109   : > { %3524 = vmatmul.mubr.msk.bf16.gmra.mrb[28].mxu1 %vm1911_vm2, %v4777_v58  ;;  %v3757_v58 = vld [vmem:[%s3856_s6 + $0xac] sm:$0xf] }
 0x10a   : > { %v1044_v51 = vpop.permute.xlu1 %1043  ;;  %v1796_v55 = vpop.permute.xlu0 %1795  ;;  %3527 = vmatprep.mubr.msk.bf16.mxu1 %vm1911_vm2, %v4785_v50  ;;  %v3270_v46 = vcombine.low %v3126_v40, %v3757_v58 }
 0x10b   : > { %v1997_v57 = vsel %vm1977_vm4, %v1958_v49, %v1044_v51  ;;  %v2125_v24 = vsel %vm1977_vm4, %v2087_v28, %v1796_v55  ;;  %v1909_v51 = vrot.slane %v3764_v44, 1 }
 0x10c   : > { %2433 = vmatprep.mubr.bf16.mxu0 %v2125_v24  ;;  %v1899_v50 = vrot.slane %v3270_v46, 1  ;;  %v5304_v24 = vld [vmem:[#allocation16_spill] sm:$0xff] }
 0x10d   : > { %2434 = vmatmul.mubr.bf16.gmra.mrb[24].mxu0 %v1997_v57  ;;  %v1910_v28 = vsel %vm870_vm0, %v1908_v19, %v1909_v51 }
 0x10e   : > { %v805_v23 = vpop.permute.xlu1 %804  ;;  %v1414_v20 = vpop.permute.xlu0 %1413  ;;  %v1901_v2 = vsel %vm870_vm0, %v1899_v50, %v1900_v43 }
 0x10f   : > { %v1927_v16 = vsel %vm1911_vm2, %v5302_v62, %v805_v23  ;;  %v2049_v13 = vsel %vm1911_vm2, %v4800_v22, %v1414_v20 }
 0x111   : > { %3528 = vmatmul.mubr.msk.bf16.gmra.mrb[32].mxu1 %vm1911_vm2, %v4789_v48  ;;  %v3759_v48 = vld [vmem:[%s3856_s6 + $0xb8] sm:$0xf] }
 0x112   : > { %v934_v25 = vpop.permute.xlu1 %933  ;;  %v1526_v36 = vpop.permute.xlu0 %1525  ;;  %3531 = vmatprep.mubr.msk.bf16.mxu1 %vm1911_vm2, %v4803_v60  ;;  %v3271_v52 = vcombine.low %v3127_v17, %v3759_v48 }
 0x113   : > { %v1960_v0 = vsel %vm1944_vm3, %v1927_v16, %v934_v25  ;;  %v2089_v45 = vsel %vm1944_vm3, %v2049_v13, %v1526_v36 }
 0x114   : > { %v1902_v53 = vrot.slane %v3271_v52, 1 }
 0x116   : > { %v1046_v59 = vpop.permute.xlu1 %1045  ;;  %v1904_v18 = vsel %vm870_vm0, %v1902_v53, %v1903_v47 }
 0x117   : > { %v1798_v60 = vpop.permute.xlu0 %1797  ;;  %v2000_v14 = vsel %vm1977_vm4, %v1960_v0, %v1046_v59 }
 0x118   : > { %v2128_v41 = vsel %vm1977_vm4, %v2089_v45, %v1798_v60 }
 0x119   : > { %2441 = vmatprep.mubr.bf16.mxu0 %v2128_v41  ;;  %3532 = vmatmul.mubr.msk.bf16.gmra.mrb[36].mxu1 %vm1911_vm2, %v4812_v56  ;;  %v5303_v56 = vld [vmem:[#allocation15_spill] sm:$0xff] }
 0x11a   : > { %v807_v22 = vpop.permute.xlu1 %806  ;;  %2442 = vmatmul.mubr.bf16.gmra.mrb[28].mxu0 %v2000_v14  ;;  %3535 = vmatprep.mubr.msk.bf16.mxu1 %vm1911_vm2, %v1901_v2 }
 0x11b   : > { %v1416_v5 = vpop.permute.xlu0 %1415  ;;  %v1929_v1 = vsel %vm1911_vm2, %v5303_v56, %v807_v22 }
 0x11c   : > { %v2052_v3 = vsel %vm1911_vm2, %v4834_v15, %v1416_v5 }
 0x11e   : > { %v936_v7 = vpop.permute.xlu1 %935 }
 0x11f   : > { %v1528_v12 = vpop.permute.xlu0 %1527  ;;  %v1962_v31 = vsel %vm1944_vm3, %v1929_v1, %v936_v7 }
 0x120   : > { %v2091_v8 = vsel %vm1944_vm3, %v2052_v3, %v1528_v12 }
 0x121   : > { %3536 = vmatmul.mubr.msk.bf16.gmra.mrb[40].mxu1 %vm1911_vm2, %v1904_v18 }
 0x122   : > { %v1048_v30 = vpop.permute.xlu1 %1047  ;;  %3539 = vmatprep.mubr.msk.bf16.mxu1 %vm1911_vm2, %v1907_v37 }
 0x123   : > { %v1800_v4 = vpop.permute.xlu0 %1799  ;;  %v2003_v32 = vsel %vm1977_vm4, %v1962_v31, %v1048_v30 }
 0x124   : > { %v2131_v21 = vsel %vm1977_vm4, %v2091_v8, %v1800_v4 }
 0x125   : > { %2449 = vmatprep.mubr.bf16.mxu0 %v2131_v21 }
 0x126   : > { %v809_v49 = vpop.permute.xlu1 %808  ;;  %2450 = vmatmul.mubr.bf16.gmra.mrb[32].mxu0 %v2003_v32 }
 0x127   : > { %v1418_v15 = vpop.permute.xlu0 %1417  ;;  %v1931_v40 = vsel %vm1911_vm2, %v5304_v24, %v809_v49 }
 0x128   : > { %v2055_v20 = vsel %vm1911_vm2, %v4848_v29, %v1418_v15 }
 0x129   : > { %3540 = vmatmul.mubr.msk.bf16.gmra.mrb[44].mxu1 %vm1911_vm2, %v1910_v28 }
 0x12a   : > { %v938_v55 = vpop.permute.xlu1 %937 }
 0x12b   : > { %v1530_v57 = vpop.permute.xlu0 %1529  ;;  %v1964_v58 = vsel %vm1944_vm3, %v1931_v40, %v938_v55 }
 0x12c   : > { %v2093_v46 = vsel %vm1944_vm3, %v2055_v20, %v1530_v57 }
 0x12e   : > { %v1050_v23 = vpop.permute.xlu1 %1049 }
 0x12f   : > { %v1802_v25 = vpop.permute.xlu0 %1801  ;;  %v2006_v36 = vsel %vm1977_vm4, %v1964_v58, %v1050_v23 }
 0x130   : > { %v2134_v50 = vsel %vm1977_vm4, %v2093_v46, %v1802_v25 }
 0x131   : > { %2457 = vmatprep.mubr.bf16.mxu0 %v2134_v50 }
 0x132   : > { %v811_v17 = vpop.permute.xlu1 %810  ;;  %2458 = vmatmul.mubr.bf16.gmra.mrb[36].mxu0 %v2006_v36 }
 0x133   : > { %v1420_v9 = vpop.permute.xlu0 %1419  ;;  %v1933_v62 = vsel %vm1911_vm2, %v4663_v39, %v811_v17 }
 0x134   : > { %v2058_v29 = vsel %vm1911_vm2, %v4863_v63, %v1420_v9 }
 0x136   : > { %v940_v43 = vpop.permute.xlu1 %939 }
 0x137   : > { %v1532_v26 = vpop.permute.xlu0 %1531  ;;  %v1966_v59 = vsel %vm1944_vm3, %v1933_v62, %v940_v43 }
 0x138   : > { %v2095_v13 = vsel %vm1944_vm3, %v2058_v29, %v1532_v26 }
 0x13a   : > { %v1052_v16 = vpop.permute.xlu1 %1051 }
 0x13b   : > { %v1804_v0 = vpop.permute.xlu0 %1803  ;;  %v2009_v48 = vsel %vm1977_vm4, %v1966_v59, %v1052_v16 }
 0x13c   : > { %v2137_v52 = vsel %vm1977_vm4, %v2095_v13, %v1804_v0  ;;  %v5074_v13 = vld [vmem:[%s5256_s2] ss:$0 sm:$0xff] }
 0x13d   : > { %2465 = vmatprep.mubr.bf16.mxu0 %v2137_v52  ;;  %v5077_v52 = vld [vmem:[%s265_s10] ss:$0 sm:$0xff] }
 0x13e   : > { %v813_v45 = vpop.permute.xlu1 %812  ;;  %2466 = vmatmul.mubr.bf16.gmra.mrb[40].mxu0 %v2009_v48 }
 0x13f   : > { %v1422_v60 = vpop.permute.xlu0 %1421  ;;  %v1935_v39 = vsel %vm1911_vm2, %v4825_v61, %v813_v45 }
 0x140   : > { %v2061_v63 = vsel %vm1911_vm2, %v4868_v27, %v1422_v60 }
 0x142   : > { %v942_v14 = vpop.permute.xlu1 %941 }
 0x143   : > { %v1534_v33 = vpop.permute.xlu0 %1533  ;;  %v1968_v41 = vsel %vm1944_vm3, %v1935_v39, %v942_v14 }
 0x144   : > { %v2097_v2 = vsel %vm1944_vm3, %v2061_v63, %v1534_v33 }
 0x146   : > { %v1054_v11 = vpop.permute.xlu1 %1053 }
 0x147   : > { %v1806_v22 = vpop.permute.xlu0 %1805  ;;  %v2012_v53 = vsel %vm1977_vm4, %v1968_v41, %v1054_v11 }
 0x148   : > { %v2140_v5 = vsel %vm1977_vm4, %v2097_v2, %v1806_v22 }
 0x149   : > { %2473 = vmatprep.mubr.bf16.mxu0 %v2140_v5 }
 0x14a   : > { %2474 = vmatmul.mubr.bf16.gmra.mrb[44].mxu0 %v2012_v53 }
 0x171   : > { %v3393_v38 = vpop.f32.mrb[0].mxu0 }
 0x172   : > { %v3394_v47 = vpop.f32.mrb[1].mxu0 }
 0x173   : > { %v3395_v42 = vadd.f32 %v3394_v47, %v3393_v38  ;;  %v3396_v54 = vpop.f32.mrb[2].mxu0 }
 0x174   : > { %v3397_v61 = vpop.f32.mrb[3].mxu0 }
 0x175   : > { %v3398_v10 = vadd.f32 %v3397_v61, %v3396_v54  ;;  %v3465_v34 = vpop.f32.mrb[0].mxu1  ;;  %v2388_v45 = vadd.f32 %v3395_v42, %v5074_v13 }
 0x176   : > { %v3466_v7 = vpop.f32.mrb[1].mxu1 }
 0x177   : > { %v5049_v27 = vadd.f32 %v3466_v7, %v3465_v34  ;;  %v3468_v6 = vpop.f32.mrb[2].mxu1  ;;  %v2391_v63 = vadd.f32 %v3398_v10, %v5074_v13 }
 0x178   : > { %v3469_v35 = vpop.f32.mrb[3].mxu1 }
 0x179   : > { %v5051_v12 = vadd.f32 %v3469_v35, %v3468_v6 }
 0x180   : > { %v3399_v18 = vpop.f32.mrb[4].mxu0 }
 0x181   : > { %v3400_v37 = vpop.f32.mrb[5].mxu0 }
 0x182   : > { %v3401_v56 = vadd.f32 %v3400_v37, %v3399_v18  ;;  %v3402_v1 = vpop.f32.mrb[6].mxu0 }
 0x183   : > { %v3403_v30 = vpop.f32.mrb[7].mxu0 }
 0x184   : > { %v3404_v3 = vadd.f32 %v3403_v30, %v3402_v1  ;;  %v2396_v0 = vadd.f32 %v3401_v56, %v5074_v13 }
 0x186   : > { %v2399_v33 = vadd.f32 %v3404_v3, %v5074_v13 }
 0x18c   : > { %v3471_v31 = vpop.f32.mrb[4].mxu1 }
 0x18d   : > { %v3472_v19 = vpop.f32.mrb[5].mxu1 }
 0x18e   : > { %v5053_v8 = vadd.f32 %v3472_v19, %v3471_v31  ;;  %v3474_v4 = vpop.f32.mrb[6].mxu1 }
 0x18f   : > { %v3475_v32 = vpop.f32.mrb[7].mxu1 }
 0x190   : > { %v5055_v44 = vadd.f32 %v3475_v32, %v3474_v4 }
 0x198   : > { %v3405_v51 = vpop.f32.mrb[8].mxu0 }
 0x199   : > { %v3406_v21 = vpop.f32.mrb[9].mxu0 }
 0x19a   : > { %v3407_v49 = vadd.f32 %v3406_v21, %v3405_v51  ;;  %v3408_v15 = vpop.f32.mrb[10].mxu0 }
 0x19b   : > { %v3409_v28 = vpop.f32.mrb[11].mxu0 }
 0x19c   : > { %v5057_v55 = vadd.f32 %v3409_v28, %v3408_v15  ;;  %v2404_v30 = vadd.f32 %v3407_v49, %v5074_v13 }
 0x19e   : > { %v2407_v51 = vadd.f32 %v5057_v55, %v5074_v13 }
 0x1a4   : > { %v3477_v57 = vpop.f32.mrb[8].mxu1 }
 0x1a5   : > { %v3478_v24 = vpop.f32.mrb[9].mxu1 }
 0x1a6   : > { %v5059_v40 = vadd.f32 %v3478_v24, %v3477_v57  ;;  %v3480_v23 = vpop.f32.mrb[10].mxu1 }
 0x1a7   : > { %v3481_v20 = vpop.f32.mrb[11].mxu1 }
 0x1a8   : > { %v5061_v58 = vadd.f32 %v3481_v20, %v3480_v23 }
 0x1b0   : > { %v3411_v46 = vpop.f32.mrb[12].mxu0 }
 0x1b1   : > { %v3412_v25 = vpop.f32.mrb[13].mxu0 }
 0x1b2   : > { %v3413_v36 = vadd.f32 %v3412_v25, %v3411_v46  ;;  %v3414_v50 = vpop.f32.mrb[14].mxu0 }
 0x1b3   : > { %v3415_v17 = vpop.f32.mrb[15].mxu0 }
 0x1b4   : > { %v3416_v9 = vadd.f32 %v3415_v17, %v3414_v50  ;;  %v2412_v18 = vadd.f32 %v3413_v36, %v5074_v13 }
 0x1b6   : > { %v2415_v19 = vadd.f32 %v3416_v9, %v5074_v13 }
 0x1bc   : > { %v3483_v43 = vpop.f32.mrb[12].mxu1 }
 0x1bd   : > { %v3484_v26 = vpop.f32.mrb[13].mxu1 }
 0x1be   : > { %v5063_v62 = vadd.f32 %v3484_v26, %v3483_v43  ;;  %v3486_v16 = vpop.f32.mrb[14].mxu1 }
 0x1bf   : > { %v3487_v29 = vpop.f32.mrb[15].mxu1 }
 0x1c0   : > { %v5065_v59 = vadd.f32 %v3487_v29, %v3486_v16 }
 0x1c4   : > { %v3513_v48 = vpop.f32.mrb[16].mxu1 }
 0x1c5   : > { %v2557_v60 = vadd.f32 %v3513_v48, %v2396_v0  ;;  %v2548_v14 = vpop.f32.mrb[17].mxu1 }
 0x1c6   : > { %v2549_v39 = vadd.f32 %v2548_v14, %v2388_v45  ;;  %v3514_v11 = vpop.f32.mrb[18].mxu1 }
 0x1c7   : > { %v2684_v41 = vadd.f32 %v5077_v52, %v2557_v60  ;;  %v2560_v2 = vadd.f32 %v3514_v11, %v2399_v33  ;;  %v2551_v22 = vpop.f32.mrb[19].mxu1 }
 0x1c8   : > { %v2682_v53 = vadd.f32 %v5077_v52, %v2549_v39  ;;  %v2552_v5 = vadd.f32 %v2551_v22, %v2391_v63  ;;  %v3417_v38 = vpop.f32.mrb[16].mxu0 }
 0x1c9   : > { %v3347_v47 = vpack.c.bf16 %v2684_v41, %v2684_v41  ;;  %v2685_v42 = vadd.f32 %v5077_v52, %v2560_v2  ;;  %v3418_v54 = vpop.f32.mrb[17].mxu0 }
 0x1ca   : > { %v3345_v61 = vpack.c.bf16 %v2682_v53, %v2682_v53  ;;  %v2683_v10 = vadd.f32 %v5077_v52, %v2552_v5  ;;  %v3419_v34 = vadd.f32 %v3418_v54, %v3417_v38  ;;  %v3420_v7 = vpop.f32.mrb[18].mxu0 }
 0x1cb   : > { %2845 = vst.msk [vmem:[%s5087_s26 + $0x8] sm:$0xf] %vm2842_vm5, %v3347_v47  ;;  %v3348_v6 = vpack.c.bf16 %v2685_v42, %v2685_v42  ;;  %v3421_v35 = vpop.f32.mrb[19].mxu0 }
 0x1cc   : > { %2843 = vst.msk [vmem:[%s5087_s26] sm:$0xf] %vm2842_vm5, %v3345_v61  ;;  %v3346_v37 = vpack.c.bf16 %v2683_v10, %v2683_v10  ;;  %v3422_v56 = vadd.f32 %v3421_v35, %v3420_v7  ;;  %v3517_v1 = vpop.f32.mrb[20].mxu1  ;;  %v2420_v17 = vadd.f32 %v3419_v34, %v5074_v13 }
 0x1cd   : > { %2846 = vst.msk [vmem:[%s5087_s26 + $0xc] sm:$0xf] %vm2842_vm5, %v3348_v6  ;;  %v2573_v3 = vadd.f32 %v3517_v1, %v2412_v18  ;;  %v2564_v31 = vpop.f32.mrb[21].mxu1 }
 0x1ce   : > { %2844 = vst.msk [vmem:[%s5087_s26 + $0x4] sm:$0xf] %vm2842_vm5, %v3346_v37  ;;  %v2565_v4 = vadd.f32 %v2564_v31, %v2404_v30  ;;  %v3518_v32 = vpop.f32.mrb[22].mxu1  ;;  %v2423_v48 = vadd.f32 %v3422_v56, %v5074_v13 }
 0x1cf   : > { %v2688_v21 = vadd.f32 %v5077_v52, %v2573_v3  ;;  %v2576_v15 = vadd.f32 %v3518_v32, %v2415_v19  ;;  %v2567_v49 = vpop.f32.mrb[23].mxu1 }
 0x1d0   : > { %v2686_v28 = vadd.f32 %v5077_v52, %v2565_v4  ;;  %v2568_v57 = vadd.f32 %v2567_v49, %v2407_v51 }
 0x1d1   : > { %v3351_v24 = vpack.c.bf16 %v2688_v21, %v2688_v21  ;;  %v2689_v23 = vadd.f32 %v5077_v52, %v2576_v15 }
 0x1d2   : > { %v3349_v20 = vpack.c.bf16 %v2686_v28, %v2686_v28  ;;  %v2687_v46 = vadd.f32 %v5077_v52, %v2568_v57 }
 0x1d3   : > { %2849 = vst.msk [vmem:[%s5087_s26 + $0x18] sm:$0xf] %vm2842_vm5, %v3351_v24  ;;  %v3352_v25 = vpack.c.bf16 %v2689_v23, %v2689_v23 }
 0x1d4   : > { %2847 = vst.msk [vmem:[%s5087_s26 + $0x10] sm:$0xf] %vm2842_vm5, %v3349_v20  ;;  %v3350_v55 = vpack.c.bf16 %v2687_v46, %v2687_v46  ;;  %v3423_v36 = vpop.f32.mrb[20].mxu0  ;;  %v3521_v50 = vpop.f32.mrb[24].mxu1 }
 0x1d5   : > { %2850 = vst.msk [vmem:[%s5087_s26 + $0x1c] sm:$0xf] %vm2842_vm5, %v3352_v25  ;;  %v3424_v9 = vpop.f32.mrb[21].mxu0  ;;  %v2580_v43 = vpop.f32.mrb[25].mxu1 }
 0x1d6   : > { %2848 = vst.msk [vmem:[%s5087_s26 + $0x14] sm:$0xf] %vm2842_vm5, %v3350_v55  ;;  %v3425_v26 = vadd.f32 %v3424_v9, %v3423_v36  ;;  %v2581_v16 = vadd.f32 %v2580_v43, %v2420_v17  ;;  %v3426_v29 = vpop.f32.mrb[22].mxu0  ;;  %v3522_v0 = vpop.f32.mrb[26].mxu1 }
 0x1d7   : > { %v3427_v45 = vpop.f32.mrb[23].mxu0  ;;  %v2583_v60 = vpop.f32.mrb[27].mxu1 }
 0x1d8   : > { %v2428_v14 = vadd.f32 %v3425_v26, %v5074_v13  ;;  %v2690_v33 = vadd.f32 %v5077_v52, %v2581_v16  ;;  %v3428_v39 = vadd.f32 %v3427_v45, %v3426_v29  ;;  %v2584_v11 = vadd.f32 %v2583_v60, %v2423_v48 }
 0x1d9   : > { %v2492_v29 = vadd.f32 %v5053_v8, %v5074_v13  ;;  %v2484_v60 = vadd.f32 %v5049_v27, %v5074_v13  ;;  %v2487_v8 = vadd.f32 %v5051_v12, %v5074_v13 }
 0x1da   : > { %v2589_v63 = vadd.f32 %v3521_v50, %v2428_v14  ;;  %v3353_v41 = vpack.c.bf16 %v2690_v33, %v2690_v33  ;;  %v2431_v2 = vadd.f32 %v3428_v39, %v5074_v13  ;;  %v2691_v22 = vadd.f32 %v5077_v52, %v2584_v11 }
 0x1db   : > { %v2495_v39 = vadd.f32 %v5055_v44, %v5074_v13 }
 0x1dc   : > { %v2692_v53 = vadd.f32 %v5077_v52, %v2589_v63  ;;  %2851 = vst.msk [vmem:[%s5087_s26 + $0x20] sm:$0xf] %vm2842_vm5, %v3353_v41  ;;  %v2592_v5 = vadd.f32 %v3522_v0, %v2431_v2  ;;  %v3354_v38 = vpack.c.bf16 %v2691_v22, %v2691_v22  ;;  %v3525_v47 = vpop.f32.mrb[28].mxu1 }
 0x1dd   : > { %v2596_v42 = vpop.f32.mrb[29].mxu1 }
 0x1de   : > { %v3355_v54 = vpack.c.bf16 %v2692_v53, %v2692_v53  ;;  %v2693_v61 = vadd.f32 %v5077_v52, %v2592_v5  ;;  %2852 = vst.msk [vmem:[%s5087_s26 + $0x24] sm:$0xf] %vm2842_vm5, %v3354_v38  ;;  %v3526_v10 = vpop.f32.mrb[30].mxu1 }
 0x1df   : > { %v2599_v34 = vpop.f32.mrb[31].mxu1 }
 0x1e0   : > { %2853 = vst.msk [vmem:[%s5087_s26 + $0x28] sm:$0xf] %vm2842_vm5, %v3355_v54  ;;  %v3356_v7 = vpack.c.bf16 %v2693_v61, %v2693_v61  ;;  %v3429_v6 = vpop.f32.mrb[24].mxu0 }
 0x1e1   : > { %v3430_v35 = vpop.f32.mrb[25].mxu0 }
 0x1e2   : > { %2854 = vst.msk [vmem:[%s5087_s26 + $0x2c] sm:$0xf] %vm2842_vm5, %v3356_v7  ;;  %v3431_v18 = vadd.f32 %v3430_v35, %v3429_v6  ;;  %v3432_v37 = vpop.f32.mrb[26].mxu0 }
 0x1e3   : > { %v3433_v56 = vpop.f32.mrb[27].mxu0 }
 0x1e4   : > { %v3434_v1 = vadd.f32 %v3433_v56, %v3432_v37  ;;  %v2436_v30 = vadd.f32 %v3431_v18, %v5074_v13  ;;  %v5134_v3 = vpop.f32.mrb[32].mxu1  ;;  %v2508_v18 = vadd.f32 %v5063_v62, %v5074_v13 }
 0x1e5   : > { %v5136_v31 = vpop.f32.mrb[33].mxu1 }
 0x1e6   : > { %v2597_v19 = vadd.f32 %v2596_v42, %v2436_v30  ;;  %v2439_v4 = vadd.f32 %v3434_v1, %v5074_v13  ;;  %v5139_v32 = vpop.f32.mrb[34].mxu1 }
 0x1e7   : > { %v5141_v51 = vpop.f32.mrb[35].mxu1 }
 0x1e8   : > { %v2694_v21 = vadd.f32 %v5077_v52, %v2597_v19  ;;  %v2600_v15 = vadd.f32 %v2599_v34, %v2439_v4  ;;  %v2500_v19 = vadd.f32 %v5059_v40, %v5074_v13 }
 0x1ea   : > { %v3357_v49 = vpack.c.bf16 %v2694_v21, %v2694_v21  ;;  %v2695_v28 = vadd.f32 %v5077_v52, %v2600_v15  ;;  %v2511_v15 = vadd.f32 %v5065_v59, %v5074_v13 }
 0x1ec   : > { %2855 = vst.msk [vmem:[%s5087_s26 + $0x30] sm:$0xf] %vm2842_vm5, %v3357_v49  ;;  %v3358_v57 = vpack.c.bf16 %v2695_v28, %v2695_v28  ;;  %v5147_v23 = vpop.f32.mrb[36].mxu1 }
 0x1ed   : > { %v3435_v24 = vpop.f32.mrb[28].mxu0  ;;  %v5149_v46 = vpop.f32.mrb[37].mxu1 }
 0x1ee   : > { %v3436_v20 = vpop.f32.mrb[29].mxu0  ;;  %2856 = vst.msk [vmem:[%s5087_s26 + $0x34] sm:$0xf] %vm2842_vm5, %v3358_v57  ;;  %v5153_v36 = vpop.f32.mrb[38].mxu1 }
 0x1ef   : > { %v3437_v25 = vadd.f32 %v3436_v20, %v3435_v24  ;;  %v3438_v55 = vpop.f32.mrb[30].mxu0  ;;  %v5155_v17 = vpop.f32.mrb[39].mxu1  ;;  %v2503_v24 = vadd.f32 %v5061_v58, %v5074_v13 }
 0x1f0   : > { %v3439_v50 = vpop.f32.mrb[31].mxu0 }
 0x1f1   : > { %v2444_v9 = vadd.f32 %v3437_v25, %v5074_v13  ;;  %v3440_v43 = vadd.f32 %v3439_v50, %v3438_v55 }
 0x1f3   : > { %v2605_v26 = vadd.f32 %v3525_v47, %v2444_v9  ;;  %v2447_v16 = vadd.f32 %v3440_v43, %v5074_v13 }
 0x1f4   : > { %v3537_v45 = vpop.f32.mrb[40].mxu1 }
 0x1f5   : > { %v2696_v0 = vadd.f32 %v5077_v52, %v2605_v26  ;;  %v2608_v48 = vadd.f32 %v3526_v10, %v2447_v16  ;;  %v2653_v14 = vadd.f32 %v3537_v45, %v2492_v29  ;;  %v2644_v33 = vpop.f32.mrb[41].mxu1 }
 0x1f6   : > { %v2645_v41 = vadd.f32 %v2644_v33, %v2484_v60  ;;  %v3538_v2 = vpop.f32.mrb[42].mxu1 }
 0x1f7   : > { %v3359_v11 = vpack.c.bf16 %v2696_v0, %v2696_v0  ;;  %v2697_v63 = vadd.f32 %v5077_v52, %v2608_v48  ;;  %v2708_v22 = vadd.f32 %v5077_v52, %v2653_v14  ;;  %v2656_v53 = vadd.f32 %v3538_v2, %v2495_v39  ;;  %v2647_v5 = vpop.f32.mrb[43].mxu1 }
 0x1f8   : > { %v2706_v44 = vadd.f32 %v5077_v52, %v2645_v41  ;;  %v2648_v38 = vadd.f32 %v2647_v5, %v2487_v8 }
 0x1f9   : > { %2857 = vst.msk [vmem:[%s5087_s26 + $0x38] sm:$0xf] %vm2842_vm5, %v3359_v11  ;;  %v3360_v27 = vpack.c.bf16 %v2697_v63, %v2697_v63  ;;  %v3441_v47 = vpop.f32.mrb[32].mxu0  ;;  %v3371_v42 = vpack.c.bf16 %v2708_v22, %v2708_v22  ;;  %v2709_v54 = vadd.f32 %v5077_v52, %v2656_v53 }
 0x1fa   : > { %v3442_v61 = vpop.f32.mrb[33].mxu0  ;;  %v3369_v12 = vpack.c.bf16 %v2706_v44, %v2706_v44  ;;  %v2707_v10 = vadd.f32 %v5077_v52, %v2648_v38 }
 0x1fb   : > { %2858 = vst.msk [vmem:[%s5087_s26 + $0x3c] sm:$0xf] %vm2842_vm5, %v3360_v27  ;;  %v3443_v34 = vadd.f32 %v3442_v61, %v3441_v47  ;;  %v3444_v7 = vpop.f32.mrb[34].mxu0  ;;  %2869 = vst.msk [vmem:[%s5087_s26 + $0x68] sm:$0xf] %vm2842_vm5, %v3371_v42  ;;  %v3372_v6 = vpack.c.bf16 %v2709_v54, %v2709_v54 }
 0x1fc   : > { %v3445_v35 = vpop.f32.mrb[35].mxu0  ;;  %2867 = vst.msk [vmem:[%s5087_s26 + $0x60] sm:$0xf] %vm2842_vm5, %v3369_v12  ;;  %v3370_v37 = vpack.c.bf16 %v2707_v10, %v2707_v10  ;;  %v3541_v30 = vpop.f32.mrb[44].mxu1 }
 0x1fd   : > { %v2452_v56 = vadd.f32 %v3443_v34, %v5074_v13  ;;  %v3446_v1 = vadd.f32 %v3445_v35, %v3444_v7  ;;  %2870 = vst.msk [vmem:[%s5087_s26 + $0x6c] sm:$0xf] %vm2842_vm5, %v3372_v6  ;;  %v2669_v4 = vadd.f32 %v3541_v30, %v2508_v18  ;;  %v2660_v21 = vpop.f32.mrb[45].mxu1 }
 0x1fe   : > { %2868 = vst.msk [vmem:[%s5087_s26 + $0x64] sm:$0xf] %vm2842_vm5, %v3370_v37  ;;  %v2661_v28 = vadd.f32 %v2660_v21, %v2500_v19  ;;  %v3542_v57 = vpop.f32.mrb[46].mxu1 }
 0x1ff   : > { %v2613_v62 = vadd.f32 %v5136_v31, %v2452_v56  ;;  %v2455_v49 = vadd.f32 %v3446_v1, %v5074_v13  ;;  %v2712_v40 = vadd.f32 %v5077_v52, %v2669_v4  ;;  %v2672_v20 = vadd.f32 %v3542_v57, %v2511_v15  ;;  %v2663_v25 = vpop.f32.mrb[47].mxu1 }
 0x200   : > { %v2710_v31 = vadd.f32 %v5077_v52, %v2661_v28  ;;  %v2664_v50 = vadd.f32 %v2663_v25, %v2503_v24 }
 0x201   : > { %v2698_v59 = vadd.f32 %v5077_v52, %v2613_v62  ;;  %v2616_v55 = vadd.f32 %v5141_v51, %v2455_v49  ;;  %v3375_v9 = vpack.c.bf16 %v2712_v40, %v2712_v40  ;;  %v2713_v43 = vadd.f32 %v5077_v52, %v2672_v20 }
 0x202   : > { %v3373_v16 = vpack.c.bf16 %v2710_v31, %v2710_v31  ;;  %v2711_v29 = vadd.f32 %v5077_v52, %v2664_v50 }
 0x203   : > { %v3361_v58 = vpack.c.bf16 %v2698_v59, %v2698_v59  ;;  %v2699_v26 = vadd.f32 %v5077_v52, %v2616_v55  ;;  %2873 = vst.msk [vmem:[%s5087_s26 + $0x78] sm:$0xf] %vm2842_vm5, %v3375_v9  ;;  %v3376_v0 = vpack.c.bf16 %v2713_v43, %v2713_v43 }
 0x204   : > { %2871 = vst.msk [vmem:[%s5087_s26 + $0x70] sm:$0xf] %vm2842_vm5, %v3373_v16  ;;  %v3374_v48 = vpack.c.bf16 %v2711_v29, %v2711_v29 }
 0x205   : > { %2859 = vst.msk [vmem:[%s5087_s26 + $0x40] sm:$0xf] %vm2842_vm5, %v3361_v58  ;;  %v3362_v51 = vpack.c.bf16 %v2699_v26, %v2699_v26  ;;  %v3447_v45 = vpop.f32.mrb[36].mxu0  ;;  %2874 = vst.msk [vmem:[%s5087_s26 + $0x7c] sm:$0xf] %vm2842_vm5, %v3376_v0 }
 0x206   : > { %v3448_v60 = vpop.f32.mrb[37].mxu0  ;;  %2872 = vst.msk [vmem:[%s5087_s26 + $0x74] sm:$0xf] %vm2842_vm5, %v3374_v48 }
 0x207   : > { %2860 = vst.msk [vmem:[%s5087_s26 + $0x44] sm:$0xf] %vm2842_vm5, %v3362_v51  ;;  %v3449_v14 = vadd.f32 %v3448_v60, %v3447_v45  ;;  %v3450_v33 = vpop.f32.mrb[38].mxu0 }
 0x208   : > { %v3451_v39 = vpop.f32.mrb[39].mxu0 }
 0x209   : > { %v2460_v11 = vadd.f32 %v3449_v14, %v5074_v13  ;;  %v3452_v63 = vadd.f32 %v3451_v39, %v3450_v33 }
 0x20b   : > { %v2621_v41 = vadd.f32 %v5134_v3, %v2460_v11  ;;  %v2463_v2 = vadd.f32 %v3452_v63, %v5074_v13 }
 0x20d   : > { %v2700_v8 = vadd.f32 %v5077_v52, %v2621_v41  ;;  %v2624_v22 = vadd.f32 %v5139_v32, %v2463_v2 }
 0x20f   : > { %v3363_v53 = vpack.c.bf16 %v2700_v8, %v2700_v8  ;;  %v2701_v5 = vadd.f32 %v5077_v52, %v2624_v22 }
 0x211   : > { %2861 = vst.msk [vmem:[%s5087_s26 + $0x48] sm:$0xf] %vm2842_vm5, %v3363_v53  ;;  %v3364_v27 = vpack.c.bf16 %v2701_v5, %v2701_v5  ;;  %v3453_v44 = vpop.f32.mrb[40].mxu0 }
 0x212   : > { %v3454_v38 = vpop.f32.mrb[41].mxu0 }
 0x213   : > { %2862 = vst.msk [vmem:[%s5087_s26 + $0x4c] sm:$0xf] %vm2842_vm5, %v3364_v27  ;;  %v3455_v47 = vadd.f32 %v3454_v38, %v3453_v44  ;;  %v3456_v3 = vpop.f32.mrb[42].mxu0 }
 0x214   : > { %v3457_v42 = vpop.f32.mrb[43].mxu0 }
 0x215   : > { %v2468_v54 = vadd.f32 %v3455_v47, %v5074_v13  ;;  %v3458_v61 = vadd.f32 %v3457_v42, %v3456_v3 }
 0x217   : > { %v2629_v32 = vadd.f32 %v5149_v46, %v2468_v54  ;;  %v2471_v12 = vadd.f32 %v3458_v61, %v5074_v13 }
 0x219   : > { %v2702_v10 = vadd.f32 %v5077_v52, %v2629_v32  ;;  %v2632_v34 = vadd.f32 %v5155_v17, %v2471_v12 }
 0x21b   : > { %v3365_v7 = vpack.c.bf16 %v2702_v10, %v2702_v10  ;;  %v2703_v6 = vadd.f32 %v5077_v52, %v2632_v34 }
 0x21d   : > { %2863 = vst.msk [vmem:[%s5087_s26 + $0x50] sm:$0xf] %vm2842_vm5, %v3365_v7  ;;  %v3366_v35 = vpack.c.bf16 %v2703_v6, %v2703_v6  ;;  %v3459_v18 = vpop.f32.mrb[44].mxu0 }
 0x21e   : > { %v3460_v37 = vpop.f32.mrb[45].mxu0 }
 0x21f   : > { %2864 = vst.msk [vmem:[%s5087_s26 + $0x54] sm:$0xf] %vm2842_vm5, %v3366_v35  ;;  %v3461_v56 = vadd.f32 %v3460_v37, %v3459_v18  ;;  %v3462_v46 = vpop.f32.mrb[46].mxu0 }
 0x220   : > { %v3463_v1 = vpop.f32.mrb[47].mxu0 }
 0x221   : > { %v2476_v30 = vadd.f32 %v3461_v56, %v5074_v13  ;;  %v3464_v19 = vadd.f32 %v3463_v1, %v3462_v46 }
 0x223   : > { %v2637_v17 = vadd.f32 %v5147_v23, %v2476_v30  ;;  %v2479_v4 = vadd.f32 %v3464_v19, %v5074_v13 }
 0x225   : > { %v2704_v21 = vadd.f32 %v5077_v52, %v2637_v17  ;;  %v2640_v15 = vadd.f32 %v5153_v36, %v2479_v4 }
 0x227   : > { %v3367_v62 = vpack.c.bf16 %v2704_v21, %v2704_v21  ;;  %v2705_v49 = vadd.f32 %v5077_v52, %v2640_v15 }
 0x229   : > { %2865 = vst.msk [vmem:[%s5087_s26 + $0x58] sm:$0xf] %vm2842_vm5, %v3367_v62  ;;  %v3368_v28 = vpack.c.bf16 %v2705_v49, %v2705_v49 }
 0x22b   : > { %2866 = vst.msk [vmem:[%s5087_s26 + $0x5c] sm:$0xf] %vm2842_vm5, %v3368_v28 }
 0x22c PF: > { %s14_s17 = sadd.s32 1, %s3787_s17   ;;  %s5305_s15 = smov %s3783_s16 }
 0x22d   : > { %p11_p5 = scmp.ge.s32.totalorder %s14_s17, 4   ;;  %s5306_s16 = smov %s5308_s18 }
 0x22f   :  { %13 = sbr.rel (!%p11_p5) target bundleno = 2 (0x2), region = 77 }

// kernel: down_block_3d.8
= control target key start
LH: loop header
LB: loop body
LE: loop exit
PB: predicated region body
PF: predicated region fallthrough
CT: control target
= control target key end

     0   :  { %s4894_s21 = smov 0   ;;  %s4896_s22 = smov 0   ;;  %s6491_s0 = inlined_call_operand.vmem [shape: bf16[2,18,18,64], index: 0, kind: input, shape index: {}]   ;;  %s6492_s1 = inlined_call_operand.vmem [shape: bf16[576,64], index: 1, kind: input, shape index: {}]   ;;  %s6493_s2 = inlined_call_operand.vmem [shape: f32[1,64], index: 2, kind: input, shape index: {}]   ;;  %s6494_s3 = inlined_call_operand.vmem [shape: bf16[2,16,16,32], index: 3, kind: input, shape index: {}]   ;;  %s6495_s4 = inlined_call_operand.vmem [shape: bf16[32,64], index: 4, kind: input, shape index: {}]   ;;  %s6496_s5 = inlined_call_operand.vmem [shape: f32[1,64], index: 5, kind: input, shape index: {}]   ;;  %s6497_s6 = inlined_call_operand.vmem [shape: bf16[2,16,16,64], index: 6, kind: output, shape index: {}]  }
   0x1   :  { %s4898_s23 = smov 0  }
   0x2 LB: > { %s28_s24 = sadd.s32 1, %s4852_s22  ;;  %p3668_p0 = scmp.ge.s32.totalorder %s4856_s23, 1  ;;  %s4856_s23 = sphi %s4898_s23, %s16_s23   ;;  %s4852_s22 = sphi %s4896_s22, %s6617_s22   ;;  %s4848_s21 = sphi %s4894_s21, %s6616_s21  }
   0x3   : > { %p30_p1 = scmp.ge.s32.totalorder %s28_s24, 2  ;;  %p270_p2 = scmp.lt.s32.totalorder %s4856_s23, 3 }
   0x5   : > { %s6619_s24 = smov (%p30_p1, %s28_s24), 0  ;;  %p271_p3 = pnand %p3668_p0, %p270_p2 }
   0x7   : > { %274 = sbr.rel (%p271_p3) target bundleno = 544 (0x220), region = 44 }
   0xe   : > { %p322_p4 = scmp.lt.s32.totalorder %s4848_s21, 1  ;;  %v4638_v0 = vld [vmem:[%s6495_s4] sm:$0xff]   ;;  %v4643_v1 = vld [vmem:[%s6495_s4 + $0x8] sm:$0xff]   ;;  %vm2359_vm0 = vcmask 261120   ;;  %s4858_s19 = smov 64   ;;  %vm950_vm2 = vcmask 1046528  }
   0xf   : > { %4364 = vmatprep.subr.bf16.mxu0 %v4638_v0  ;;  %v4663_v2 = vld [vmem:[%s6492_s1 + $0x40] sm:$0xff]   ;;  %v4671_v4 = vld [vmem:[%s6492_s1 + $0x48] sm:$0xff]   ;;  %vm677_vm1 = vsmask.f32 7424  ;;  %vm1927_vm3 = vcmask 523264   ;;  %vm3483_vm4 = vcmask 519168  }
  0x10   : > { %s6621_s21 = smov (!%p322_p4, %s4848_s21), 1  ;;  %4365 = vmatpush3.bf16.msra.mxu0 %v4638_v0  ;;  %4120 = vmatprep.subr.bf16.mxu1 %v4663_v2  ;;  %v4665_v3 = vld [vmem:[%s6492_s1] sm:$0xff]  }
  0x11   : > { %s4552_s7 = smul.u32 216, %s6621_s21  ;;  %4366 = vmatprep.subr.bf16.mxu0 %v4643_v1  ;;  %s4068_s8 = sshll.u32 %s6621_s21, 7  ;;  %4121 = vmatpush3.bf16.msra.mxu1 %v4665_v3 }
  0x12   : > { %s4936_s15 = scalar_lea.vmem %s6494_s3, %s4068_s8  ;;  %4122 = vmatprep.subr.bf16.mxu1 %v4671_v4  ;;  %s6332_s28 = scalar_lea.vmem %s6497_s6, %s4068_s8 }
  0x13   : > { %s4941_s18 = scalar_lea.vmem %s6491_s0, %s4552_s7  ;;  %v4645_v5 = vld [vmem:[%s4936_s15] sm:$0xff]   ;;  %v4648_v30 = vld [vmem:[%s4936_s15 + $0x8] sm:$0xff]  }
  0x14   : > { %v3674_v6 = vld [vmem:[%s4941_s18 + $0xc] sm:$0xf]  ;;  %v4946_v7 = vld [vmem:[%s4941_s18 + $0x10] sm:$0xf]  ;;  %4367 = vmatpush3.bf16.msra.mxu0 %v4643_v1  ;;  %v3676_v9 = vld [vmem:[%s4941_s18 + $0x18] sm:$0xf]  ;;  %4368 = vmatprep.mubr.msk.bf16.mxu0 %vm2359_vm0, %v4645_v5 }
  0x15   : > { %v4949_v8 = vcombine.low %v3674_v6, %v4946_v7  ;;  %v4953_v10 = vld [vmem:[%s4941_s18 + $0x1c] sm:$0xf]  ;;  %v355_v12 = vld [vmem:[%s4941_s18] sm:$0xf]  ;;  %v356_v13 = vld [vmem:[%s4941_s18 + $0x4] sm:$0xf] }
  0x16   : > { %v4957_v11 = vcombine.low %v3676_v9, %v4953_v10  ;;  %v4963_v14 = vcombine.low %v355_v12, %v356_v13  ;;  %v4583_v15 = vld [vmem:[%s4941_s18 + $0x8] ss:$0 sps:$4 sm:$0x11]   ;;  %v357_v16 = vld [vmem:[%s4941_s18 + $0xc] sm:$0xf] }
  0x17   : > { %1079 = vrot.lane.b32.xlu0 %v4949_v8, %s4858_s19  ;;  %v358_v17 = vld [vmem:[%s4941_s18 + $0x10] sm:$0xf]  ;;  %v686_v20 = vshll.u32 %v4583_v15, 16  ;;  %v4585_v22 = vld [vmem:[%s4941_s18 + $0x14] ss:$0 sps:$4 sm:$0x11]   ;;  %4369 = vmatmul.mubr.msk.bf16.vlgmr.msra.gmra.mrb[0].mxu0 %vm2359_vm0, %v4648_v30 }
  0x18   : > { %1081 = vrot.lane.b32.xlu1 %v4957_v11, %s4858_s19  ;;  %v679_v18 = vshrl.u32 %v4963_v14, 16  ;;  %v681_v19 = vshll.u32 %v4963_v14, 16  ;;  %v4972_v21 = vcombine.low %v357_v16, %v358_v17  ;;  %v3678_v25 = vld [vmem:[%s4941_s18 + $0x24] sm:$0xf]  ;;  %v698_v28 = vshll.u32 %v4585_v22, 16 }
  0x19   : > { %v688_v24 = vrot.slane %v686_v20, 1  ;;  %v359_v29 = vld [vmem:[%s4941_s18 + $0x18] sm:$0xf]  ;;  %v4981_v32 = vld [vmem:[%s4941_s18 + $0x28] sm:$0xf] }
  0x1a   : > { %v683_v23 = vrot.slane %v681_v19, 1  ;;  %v691_v26 = vshrl.u32 %v4972_v21, 16  ;;  %v693_v27 = vshll.u32 %v4972_v21, 16  ;;  %v360_v33 = vld [vmem:[%s4941_s18 + $0x1c] sm:$0xf]  ;;  %v700_v35 = vrot.slane %v698_v28, 1 }
  0x1b   : > { %v4986_v37 = vcombine.low %v359_v29, %v360_v33  ;;  %v4589_v38 = vld [vmem:[%s4941_s18 + $0x20] ss:$0 sps:$4 sm:$0x11]   ;;  %v3680_v39 = vld [vmem:[%s4941_s18 + $0x30] sm:$0xf]  ;;  %v4992_v41 = vcombine.low %v3678_v25, %v4981_v32 }
  0x1c   : > { %v684_v31 = vor.u32 %v683_v23, %v679_v18  ;;  %v695_v34 = vrot.slane %v693_v27, 1  ;;  %v4995_v42 = vld [vmem:[%s4941_s18 + $0x34] sm:$0xf]  ;;  %v361_v43 = vld [vmem:[%s4941_s18 + $0x24] sm:$0xf]  ;;  %v710_v47 = vshll.u32 %v4589_v38, 16 }
  0x1d   : > { %v362_v44 = vld [vmem:[%s4941_s18 + $0x28] sm:$0xf]  ;;  %v703_v45 = vshrl.u32 %v4986_v37, 16  ;;  %v705_v46 = vshll.u32 %v4986_v37, 16  ;;  %v3722_v48 = vld [vmem:[%s4941_s18 + $0xc] sm:$0xe]  ;;  %v5014_v56 = vcombine.low %v3680_v39, %v4995_v42 }
  0x1e   : > { %v689_v36 = vsel %vm677_vm1, %v684_v31, %v688_v24  ;;  %v696_v40 = vor.u32 %v695_v34, %v691_v26  ;;  %v5003_v50 = vcombine.low %v361_v43, %v362_v44  ;;  %v4593_v51 = vld [vmem:[%s4941_s18 + $0x2c] ss:$0 sps:$4 sm:$0x11]   ;;  %v712_v53 = vrot.slane %v710_v47, 1  ;;  %v3682_v54 = vld [vmem:[%s4941_s18 + $0x3c] sm:$0xf] }
  0x1f   : > { %870 = vrot.lane.b32.xlu0 %v689_v36, %s4858_s19  ;;  %v707_v52 = vrot.slane %v705_v46, 1  ;;  %v5009_v55 = vld [vmem:[%s4941_s18 + $0x40] sm:$0xf]  ;;  %v722_v59 = vshll.u32 %v4593_v51, 16  ;;  %v363_v60 = vld [vmem:[%s4941_s18 + $0x30] sm:$0xf]  ;;  %v3882_v4 = vcombine.low %v3722_v48, %v4946_v7 }
  0x20   : > { %v701_v49 = vsel %vm677_vm1, %v696_v40, %v700_v35  ;;  %v715_v57 = vshrl.u32 %v5003_v50, 16  ;;  %v717_v58 = vshll.u32 %v5003_v50, 16  ;;  %v364_v62 = vld [vmem:[%s4941_s18 + $0x34] sm:$0xf]  ;;  %v3738_v63 = vld [vmem:[%s4941_s18 + $0x18] sm:$0xf]  ;;  %v5027_v6 = vcombine.low %v3682_v54, %v5009_v55 }
  0x21   : > { %872 = vrot.lane.b32.xlu1 %v701_v49, %s4858_s19  ;;  %v708_v61 = vor.u32 %v707_v52, %v703_v45  ;;  %v724_v1 = vrot.slane %v722_v59, 1  ;;  %v5021_v2 = vcombine.low %v363_v60, %v364_v62  ;;  %v4597_v3 = vld [vmem:[%s4941_s18 + $0x38] ss:$0 sps:$4 sm:$0x11]   ;;  %v3739_v9 = vld [vmem:[%s4941_s18 + $0x1c] sm:$0xf] }
  0x22   : > { %v719_v0 = vrot.slane %v717_v58, 1  ;;  %v734_v16 = vshll.u32 %v4597_v3, 16  ;;  %v4599_v7 = vld [vmem:[%s4941_s18 + $0x20] ss:$0 sps:$4 sm:$0x11]   ;;  %v5036_v17 = vcombine.low %v3738_v63, %v3739_v9  ;;  %v4654_v24 = vld [vmem:[%s4936_s15 + $0x10] sm:$0xff]  }
  0x23   : > { %1083 = vrot.lane.b32.xlu0 %v4992_v41, %s4858_s19  ;;  %v713_v5 = vsel %vm677_vm1, %v708_v61, %v712_v53  ;;  %v727_v13 = vshrl.u32 %v5021_v2, 16  ;;  %v729_v15 = vshll.u32 %v5021_v2, 16  ;;  %v4600_v18 = vld [vmem:[%s4941_s18 + $0x14] ss:$0 sps:$4 sm:$0x11]   ;;  %v1615_v23 = vshll.u32 %v4599_v7, 16  ;;  %4372 = vmatprep.mubr.msk.bf16.mxu0 %vm2359_vm0, %v4654_v24 }
  0x24   : > { %v720_v12 = vor.u32 %v719_v0, %v715_v57  ;;  %v736_v22 = vrot.slane %v734_v16, 1  ;;  %v3723_v25 = vld [vmem:[%s4941_s18 + $0x18] sm:$0xe]  ;;  %v1608_v26 = vshrl.u32 %v5036_v17, 16  ;;  %v1610_v27 = vshll.u32 %v5036_v17, 16  ;;  %v4664_v45 = vld [vmem:[%s4936_s15 + $0x20] sm:$0xff]  }
  0x25   : > { %874 = vrot.lane.b32.xlu1 %v713_v5, %s4858_s19  ;;  %v731_v20 = vrot.slane %v729_v15, 1  ;;  %v1617_v29 = vrot.slane %v1615_v23, 1  ;;  %v1399_v30 = vrot.slane %v3882_v4, 1  ;;  %v1400_v31 = vrot.slane %v4600_v18, 1  ;;  %v365_v33 = vld [vmem:[%s4941_s18 + $0x3c] sm:$0xf] }
  0x26   : > { %v725_v19 = vsel %vm677_vm1, %v720_v12, %v724_v1  ;;  %v1612_v34 = vrot.slane %v1610_v27, 1  ;;  %v3684_v35 = vld [vmem:[%s4941_s18 + $0x48] sm:$0xf]  ;;  %v366_v36 = vld [vmem:[%s4941_s18 + $0x40] sm:$0xf]  ;;  %v4657_v38 = vld [vmem:[%s4936_s15 + $0x18] sm:$0xff]   ;;  %v3883_v46 = vcombine.low %v3723_v25, %v4953_v10 }
  0x27   : > { %1085 = vrot.lane.b32.xlu0 %v5014_v56, %s4858_s19  ;;  %v732_v28 = vor.u32 %v731_v20, %v727_v13  ;;  %v5054_v40 = vld [vmem:[%s4941_s18 + $0x4c] sm:$0xf]  ;;  %v5056_v43 = vcombine.low %v365_v33, %v366_v36  ;;  %v4604_v44 = vld [vmem:[%s4941_s18 + $0x44] ss:$0 sps:$4 sm:$0x11]   ;;  %4373 = vmatmul.mubr.msk.bf16.gmra.mrb[4].mxu0 %vm2359_vm0, %v4657_v38  ;;  %v1401_v57 = vsel %vm950_vm2, %v1399_v30, %v1400_v31 }
  0x28   : > { %v1613_v47 = vor.u32 %v1612_v34, %v1608_v26  ;;  %v3740_v48 = vld [vmem:[%s4941_s18 + $0x24] sm:$0xf]  ;;  %v3741_v49 = vld [vmem:[%s4941_s18 + $0x28] sm:$0xf]  ;;  %v746_v53 = vshll.u32 %v4604_v44, 16  ;;  %4376 = vmatprep.mubr.msk.bf16.mxu0 %vm2359_vm0, %v4664_v45  ;;  %v5076_v60 = vcombine.low %v3684_v35, %v5054_v40  ;;  %v1402_v4 = vrot.slane %v3883_v46, 1 }
  0x29   : > { %876 = vrot.lane.b32.xlu1 %v725_v19, %s4858_s19  ;;  %v737_v39 = vsel %vm677_vm1, %v732_v28, %v736_v22  ;;  %v739_v51 = vshrl.u32 %v5056_v43, 16  ;;  %v741_v52 = vshll.u32 %v5056_v43, 16  ;;  %v5070_v10 = vcombine.low %v3740_v48, %v3741_v49  ;;  %v4606_v58 = vld [vmem:[%s4941_s18 + $0x2c] ss:$0 sps:$4 sm:$0x11]  }
  0x2a   : > { %v1618_v54 = vsel %vm677_vm1, %v1613_v47, %v1617_v29  ;;  %v4607_v59 = vld [vmem:[%s4941_s18 + $0x20] ss:$0 sps:$4 sm:$0x11]   ;;  %v748_v62 = vrot.slane %v746_v53, 1  ;;  %v3724_v63 = vld [vmem:[%s4941_s18 + $0x24] sm:$0xe] }
  0x2b   : > { %1087 = vrot.lane.b32.xlu0 %v5027_v6, %s4858_s19  ;;  %v743_v61 = vrot.slane %v741_v52, 1  ;;  %v1620_v0 = vshrl.u32 %v5070_v10, 16  ;;  %v1622_v1 = vshll.u32 %v5070_v10, 16  ;;  %v1627_v3 = vshll.u32 %v4606_v58, 16  ;;  %v3686_v12 = vld [vmem:[%s4941_s18 + $0x54] sm:$0xf] }
  0x2c   : > { %v1403_v9 = vrot.slane %v4607_v59, 1  ;;  %v367_v13 = vld [vmem:[%s4941_s18 + $0x48] sm:$0xf]  ;;  %v368_v15 = vld [vmem:[%s4941_s18 + $0x4c] sm:$0xf]  ;;  %v3884_v26 = vcombine.low %v3724_v63, %v4981_v32 }
  0x2d   : > { %878 = vrot.lane.b32.xlu1 %v737_v39, %s4858_s19  ;;  %v744_v5 = vor.u32 %v743_v61, %v739_v51  ;;  %v4668_v16 = vld [vmem:[%s4936_s15 + $0x28] sm:$0xff]   ;;  %v1624_v7 = vrot.slane %v1622_v1, 1  ;;  %v1629_v18 = vrot.slane %v1627_v3, 1  ;;  %v5086_v19 = vcombine.low %v367_v13, %v368_v15  ;;  %v3742_v20 = vld [vmem:[%s4941_s18 + $0x30] sm:$0xf] }
  0x2e   : > { %v5093_v23 = vld [vmem:[%s4941_s18 + $0x58] sm:$0xf]  ;;  %v4611_v24 = vld [vmem:[%s4941_s18 + $0x50] ss:$0 sps:$4 sm:$0x11]   ;;  %v4672_v25 = vld [vmem:[%s6492_s1 + $0x8] sm:$0xff]   ;;  %v1404_v32 = vsel %vm950_vm2, %v1402_v4, %v1403_v9 }
  0x2f   : > { %1799 = vrot.lane.b32.xlu0 %v1618_v54, %s4858_s19  ;;  %6536 = vst [vmem:[#allocation2_spill] sm:$0xff] %v5086_v19  ;;  %v749_v22 = vsel %vm677_vm1, %v744_v5, %v748_v62  ;;  %v1625_v27 = vor.u32 %v1624_v7, %v1620_v0  ;;  %v751_v28 = vshrl.u32 %v5086_v19, 16  ;;  %v753_v29 = vshll.u32 %v5086_v19, 16  ;;  %v3743_v30 = vld [vmem:[%s4941_s18 + $0x34] sm:$0xf]  ;;  %4377 = vmatmul.mubr.msk.bf16.gmra.mrb[8].mxu0 %vm2359_vm0, %v4668_v16  ;;  %v5129_v0 = vld [vmem:[%s6492_s1 + $0xc0] sm:$0xff]  }
  0x30   : > { %v758_v31 = vshll.u32 %v4611_v24, 16  ;;  %v5105_v33 = vcombine.low %v3742_v20, %v3743_v30  ;;  %v4613_v34 = vld [vmem:[%s4941_s18 + $0x38] ss:$0 sps:$4 sm:$0x11]   ;;  %4123 = vmatpush3.bf16.msra.mxu1 %v4672_v25  ;;  %v5111_v36 = vcombine.low %v3686_v12, %v5093_v23  ;;  %v3725_v48 = vld [vmem:[%s4941_s18 + $0x30] sm:$0xe]  ;;  %4232 = vmatprep.subr.bf16.mxu0 %v5129_v0 }
  0x31   : > { %1447 = vrot.lane.b32.xlu1 %v1401_v57, %s4858_s19  ;;  %v1630_v35 = vsel %vm677_vm1, %v1625_v27, %v1629_v18  ;;  %v755_v38 = vrot.slane %v753_v29, 1  ;;  %v4614_v39 = vld [vmem:[%s4941_s18 + $0x2c] ss:$0 sps:$4 sm:$0x11]   ;;  %v1639_v47 = vshll.u32 %v4613_v34, 16  ;;  %v1405_v51 = vrot.slane %v3884_v26, 1 }
  0x32   : > { %v760_v44 = vrot.slane %v758_v31, 1  ;;  %v1632_v45 = vshrl.u32 %v5105_v33, 16  ;;  %v1634_v46 = vshll.u32 %v5105_v33, 16  ;;  %v1406_v52 = vrot.slane %v4614_v39, 1  ;;  %v369_v57 = vld [vmem:[%s4941_s18 + $0x54] sm:$0xf] }
  0x33   : > { %1089 = vrot.lane.b32.xlu0 %v5076_v60, %s4858_s19  ;;  %v756_v49 = vor.u32 %v755_v38, %v751_v28  ;;  %v1641_v54 = vrot.slane %v1639_v47, 1  ;;  %v370_v58 = vld [vmem:[%s4941_s18 + $0x58] sm:$0xf]  ;;  %v3688_v61 = vld [vmem:[%s4941_s18 + $0x60] sm:$0xf]  ;;  %v3885_v7 = vcombine.low %v3725_v48, %v4995_v42 }
  0x34   : > { %v1636_v53 = vrot.slane %v1634_v46, 1  ;;  %v5123_v62 = vcombine.low %v369_v57, %v370_v58  ;;  %v4618_v63 = vld [vmem:[%s4941_s18 + $0x5c] ss:$0 sps:$4 sm:$0x11]   ;;  %v5134_v3 = vld [vmem:[%s4941_s18 + $0x64] sm:$0xf]  ;;  %v1407_v20 = vsel %vm950_vm2, %v1405_v51, %v1406_v52 }
  0x35   : > { %880 = vrot.lane.b32.xlu1 %v749_v22, %s4858_s19  ;;  %v761_v59 = vsel %vm677_vm1, %v756_v49, %v760_v44  ;;  %v3744_v4 = vld [vmem:[%s4941_s18 + $0x3c] sm:$0xf]  ;;  %v3745_v5 = vld [vmem:[%s4941_s18 + $0x40] sm:$0xf]  ;;  %v770_v13 = vshll.u32 %v4618_v63, 16  ;;  %v5158_v42 = vcombine.low %v3688_v61, %v5134_v3  ;;  %v4678_v51 = vld [vmem:[%s6492_s1 + $0x50] sm:$0xff]  }
  0x36   : > { %6537 = vst [vmem:[#allocation3_spill] sm:$0xff] %v5123_v62  ;;  %v1637_v1 = vor.u32 %v1636_v53, %v1632_v45  ;;  %v763_v9 = vshrl.u32 %v5123_v62, 16  ;;  %v765_v12 = vshll.u32 %v5123_v62, 16  ;;  %v5140_v15 = vcombine.low %v3744_v4, %v3745_v5  ;;  %v5146_v16 = vld [vmem:[%s6492_s1 + $0x80] sm:$0xff]   ;;  %v3726_v30 = vld [vmem:[%s4941_s18 + $0x3c] sm:$0xe]  ;;  %4124 = vmatprep.subr.bf16.mxu1 %v4678_v51 }
  0x37   : > { %1801 = vrot.lane.b32.xlu0 %v1630_v35, %s4858_s19  ;;  %v4620_v22 = vld [vmem:[%s4941_s18 + $0x44] ss:$0 sps:$4 sm:$0x11]   ;;  %v772_v25 = vrot.slane %v770_v13, 1  ;;  %4233 = vmatpush3.bf16.msra.mxu0 %v5146_v16  ;;  %v371_v35 = vld [vmem:[%s4941_s18 + $0x60] sm:$0xf] }
  0x38   : > { %v1642_v18 = vsel %vm677_vm1, %v1637_v1, %v1641_v54  ;;  %v767_v24 = vrot.slane %v765_v12, 1  ;;  %v1644_v26 = vshrl.u32 %v5140_v15, 16  ;;  %v1646_v27 = vshll.u32 %v5140_v15, 16  ;;  %v4621_v29 = vld [vmem:[%s4941_s18 + $0x38] ss:$0 sps:$4 sm:$0x11]  }
  0x39   : > { %1449 = vrot.lane.b32.xlu1 %v1404_v32, %s4858_s19  ;;  %v1651_v28 = vshll.u32 %v4620_v22, 16  ;;  %v372_v38 = vld [vmem:[%s4941_s18 + $0x64] sm:$0xf]  ;;  %v1408_v45 = vrot.slane %v3885_v7, 1  ;;  %v1409_v46 = vrot.slane %v4621_v29, 1  ;;  %v4679_v63 = vld [vmem:[%s4936_s15 + $0x30] sm:$0xff]   ;;  %v3886_v1 = vcombine.low %v3726_v30, %v5009_v55 }
  0x3a   : > { %v768_v31 = vor.u32 %v767_v24, %v763_v9  ;;  %v1648_v34 = vrot.slane %v1646_v27, 1  ;;  %v3690_v47 = vld [vmem:[%s4941_s18 + $0x6c] sm:$0xf]  ;;  %v5168_v48 = vld [vmem:[%s4941_s18 + $0x70] sm:$0xf]  ;;  %v5176_v52 = vcombine.low %v371_v35, %v372_v38  ;;  %4380 = vmatprep.mubr.msk.bf16.mxu0 %vm2359_vm0, %v4679_v63  ;;  %v4681_v63 = vld [vmem:[%s4936_s15 + $0x38] sm:$0xff]  }
  0x3b   : > { %1091 = vrot.lane.b32.xlu0 %v5111_v36, %s4858_s19  ;;  %v1653_v32 = vrot.slane %v1651_v28, 1  ;;  %v4625_v49 = vld [vmem:[%s4941_s18 + $0x68] ss:$0 sps:$4 sm:$0x11]   ;;  %v3747_v54 = vld [vmem:[%s4941_s18 + $0x4c] sm:$0xf]  ;;  %v1410_v12 = vsel %vm950_vm2, %v1408_v45, %v1409_v46  ;;  %v5196_v55 = vcombine.low %v3690_v47, %v5168_v48  ;;  %4381 = vmatmul.mubr.msk.bf16.gmra.mrb[12].mxu0 %vm2359_vm0, %v4681_v63 }
  0x3c   : > { %v773_v39 = vsel %vm677_vm1, %v768_v31, %v772_v25  ;;  %v1649_v44 = vor.u32 %v1648_v34, %v1644_v26  ;;  %6538 = vst [vmem:[#allocation4_spill] sm:$0xff] %v5176_v52  ;;  %v3746_v53 = vld [vmem:[%s4941_s18 + $0x48] sm:$0xf]  ;;  %v782_v58 = vshll.u32 %v4625_v49, 16  ;;  %v775_v4 = vshrl.u32 %v5176_v52, 16  ;;  %v4680_v31 = vld [vmem:[%s6492_s1 + $0x10] sm:$0xff]  }
  0x3d   : > { %882 = vrot.lane.b32.xlu1 %v761_v59, %s4858_s19  ;;  %v5181_v59 = vcombine.low %v3746_v53, %v3747_v54  ;;  %v4627_v61 = vld [vmem:[%s4941_s18 + $0x50] ss:$0 sps:$4 sm:$0x11]   ;;  %v777_v5 = vshll.u32 %v5176_v52, 16  ;;  %v3727_v9 = vld [vmem:[%s4941_s18 + $0x48] sm:$0xe]  ;;  %4125 = vmatpush3.bf16.msra.mxu1 %v4680_v31 }
  0x3e   : > { %v1654_v57 = vsel %vm677_vm1, %v1649_v44, %v1653_v32  ;;  %v784_v22 = vrot.slane %v782_v58, 1  ;;  %v4628_v24 = vld [vmem:[%s4941_s18 + $0x44] ss:$0 sps:$4 sm:$0x11]   ;;  %v373_v27 = vld [vmem:[%s4941_s18 + $0x6c] sm:$0xf]  ;;  %v3887_v45 = vcombine.low %v3727_v9, %v5054_v40 }
  0x3f   : > { %1803 = vrot.lane.b32.xlu0 %v1642_v18, %s4858_s19  ;;  %6539 = vst [vmem:[#allocation5_spill] sm:$0xff] %v5181_v59  ;;  %v1656_v13 = vshrl.u32 %v5181_v59, 16  ;;  %v1658_v7 = vshll.u32 %v5181_v59, 16  ;;  %v1663_v18 = vshll.u32 %v4627_v61, 16  ;;  %v374_v28 = vld [vmem:[%s4941_s18 + $0x70] sm:$0xf] }
  0x40   : > { %v1411_v30 = vrot.slane %v3886_v1, 1  ;;  %v1412_v35 = vrot.slane %v4628_v24, 1  ;;  %v3692_v32 = vld [vmem:[%s4941_s18 + $0x78] sm:$0xf]  ;;  %v5206_v38 = vcombine.low %v373_v27, %v374_v28  ;;  %v3748_v44 = vld [vmem:[%s4941_s18 + $0x54] sm:$0xf] }
  0x41   : > { %1451 = vrot.lane.b32.xlu1 %v1407_v20, %s4858_s19  ;;  %v779_v20 = vrot.slane %v777_v5, 1  ;;  %v1660_v25 = vrot.slane %v1658_v7, 1  ;;  %v1665_v26 = vrot.slane %v1663_v18, 1  ;;  %v5215_v47 = vld [vmem:[%s4941_s18 + $0x7c] sm:$0xf] }
  0x42   : > { %6540 = vst [vmem:[#allocation6_spill] sm:$0xff] %v5206_v38  ;;  %v3749_v49 = vld [vmem:[%s4941_s18 + $0x58] sm:$0xf]  ;;  %v787_v53 = vshrl.u32 %v5206_v38, 16  ;;  %v789_v54 = vshll.u32 %v5206_v38, 16  ;;  %v1413_v1 = vsel %vm950_vm2, %v1411_v30, %v1412_v35  ;;  %v5234_v7 = vcombine.low %v3692_v32, %v5215_v47  ;;  %v5254_v35 = vld [vmem:[%s6492_s1 + $0x88] sm:$0xff]  }
  0x43   : > { %1093 = vrot.lane.b32.xlu0 %v5158_v42, %s4858_s19  ;;  %v780_v29 = vor.u32 %v779_v20, %v775_v4  ;;  %v1661_v34 = vor.u32 %v1660_v25, %v1656_v13  ;;  %v4634_v58 = vld [vmem:[%s4941_s18 + $0x5c] ss:$0 sps:$4 sm:$0x11]   ;;  %v5223_v40 = vcombine.low %v3748_v44, %v3749_v49  ;;  %v4635_v61 = vld [vmem:[%s4941_s18 + $0x50] ss:$0 sps:$4 sm:$0x11]  }
  0x44   : > { %v791_v4 = vrot.slane %v789_v54, 1  ;;  %v1675_v9 = vshll.u32 %v4634_v58, 16  ;;  %6542 = vst [vmem:[#allocation8_spill] sm:$0xff] %v5234_v7  ;;  %v1415_v27 = vrot.slane %v4635_v61, 1  ;;  %v375_v28 = vld [vmem:[%s4941_s18 + $0x78] sm:$0xf] }
  0x45   : > { %884 = vrot.lane.b32.xlu1 %v773_v39, %s4858_s19  ;;  %v4632_v39 = vld [vmem:[%s4941_s18 + $0x74] ss:$0 sps:$4 sm:$0x11]   ;;  %v785_v46 = vsel %vm677_vm1, %v780_v29, %v784_v22  ;;  %v1666_v51 = vsel %vm677_vm1, %v1661_v34, %v1665_v26  ;;  %6541 = vst [vmem:[#allocation7_spill] sm:$0xff] %v5223_v40  ;;  %v1668_v18 = vshrl.u32 %v5223_v40, 16  ;;  %v1670_v20 = vshll.u32 %v5223_v40, 16 }
  0x46   : > { %v4683_v22 = vld [vmem:[%s6492_s1 + $0x18] sm:$0xff]   ;;  %v792_v24 = vor.u32 %v791_v4, %v787_v53  ;;  %v1677_v25 = vrot.slane %v1675_v9, 1  ;;  %v1414_v26 = vrot.slane %v3887_v45, 1  ;;  %v5246_v29 = vld [vmem:[%s6492_s1 + $0xc8] sm:$0xff]   ;;  %v3728_v30 = vld [vmem:[%s4941_s18 + $0x54] sm:$0xe] }
  0x47   : > { %1805 = vrot.lane.b32.xlu0 %v1654_v57, %s4858_s19  ;;  %v794_v57 = vshll.u32 %v4632_v39, 16  ;;  %v1672_v31 = vrot.slane %v1670_v20, 1  ;;  %v376_v34 = vld [vmem:[%s4941_s18 + $0x7c] sm:$0xf]  ;;  %v3694_v39 = vld [vmem:[%s4941_s18 + $0x84] sm:$0xf]  ;;  %4234 = vmatprep.subr.bf16.mxu0 %v5246_v29 }
  0x48   : > { %v5259_v44 = vld [vmem:[%s4941_s18 + $0x88] sm:$0xf]  ;;  %v5261_v45 = vcombine.low %v375_v28, %v376_v34  ;;  %v4686_v49 = vld [vmem:[%s6492_s1 + $0x60] sm:$0xff]   ;;  %4235 = vmatpush3.bf16.msra.mxu0 %v5254_v35  ;;  %v1416_v20 = vsel %vm950_vm2, %v1414_v26, %v1415_v27  ;;  %v4644_v28 = vld [vmem:[%s4941_s18 + $0x5c] ss:$0 sps:$4 sm:$0x11]  }
  0x49   : > { %1453 = vrot.lane.b32.xlu1 %v1410_v12, %s4858_s19  ;;  %v796_v5 = vrot.slane %v794_v57, 1  ;;  %v4682_v12 = vld [vmem:[%s6492_s1 + $0x58] sm:$0xff]   ;;  %v3750_v53 = vld [vmem:[%s4941_s18 + $0x60] sm:$0xf]  ;;  %v3751_v54 = vld [vmem:[%s4941_s18 + $0x64] sm:$0xf]  ;;  %v5289_v34 = vcombine.low %v3694_v39, %v5259_v44 }
  0x4a   : > { %4126 = vmatprep.subr.bf16.mxu1 %v4682_v12  ;;  %6543 = vst [vmem:[#allocation9_spill] sm:$0xff] %v5261_v45  ;;  %v799_v58 = vshrl.u32 %v5261_v45, 16  ;;  %v801_v61 = vshll.u32 %v5261_v45, 16  ;;  %v5280_v9 = vcombine.low %v3750_v53, %v3751_v54  ;;  %v4642_v12 = vld [vmem:[%s4941_s18 + $0x68] ss:$0 sps:$4 sm:$0x11]  }
  0x4b   : > { %1095 = vrot.lane.b32.xlu0 %v5196_v55, %s4858_s19  ;;  %4127 = vmatpush3.bf16.msra.mxu1 %v4683_v22  ;;  %v797_v32 = vsel %vm677_vm1, %v792_v24, %v796_v5  ;;  %v377_v26 = vld [vmem:[%s4941_s18 + $0x84] sm:$0xf]  ;;  %v1418_v53 = vrot.slane %v4644_v28, 1  ;;  %v3696_v54 = vld [vmem:[%s4941_s18 + $0x90] sm:$0xf] }
  0x4c   : > { %4128 = vmatprep.subr.bf16.mxu1 %v4686_v49  ;;  %6544 = vst [vmem:[#allocation10_spill] sm:$0xff] %v5280_v9  ;;  %v803_v22 = vrot.slane %v801_v61, 1  ;;  %v378_v49 = vld [vmem:[%s4941_s18 + $0x88] sm:$0xf]  ;;  %v5299_v61 = vld [vmem:[%s4941_s18 + $0x94] sm:$0xf] }
  0x4d   : > { %886 = vrot.lane.b32.xlu1 %v785_v46, %s4858_s19  ;;  %v4640_v46 = vld [vmem:[%s4941_s18 + $0x80] ss:$0 sps:$4 sm:$0x11]   ;;  %v4662_v4 = vld [vmem:[%s4941_s18 + $0x74] ss:$0 sps:$4 sm:$0x11]  }
  0x4e   : > { %v806_v63 = vshll.u32 %v4640_v46, 16  ;;  %v3760_v59 = vld [vmem:[%s4941_s18 + $0x9c] sm:$0xf] }
  0x4f   : > { %1807 = vrot.lane.b32.xlu0 %v1666_v51, %s4858_s19  ;;  %v1673_v51 = vor.u32 %v1672_v31, %v1668_v18  ;;  %v3888_v18 = vcombine.low %v3728_v30, %v5093_v23  ;;  %v3729_v31 = vld [vmem:[%s4941_s18 + $0x60] sm:$0xe]  ;;  %v1682_v23 = vshll.u32 %v5280_v9, 16  ;;  %v1687_v30 = vshll.u32 %v4642_v12, 16 }
  0x50   : > { %v808_v24 = vrot.slane %v806_v63, 1  ;;  %v5301_v63 = vcombine.low %v377_v26, %v378_v49  ;;  %v4652_v26 = vld [vmem:[%s4941_s18 + $0x74] ss:$0 sps:$4 sm:$0x11]   ;;  %v5322_v49 = vcombine.low %v3696_v54, %v5299_v61 }
  0x51   : > { %1455 = vrot.lane.b32.xlu1 %v1413_v1, %s4858_s19  ;;  %v1678_v5 = vsel %vm677_vm1, %v1673_v51, %v1677_v25  ;;  %v1680_v25 = vshrl.u32 %v5280_v9, 16  ;;  %v1684_v27 = vrot.slane %v1682_v23, 1  ;;  %v1689_v46 = vrot.slane %v1687_v30, 1  ;;  %v380_v1 = vld [vmem:[%s4941_s18 + $0x94] sm:$0xf] }
  0x52   : > { %v1417_v39 = vrot.slane %v3888_v18, 1  ;;  %6545 = vst [vmem:[#allocation11_spill] sm:$0xff] %v5301_v63  ;;  %v3889_v23 = vcombine.low %v3729_v31, %v5134_v3  ;;  %v811_v18 = vshrl.u32 %v5301_v63, 16  ;;  %6547 = vst [vmem:[#allocation13_spill] sm:$0xff] %v5322_v49 }
  0x53   : > { %1097 = vrot.lane.b32.xlu0 %v5234_v7, %s4858_s19  ;;  %v1685_v12 = vor.u32 %v1684_v27, %v1680_v25  ;;  %v4653_v25 = vld [vmem:[%s4941_s18 + $0x68] ss:$0 sps:$4 sm:$0x11]  }
  0x54   : > { %v1419_v27 = vsel %vm950_vm2, %v1417_v39, %v1418_v53  ;;  %v1420_v39 = vrot.slane %v3889_v23, 1  ;;  %v1421_v53 = vrot.slane %v4653_v25, 1  ;;  %v4659_v25 = vld [vmem:[%s4941_s18 + $0x98] ss:$0 sps:$4 sm:$0x11]  }
  0x55   : > { %888 = vrot.lane.b32.xlu1 %v797_v32, %s4858_s19  ;;  %v804_v32 = vor.u32 %v803_v22, %v799_v58  ;;  %v4650_v58 = vld [vmem:[%s4941_s18 + $0x8c] ss:$0 sps:$4 sm:$0x11]   ;;  %v3753_v22 = vld [vmem:[%s4941_s18 + $0x70] sm:$0xf]  ;;  %v1690_v30 = vsel %vm677_vm1, %v1685_v12, %v1689_v46 }
  0x56   : > { %v818_v28 = vshll.u32 %v4650_v58, 16  ;;  %v1699_v58 = vshll.u32 %v4652_v26, 16  ;;  %v3731_v26 = vld [vmem:[%s4941_s18 + $0x78] sm:$0xe] }
  0x57   : > { %1809 = vrot.lane.b32.xlu0 %v1678_v5, %s4858_s19  ;;  %v809_v51 = vsel %vm677_vm1, %v804_v32, %v808_v24  ;;  %v4687_v5 = vld [vmem:[%s4936_s15 + $0x40] sm:$0xff]   ;;  %v813_v24 = vshll.u32 %v5301_v63, 16 }
  0x58   : > { %4384 = vmatprep.mubr.msk.bf16.mxu0 %vm2359_vm0, %v4687_v5  ;;  %v820_v31 = vrot.slane %v818_v28, 1  ;;  %v3730_v5 = vld [vmem:[%s4941_s18 + $0x6c] sm:$0xe]  ;;  %v3698_v28 = vld [vmem:[%s4941_s18 + $0x9c] sm:$0xf] }
  0x59   : > { %1457 = vrot.lane.b32.xlu1 %v1416_v20, %s4858_s19  ;;  %v3752_v20 = vld [vmem:[%s4941_s18 + $0x6c] sm:$0xf]  ;;  %v815_v3 = vrot.slane %v813_v24, 1  ;;  %v379_v24 = vld [vmem:[%s4941_s18 + $0x90] sm:$0xf] }
  0x5a   : > { %v5315_v32 = vcombine.low %v3752_v20, %v3753_v22  ;;  %v1701_v22 = vrot.slane %v1699_v58, 1  ;;  %v5338_v23 = vcombine.low %v379_v24, %v380_v1  ;;  %v1422_v1 = vsel %vm950_vm2, %v1420_v39, %v1421_v53 }
  0x5b   : > { %1099 = vrot.lane.b32.xlu0 %v5289_v34, %s4858_s19  ;;  %v816_v12 = vor.u32 %v815_v3, %v811_v18  ;;  %v4688_v3 = vld [vmem:[%s6492_s1 + $0x20] sm:$0xff]   ;;  %v830_v24 = vshll.u32 %v4659_v25, 16 }
  0x5c   : > { %6546 = vst [vmem:[#allocation12_spill] sm:$0xff] %v5315_v32  ;;  %v1692_v46 = vshrl.u32 %v5315_v32, 16  ;;  %6548 = vst [vmem:[#allocation14_spill] sm:$0xff] %v5338_v23  ;;  %4129 = vmatpush3.bf16.msra.mxu1 %v4688_v3 }
  0x5d   : > { %890 = vrot.lane.b32.xlu1 %v809_v51, %s4858_s19  ;;  %v1694_v51 = vshll.u32 %v5315_v32, 16  ;;  %v821_v54 = vsel %vm677_vm1, %v816_v12, %v820_v31  ;;  %v3755_v31 = vld [vmem:[%s4941_s18 + $0x7c] sm:$0xf]  ;;  %v823_v12 = vshrl.u32 %v5338_v23, 16  ;;  %v832_v39 = vrot.slane %v830_v24, 1 }
  0x5e   : > { %v4670_v24 = vld [vmem:[%s4941_s18 + $0xa4] ss:$0 sps:$4 sm:$0x11]  }
  0x5f   : > { %1811 = vrot.lane.b32.xlu0 %v1690_v30, %s4858_s19  ;;  %v1696_v20 = vrot.slane %v1694_v51, 1  ;;  %v5332_v30 = vld [vmem:[%s4941_s18 + $0xa0] sm:$0xf]  ;;  %v3890_v51 = vcombine.low %v3730_v5, %v5168_v48 }
  0x60   : > { %v5359_v48 = vcombine.low %v3698_v28, %v5332_v30  ;;  %v4689_v28 = vld [vmem:[%s4936_s15 + $0x48] sm:$0xff]  }
  0x61   : > { %1459 = vrot.lane.b32.xlu1 %v1419_v27, %s4858_s19  ;;  %v1697_v18 = vor.u32 %v1696_v20, %v1692_v46  ;;  %v3754_v27 = vld [vmem:[%s4941_s18 + $0x78] sm:$0xf]  ;;  %v825_v46 = vshll.u32 %v5338_v23, 16  ;;  %v4661_v20 = vld [vmem:[%s4941_s18 + $0x80] ss:$0 sps:$4 sm:$0x11]   ;;  %4385 = vmatmul.mubr.msk.bf16.gmra.mrb[16].mxu0 %vm2359_vm0, %v4689_v28 }
  0x62   : > { %v5353_v13 = vcombine.low %v3754_v27, %v3755_v31  ;;  %6550 = vst [vmem:[#allocation16_spill] sm:$0xff] %v5359_v48  ;;  %v1423_v3 = vrot.slane %v3890_v51, 1  ;;  %v1424_v31 = vrot.slane %v4662_v4, 1 }
  0x63   : > { %1101 = vrot.lane.b32.xlu0 %v5322_v49, %s4858_s19  ;;  %v1702_v58 = vsel %vm677_vm1, %v1697_v18, %v1701_v22  ;;  %v827_v5 = vrot.slane %v825_v46, 1  ;;  %v1711_v22 = vshll.u32 %v4661_v20, 16  ;;  %v3700_v46 = vld [vmem:[%s4941_s18 + $0xa8] sm:$0xf] }
  0x64   : > { %6549 = vst [vmem:[#allocation15_spill] sm:$0xff] %v5353_v13  ;;  %v1704_v53 = vshrl.u32 %v5353_v13, 16  ;;  %v1706_v18 = vshll.u32 %v5353_v13, 16  ;;  %v3733_v13 = vld [vmem:[%s4941_s18 + $0x90] sm:$0xe] }
  0x65   : > { %892 = vrot.lane.b32.xlu1 %v821_v54, %s4858_s19  ;;  %v3891_v54 = vcombine.low %v3731_v26, %v5215_v47  ;;  %v828_v25 = vor.u32 %v827_v5, %v823_v12  ;;  %v1713_v27 = vrot.slane %v1711_v22, 1  ;;  %v381_v47 = vld [vmem:[%s4941_s18 + $0x9c] sm:$0xf]  ;;  %v4690_v26 = vld [vmem:[%s6492_s1 + $0x68] sm:$0xff]   ;;  %v1425_v22 = vsel %vm950_vm2, %v1423_v3, %v1424_v31  ;;  %v5400_v3 = vld [vmem:[%s6492_s1 + $0x90] sm:$0xff]  }
  0x66   : > { %v5375_v12 = vld [vmem:[%s4941_s18 + $0xac] sm:$0xf]  ;;  %4130 = vmatprep.subr.bf16.mxu1 %v4690_v26  ;;  %v842_v26 = vshll.u32 %v4670_v24, 16  ;;  %v3762_v49 = vld [vmem:[%s4941_s18 + $0xa8] sm:$0xf] }
  0x67   : > { %1813 = vrot.lane.b32.xlu0 %v1702_v58, %s4858_s19  ;;  %v1708_v58 = vrot.slane %v1706_v18, 1  ;;  %v833_v20 = vsel %vm677_vm1, %v828_v25, %v832_v39  ;;  %v4691_v5 = vld [vmem:[%s6492_s1 + $0x28] sm:$0xff]   ;;  %v3756_v39 = vld [vmem:[%s4941_s18 + $0x84] sm:$0xf]  ;;  %v1426_v25 = vrot.slane %v3891_v54, 1  ;;  %v5404_v54 = vcombine.low %v3700_v46, %v5375_v12 }
  0x68   : > { %v3757_v18 = vld [vmem:[%s4941_s18 + $0x88] sm:$0xf]  ;;  %4131 = vmatpush3.bf16.msra.mxu1 %v4691_v5 }
  0x69   : > { %1461 = vrot.lane.b32.xlu1 %v1422_v1, %s4858_s19  ;;  %v382_v1 = vld [vmem:[%s4941_s18 + $0xa0] sm:$0xf]  ;;  %v1709_v4 = vor.u32 %v1708_v58, %v1704_v53  ;;  %v5392_v53 = vld [vmem:[%s6492_s1 + $0xd0] sm:$0xff]   ;;  %6552 = vst [vmem:[#allocation18_spill] sm:$0xff] %v5404_v54  ;;  %v5406_v31 = vcombine.low %v3756_v39, %v3757_v18 }
  0x6a   : > { %v5379_v51 = vcombine.low %v381_v47, %v382_v1  ;;  %4236 = vmatprep.subr.bf16.mxu0 %v5392_v53  ;;  %v4676_v39 = vld [vmem:[%s4941_s18 + $0x80] ss:$0 sps:$4 sm:$0x11]  }
  0x6b   : > { %1103 = vrot.lane.b32.xlu0 %v5359_v48, %s4858_s19  ;;  %v1714_v28 = vsel %vm677_vm1, %v1709_v4, %v1713_v27  ;;  %6553 = vst [vmem:[#allocation19_spill] sm:$0xff] %v5406_v31  ;;  %v4674_v27 = vld [vmem:[%s4941_s18 + $0x8c] ss:$0 sps:$4 sm:$0x11]   ;;  %v844_v4 = vrot.slane %v842_v26, 1  ;;  %4237 = vmatpush3.bf16.msra.mxu0 %v5400_v3  ;;  %v1716_v24 = vshrl.u32 %v5406_v31, 16 }
  0x6c   : > { %6551 = vst [vmem:[#allocation17_spill] sm:$0xff] %v5379_v51  ;;  %v835_v58 = vshrl.u32 %v5379_v51, 16  ;;  %v837_v47 = vshll.u32 %v5379_v51, 16  ;;  %v1718_v46 = vshll.u32 %v5406_v31, 16  ;;  %v1723_v5 = vshll.u32 %v4674_v27, 16  ;;  %v4695_v26 = vld [vmem:[%s4936_s15 + $0x50] sm:$0xff]  }
  0x6d   : > { %894 = vrot.lane.b32.xlu1 %v833_v20, %s4858_s19  ;;  %v4694_v20 = vld [vmem:[%s6492_s1 + $0x70] sm:$0xff]   ;;  %4388 = vmatprep.mubr.msk.bf16.mxu0 %vm2359_vm0, %v4695_v26 }
  0x6e   : > { %v839_v1 = vrot.slane %v837_v47, 1  ;;  %4132 = vmatprep.subr.bf16.mxu1 %v4694_v20  ;;  %v1725_v57 = vrot.slane %v1723_v5, 1  ;;  %v1427_v47 = vrot.slane %v4676_v39, 1  ;;  %v6554_v20 = vshll.u32 %v4949_v8, 16  ;;  %v3702_v5 = vld [vmem:[%s4941_s18 + $0xb4] sm:$0xf] }
  0x6f   : > { %1815 = vrot.lane.b32.xlu0 %v1714_v28, %s4858_s19  ;;  %v1720_v28 = vrot.slane %v1718_v46, 1  ;;  %v4698_v46 = vld [vmem:[%s6492_s1 + $0x78] sm:$0xff]   ;;  %v5660_v48 = vld [vmem:[%s4941_s18 + $0xb4] sm:$0xe] }
  0x70   : > { %v840_v18 = vor.u32 %v839_v1, %v835_v58  ;;  %v1428_v27 = vsel %vm950_vm2, %v1426_v25, %v1427_v47  ;;  %v5430_v1 = vrot.slane %v6554_v20, 1  ;;  %v5446_v39 = vld [vmem:[%s4941_s18 + $0xb8] sm:$0xf]  ;;  %v4776_v20 = vld [vmem:[%s4941_s18 + $0x8] ss:$0 sps:$4 sm:$0x11]  }
  0x71   : > { %1463 = vrot.lane.b32.xlu1 %v1425_v22, %s4858_s19  ;;  %v1721_v22 = vor.u32 %v1720_v28, %v1716_v24  ;;  %v5455_v26 = vcombine.low %v3702_v5, %v5446_v39  ;;  %v4777_v5 = vld [vmem:[%s4941_s18 + $0x4] sm:$0xf]  ;;  %v5479_v24 = vld [vmem:[%s6492_s1 + $0xd8] sm:$0xff]  }
  0x72   : > { %v845_v51 = vsel %vm677_vm1, %v840_v18, %v844_v4  ;;  %v6555_v4 = vshll.u32 %v4957_v11, 16  ;;  %v6556_v18 = vshll.u32 %v4992_v41, 16  ;;  %4238 = vmatprep.subr.bf16.mxu0 %v5479_v24 }
  0x73   : > { %1105 = vrot.lane.b32.xlu0 %v5404_v54, %s4858_s19  ;;  %v1726_v58 = vsel %vm677_vm1, %v1721_v22, %v1725_v57  ;;  %v4697_v57 = vld [vmem:[%s4936_s15 + $0x58] sm:$0xff]   ;;  %6557 = vst [vmem:[#allocation20_spill] sm:$0xff] %v5455_v26  ;;  %v5654_v54 = vld [vmem:[%s4941_s18 + $0xa0] sm:$0xf] }
  0x74   : > { %v5437_v25 = vrot.slane %v6555_v4, 1  ;;  %v5450_v28 = vrot.slane %v6556_v18, 1  ;;  %4389 = vmatmul.mubr.msk.bf16.gmra.mrb[20].mxu0 %vm2359_vm0, %v4697_v57  ;;  %v4701_v22 = vld [vmem:[%s6492_s1 + $0x38] sm:$0xff]   ;;  %v3732_v4 = vld [vmem:[%s4941_s18 + $0x84] sm:$0xe]  ;;  %6570 = vst [vmem:[#allocation32_spill] sm:$0xff] %v5654_v54 }
  0x75   : > { %896 = vrot.lane.b32.xlu1 %v845_v51, %s4858_s19  ;;  %v4696_v51 = vld [vmem:[%s6492_s1 + $0x30] sm:$0xff]   ;;  %v403_v57 = vld [vmem:[%s4941_s18] sm:$0xe]  ;;  %v3892_v63 = vcombine.low %v3732_v4, %v5259_v44 }
  0x76   : > { %4133 = vmatpush3.bf16.msra.mxu1 %v4696_v51  ;;  %v952_v51 = vrot.slane %v4776_v20, 1  ;;  %v3834_v47 = vcombine.low %v403_v57, %v4777_v5  ;;  %v1198_v20 = vshll.u32 %v5014_v56, 16  ;;  %v5505_v44 = vld [vmem:[%s6492_s1 + $0xe0] sm:$0xff]  }
  0x77   : > { %1817 = vrot.lane.b32.xlu0 %v1726_v58, %s4858_s19  ;;  %4134 = vmatprep.subr.bf16.mxu1 %v4698_v46  ;;  %v5462_v58 = vld [vmem:[%s4941_s18 + $0xac] sm:$0xf]  ;;  %v5473_v46 = vld [vmem:[%s4941_s18 + $0xb0] ss:$0 sps:$4 sm:$0x11]  }
  0x78   : > { %6558 = vst [vmem:[#allocation21_spill] sm:$0xff] %v5462_v58  ;;  %6560 = vst [vmem:[#allocation23_spill] sm:$0xff] %v5473_v46  ;;  %v854_v5 = vshll.u32 %v5473_v46, 16  ;;  %v951_v31 = vrot.slane %v3834_v47, 1  ;;  %v5498_v38 = vrot.slane %v1198_v20, 1  ;;  %v4719_v46 = vld [vmem:[%s4936_s15 + $0x78] sm:$0xff]  }
  0x79   : > { %1465 = vrot.lane.b32.xlu1 %v1428_v27, %s4858_s19  ;;  %v383_v27 = vld [vmem:[%s4941_s18 + $0xa8] sm:$0xf] }
  0x7a   : > { %v5469_v18 = vcombine.low %v383_v27, %v5462_v58  ;;  %4135 = vmatpush3.bf16.msra.mxu1 %v4701_v22  ;;  %v5487_v22 = vld [vmem:[%s6492_s1 + $0x98] sm:$0xff]   ;;  %v856_v7 = vrot.slane %v854_v5, 1  ;;  %v953_v32 = vsel %vm950_vm2, %v951_v31, %v952_v51  ;;  %v5511_v31 = vld [vmem:[%s6492_s1 + $0xa0] sm:$0xff]   ;;  %v385_v5 = vld [vmem:[%s4941_s18 + $0xb4] sm:$0xf] }
  0x7b   : > { %1107 = vrot.lane.b32.xlu0 %v5455_v26, %s4858_s19  ;;  %4440 = vmatprep.subr.bf16.mxu1 %v5129_v0  ;;  %v4708_v0 = vld [vmem:[%s4936_s15 + $0x68] sm:$0xff]   ;;  %v3704_v51 = vld [vmem:[%s4941_s18 + $0xc0] sm:$0xf] }
  0x7c   : > { %6559 = vst [vmem:[#allocation22_spill] sm:$0xff] %v5469_v18  ;;  %v847_v23 = vshrl.u32 %v5469_v18, 16  ;;  %v849_v27 = vshll.u32 %v5469_v18, 16  ;;  %4239 = vmatpush3.bf16.msra.mxu0 %v5487_v22  ;;  %v4707_v18 = vld [vmem:[%s4936_s15 + $0x60] sm:$0xff]  }
  0x7d   : > { %4392 = vmatprep.mubr.msk.bf16.mxu0 %vm2359_vm0, %v4707_v18  ;;  %4240 = vmatprep.subr.bf16.mxu0 %v5505_v44  ;;  %v5518_v18 = vld [vmem:[%s4941_s18 + $0xc4] sm:$0xf] }
  0x7e   : > { %v851_v45 = vrot.slane %v849_v27, 1  ;;  %4393 = vmatmul.mubr.msk.bf16.gmra.mrb[24].mxu0 %vm2359_vm0, %v4708_v0  ;;  %v5521_v27 = vrot.slane %v3892_v63, 1  ;;  %v5531_v0 = vld [vmem:[%s4941_s18 + $0xb8] sm:$0xf]  ;;  %v404_v63 = vld [vmem:[%s4941_s18 + $0xc] sm:$0xe] }
  0x7f   : > { %6562 = vst [vmem:[#allocation25_spill] sm:$0xff] %v5531_v0 }
  0x80   : > { %v852_v47 = vor.u32 %v851_v45, %v847_v23  ;;  %v4778_v45 = vld [vmem:[%s4941_s18 + $0x14] ss:$0 sps:$4 sm:$0x11]   ;;  %4241 = vmatpush3.bf16.msra.mxu0 %v5511_v31 }
  0x82   : > { %v857_v23 = vsel %vm677_vm1, %v852_v47, %v856_v7  ;;  %v5527_v7 = vcombine.low %v3704_v51, %v5518_v18 }
  0x83   : > { %898 = vrot.lane.b32.xlu1 %v857_v23, %s4858_s19  ;;  %v4780_v23 = vld [vmem:[%s4941_s18 + $0x10] sm:$0xf] }
  0x84   : > { %6561 = vst [vmem:[#allocation24_spill] sm:$0xff] %v5527_v7  ;;  %1109 = vrot.lane.b32.xlu0 %v5527_v7, %s4858_s19  ;;  %v3835_v51 = vcombine.low %v404_v63, %v4780_v23 }
  0x89   : > { %v1080_v57 = vpop.permute.xlu0 %1079 }
  0x8a   : > { %v1978_v9 = vsel %vm1927_vm3, %v953_v32, %v1080_v57  ;;  %v1082_v4 = vpop.permute.xlu1 %1081  ;;  %v1167_v32 = vshll.u32 %v4778_v45, 16  ;;  %v3893_v57 = vcombine.low %v3733_v13, %v5299_v61  ;;  %v5534_v45 = vcombine.low %v385_v5, %v5531_v0  ;;  %v5543_v13 = vld [vmem:[%s6492_s1 + $0xe8] sm:$0xff]   ;;  %v5553_v5 = vld [vmem:[%s4941_s18 + $0x20] ss:$0 sps:$4 sm:$0x11]  }
  0x8b   : > { %2872 = vmatprep.mubr.bf16.mxu1 %v1978_v9  ;;  %v4779_v9 = vld [vmem:[%s4941_s18 + $0x14] ss:$0 sps:$4 sm:$0x11]   ;;  %4242 = vmatprep.subr.bf16.mxu0 %v5543_v13 }
  0x8c   : > { %v955_v20 = vrot.slane %v4779_v9, 1  ;;  %6563 = vst [vmem:[#allocation26_spill] sm:$0xff] %v5534_v45  ;;  %v5537_v9 = vld [vmem:[%s4941_s18 + $0xbc] ss:$0 sps:$4 sm:$0x11]   ;;  %v5550_v52 = vrot.slane %v1167_v32, 1 }
  0x8d   : > { %6564 = vst [vmem:[#allocation27_spill] sm:$0xff] %v5537_v9  ;;  %v859_v0 = vshrl.u32 %v5534_v45, 16  ;;  %v861_v62 = vshll.u32 %v5534_v45, 16  ;;  %v5563_v32 = vld [vmem:[%s6492_s1 + $0xa8] sm:$0xff]   ;;  %v5567_v23 = vrot.slane %v3893_v57, 1 }
  0x8e   : > { %4243 = vmatpush3.bf16.msra.mxu0 %v5563_v32  ;;  %v5584_v57 = vld [vmem:[%s4941_s18 + $0x2c] ss:$0 sps:$4 sm:$0x11]  }
  0x8f   : > { %v863_v45 = vrot.slane %v861_v62, 1  ;;  %v5581_v62 = vld [vmem:[%s6492_s1 + $0xf0] sm:$0xff]  }
  0x90   : > { %4244 = vmatprep.subr.bf16.mxu0 %v5581_v62 }
  0x91   : > { %v871_v47 = vpop.permute.xlu0 %870  ;;  %v864_v58 = vor.u32 %v863_v45, %v859_v0 }
  0x92   : > { %v1929_v61 = vsel %vm1927_vm3, %v4963_v14, %v871_v47  ;;  %v866_v14 = vshll.u32 %v5537_v9, 16  ;;  %v3734_v47 = vld [vmem:[%s4941_s18 + $0x9c] sm:$0xe]  ;;  %v4718_v9 = vld [vmem:[%s4936_s15 + $0x70] sm:$0xff]  }
  0x93   : > { %2873 = vmatmul.mubr.bf16.vlgmr.msra.gmra.mrb[0].mxu1 %v1929_v61  ;;  %v873_v63 = vpop.permute.xlu1 %872  ;;  %v954_v61 = vrot.slane %v3835_v51, 1  ;;  %4396 = vmatprep.mubr.msk.bf16.mxu0 %vm2359_vm0, %v4718_v9  ;;  %v3894_v45 = vcombine.low %v3734_v47, %v5332_v30  ;;  %v5615_v30 = vld [vmem:[%s4941_s18 + $0x98] ss:$0 sps:$4 sm:$0x11]  }
  0x94   : > { %4448 = vmatpush3.bf16.msra.mxu1 %v5146_v16  ;;  %v868_v7 = vrot.slane %v866_v14, 1  ;;  %4397 = vmatmul.mubr.msk.bf16.gmra.mrb[28].mxu0 %vm2359_vm0, %v4719_v46  ;;  %v5607_v46 = vld [vmem:[%s4941_s18 + $0xa8] sm:$0xe]  ;;  %6567 = vst [vmem:[#allocation30_spill] sm:$0xff] %v5615_v30 }
  0x95   : > { %v5569_v40 = vpop.permute.xlu0 %1083  ;;  %4441 = vmatprep.subr.bf16.mxu1 %v5246_v29  ;;  %v956_v26 = vsel %vm950_vm2, %v954_v61, %v955_v20  ;;  %v1932_v29 = vsel %vm1927_vm3, %v4972_v21, %v873_v63  ;;  %v4783_v20 = vld [vmem:[%s4941_s18 + $0x20] ss:$0 sps:$4 sm:$0x11]   ;;  %v5603_v21 = vld [vmem:[%s4941_s18 + $0x94] sm:$0xf] }
  0x96   : > { %v1982_v16 = vsel %vm1927_vm3, %v956_v26, %v1082_v4  ;;  %v5593_v26 = vld [vmem:[%s6492_s1 + $0xb0] sm:$0xff]   ;;  %v1179_v0 = vshll.u32 %v4783_v20, 16  ;;  %v869_v14 = vsel %vm677_vm1, %v864_v58, %v868_v7  ;;  %6565 = vst [vmem:[#allocation28_spill] sm:$0xff] %v5603_v21  ;;  %v5618_v58 = vld [vmem:[%s4941_s18 + $0x8c] ss:$0 sps:$4 sm:$0x11]  }
  0x97   : > { %2880 = vmatprep.mubr.bf16.mxu1 %v1982_v16  ;;  %v3758_v4 = vld [vmem:[%s4941_s18 + $0x90] sm:$0xf]  ;;  %v875_v9 = vpop.permute.xlu1 %874  ;;  %900 = vrot.lane.b32.xlu1 %v869_v14, %s4858_s19  ;;  %6568 = vst [vmem:[#allocation31_spill] sm:$0xff] %v5618_v58  ;;  %v5623_v7 = vld [vmem:[%s6492_s1 + $0xf8] sm:$0xff]   ;;  %v1430_v14 = vrot.slane %v5618_v58, 1 }
  0x98   : > { %4449 = vmatpush3.bf16.msra.mxu1 %v5254_v35  ;;  %4245 = vmatpush3.bf16.msra.mxu0 %v5593_v26  ;;  %v5612_v63 = vcombine.low %v3758_v4, %v5603_v21  ;;  %v6569_v35 = vshrl.u32 %v4949_v8, 16  ;;  %v5628_v16 = vrot.slane %v1179_v0, 1  ;;  %v5646_v0 = vrot.slane %v3894_v45, 1  ;;  %v4784_v21 = vld [vmem:[%s4941_s18 + $0x1c] sm:$0xf] }
  0x99   : > { %v5599_v61 = vpop.permute.xlu0 %1085  ;;  %4442 = vmatprep.subr.bf16.mxu1 %v5392_v53  ;;  %4246 = vmatprep.subr.bf16.mxu0 %v5623_v7  ;;  %v5643_v53 = vld [vmem:[%s6492_s1 + $0xb8] sm:$0xff]  }
  0x9a   : > { %6566 = vst [vmem:[#allocation29_spill] sm:$0xff] %v5612_v63  ;;  %v1165_v47 = vor.u32 %v5430_v1, %v6569_v35  ;;  %v1728_v4 = vshrl.u32 %v5612_v63, 16  ;;  %v1730_v20 = vshll.u32 %v5612_v63, 16  ;;  %v405_v1 = vld [vmem:[%s4941_s18 + $0x18] sm:$0xe] }
  0x9b   : > { %2881 = vmatmul.mubr.bf16.gmra.mrb[4].mxu1 %v1932_v29  ;;  %v1735_v29 = vshll.u32 %v5615_v30, 16  ;;  %v5635_v51 = vpop.permute.xlu1 %876  ;;  %v1431_v30 = vsel %vm950_vm2, %v5521_v27, %v1430_v14  ;;  %v3836_v58 = vcombine.low %v405_v1, %v4784_v21  ;;  %v5668_v27 = vld [vmem:[%s4941_s18 + $0xa4] ss:$0 sps:$4 sm:$0x11]   ;;  %v6572_v21 = vshrl.u32 %v4957_v11, 16 }
  0x9c   : > { %4450 = vmatpush3.bf16.msra.mxu1 %v5400_v3  ;;  %v1732_v35 = vrot.slane %v1730_v20, 1  ;;  %1467 = vrot.lane.b32.xlu1 %v1431_v30, %s4858_s19  ;;  %v5665_v3 = vcombine.low %v3760_v59, %v5654_v54  ;;  %v5674_v20 = vld [vmem:[%s4941_s18 + $0x38] ss:$0 sps:$4 sm:$0x11]   ;;  %v1170_v30 = vsel %vm677_vm1, %v1165_v47, %v5550_v52  ;;  %v1935_v59 = vsel %vm1927_vm3, %v4986_v37, %v875_v9  ;;  %v4787_v47 = vld [vmem:[%s4941_s18 + $0x28] sm:$0xf] }
  0x9d   : > { %v5637_v8 = vpop.permute.xlu0 %1087  ;;  %v1737_v63 = vrot.slane %v1735_v29, 1  ;;  %4443 = vmatprep.subr.bf16.mxu1 %v5479_v24  ;;  %4247 = vmatpush3.bf16.msra.mxu0 %v5643_v53  ;;  %v1177_v24 = vor.u32 %v5437_v25, %v6572_v21  ;;  %v957_v1 = vrot.slane %v3836_v58, 1  ;;  %v5682_v45 = vld [vmem:[%s4941_s18 + $0x98] ss:$0 sps:$4 sm:$0x11]   ;;  %v6573_v37 = vrot.slane %v5553_v5, 1 }
  0x9e   : > { %6571 = vst [vmem:[#allocation33_spill] sm:$0xff] %v5665_v3  ;;  %v1733_v14 = vor.u32 %v1732_v35, %v1728_v4  ;;  %v1740_v25 = vshrl.u32 %v5665_v3, 16  ;;  %v1742_v21 = vshll.u32 %v5665_v3, 16  ;;  %v1747_v4 = vshll.u32 %v5668_v27, 16  ;;  %v406_v35 = vld [vmem:[%s4941_s18 + $0x24] sm:$0xe] }
  0x9f   : > { %v5684_v11 = vpop.permute.xlu1 %878  ;;  %v4786_v29 = vld [vmem:[%s4941_s18 + $0x2c] ss:$0 sps:$4 sm:$0x11]   ;;  %v959_v9 = vsel %vm950_vm2, %v957_v1, %v6573_v37  ;;  %v1433_v58 = vrot.slane %v5682_v45, 1  ;;  %v3837_v19 = vcombine.low %v406_v35, %v4787_v47  ;;  %v3896_v35 = vcombine.low %v5660_v48, %v5446_v39 }
  0xa0   : > { %v1191_v54 = vshll.u32 %v4786_v29, 16  ;;  %4451 = vmatpush3.bf16.msra.mxu1 %v5487_v22  ;;  %v1738_v52 = vsel %vm677_vm1, %v1733_v14, %v1737_v63  ;;  %v5700_v3 = vld [vmem:[%s4941_s18 + $0xac] sm:$0xf]  ;;  %v4739_v29 = vld [vmem:[%s6492_s1 + $0x100] sm:$0xff]   ;;  %v1986_v5 = vsel %vm1927_vm3, %v959_v9, %v5569_v40  ;;  %v1744_v63 = vrot.slane %v1742_v21, 1 }
  0xa1   : > { %4444 = vmatprep.subr.bf16.mxu1 %v5505_v44  ;;  %1819 = vrot.lane.b32.xlu0 %v1738_v52, %s4858_s19  ;;  %v1800_v22 = vpop.permute.xlu0 %1799  ;;  %v1749_v14 = vrot.slane %v1747_v4, 1  ;;  %v5710_v1 = vcombine.low %v3762_v49, %v5700_v3  ;;  %v1434_v52 = vsel %vm950_vm2, %v5567_v23, %v1433_v58  ;;  %v960_v37 = vrot.slane %v3837_v19, 1  ;;  %v5719_v47 = vld [vmem:[%s4941_s18 + $0xb0] ss:$0 sps:$4 sm:$0x11]  }
  0xa2   : > { %2888 = vmatprep.mubr.bf16.mxu1 %v1986_v5  ;;  %v2105_v44 = vsel %vm1927_vm3, %v5036_v17, %v1800_v22  ;;  %v407_v40 = vld [vmem:[%s4941_s18 + $0x30] sm:$0xe]  ;;  %4400 = vmatprep.subr.bf16.mxu0 %v4739_v29  ;;  %v1745_v21 = vor.u32 %v1744_v63, %v1740_v25  ;;  %v5725_v5 = vld [vmem:[%s4941_s18 + $0xa4] ss:$0 sps:$4 sm:$0x11]   ;;  %v6574_v23 = vrot.slane %v5584_v57, 1 }
  0xa3   : > { %v1448_v49 = vpop.permute.xlu1 %1447  ;;  %2889 = vmatmul.mubr.bf16.gmra.mrb[8].mxu1 %v1935_v59  ;;  %3033 = vmatprep.mubr.bf16.mxu0 %v2105_v44  ;;  %v1752_v4 = vshrl.u32 %v5710_v1, 16  ;;  %v1754_v9 = vshll.u32 %v5710_v1, 16  ;;  %v4788_v17 = vld [vmem:[%s4941_s18 + $0x34] sm:$0xf]  ;;  %v1182_v59 = vsel %vm677_vm1, %v1177_v24, %v5628_v16  ;;  %v1759_v25 = vshll.u32 %v5719_v47, 16 }
  0xa4   : > { %v3838_v22 = vcombine.low %v407_v40, %v4788_v17  ;;  %v2042_v19 = vsel %vm1927_vm3, %v1170_v30, %v1448_v49  ;;  %1469 = vrot.lane.b32.xlu1 %v1434_v52, %s4858_s19  ;;  %v962_v58 = vsel %vm950_vm2, %v960_v37, %v6574_v23  ;;  %v3764_v63 = vld [vmem:[%s4941_s18 + $0xb4] sm:$0xf]  ;;  %v5738_v44 = vld [vmem:[%s4941_s18 + $0xb8] sm:$0xf]  ;;  %v5743_v40 = vld [vmem:[%s6492_s1 + $0x108] sm:$0xff]   ;;  %4452 = vmatpush3.bf16.msra.mxu1 %v5511_v31  ;;  %v1436_v52 = vrot.slane %v5725_v5, 1 }
  0xa5   : > { %3034 = vmatmul.mubr.bf16.vlgmr.msra.gmra.mrb[32].mxu0 %v2042_v19  ;;  %v5746_v57 = vpop.permute.xlu0 %1089  ;;  %v1750_v30 = vsel %vm677_vm1, %v1745_v21, %v1749_v14  ;;  %v1990_v16 = vsel %vm1927_vm3, %v962_v58, %v5599_v61  ;;  %v1756_v24 = vrot.slane %v1754_v9, 1  ;;  %4445 = vmatprep.subr.bf16.mxu1 %v5543_v13  ;;  %v1761_v37 = vrot.slane %v1759_v25, 1  ;;  %v5760_v14 = vld [vmem:[%s4941_s18 + $0xbc] ss:$0 sps:$4 sm:$0x11]  }
  0xa6   : > { %1821 = vrot.lane.b32.xlu0 %v1750_v30, %s4858_s19  ;;  %2896 = vmatprep.mubr.bf16.mxu1 %v1990_v16  ;;  %v963_v31 = vrot.slane %v3838_v22, 1  ;;  %v5754_v49 = vrot.slane %v1191_v54, 1  ;;  %v5757_v17 = vcombine.low %v3764_v63, %v5738_v44  ;;  %v1938_v61 = vsel %vm1927_vm3, %v5003_v50, %v5635_v51  ;;  %v5770_v22 = vld [vmem:[%s4941_s18 + $0xb0] ss:$0 sps:$4 sm:$0x11]  }
  0xa7   : > { %v5762_v21 = vpop.permute.xlu1 %880  ;;  %v1757_v9 = vor.u32 %v1756_v24, %v1752_v4  ;;  %v1437_v13 = vsel %vm950_vm2, %v5646_v0, %v1436_v52  ;;  %v6575_v54 = vcombine.low %v5607_v46, %v5375_v12  ;;  %4401 = vmatpush3.bf16.msra.mxu0 %v4739_v29  ;;  %v5776_v23 = vld [vmem:[%s4941_s18 + $0xc0] sm:$0xe]  ;;  %v6576_v50 = vrot.slane %v5674_v20, 1  ;;  %v408_v25 = vld [vmem:[%s4941_s18 + $0x3c] sm:$0xe] }
  0xa8   : > { %1471 = vrot.lane.b32.xlu1 %v1437_v13, %s4858_s19  ;;  %v1764_v4 = vshrl.u32 %v5757_v17, 16  ;;  %v1766_v0 = vshll.u32 %v5757_v17, 16  ;;  %v1771_v58 = vshll.u32 %v5760_v14, 16  ;;  %4402 = vmatprep.subr.bf16.mxu0 %v5743_v40  ;;  %v1439_v20 = vrot.slane %v5770_v22, 1  ;;  %v3766_v16 = vld [vmem:[%s4941_s18 + $0xc0] sm:$0xf] }
  0xa9   : > { %v1438_v19 = vrot.slane %v6575_v54, 1  ;;  %v965_v51 = vsel %vm950_vm2, %v963_v31, %v6576_v50  ;;  %v1802_v12 = vpop.permute.xlu0 %1801  ;;  %v1762_v46 = vsel %vm677_vm1, %v1757_v9, %v1761_v37  ;;  %v4789_v63 = vld [vmem:[%s4941_s18 + $0x44] ss:$0 sps:$4 sm:$0x11]   ;;  %4453 = vmatpush3.bf16.msra.mxu1 %v5563_v32  ;;  %v4790_v37 = vld [vmem:[%s4941_s18 + $0x40] sm:$0xf] }
  0xaa   : > { %v1994_v29 = vsel %vm1927_vm3, %v965_v51, %v5637_v8  ;;  %v967_v30 = vrot.slane %v4789_v63, 1  ;;  %v2108_v24 = vsel %vm1927_vm3, %v5070_v10, %v1802_v12  ;;  %1823 = vrot.lane.b32.xlu0 %v1762_v46, %s4858_s19  ;;  %v1768_v52 = vrot.slane %v1766_v0, 1  ;;  %v5799_v8 = vld [vmem:[%s4941_s18 + $0xc4] sm:$0xf]  ;;  %4446 = vmatprep.subr.bf16.mxu1 %v5581_v62  ;;  %v4752_v0 = vld [vmem:[%s6492_s1 + $0x110] sm:$0xff]  }
  0xab   : > { %v1773_v31 = vrot.slane %v1771_v58, 1  ;;  %v3839_v9 = vcombine.low %v408_v25, %v4790_v37  ;;  %v1450_v13 = vpop.permute.xlu1 %1449  ;;  %2897 = vmatmul.mubr.bf16.gmra.mrb[12].mxu1 %v1938_v61  ;;  %3041 = vmatprep.mubr.bf16.mxu0 %v2108_v24  ;;  %v6577_v54 = vshrl.u32 %v4992_v41, 16  ;;  %v1440_v10 = vsel %vm950_vm2, %v1438_v19, %v1439_v20  ;;  %v5810_v51 = vld [vmem:[%s4941_s18 + $0xc8] ss:$0 sps:$4 sm:$0x11]  }
  0xac   : > { %v5807_v50 = vcombine.low %v3766_v16, %v5799_v8  ;;  %v2046_v62 = vsel %vm1927_vm3, %v1182_v59, %v1450_v13  ;;  %2904 = vmatprep.mubr.bf16.mxu1 %v1994_v29  ;;  %v1769_v61 = vor.u32 %v1768_v52, %v1764_v4  ;;  %1473 = vrot.lane.b32.xlu1 %v1440_v10, %s4858_s19  ;;  %v1441_v19 = vrot.slane %v3896_v35, 1  ;;  %v409_v29 = vld [vmem:[%s4941_s18 + $0x48] sm:$0xe]  ;;  %v5838_v25 = vld [vmem:[%s4941_s18 + $0xd0] sm:$0xf] }
  0xad   : > { %v1189_v32 = vor.u32 %v5450_v28, %v6577_v54  ;;  %v966_v41 = vrot.slane %v3839_v9, 1  ;;  %v5818_v28 = vld [vmem:[%s4941_s18 + $0xbc] ss:$0 sps:$4 sm:$0x11]   ;;  %v3897_v58 = vcombine.low %v5776_v23, %v5518_v18  ;;  %3042 = vmatmul.mubr.bf16.gmra.mrb[36].mxu0 %v2046_v62  ;;  %v5825_v12 = vpop.permute.xlu0 %1091  ;;  %v1783_v46 = vshll.u32 %v5810_v51, 16  ;;  %4454 = vmatpush3.bf16.msra.mxu1 %v5593_v26 }
  0xae   : > { %v1776_v59 = vshrl.u32 %v5807_v50, 16  ;;  %v1778_v4 = vshll.u32 %v5807_v50, 16  ;;  %v1774_v20 = vsel %vm677_vm1, %v1769_v61, %v1773_v31  ;;  %v1442_v39 = vrot.slane %v5818_v28, 1  ;;  %v4791_v18 = vld [vmem:[%s4941_s18 + $0x4c] sm:$0xf]  ;;  %4403 = vmatpush3.bf16.msra.mxu0 %v5743_v40  ;;  %4447 = vmatprep.subr.bf16.mxu1 %v5623_v7 }
  0xaf   : > { %v968_v48 = vsel %vm950_vm2, %v966_v41, %v967_v30  ;;  %v3840_v35 = vcombine.low %v409_v29, %v4791_v18  ;;  %v3768_v23 = vld [vmem:[%s4941_s18 + $0xcc] sm:$0xf]  ;;  %v5842_v63 = vpop.permute.xlu1 %882  ;;  %v1941_v26 = vsel %vm1927_vm3, %v5021_v2, %v5684_v11  ;;  %1825 = vrot.lane.b32.xlu0 %v1774_v20, %s4858_s19  ;;  %v1785_v16 = vrot.slane %v1783_v46, 1  ;;  %4404 = vmatprep.subr.bf16.mxu0 %v4752_v0  ;;  %v4792_v7 = vld [vmem:[%s4941_s18 + $0x38] ss:$0 sps:$4 sm:$0x11]  }
  0xb0   : > { %v1780_v30 = vrot.slane %v1778_v4, 1  ;;  %v1194_v24 = vsel %vm677_vm1, %v1189_v32, %v5754_v49  ;;  %v1998_v40 = vsel %vm1927_vm3, %v968_v48, %v5746_v57  ;;  %v1203_v52 = vshll.u32 %v4792_v7, 16  ;;  %v5855_v37 = vld [vmem:[%s4941_s18 + $0xd4] ss:$0 sps:$4 sm:$0x11]   ;;  %v4755_v57 = vld [vmem:[%s6492_s1 + $0x118] sm:$0xff]  }
  0xb1   : > { %v1443_v31 = vsel %vm950_vm2, %v1441_v19, %v1442_v39  ;;  %v1804_v9 = vpop.permute.xlu0 %1803  ;;  %v969_v11 = vrot.slane %v3840_v35, 1  ;;  %v4793_v13 = vld [vmem:[%s4941_s18 + $0x50] ss:$0 sps:$4 sm:$0x11]   ;;  %v5860_v10 = vcombine.low %v3768_v23, %v5838_v25  ;;  %4455 = vmatpush3.bf16.msra.mxu1 %v5643_v53  ;;  %v1795_v62 = vshll.u32 %v5855_v37, 16 }
  0xb2   : > { %v1781_v2 = vor.u32 %v1780_v30, %v1776_v59  ;;  %1475 = vrot.lane.b32.xlu1 %v1443_v31, %s4858_s19  ;;  %v970_v54 = vrot.slane %v4793_v13, 1  ;;  %v5863_v49 = vld [vmem:[%s4941_s18 + $0xc8] ss:$0 sps:$4 sm:$0x11]   ;;  %v2111_v32 = vsel %vm1927_vm3, %v5105_v33, %v1804_v9  ;;  %v1444_v61 = vrot.slane %v3897_v58, 1  ;;  %4405 = vmatpush3.bf16.msra.mxu0 %v4752_v0 }
  0xb3   : > { %v1210_v41 = vshll.u32 %v5027_v6, 16  ;;  %v1452_v19 = vpop.permute.xlu1 %1451  ;;  %2905 = vmatmul.mubr.bf16.gmra.mrb[16].mxu1 %v1941_v26  ;;  %3049 = vmatprep.mubr.bf16.mxu0 %v2111_v32  ;;  %v410_v4 = vld [vmem:[%s4941_s18 + $0x54] sm:$0xe]  ;;  %v1788_v33 = vshrl.u32 %v5860_v10, 16  ;;  %v1790_v53 = vshll.u32 %v5860_v10, 16  ;;  %v1445_v0 = vrot.slane %v5863_v49, 1 }
  0xb4   : > { %v1786_v59 = vsel %vm677_vm1, %v1781_v2, %v1785_v16  ;;  %v2050_v46 = vsel %vm1927_vm3, %v1194_v24, %v1452_v19  ;;  %2912 = vmatprep.mubr.bf16.mxu1 %v1998_v40  ;;  %v6578_v29 = vshrl.u32 %v5014_v56, 16  ;;  %v1205_v48 = vrot.slane %v1203_v52, 1  ;;  %4406 = vmatprep.subr.bf16.mxu0 %v4755_v57  ;;  %v4794_v26 = vld [vmem:[%s4941_s18 + $0x58] sm:$0xf] }
  0xb5   : > { %1827 = vrot.lane.b32.xlu0 %v1786_v59, %s4858_s19  ;;  %3050 = vmatmul.mubr.bf16.gmra.mrb[40].mxu0 %v2050_v46  ;;  %v5880_v58 = vpop.permute.xlu0 %1093  ;;  %v971_v39 = vsel %vm950_vm2, %v969_v11, %v970_v54  ;;  %v1792_v18 = vrot.slane %v1790_v53, 1  ;;  %v1797_v35 = vrot.slane %v1795_v62, 1  ;;  %v1446_v23 = vsel %vm950_vm2, %v1444_v61, %v1445_v0  ;;  %v4795_v11 = vld [vmem:[%s4941_s18 + $0x44] ss:$0 sps:$4 sm:$0x11]  }
  0xb6   : > { %v1201_v20 = vor.u32 %v5498_v38, %v6578_v29  ;;  %v3841_v30 = vcombine.low %v410_v4, %v4794_v26  ;;  %4407 = vmatpush3.bf16.msra.mxu0 %v4755_v57  ;;  %v1208_v16 = vshrl.u32 %v5027_v6, 16  ;;  %v1222_v24 = vshll.u32 %v5076_v60, 16  ;;  %1477 = vrot.lane.b32.xlu1 %v1446_v23, %s4858_s19  ;;  %v4796_v62 = vld [vmem:[%s4941_s18 + $0x5c] ss:$0 sps:$4 sm:$0x11]  }
  0xb7   : > { %v5890_v56 = vpop.permute.xlu1 %884  ;;  %v1212_v38 = vrot.slane %v1210_v41, 1  ;;  %v1234_v40 = vshll.u32 %v5111_v36, 16  ;;  %v1944_v7 = vsel %vm1927_vm3, %v5056_v43, %v5762_v21  ;;  %v1793_v52 = vor.u32 %v1792_v18, %v1788_v33 }
  0xb8   : > { %v1246_v31 = vshll.u32 %v5158_v42, 16  ;;  %v1206_v6 = vsel %vm677_vm1, %v1201_v20, %v1205_v48  ;;  %v2002_v2 = vsel %vm1927_vm3, %v971_v39, %v5825_v12  ;;  %v1215_v13 = vshll.u32 %v4795_v11, 16  ;;  %v411_v12 = vld [vmem:[%s4941_s18 + $0x60] sm:$0xe] }
  0xb9   : > { %v1806_v9 = vpop.permute.xlu0 %1805  ;;  %v1798_v57 = vsel %vm677_vm1, %v1793_v52, %v1797_v35  ;;  %v972_v32 = vrot.slane %v3841_v30, 1  ;;  %v973_v43 = vrot.slane %v4796_v62, 1  ;;  %v1220_v21 = vshrl.u32 %v5076_v60, 16  ;;  %v6579_v35 = vld [vmem:[#allocation13_spill] sm:$0xff]  ;;  %v6581_v52 = vld [vmem:[#allocation16_spill] sm:$0xff] }
  0xba   : > { %v2114_v54 = vsel %vm1927_vm3, %v5140_v15, %v1806_v9  ;;  %v1224_v61 = vrot.slane %v1222_v24, 1  ;;  %v1258_v41 = vshll.u32 %v5196_v55, 16  ;;  %v1232_v59 = vshrl.u32 %v5111_v36, 16  ;;  %1829 = vrot.lane.b32.xlu0 %v1798_v57, %s4858_s19  ;;  %v4797_v36 = vld [vmem:[%s4941_s18 + $0x64] sm:$0xf] }
  0xbb   : > { %v1454_v19 = vpop.permute.xlu1 %1453  ;;  %2913 = vmatmul.mubr.bf16.gmra.mrb[20].mxu1 %v1944_v7  ;;  %3057 = vmatprep.mubr.bf16.mxu0 %v2114_v54  ;;  %v1236_v4 = vrot.slane %v1234_v40, 1  ;;  %v1244_v46 = vshrl.u32 %v5158_v42, 16  ;;  %v1213_v33 = vor.u32 %v1212_v38, %v1208_v16  ;;  %v1217_v53 = vrot.slane %v1215_v13, 1  ;;  %v6580_v16 = vld [vmem:[#allocation2_spill] sm:$0xff]  ;;  %v412_v54 = vld [vmem:[%s4941_s18 + $0x6c] sm:$0xe] }
  0xbc   : > { %v2054_v15 = vsel %vm1927_vm3, %v1206_v6, %v1454_v19  ;;  %2920 = vmatprep.mubr.bf16.mxu1 %v2002_v2  ;;  %v1248_v0 = vrot.slane %v1246_v31, 1  ;;  %v1282_v29 = vshll.u32 %v5289_v34, 16  ;;  %v974_v20 = vsel %vm950_vm2, %v972_v32, %v973_v43  ;;  %v4798_v38 = vld [vmem:[%s4941_s18 + $0x50] ss:$0 sps:$4 sm:$0x11]   ;;  %v6582_v9 = vld [vmem:[#allocation18_spill] sm:$0xff] }
  0xbd   : > { %3058 = vmatmul.mubr.bf16.gmra.mrb[44].mxu0 %v2054_v15  ;;  %v5913_v60 = vpop.permute.xlu0 %1095  ;;  %v3842_v48 = vcombine.low %v411_v12, %v4797_v36  ;;  %v5919_v18 = vrot.slane %v1258_v41, 1  ;;  %v1294_v42 = vshll.u32 %v6579_v35, 16  ;;  %v1225_v26 = vor.u32 %v1224_v61, %v1220_v21  ;;  %v6583_v32 = vld [vmem:[#allocation5_spill] sm:$0xff]  ;;  %v4799_v43 = vld [vmem:[%s4941_s18 + $0x68] ss:$0 sps:$4 sm:$0x11]  }
  0xbe   : > { %v1947_v24 = vsel %vm1927_vm3, %v6580_v16, %v5842_v63  ;;  %v1227_v40 = vshll.u32 %v4798_v38, 16  ;;  %v5929_v7 = vor.u32 %v1236_v4, %v1232_v59  ;;  %v1306_v31 = vshll.u32 %v6581_v52, 16  ;;  %v417_v61 = vld [vmem:[%s4941_s18 + $0xa8] sm:$0xe]  ;;  %v6585_v16 = vld [vmem:[#allocation20_spill] sm:$0xff] }
  0xbf   : > { %v5922_v23 = vpop.permute.xlu1 %886  ;;  %v1318_v6 = vshll.u32 %v6582_v9, 16  ;;  %v1218_v11 = vsel %vm677_vm1, %v1213_v33, %v1217_v53  ;;  %v2006_v13 = vsel %vm1927_vm3, %v974_v20, %v5880_v58  ;;  %v1284_v57 = vrot.slane %v1282_v29, 1  ;;  %v4800_v59 = vld [vmem:[%s4941_s18 + $0x5c] ss:$0 sps:$4 sm:$0x11]  }
  0xc0   : > { %v975_v62 = vrot.slane %v3842_v48, 1  ;;  %v976_v21 = vrot.slane %v4799_v43, 1  ;;  %v1292_v41 = vshrl.u32 %v6579_v35, 16  ;;  %v1296_v19 = vrot.slane %v1294_v42, 1  ;;  %v4801_v29 = vld [vmem:[%s4941_s18 + $0x70] sm:$0xf] }
  0xc1   : > { %v1808_v2 = vpop.permute.xlu0 %1807  ;;  %v1239_v4 = vshll.u32 %v4800_v59, 16  ;;  %v5943_v15 = vor.u32 %v1248_v0, %v1244_v46  ;;  %v1304_v58 = vshrl.u32 %v6581_v52, 16  ;;  %v1229_v53 = vrot.slane %v1227_v40, 1  ;;  %v6584_v46 = vld [vmem:[#allocation21_spill] sm:$0xff]  ;;  %v6586_v52 = vld [vmem:[#allocation23_spill] sm:$0xff] }
  0xc2   : > { %v2117_v63 = vsel %vm1927_vm3, %v6583_v32, %v1808_v2  ;;  %v3843_v20 = vcombine.low %v412_v54, %v4801_v29  ;;  %v1308_v36 = vrot.slane %v1306_v31, 1  ;;  %v5949_v35 = vrot.slane %v1318_v6, 1  ;;  %v418_v2 = vld [vmem:[%s4941_s18 + $0xb4] sm:$0xe]  ;;  %v6588_v54 = vld [vmem:[#allocation3_spill] sm:$0xff] }
  0xc3   : > { %v1456_v12 = vpop.permute.xlu1 %1455  ;;  %2921 = vmatmul.mubr.bf16.gmra.mrb[24].mxu1 %v1947_v24  ;;  %3065 = vmatprep.mubr.bf16.mxu0 %v2117_v63  ;;  %v3848_v0 = vcombine.low %v417_v61, %v6584_v46  ;;  %v1330_v38 = vshll.u32 %v6585_v16, 16  ;;  %v977_v40 = vsel %vm950_vm2, %v975_v62, %v976_v21  ;;  %v994_v31 = vrot.slane %v6586_v52, 1  ;;  %v413_v43 = vld [vmem:[%s4941_s18 + $0x78] sm:$0xe]  ;;  %v414_v46 = vld [vmem:[%s4941_s18 + $0x84] sm:$0xe] }
  0xc4   : > { %v2058_v33 = vsel %vm1927_vm3, %v1218_v11, %v1456_v12  ;;  %2928 = vmatprep.mubr.bf16.mxu1 %v2006_v13  ;;  %v6587_v11 = vld [vmem:[#allocation24_spill] sm:$0xff]  ;;  %v1950_v32 = vsel %vm1927_vm3, %v6588_v54, %v5890_v56  ;;  %v1241_v63 = vrot.slane %v1239_v4, 1  ;;  %v1230_v12 = vsel %vm677_vm1, %v1225_v26, %v1229_v53  ;;  %v4803_v21 = vld [vmem:[%s4941_s18 + $0x68] ss:$0 sps:$4 sm:$0x11]   ;;  %v6589_v56 = vld [vmem:[#allocation25_spill] sm:$0xff] }
  0xc5   : > { %3066 = vmatmul.mubr.bf16.gmra.mrb[48].mxu0 %v2058_v33  ;;  %v5951_v42 = vpop.permute.xlu0 %1097  ;;  %v1342_v6 = vshll.u32 %v6587_v11, 16  ;;  %v993_v61 = vrot.slane %v3848_v0, 1  ;;  %v978_v59 = vrot.slane %v3843_v20, 1  ;;  %v4802_v33 = vld [vmem:[%s4941_s18 + $0x74] ss:$0 sps:$4 sm:$0x11]   ;;  %v2010_v39 = vsel %vm1927_vm3, %v977_v40, %v5913_v60 }
  0xc6   : > { %v979_v62 = vrot.slane %v4802_v33, 1  ;;  %v1251_v29 = vshll.u32 %v4803_v21, 16  ;;  %v3849_v4 = vcombine.low %v418_v2, %v6589_v56  ;;  %v6590_v0 = vld [vmem:[#allocation27_spill] sm:$0xff]  ;;  %v5977_v48 = vrot.slane %v1330_v38, 1  ;;  %v4804_v33 = vld [vmem:[%s4941_s18 + $0x7c] sm:$0xf] }
  0xc7   : > { %v5960_v13 = vpop.permute.xlu1 %888  ;;  %v5973_v24 = vsel %vm950_vm2, %v993_v61, %v994_v31  ;;  %v997_v54 = vrot.slane %v6590_v0, 1  ;;  %v1340_v26 = vshrl.u32 %v6587_v11, 16  ;;  %v6591_v53 = vld [vmem:[#allocation7_spill] sm:$0xff]  ;;  %v3844_v21 = vcombine.low %v413_v43, %v4804_v33  ;;  %v3797_v33 = vld [vmem:[%s4941_s18 + $0x9c] sm:$0xe]  ;;  %v6603_v11 = vld [vmem:[#allocation8_spill] sm:$0xff] }
  0xc8   : > { %v5983_v30 = vrot.slane %v1342_v6, 1  ;;  %v4805_v40 = vld [vmem:[%s4941_s18 + $0x88] sm:$0xf]  ;;  %v996_v2 = vrot.slane %v3849_v4, 1  ;;  %v6592_v38 = vshrl.u32 %v5289_v34, 16  ;;  %v1297_v6 = vor.u32 %v1296_v19, %v1292_v41 }
  0xc9   : > { %v1810_v52 = vpop.permute.xlu0 %1809  ;;  %v3845_v31 = vcombine.low %v414_v46, %v4805_v40  ;;  %v6593_v0 = vld [vmem:[#allocation31_spill] sm:$0xff]  ;;  %v1242_v46 = vsel %vm677_vm1, %v5929_v7, %v1241_v63  ;;  %v980_v34 = vsel %vm950_vm2, %v978_v59, %v979_v62  ;;  %v3799_v59 = vld [vmem:[%s4941_s18 + $0xb4] sm:$0xe] }
  0xca   : > { %v2120_v20 = vsel %vm1927_vm3, %v6591_v53, %v1810_v52  ;;  %v1285_v61 = vor.u32 %v1284_v57, %v6592_v38  ;;  %v1253_v52 = vrot.slane %v1251_v29, 1  ;;  %v1287_v43 = vshll.u32 %v6593_v0, 16  ;;  %v3796_v53 = vld [vmem:[%s4941_s18 + $0x90] sm:$0xe]  ;;  %v3798_v38 = vld [vmem:[%s4941_s18 + $0xa8] sm:$0xe] }
  0xcb   : > { %v1458_v60 = vpop.permute.xlu1 %1457  ;;  %2929 = vmatmul.mubr.bf16.gmra.mrb[28].mxu1 %v1950_v32  ;;  %3073 = vmatprep.mubr.bf16.mxu0 %v2120_v20  ;;  %v5997_v57 = vsel %vm950_vm2, %v996_v2, %v997_v54  ;;  %v4806_v29 = vld [vmem:[%s4941_s18 + $0x80] ss:$0 sps:$4 sm:$0x11]   ;;  %v6001_v20 = vld [vmem:[%s4941_s18 + $0x74] ss:$0 sps:$4 sm:$0x11]   ;;  %v2014_v40 = vsel %vm1927_vm3, %v980_v34, %v5951_v42 }
  0xcc   : > { %v2062_v56 = vsel %vm1927_vm3, %v1230_v12, %v1458_v60  ;;  %2936 = vmatprep.mubr.bf16.mxu1 %v2010_v39  ;;  %v1309_v12 = vor.u32 %v1308_v36, %v1304_v58  ;;  %v981_v39 = vrot.slane %v3844_v21, 1  ;;  %v982_v4 = vrot.slane %v4806_v29, 1  ;;  %v6010_v63 = vld [vmem:[%s4941_s18 + $0x8c] ss:$0 sps:$4 sm:$0x11]   ;;  %v6594_v36 = vld [vmem:[#allocation28_spill] sm:$0xff] }
  0xcd   : > { %3074 = vmatmul.mubr.bf16.gmra.mrb[52].mxu0 %v2062_v56  ;;  %v5991_v32 = vpop.permute.xlu0 %1099  ;;  %v1263_v41 = vshll.u32 %v6001_v20, 16  ;;  %v1289_v19 = vrot.slane %v1287_v43, 1  ;;  %v6007_v7 = vrot.slane %v3845_v31, 1  ;;  %v1299_v58 = vshll.u32 %v5682_v45, 16  ;;  %v6595_v54 = vld [vmem:[#allocation4_spill] sm:$0xff]  ;;  %v6596_v43 = vld [vmem:[#allocation30_spill] sm:$0xff] }
  0xce   : > { %v3940_v62 = vcombine.low %v3796_v53, %v6594_v36  ;;  %v1953_v21 = vsel %vm1927_vm3, %v6595_v54, %v5922_v23  ;;  %v6022_v2 = vsel %vm677_vm1, %v5943_v15, %v1253_v52  ;;  %v1910_v53 = vrot.slane %v6596_v43, 1  ;;  %v6597_v29 = vld [vmem:[#allocation32_spill] sm:$0xff]  ;;  %v6598_v23 = vld [vmem:[#allocation10_spill] sm:$0xff]  ;;  %v6606_v20 = vld [vmem:[#allocation9_spill] sm:$0xff] }
  0xcf   : > { %v6005_v60 = vpop.permute.xlu1 %890  ;;  %v6025_v31 = vsel %vm677_vm1, %v1285_v61, %v1289_v19  ;;  %v1301_v0 = vrot.slane %v1299_v58, 1  ;;  %v3941_v36 = vcombine.low %v3797_v33, %v6597_v29  ;;  %v983_v42 = vsel %vm950_vm2, %v981_v39, %v982_v4  ;;  %v3800_v4 = vld [vmem:[%s4941_s18 + $0xc0] sm:$0xe] }
  0xd0   : > { %v1909_v45 = vrot.slane %v3940_v62, 1  ;;  %v1913_v15 = vrot.slane %v5668_v27, 1  ;;  %v1311_v61 = vshll.u32 %v5725_v5, 16  ;;  %v3942_v58 = vcombine.low %v3798_v38, %v5700_v3 }
  0xd1   : > { %v1812_v56 = vpop.permute.xlu0 %1811  ;;  %v6037_v34 = vsel %vm677_vm1, %v1297_v6, %v1301_v0  ;;  %v1912_v33 = vrot.slane %v3941_v36, 1  ;;  %v1916_v27 = vrot.slane %v5719_v47, 1  ;;  %v3943_v5 = vcombine.low %v3799_v59, %v5738_v44  ;;  %v6599_v6 = vld [vmem:[#allocation6_spill] sm:$0xff] }
  0xd2   : > { %v2123_v54 = vsel %vm1927_vm3, %v6598_v23, %v1812_v56  ;;  %v6040_v19 = vsel %vm950_vm2, %v1909_v45, %v1910_v53  ;;  %v1313_v39 = vrot.slane %v1311_v61, 1  ;;  %v1956_v0 = vsel %vm1927_vm3, %v6599_v6, %v5960_v13 }
  0xd3   : > { %v1460_v52 = vpop.permute.xlu1 %1459  ;;  %2937 = vmatmul.mubr.bf16.gmra.mrb[32].mxu1 %v1953_v21  ;;  %3081 = vmatprep.mubr.bf16.mxu0 %v2123_v54  ;;  %v3801_v21 = vld [vmem:[%s4941_s18 + $0xcc] sm:$0xe]  ;;  %v6052_v45 = vsel %vm950_vm2, %v1912_v33, %v1913_v15  ;;  %v1915_v3 = vrot.slane %v3942_v58, 1  ;;  %v1918_v47 = vrot.slane %v3943_v5, 1  ;;  %v6600_v44 = vshrl.u32 %v6582_v9, 16 }
  0xd4   : > { %v2066_v62 = vsel %vm1927_vm3, %v1242_v46, %v1460_v52  ;;  %2944 = vmatprep.mubr.bf16.mxu1 %v2014_v40  ;;  %v1919_v46 = vrot.slane %v5760_v14, 1  ;;  %v6056_v40 = vsel %vm677_vm1, %v1309_v12, %v1313_v39  ;;  %v1323_v38 = vshll.u32 %v5770_v22, 16 }
  0xd5   : > { %3082 = vmatmul.mubr.bf16.gmra.mrb[56].mxu0 %v2066_v62  ;;  %v1102_v56 = vpop.permute.xlu0 %1101  ;;  %v1321_v59 = vor.u32 %v5949_v35, %v6600_v44  ;;  %v6065_v13 = vsel %vm950_vm2, %v1915_v3, %v1916_v27  ;;  %v3944_v53 = vcombine.low %v3800_v4, %v5799_v8  ;;  %v1922_v29 = vrot.slane %v5810_v51, 1  ;;  %v3786_v3 = vld [vmem:[%s4941_s18 + $0x18] sm:$0xe]  ;;  %v4810_v44 = vld [vmem:[%s4941_s18 + $0x80] ss:$0 sps:$4 sm:$0x11]  }
  0xd6   : > { %v3945_v14 = vcombine.low %v3801_v21, %v5838_v25  ;;  %v2018_v12 = vsel %vm1927_vm3, %v983_v42, %v5991_v32  ;;  %v6073_v9 = vsel %vm950_vm2, %v1918_v47, %v1919_v46  ;;  %v1325_v35 = vrot.slane %v1323_v38, 1  ;;  %v6602_v25 = vld [vmem:[#allocation12_spill] sm:$0xff]  ;;  %v6607_v38 = vld [vmem:[#allocation15_spill] sm:$0xff] }
  0xd7   : > { %v6062_v43 = vpop.permute.xlu1 %892  ;;  %v1925_v22 = vrot.slane %v5855_v37, 1  ;;  %v1921_v23 = vrot.slane %v3944_v53, 1  ;;  %v6601_v15 = vshrl.u32 %v6585_v16, 16  ;;  %v1335_v51 = vshll.u32 %v5818_v28, 16  ;;  %v415_v16 = vld [vmem:[%s4941_s18 + $0x90] sm:$0xe] }
  0xd8   : > { %v1924_v54 = vrot.slane %v3945_v14, 1  ;;  %v6083_v32 = vsel %vm677_vm1, %v1321_v59, %v1325_v35  ;;  %v1345_v42 = vor.u32 %v5983_v30, %v1340_v26  ;;  %v1347_v37 = vshll.u32 %v5863_v49, 16  ;;  %v4809_v21 = vld [vmem:[%s4941_s18 + $0x94] sm:$0xf] }
  0xd9   : > { %v1814_v36 = vpop.permute.xlu0 %1813  ;;  %v1333_v8 = vor.u32 %v5977_v48, %v6601_v15  ;;  %v6091_v48 = vsel %vm950_vm2, %v1921_v23, %v1922_v29  ;;  %v1337_v33 = vrot.slane %v1335_v51, 1  ;;  %v1270_v49 = vshll.u32 %v6603_v11, 16  ;;  %v4811_v14 = vld [vmem:[%s4941_s18 + $0x98] ss:$0 sps:$4 sm:$0x11]  }
  0xda   : > { %v2126_v61 = vsel %vm1927_vm3, %v6602_v25, %v1814_v36  ;;  %v6094_v28 = vsel %vm950_vm2, %v1924_v54, %v1925_v22  ;;  %v1349_v30 = vrot.slane %v1347_v37, 1  ;;  %v6604_v62 = vshrl.u32 %v5196_v55, 16  ;;  %v416_v36 = vld [vmem:[%s4941_s18 + $0x9c] sm:$0xe]  ;;  %v4813_v51 = vld [vmem:[%s4941_s18 + $0xa0] sm:$0xf] }
  0xdb   : > { %v1462_v52 = vpop.permute.xlu1 %1461  ;;  %2945 = vmatmul.mubr.bf16.gmra.mrb[36].mxu1 %v1956_v0  ;;  %3089 = vmatprep.mubr.bf16.mxu0 %v2126_v61  ;;  %v1265_v27 = vrot.slane %v1263_v41, 1  ;;  %v6105_v5 = vsel %vm677_vm1, %v1333_v8, %v1337_v33  ;;  %v3846_v6 = vcombine.low %v415_v16, %v4809_v21  ;;  %v1959_v41 = vsel %vm1927_vm3, %v6606_v20, %v6005_v60  ;;  %v4812_v60 = vld [vmem:[%s4941_s18 + $0x1c] sm:$0xf]  ;;  %v4814_v37 = vld [vmem:[%s4941_s18 + $0x20] ss:$0 sps:$4 sm:$0x11]  }
  0xdc   : > { %v2070_v58 = vsel %vm1927_vm3, %v6022_v2, %v1462_v52  ;;  %2952 = vmatprep.mubr.bf16.mxu1 %v2018_v12  ;;  %v1261_v39 = vor.u32 %v5919_v18, %v6604_v62  ;;  %v6605_v2 = vrot.slane %v6010_v63, 1  ;;  %v6113_v0 = vsel %vm677_vm1, %v1345_v42, %v1349_v30  ;;  %v3787_v16 = vld [vmem:[%s4941_s18 + $0x24] sm:$0xe]  ;;  %v6608_v33 = vld [vmem:[#allocation11_spill] sm:$0xff]  ;;  %v3788_v30 = vld [vmem:[%s4941_s18 + $0x30] sm:$0xe] }
  0xdd   : > { %3090 = vmatmul.mubr.bf16.gmra.mrb[60].mxu0 %v2070_v58  ;;  %v1104_v26 = vpop.permute.xlu0 %1103  ;;  %v1268_v18 = vshrl.u32 %v6603_v11, 16  ;;  %v1272_v63 = vrot.slane %v1270_v49, 1  ;;  %v1275_v59 = vshll.u32 %v4810_v44, 16  ;;  %v987_v29 = vrot.slane %v3846_v6, 1 }
  0xde   : > { %v986_v4 = vsel %vm950_vm2, %v6007_v7, %v6605_v2  ;;  %v1266_v7 = vsel %vm677_vm1, %v1261_v39, %v1265_v27  ;;  %v988_v12 = vrot.slane %v4811_v14, 1  ;;  %v3930_v22 = vcombine.low %v3786_v3, %v4812_v60  ;;  %v4815_v39 = vld [vmem:[%s4941_s18 + $0x28] sm:$0xf] }
  0xdf   : > { %v6115_v55 = vpop.permute.xlu1 %894  ;;  %v2022_v47 = vsel %vm1927_vm3, %v986_v4, %v1102_v56  ;;  %v1273_v54 = vor.u32 %v1272_v63, %v1268_v18  ;;  %v1277_v15 = vrot.slane %v1275_v59, 1  ;;  %v3847_v25 = vcombine.low %v416_v36, %v4813_v51  ;;  %v4816_v4 = vld [vmem:[%s4941_s18 + $0xa4] ss:$0 sps:$4 sm:$0x11]   ;;  %v6609_v18 = vld [vmem:[#allocation19_spill] sm:$0xff] }
  0xe0   : > { %v989_v8 = vsel %vm950_vm2, %v987_v29, %v988_v12  ;;  %v1879_v42 = vrot.slane %v3930_v22, 1  ;;  %v1880_v52 = vrot.slane %v4814_v37, 1  ;;  %v1962_v58 = vsel %vm1927_vm3, %v6608_v33, %v6062_v43  ;;  %v4818_v63 = vld [vmem:[%s4941_s18 + $0x2c] ss:$0 sps:$4 sm:$0x11]   ;;  %v6610_v29 = vld [vmem:[#allocation14_spill] sm:$0xff] }
  0xe1   : > { %v1816_v46 = vpop.permute.xlu0 %1815  ;;  %v1278_v11 = vsel %vm677_vm1, %v1273_v54, %v1277_v15  ;;  %v2026_v49 = vsel %vm1927_vm3, %v989_v8, %v1104_v26  ;;  %v3931_v27 = vcombine.low %v3787_v16, %v4815_v39  ;;  %v990_v2 = vrot.slane %v3847_v25, 1  ;;  %v4819_v59 = vld [vmem:[%s4941_s18 + $0x38] ss:$0 sps:$4 sm:$0x11]   ;;  %v3790_v12 = vld [vmem:[%s4941_s18 + $0x48] sm:$0xe] }
  0xe2   : > { %v2129_v53 = vsel %vm1927_vm3, %v6607_v38, %v1816_v46  ;;  %v991_v21 = vrot.slane %v4816_v4, 1  ;;  %v1881_v43 = vsel %vm950_vm2, %v1879_v42, %v1880_v52  ;;  %v1883_v46 = vrot.slane %v4818_v63, 1  ;;  %v4820_v22 = vld [vmem:[%s4941_s18 + $0x40] sm:$0xf]  ;;  %v4821_v54 = vld [vmem:[%s4941_s18 + $0x4c] sm:$0xf] }
  0xe3   : > { %v1464_v35 = vpop.permute.xlu1 %1463  ;;  %2953 = vmatmul.mubr.bf16.gmra.mrb[40].mxu1 %v1959_v41  ;;  %3097 = vmatprep.mubr.bf16.mxu0 %v2129_v53  ;;  %v4817_v41 = vld [vmem:[%s4941_s18 + $0x34] sm:$0xf]  ;;  %v1886_v38 = vrot.slane %v4819_v59, 1  ;;  %v3789_v53 = vld [vmem:[%s4941_s18 + $0x3c] sm:$0xe]  ;;  %v1965_v14 = vsel %vm1927_vm3, %v6610_v29, %v6115_v55  ;;  %v3934_v15 = vcombine.low %v3790_v12, %v4821_v54 }
  0xe4   : > { %v2074_v56 = vsel %vm1927_vm3, %v1266_v7, %v1464_v35  ;;  %2960 = vmatprep.mubr.bf16.mxu1 %v2022_v47  ;;  %v3932_v3 = vcombine.low %v3788_v30, %v4817_v41  ;;  %v1882_v7 = vrot.slane %v3931_v27, 1  ;;  %v992_v47 = vsel %vm950_vm2, %v990_v2, %v991_v21  ;;  %v4823_v42 = vld [vmem:[%s4941_s18 + $0x50] ss:$0 sps:$4 sm:$0x11]   ;;  %v3791_v52 = vld [vmem:[%s4941_s18 + $0x54] sm:$0xe] }
  0xe5   : > { %3098 = vmatmul.mubr.bf16.gmra.mrb[64].mxu0 %v2074_v56  ;;  %v1106_v23 = vpop.permute.xlu0 %1105  ;;  %v3933_v36 = vcombine.low %v3789_v53, %v4820_v22  ;;  %v1891_v25 = vrot.slane %v3934_v15, 1  ;;  %v1892_v37 = vrot.slane %v4823_v42, 1  ;;  %v6611_v16 = vld [vmem:[#allocation17_spill] sm:$0xff]  ;;  %v4825_v27 = vld [vmem:[%s4941_s18 + $0x64] sm:$0xf] }
  0xe6   : > { %v1885_v44 = vrot.slane %v3932_v3, 1  ;;  %v2030_v35 = vsel %vm1927_vm3, %v992_v47, %v1106_v23  ;;  %v1884_v60 = vsel %vm950_vm2, %v1882_v7, %v1883_v46  ;;  %v4822_v23 = vld [vmem:[%s4941_s18 + $0x44] ss:$0 sps:$4 sm:$0x11]   ;;  %v3794_v41 = vld [vmem:[%s4941_s18 + $0x78] sm:$0xe] }
  0xe7   : > { %v897_v61 = vpop.permute.xlu1 %896  ;;  %v1888_v55 = vrot.slane %v3933_v36, 1  ;;  %v1889_v8 = vrot.slane %v4822_v23, 1  ;;  %v1893_v39 = vsel %vm950_vm2, %v1891_v25, %v1892_v37  ;;  %v4826_v4 = vld [vmem:[%s4941_s18 + $0x5c] ss:$0 sps:$4 sm:$0x11]   ;;  %v6612_v3 = vld [vmem:[#allocation22_spill] sm:$0xff] }
  0xe8   : > { %v1887_v56 = vsel %vm950_vm2, %v1885_v44, %v1886_v38  ;;  %v1968_v33 = vsel %vm1927_vm3, %v6611_v16, %v897_v61  ;;  %v4828_v7 = vld [vmem:[%s4941_s18 + $0x70] sm:$0xf]  ;;  %v4829_v38 = vld [vmem:[%s4941_s18 + $0x7c] sm:$0xf]  ;;  %v3795_v36 = vld [vmem:[%s4941_s18 + $0x84] sm:$0xe] }
  0xe9   : > { %v1818_v62 = vpop.permute.xlu0 %1817  ;;  %v3938_v53 = vcombine.low %v3794_v41, %v4829_v38  ;;  %v4832_v54 = vld [vmem:[%s4941_s18 + $0x88] sm:$0xf]  ;;  %v4833_v25 = vld [vmem:[%s4941_s18 + $0x8c] ss:$0 sps:$4 sm:$0x11]  }
  0xea   : > { %v2132_v20 = vsel %vm1927_vm3, %v6609_v18, %v1818_v62  ;;  %v3939_v15 = vcombine.low %v3795_v36, %v4832_v54  ;;  %v1907_v42 = vrot.slane %v4833_v25, 1 }
  0xeb   : > { %v1466_v6 = vpop.permute.xlu1 %1465  ;;  %2961 = vmatmul.mubr.bf16.gmra.mrb[44].mxu1 %v1962_v58  ;;  %3105 = vmatprep.mubr.bf16.mxu0 %v2132_v20  ;;  %v3792_v58 = vld [vmem:[%s4941_s18 + $0x60] sm:$0xe]  ;;  %v3793_v20 = vld [vmem:[%s4941_s18 + $0x6c] sm:$0xe] }
  0xec   : > { %v2078_v26 = vsel %vm1927_vm3, %v1278_v11, %v1466_v6  ;;  %2968 = vmatprep.mubr.bf16.mxu1 %v2026_v49  ;;  %v1890_v11 = vsel %vm950_vm2, %v1888_v55, %v1889_v8  ;;  %v4824_v49 = vld [vmem:[%s4941_s18 + $0x58] sm:$0xf]  ;;  %v3936_v2 = vcombine.low %v3792_v58, %v4825_v27  ;;  %v4827_v6 = vld [vmem:[%s4941_s18 + $0x68] ss:$0 sps:$4 sm:$0x11]   ;;  %v3937_v47 = vcombine.low %v3793_v20, %v4828_v7  ;;  %v6613_v55 = vld [vmem:[#allocation26_spill] sm:$0xff] }
  0xed   : > { %3106 = vmatmul.mubr.bf16.gmra.mrb[68].mxu0 %v2078_v26  ;;  %v1108_v51 = vpop.permute.xlu0 %1107  ;;  %v3935_v62 = vcombine.low %v3791_v52, %v4824_v49  ;;  %v1898_v18 = vrot.slane %v4827_v6, 1  ;;  %v6614_v58 = vld [vmem:[#allocation29_spill] sm:$0xff]  ;;  %v6244_v7 = vld [vmem:[%s6493_s2] ss:$0 sm:$0xff] }
  0xee   : > { %4408 = vmatprep.mubr.msk.bf16.mxu0 %vm1927_vm3, %v1881_v43  ;;  %v2034_v30 = vsel %vm1927_vm3, %v5973_v24, %v1108_v51  ;;  %v1895_v24 = vrot.slane %v4826_v4, 1  ;;  %v1897_v21 = vrot.slane %v3936_v2, 1  ;;  %v1900_v29 = vrot.slane %v3937_v47, 1 }
  0xef   : > { %v1894_v61 = vrot.slane %v3935_v62, 1  ;;  %v1906_v51 = vrot.slane %v3939_v15, 1  ;;  %v6615_v62 = vld [vmem:[#allocation33_spill] sm:$0xff] }
  0xf0   : > { %v1899_v59 = vsel %vm950_vm2, %v1897_v21, %v1898_v18 }
  0xf1   : > { %v1896_v63 = vsel %vm950_vm2, %v1894_v61, %v1895_v24  ;;  %v1908_v52 = vsel %vm950_vm2, %v1906_v51, %v1907_v42 }
  0xf3   : > { %2969 = vmatmul.mubr.bf16.gmra.mrb[48].mxu1 %v1965_v14  ;;  %v4830_v14 = vld [vmem:[%s4941_s18 + $0x74] ss:$0 sps:$4 sm:$0x11]  }
  0xf4   : > { %2976 = vmatprep.mubr.bf16.mxu1 %v2030_v35  ;;  %v1901_v12 = vrot.slane %v4830_v14, 1  ;;  %v1903_v35 = vrot.slane %v3938_v53, 1 }
  0xf5   : > { %4409 = vmatmul.mubr.msk.bf16.vlgmr.msra.gmra.mrb[0].mxu0 %vm1927_vm3, %v1884_v60  ;;  %v899_v43 = vpop.permute.xlu1 %898  ;;  %v4831_v60 = vld [vmem:[%s4941_s18 + $0x80] ss:$0 sps:$4 sm:$0x11]  }
  0xf6   : > { %4412 = vmatprep.mubr.msk.bf16.mxu0 %vm1927_vm3, %v1887_v56  ;;  %v1971_v26 = vsel %vm1927_vm3, %v6612_v3, %v899_v43  ;;  %v1110_v46 = vpop.permute.xlu0 %1109  ;;  %v1904_v22 = vrot.slane %v4831_v60, 1 }
  0xf7   : > { %v2038_v44 = vsel %vm1927_vm3, %v5997_v57, %v1110_v46  ;;  %v1902_v57 = vsel %vm950_vm2, %v1900_v29, %v1901_v12 }
  0xf8   : > { %v1905_v8 = vsel %vm950_vm2, %v1903_v35, %v1904_v22 }
  0xfb   : > { %2977 = vmatmul.mubr.bf16.gmra.mrb[52].mxu1 %v1968_v33 }
  0xfc   : > { %2984 = vmatprep.mubr.bf16.mxu1 %v2034_v30 }
  0xfd   : > { %4413 = vmatmul.mubr.msk.bf16.gmra.mrb[4].mxu0 %vm1927_vm3, %v1890_v11 }
  0xfe   : > { %4416 = vmatprep.mubr.msk.bf16.mxu0 %vm1927_vm3, %v1893_v39 }
 0x103   : > { %2985 = vmatmul.mubr.bf16.gmra.mrb[56].mxu1 %v1971_v26 }
 0x104   : > { %2992 = vmatprep.mubr.bf16.mxu1 %v2038_v44 }
 0x105   : > { %4417 = vmatmul.mubr.msk.bf16.gmra.mrb[8].mxu0 %vm1927_vm3, %v1896_v63 }
 0x106   : > { %4420 = vmatprep.mubr.msk.bf16.mxu0 %vm1927_vm3, %v1899_v59 }
 0x109   : > { %v901_v56 = vpop.permute.xlu1 %900 }
 0x10a   : > { %v1974_v23 = vsel %vm1927_vm3, %v6613_v55, %v901_v56 }
 0x10b   : > { %2993 = vmatmul.mubr.bf16.gmra.mrb[60].mxu1 %v1974_v23 }
 0x10d   : > { %4421 = vmatmul.mubr.msk.bf16.gmra.mrb[12].mxu0 %vm1927_vm3, %v1902_v57 }
 0x10e   : > { %4424 = vmatprep.mubr.msk.bf16.mxu0 %vm1927_vm3, %v1905_v8  ;;  %v1468_v37 = vpop.permute.xlu1 %1467 }
 0x10f   : > { %v2082_v33 = vsel %vm1927_vm3, %v6025_v31, %v1468_v37 }
 0x113   : > { %v1820_v16 = vpop.permute.xlu0 %1819 }
 0x114   : > { %v2135_v30 = vsel %vm1927_vm3, %v6614_v58, %v1820_v16 }
 0x115   : > { %3113 = vmatprep.mubr.bf16.mxu1 %v2135_v30  ;;  %4425 = vmatmul.mubr.msk.bf16.gmra.mrb[16].mxu0 %vm1927_vm3, %v1908_v52 }
 0x116   : > { %3114 = vmatmul.mubr.bf16.vlgmr.msra.gmra.mrb[64].mxu1 %v2082_v33  ;;  %4428 = vmatprep.mubr.msk.bf16.mxu0 %vm1927_vm3, %v6040_v19  ;;  %v1470_v49 = vpop.permute.xlu1 %1469 }
 0x117   : > { %v2086_v27 = vsel %vm1927_vm3, %v6037_v34, %v1470_v49 }
 0x118   : > { %v1822_v11 = vpop.permute.xlu0 %1821 }
 0x119   : > { %v2138_v39 = vsel %vm1927_vm3, %v6615_v62, %v1822_v11 }
 0x11a   : > { %3121 = vmatprep.mubr.bf16.mxu1 %v2138_v39  ;;  %v1472_v19 = vpop.permute.xlu1 %1471 }
 0x11b   : > { %v2090_v4 = vsel %vm1927_vm3, %v6056_v40, %v1472_v19 }
 0x11c   : > { %v1824_v31 = vpop.permute.xlu0 %1823 }
 0x11d   : > { %4429 = vmatmul.mubr.msk.bf16.gmra.mrb[20].mxu0 %vm1927_vm3, %v6052_v45  ;;  %v2141_v2 = vsel %vm1927_vm3, %v5710_v1, %v1824_v31 }
 0x11e   : > { %3122 = vmatmul.mubr.bf16.gmra.mrb[68].mxu1 %v2086_v27  ;;  %4432 = vmatprep.mubr.msk.bf16.mxu0 %vm1927_vm3, %v6065_v13  ;;  %v1474_v1 = vpop.permute.xlu1 %1473 }
 0x11f   : > { %3129 = vmatprep.mubr.bf16.mxu1 %v2141_v2  ;;  %v2094_v13 = vsel %vm1927_vm3, %v6083_v32, %v1474_v1 }
 0x121   : > { %v1826_v61 = vpop.permute.xlu0 %1825 }
 0x122   : > { %v2144_v34 = vsel %vm1927_vm3, %v5757_v17, %v1826_v61 }
 0x124   : > { %v1476_v17 = vpop.permute.xlu1 %1475 }
 0x125   : > { %4433 = vmatmul.mubr.msk.bf16.gmra.mrb[24].mxu0 %vm1927_vm3, %v6073_v9  ;;  %v2098_v9 = vsel %vm1927_vm3, %v6105_v5, %v1476_v17 }
 0x126   : > { %3130 = vmatmul.mubr.bf16.gmra.mrb[72].mxu1 %v2090_v4  ;;  %4436 = vmatprep.mubr.msk.bf16.mxu0 %vm1927_vm3, %v6091_v48 }
 0x127   : > { %3137 = vmatprep.mubr.bf16.mxu1 %v2144_v34  ;;  %v1828_v45 = vpop.permute.xlu0 %1827 }
 0x128   : > { %v2147_v24 = vsel %vm1927_vm3, %v5807_v50, %v1828_v45  ;;  %v1478_v21 = vpop.permute.xlu1 %1477 }
 0x129   : > { %v2102_v32 = vsel %vm1927_vm3, %v6113_v0, %v1478_v21 }
 0x12c   : > { %v1830_v40 = vpop.permute.xlu0 %1829 }
 0x12d   : > { %4437 = vmatmul.mubr.msk.bf16.gmra.mrb[28].mxu0 %vm1927_vm3, %v6094_v28  ;;  %v2150_v48 = vsel %vm1927_vm3, %v5860_v10, %v1830_v40 }
 0x12e   : > { %3138 = vmatmul.mubr.bf16.gmra.mrb[76].mxu1 %v2094_v13 }
 0x12f   : > { %3145 = vmatprep.mubr.bf16.mxu1 %v2147_v24 }
 0x136   : > { %3146 = vmatmul.mubr.bf16.gmra.mrb[80].mxu1 %v2098_v9 }
 0x137   : > { %3153 = vmatprep.mubr.bf16.mxu1 %v2150_v48 }
 0x13e   : > { %3154 = vmatmul.mubr.bf16.gmra.mrb[84].mxu1 %v2102_v32 }
 0x166   : > { %v4136_v50 = vpop.f32.mrb[0].mxu1 }
 0x167   : > { %v4137_v6 = vpop.f32.mrb[1].mxu1 }
 0x168   : > { %v4138_v28 = vadd.f32 %v4137_v6, %v4136_v50  ;;  %v4139_v18 = vpop.f32.mrb[2].mxu1 }
 0x169   : > { %v4140_v20 = vpop.f32.mrb[3].mxu1 }
 0x16a   : > { %v4141_v43 = vadd.f32 %v4140_v20, %v4139_v18  ;;  %v2875_v29 = vadd.f32 %v4138_v28, %v6244_v7 }
 0x16c   : > { %v2878_v22 = vadd.f32 %v4141_v43, %v6244_v7 }
 0x16e   : > { %v4142_v41 = vpop.f32.mrb[4].mxu1 }
 0x16f   : > { %v4143_v3 = vpop.f32.mrb[5].mxu1 }
 0x170   : > { %v4144_v26 = vadd.f32 %v4143_v3, %v4142_v41  ;;  %v4145_v5 = vpop.f32.mrb[6].mxu1 }
 0x171   : > { %v4146_v63 = vpop.f32.mrb[7].mxu1 }
 0x172   : > { %v4147_v46 = vadd.f32 %v4146_v63, %v4145_v5  ;;  %v2883_v42 = vadd.f32 %v4144_v26, %v6244_v7 }
 0x174   : > { %v2886_v58 = vadd.f32 %v4147_v46, %v6244_v7 }
 0x176   : > { %v4148_v10 = vpop.f32.mrb[8].mxu1 }
 0x177   : > { %v4149_v0 = vpop.f32.mrb[9].mxu1 }
 0x178   : > { %v4150_v47 = vadd.f32 %v4149_v0, %v4148_v10  ;;  %v4248_v44 = vpop.f32.mrb[32].mxu0  ;;  %v4151_v59 = vpop.f32.mrb[10].mxu1 }
 0x179   : > { %v4249_v38 = vpop.f32.mrb[33].mxu0  ;;  %v4152_v53 = vpop.f32.mrb[11].mxu1 }
 0x17a   : > { %v4250_v14 = vadd.f32 %v4249_v38, %v4248_v44  ;;  %v4153_v12 = vadd.f32 %v4152_v53, %v4151_v59  ;;  %v4251_v35 = vpop.f32.mrb[34].mxu0  ;;  %v2891_v4 = vadd.f32 %v4150_v47, %v6244_v7 }
 0x17b   : > { %v4252_v60 = vpop.f32.mrb[35].mxu0 }
 0x17c   : > { %v6248_v36 = vadd.f32 %v4250_v14, %v2875_v29  ;;  %v4253_v56 = vadd.f32 %v4252_v60, %v4251_v35  ;;  %v2894_v24 = vadd.f32 %v4153_v12, %v6244_v7 }
 0x17e   : > { %v6250_v57 = vadd.f32 %v4253_v56, %v2878_v22  ;;  %v4154_v54 = vpop.f32.mrb[12].mxu1 }
 0x17f   : > { %v4155_v15 = vpop.f32.mrb[13].mxu1 }
 0x180   : > { %v4156_v55 = vadd.f32 %v4155_v15, %v4154_v54  ;;  %v4254_v23 = vpop.f32.mrb[36].mxu0  ;;  %v4157_v8 = vpop.f32.mrb[14].mxu1 }
 0x181   : > { %v4255_v51 = vpop.f32.mrb[37].mxu0  ;;  %v4158_v25 = vpop.f32.mrb[15].mxu1 }
 0x182   : > { %v4256_v37 = vadd.f32 %v4255_v51, %v4254_v23  ;;  %v4159_v52 = vadd.f32 %v4158_v25, %v4157_v8  ;;  %v4257_v16 = vpop.f32.mrb[38].mxu0  ;;  %v2899_v20 = vadd.f32 %v4156_v55, %v6244_v7 }
 0x183   : > { %v4258_v33 = vpop.f32.mrb[39].mxu0 }
 0x184   : > { %v6254_v30 = vadd.f32 %v4256_v37, %v2883_v42  ;;  %v4259_v11 = vadd.f32 %v4258_v33, %v4257_v16  ;;  %v2902_v5 = vadd.f32 %v4159_v52, %v6244_v7 }
 0x186   : > { %v6256_v49 = vadd.f32 %v4259_v11, %v2886_v58  ;;  %v4160_v62 = vpop.f32.mrb[16].mxu1 }
 0x187   : > { %v4161_v39 = vpop.f32.mrb[17].mxu1 }
 0x188   : > { %v4162_v27 = vadd.f32 %v4161_v39, %v4160_v62  ;;  %v4260_v31 = vpop.f32.mrb[40].mxu0  ;;  %v4163_v2 = vpop.f32.mrb[18].mxu1 }
 0x189   : > { %v4261_v19 = vpop.f32.mrb[41].mxu0  ;;  %v4164_v61 = vpop.f32.mrb[19].mxu1 }
 0x18a   : > { %v4262_v34 = vadd.f32 %v4261_v19, %v4260_v31  ;;  %v4165_v1 = vadd.f32 %v4164_v61, %v4163_v2  ;;  %v4263_v45 = vpop.f32.mrb[42].mxu0  ;;  %v2907_v14 = vadd.f32 %v4162_v27, %v6244_v7 }
 0x18b   : > { %v4264_v13 = vpop.f32.mrb[43].mxu0 }
 0x18c   : > { %v6260_v17 = vadd.f32 %v4262_v34, %v2891_v4  ;;  %v4265_v40 = vadd.f32 %v4264_v13, %v4263_v45  ;;  %v2910_v56 = vadd.f32 %v4165_v1, %v6244_v7 }
 0x18e   : > { %v6262_v9 = vadd.f32 %v4265_v40, %v2894_v24  ;;  %v4166_v48 = vpop.f32.mrb[20].mxu1 }
 0x18f   : > { %v4167_v21 = vpop.f32.mrb[21].mxu1 }
 0x190   : > { %v4168_v32 = vadd.f32 %v4167_v21, %v4166_v48  ;;  %v4266_v50 = vpop.f32.mrb[44].mxu0  ;;  %v4169_v6 = vpop.f32.mrb[22].mxu1 }
 0x191   : > { %v4267_v28 = vpop.f32.mrb[45].mxu0  ;;  %v4170_v18 = vpop.f32.mrb[23].mxu1 }
 0x192   : > { %v4268_v43 = vadd.f32 %v4267_v28, %v4266_v50  ;;  %v4171_v41 = vadd.f32 %v4170_v18, %v4169_v6  ;;  %v4269_v3 = vpop.f32.mrb[46].mxu0  ;;  %v2915_v16 = vadd.f32 %v4168_v32, %v6244_v7 }
 0x193   : > { %v4270_v26 = vpop.f32.mrb[47].mxu0 }
 0x194   : > { %v6266_v63 = vadd.f32 %v4268_v43, %v2899_v20  ;;  %v4271_v46 = vadd.f32 %v4270_v26, %v4269_v3  ;;  %v2918_v39 = vadd.f32 %v4171_v41, %v6244_v7 }
 0x196   : > { %v6268_v10 = vadd.f32 %v4271_v46, %v2902_v5  ;;  %v4172_v0 = vpop.f32.mrb[24].mxu1 }
 0x197   : > { %v4173_v47 = vpop.f32.mrb[25].mxu1 }
 0x198   : > { %v4174_v44 = vadd.f32 %v4173_v47, %v4172_v0  ;;  %v4272_v59 = vpop.f32.mrb[48].mxu0  ;;  %v4175_v38 = vpop.f32.mrb[26].mxu1 }
 0x199   : > { %v4273_v53 = vpop.f32.mrb[49].mxu0  ;;  %v4176_v29 = vpop.f32.mrb[27].mxu1 }
 0x19a   : > { %v4274_v12 = vadd.f32 %v4273_v53, %v4272_v59  ;;  %v4177_v35 = vadd.f32 %v4176_v29, %v4175_v38  ;;  %v4275_v60 = vpop.f32.mrb[50].mxu0  ;;  %v2923_v24 = vadd.f32 %v4174_v44, %v6244_v7 }
 0x19b   : > { %v4276_v22 = vpop.f32.mrb[51].mxu0 }
 0x19c   : > { %v6272_v54 = vadd.f32 %v4274_v12, %v2907_v14  ;;  %v4277_v15 = vadd.f32 %v4276_v22, %v4275_v60  ;;  %v2926_v50 = vadd.f32 %v4177_v35, %v6244_v7 }
 0x19e   : > { %v6274_v55 = vadd.f32 %v4277_v15, %v2910_v56  ;;  %v4178_v23 = vpop.f32.mrb[28].mxu1 }
 0x19f   : > { %v4179_v8 = vpop.f32.mrb[29].mxu1 }
 0x1a0   : > { %v4180_v51 = vadd.f32 %v4179_v8, %v4178_v23  ;;  %v4278_v25 = vpop.f32.mrb[52].mxu0  ;;  %v4181_v42 = vpop.f32.mrb[30].mxu1 }
 0x1a1   : > { %v4279_v37 = vpop.f32.mrb[53].mxu0  ;;  %v4182_v52 = vpop.f32.mrb[31].mxu1 }
 0x1a2   : > { %v4280_v33 = vadd.f32 %v4279_v37, %v4278_v25  ;;  %v4183_v58 = vadd.f32 %v4182_v52, %v4181_v42  ;;  %v4281_v11 = vpop.f32.mrb[54].mxu0  ;;  %v2931_v0 = vadd.f32 %v4180_v51, %v6244_v7 }
 0x1a3   : > { %v4282_v62 = vpop.f32.mrb[55].mxu0 }
 0x1a4   : > { %v6278_v27 = vadd.f32 %v4280_v33, %v2915_v16  ;;  %v4283_v31 = vadd.f32 %v4282_v62, %v4281_v11  ;;  %v2934_v53 = vadd.f32 %v4183_v58, %v6244_v7 }
 0x1a6   : > { %v6280_v2 = vadd.f32 %v4283_v31, %v2918_v39  ;;  %v4184_v19 = vpop.f32.mrb[32].mxu1 }
 0x1a7   : > { %v4185_v61 = vpop.f32.mrb[33].mxu1 }
 0x1a8   : > { %v4186_v4 = vadd.f32 %v4185_v61, %v4184_v19  ;;  %v4284_v34 = vpop.f32.mrb[56].mxu0  ;;  %v4187_v1 = vpop.f32.mrb[34].mxu1 }
 0x1a9   : > { %v4285_v45 = vpop.f32.mrb[57].mxu0  ;;  %v4188_v13 = vpop.f32.mrb[35].mxu1 }
 0x1aa   : > { %v4286_v40 = vadd.f32 %v4285_v45, %v4284_v34  ;;  %v4189_v48 = vadd.f32 %v4188_v13, %v4187_v1  ;;  %v4287_v21 = vpop.f32.mrb[58].mxu0  ;;  %v2939_v51 = vadd.f32 %v4186_v4, %v6244_v7 }
 0x1ab   : > { %v4288_v32 = vpop.f32.mrb[59].mxu0 }
 0x1ac   : > { %v6284_v6 = vadd.f32 %v4286_v40, %v2923_v24  ;;  %v4289_v28 = vadd.f32 %v4288_v32, %v4287_v21  ;;  %v2942_v16 = vadd.f32 %v4189_v48, %v6244_v7 }
 0x1ae   : > { %v6286_v18 = vadd.f32 %v4289_v28, %v2926_v50  ;;  %v4190_v20 = vpop.f32.mrb[36].mxu1  ;;  %v6315_v50 = vld [vmem:[%s6496_s5] ss:$0 sm:$0xff] }
 0x1af   : > { %v4191_v43 = vpop.f32.mrb[37].mxu1 }
 0x1b0   : > { %v4192_v41 = vadd.f32 %v4191_v43, %v4190_v20  ;;  %v4290_v3 = vpop.f32.mrb[60].mxu0  ;;  %v4193_v26 = vpop.f32.mrb[38].mxu1 }
 0x1b1   : > { %v4291_v5 = vpop.f32.mrb[61].mxu0  ;;  %v4194_v46 = vpop.f32.mrb[39].mxu1 }
 0x1b2   : > { %v4292_v47 = vadd.f32 %v4291_v5, %v4290_v3  ;;  %v4195_v44 = vadd.f32 %v4194_v46, %v4193_v26  ;;  %v4293_v59 = vpop.f32.mrb[62].mxu0  ;;  %v2947_v1 = vadd.f32 %v4192_v41, %v6244_v7  ;;  %v4456_v41 = vadd.f32 %v6315_v50, %v6254_v30 }
 0x1b3   : > { %v4294_v38 = vpop.f32.mrb[63].mxu0  ;;  %v4458_v46 = vadd.f32 %v6315_v50, %v6248_v36 }
 0x1b4   : > { %v6290_v29 = vadd.f32 %v4292_v47, %v2931_v0  ;;  %v4295_v14 = vadd.f32 %v4294_v38, %v4293_v59  ;;  %v2950_v48 = vadd.f32 %v4195_v44, %v6244_v7  ;;  %v4460_v59 = vadd.f32 %v6315_v50, %v6256_v49 }
 0x1b6   : > { %v6292_v12 = vadd.f32 %v4295_v14, %v2934_v53  ;;  %v4196_v35 = vpop.f32.mrb[40].mxu1  ;;  %v4462_v53 = vadd.f32 %v6315_v50, %v6250_v57 }
 0x1b7   : > { %v4197_v60 = vpop.f32.mrb[41].mxu1 }
 0x1b8   : > { %v6294_v22 = vadd.f32 %v4197_v60, %v4196_v35  ;;  %v4296_v56 = vpop.f32.mrb[64].mxu0  ;;  %v4199_v15 = vpop.f32.mrb[42].mxu1 }
 0x1b9   : > { %v4297_v23 = vpop.f32.mrb[65].mxu0  ;;  %v4200_v8 = vpop.f32.mrb[43].mxu1 }
 0x1ba   : > { %v4298_v25 = vadd.f32 %v4297_v23, %v4296_v56  ;;  %v6297_v42 = vadd.f32 %v4200_v8, %v4199_v15  ;;  %v4299_v37 = vpop.f32.mrb[66].mxu0 }
 0x1bb   : > { %v4300_v52 = vpop.f32.mrb[67].mxu0 }
 0x1bc   : > { %v6300_v33 = vadd.f32 %v4298_v25, %v2939_v51  ;;  %v4301_v58 = vadd.f32 %v4300_v52, %v4299_v37  ;;  %v4464_v25 = vadd.f32 %v6315_v50, %v6266_v63 }
 0x1be   : > { %v6302_v11 = vadd.f32 %v4301_v58, %v2942_v16  ;;  %v4202_v62 = vpop.f32.mrb[44].mxu1  ;;  %v4466_v16 = vadd.f32 %v6315_v50, %v6260_v17 }
 0x1bf   : > { %v4203_v39 = vpop.f32.mrb[45].mxu1 }
 0x1c0   : > { %v6304_v31 = vadd.f32 %v4203_v39, %v4202_v62  ;;  %v4302_v19 = vpop.f32.mrb[68].mxu0  ;;  %v4205_v61 = vpop.f32.mrb[46].mxu1 }
 0x1c1   : > { %v4303_v34 = vpop.f32.mrb[69].mxu0  ;;  %v4206_v4 = vpop.f32.mrb[47].mxu1 }
 0x1c2   : > { %v4304_v45 = vadd.f32 %v4303_v34, %v4302_v19  ;;  %v6307_v13 = vadd.f32 %v4206_v4, %v4205_v61  ;;  %v4305_v24 = vpop.f32.mrb[70].mxu0  ;;  %v4468_v19 = vadd.f32 %v6315_v50, %v6268_v10  ;;  %v4470_v4 = vadd.f32 %v6315_v50, %v6262_v9 }
 0x1c3   : > { %v4306_v40 = vpop.f32.mrb[71].mxu0 }
 0x1c4   : > { %v6310_v21 = vadd.f32 %v4304_v45, %v2947_v1  ;;  %v4307_v32 = vadd.f32 %v4306_v40, %v4305_v24 }
 0x1c6   : > { %v6317_v28 = vadd.f32 %v4307_v32, %v2950_v48  ;;  %v4208_v20 = vpop.f32.mrb[48].mxu1 }
 0x1c7   : > { %v4209_v43 = vpop.f32.mrb[49].mxu1 }
 0x1c8   : > { %v6321_v3 = vadd.f32 %v4209_v43, %v4208_v20  ;;  %v4410_v26 = vpop.f32.mrb[0].mxu0  ;;  %v4211_v5 = vpop.f32.mrb[50].mxu1  ;;  %v4472_v43 = vadd.f32 %v6315_v50, %v6278_v27 }
 0x1c9   : > { %v4457_v0 = vadd.f32 %v4456_v41, %v4410_v26  ;;  %v3196_v47 = vpop.f32.mrb[1].mxu0  ;;  %v4212_v44 = vpop.f32.mrb[51].mxu1 }
 0x1ca   : > { %v4459_v30 = vadd.f32 %v4458_v46, %v3196_v47  ;;  %v6334_v38 = vadd.f32 %v4212_v44, %v4211_v5  ;;  %v4411_v36 = vpop.f32.mrb[2].mxu0  ;;  %v4474_v5 = vadd.f32 %v6315_v50, %v6272_v54  ;;  %v4476_v44 = vadd.f32 %v6315_v50, %v6280_v2 }
 0x1cb   : > { %v4072_v14 = vpack.c.bf16 %v4457_v0, %v4457_v0  ;;  %v4461_v49 = vadd.f32 %v4460_v59, %v4411_v36  ;;  %v3199_v35 = vpop.f32.mrb[3].mxu0  ;;  %v4478_v36 = vadd.f32 %v6315_v50, %v6274_v55 }
 0x1cc   : > { %v4070_v60 = vpack.c.bf16 %v4459_v30, %v4459_v30  ;;  %v4463_v56 = vadd.f32 %v4462_v53, %v3199_v35 }
 0x1cd   : > { %3486 = vst.msk [vmem:[%s6332_s28 + $0x8] sm:$0xf] %vm3483_vm4, %v4072_v14  ;;  %v4073_v15 = vpack.c.bf16 %v4461_v49, %v4461_v49 }
 0x1ce   : > { %3484 = vst.msk [vmem:[%s6332_s28] sm:$0xf] %vm3483_vm4, %v4070_v60  ;;  %v4071_v23 = vpack.c.bf16 %v4463_v56, %v4463_v56  ;;  %v4214_v8 = vpop.f32.mrb[52].mxu1 }
 0x1cf   : > { %3487 = vst.msk [vmem:[%s6332_s28 + $0xc] sm:$0xf] %vm3483_vm4, %v4073_v15  ;;  %v4215_v51 = vpop.f32.mrb[53].mxu1  ;;  %v4480_v15 = vadd.f32 %v6315_v50, %v6290_v29 }
 0x1d0   : > { %3485 = vst.msk [vmem:[%s6332_s28 + $0x4] sm:$0xf] %vm3483_vm4, %v4071_v23  ;;  %v6348_v57 = vadd.f32 %v4215_v51, %v4214_v8  ;;  %v4414_v37 = vpop.f32.mrb[4].mxu0  ;;  %v4217_v52 = vpop.f32.mrb[54].mxu1  ;;  %v4482_v8 = vadd.f32 %v6315_v50, %v6284_v6 }
 0x1d1   : > { %v4465_v58 = vadd.f32 %v4464_v25, %v4414_v37  ;;  %v3212_v62 = vpop.f32.mrb[5].mxu0  ;;  %v4218_v39 = vpop.f32.mrb[55].mxu1 }
 0x1d2   : > { %v4467_v61 = vadd.f32 %v4466_v16, %v3212_v62  ;;  %v6354_v63 = vadd.f32 %v4218_v39, %v4217_v52  ;;  %v4415_v34 = vpop.f32.mrb[6].mxu0  ;;  %v4484_v16 = vadd.f32 %v6315_v50, %v6292_v12  ;;  %v4486_v39 = vadd.f32 %v6315_v50, %v6286_v18 }
 0x1d3   : > { %v4076_v1 = vpack.c.bf16 %v4465_v58, %v4465_v58  ;;  %v4469_v45 = vadd.f32 %v4468_v19, %v4415_v34  ;;  %v3215_v24 = vpop.f32.mrb[7].mxu0 }
 0x1d4   : > { %v4074_v17 = vpack.c.bf16 %v4467_v61, %v4467_v61  ;;  %v4471_v40 = vadd.f32 %v4470_v4, %v3215_v24  ;;  %v4488_v24 = vadd.f32 %v6315_v50, %v6310_v21  ;;  %v4494_v21 = vadd.f32 %v6315_v50, %v6302_v11 }
 0x1d5   : > { %3490 = vst.msk [vmem:[%s6332_s28 + $0x18] sm:$0xf] %vm3483_vm4, %v4076_v1  ;;  %v4077_v48 = vpack.c.bf16 %v4469_v45, %v4469_v45 }
 0x1d6   : > { %3488 = vst.msk [vmem:[%s6332_s28 + $0x10] sm:$0xf] %vm3483_vm4, %v4074_v17  ;;  %v4075_v32 = vpack.c.bf16 %v4471_v40, %v4471_v40  ;;  %v4220_v10 = vpop.f32.mrb[56].mxu1  ;;  %v4490_v17 = vadd.f32 %v6315_v50, %v6300_v33 }
 0x1d7   : > { %3491 = vst.msk [vmem:[%s6332_s28 + $0x1c] sm:$0xf] %vm3483_vm4, %v4077_v48  ;;  %v4221_v20 = vpop.f32.mrb[57].mxu1 }
 0x1d8   : > { %3489 = vst.msk [vmem:[%s6332_s28 + $0x14] sm:$0xf] %vm3483_vm4, %v4075_v32  ;;  %v6368_v9 = vadd.f32 %v4221_v20, %v4220_v10  ;;  %v4418_v41 = vpop.f32.mrb[8].mxu0  ;;  %v4223_v26 = vpop.f32.mrb[58].mxu1  ;;  %v4492_v10 = vadd.f32 %v6315_v50, %v6317_v28 }
 0x1d9   : > { %v4473_v46 = vadd.f32 %v4472_v43, %v4418_v41  ;;  %v3228_v0 = vpop.f32.mrb[9].mxu0  ;;  %v4224_v47 = vpop.f32.mrb[59].mxu1 }
 0x1da   : > { %v4475_v59 = vadd.f32 %v4474_v5, %v3228_v0  ;;  %v6374_v27 = vadd.f32 %v4224_v47, %v4223_v26  ;;  %v4419_v30 = vpop.f32.mrb[10].mxu0  ;;  %v2955_v26 = vadd.f32 %v6294_v22, %v6244_v7 }
 0x1db   : > { %v4080_v53 = vpack.c.bf16 %v4473_v46, %v4473_v46  ;;  %v4477_v14 = vadd.f32 %v4476_v44, %v4419_v30  ;;  %v3231_v49 = vpop.f32.mrb[11].mxu0  ;;  %v2958_v30 = vadd.f32 %v6297_v42, %v6244_v7 }
 0x1dc   : > { %v4078_v54 = vpack.c.bf16 %v4475_v59, %v4475_v59  ;;  %v4479_v35 = vadd.f32 %v4478_v36, %v3231_v49 }
 0x1dd   : > { %3494 = vst.msk [vmem:[%s6332_s28 + $0x28] sm:$0xf] %vm3483_vm4, %v4080_v53  ;;  %v4081_v60 = vpack.c.bf16 %v4477_v14, %v4477_v14 }
 0x1de   : > { %3492 = vst.msk [vmem:[%s6332_s28 + $0x20] sm:$0xf] %vm3483_vm4, %v4078_v54  ;;  %v4079_v56 = vpack.c.bf16 %v4479_v35, %v4479_v35  ;;  %v4226_v2 = vpop.f32.mrb[60].mxu1 }
 0x1df   : > { %3495 = vst.msk [vmem:[%s6332_s28 + $0x2c] sm:$0xf] %vm3483_vm4, %v4081_v60  ;;  %v4227_v55 = vpop.f32.mrb[61].mxu1 }
 0x1e0   : > { %3493 = vst.msk [vmem:[%s6332_s28 + $0x24] sm:$0xf] %vm3483_vm4, %v4079_v56  ;;  %v4422_v23 = vpop.f32.mrb[12].mxu0  ;;  %v6390_v51 = vadd.f32 %v4227_v55, %v4226_v2  ;;  %v4229_v37 = vpop.f32.mrb[62].mxu1  ;;  %v2963_v55 = vadd.f32 %v6304_v31, %v6244_v7 }
 0x1e1   : > { %v4481_v25 = vadd.f32 %v4480_v15, %v4422_v23  ;;  %v3244_v52 = vpop.f32.mrb[13].mxu0  ;;  %v4230_v29 = vpop.f32.mrb[63].mxu1 }
 0x1e2   : > { %v4483_v58 = vadd.f32 %v4482_v8, %v3244_v52  ;;  %v4423_v62 = vpop.f32.mrb[14].mxu0  ;;  %v6396_v6 = vadd.f32 %v4230_v29, %v4229_v37 }
 0x1e3   : > { %v4084_v19 = vpack.c.bf16 %v4481_v25, %v4481_v25  ;;  %v4485_v61 = vadd.f32 %v4484_v16, %v4423_v62  ;;  %v3247_v34 = vpop.f32.mrb[15].mxu0 }
 0x1e4   : > { %v4082_v4 = vpack.c.bf16 %v4483_v58, %v4483_v58  ;;  %v4487_v1 = vadd.f32 %v4486_v39, %v3247_v34  ;;  %v2966_v58 = vadd.f32 %v6307_v13, %v6244_v7 }
 0x1e5   : > { %3498 = vst.msk [vmem:[%s6332_s28 + $0x38] sm:$0xf] %vm3483_vm4, %v4084_v19  ;;  %v4085_v45 = vpack.c.bf16 %v4485_v61, %v4485_v61 }
 0x1e6   : > { %3496 = vst.msk [vmem:[%s6332_s28 + $0x30] sm:$0xf] %vm3483_vm4, %v4082_v4  ;;  %v4083_v12 = vpack.c.bf16 %v4487_v1, %v4487_v1 }
 0x1e7   : > { %3499 = vst.msk [vmem:[%s6332_s28 + $0x3c] sm:$0xf] %vm3483_vm4, %v4085_v45 }
 0x1e8   : > { %3497 = vst.msk [vmem:[%s6332_s28 + $0x34] sm:$0xf] %vm3483_vm4, %v4083_v12  ;;  %v4426_v18 = vpop.f32.mrb[16].mxu0 }
 0x1e9   : > { %v4308_v40 = vpop.f32.mrb[64].mxu1  ;;  %v4489_v48 = vadd.f32 %v4488_v24, %v4426_v18  ;;  %v3260_v32 = vpop.f32.mrb[17].mxu0  ;;  %v2971_v24 = vadd.f32 %v6321_v3, %v6244_v7 }
 0x1ea   : > { %v4309_v20 = vpop.f32.mrb[65].mxu1  ;;  %v4491_v43 = vadd.f32 %v4490_v17, %v3260_v32  ;;  %v4427_v41 = vpop.f32.mrb[18].mxu0 }
 0x1eb   : > { %v4310_v5 = vadd.f32 %v4309_v20, %v4308_v40  ;;  %v4088_v33 = vpack.c.bf16 %v4489_v48, %v4489_v48  ;;  %v4311_v46 = vpop.f32.mrb[66].mxu1  ;;  %v4493_v0 = vadd.f32 %v4492_v10, %v4427_v41  ;;  %v3263_v47 = vpop.f32.mrb[19].mxu0  ;;  %v2974_v20 = vadd.f32 %v6334_v38, %v6244_v7 }
 0x1ec   : > { %v4086_v44 = vpack.c.bf16 %v4491_v43, %v4491_v43  ;;  %v4312_v28 = vpop.f32.mrb[67].mxu1  ;;  %v4495_v59 = vadd.f32 %v4494_v21, %v3263_v47 }
 0x1ed   : > { %v3116_v36 = vadd.f32 %v4310_v5, %v2955_v26  ;;  %3502 = vst.msk [vmem:[%s6332_s28 + $0x48] sm:$0xf] %vm3483_vm4, %v4088_v33  ;;  %v4313_v11 = vadd.f32 %v4312_v28, %v4311_v46  ;;  %v4089_v53 = vpack.c.bf16 %v4493_v0, %v4493_v0  ;;  %v2979_v28 = vadd.f32 %v6348_v57, %v6244_v7 }
 0x1ee   : > { %3500 = vst.msk [vmem:[%s6332_s28 + $0x40] sm:$0xf] %vm3483_vm4, %v4086_v44  ;;  %v4087_v22 = vpack.c.bf16 %v4495_v59, %v4495_v59 }
 0x1ef   : > { %v3119_v14 = vadd.f32 %v4313_v11, %v2958_v30  ;;  %3503 = vst.msk [vmem:[%s6332_s28 + $0x4c] sm:$0xf] %vm3483_vm4, %v4089_v53  ;;  %v4498_v54 = vadd.f32 %v6315_v50, %v3116_v36 }
 0x1f0   : > { %3501 = vst.msk [vmem:[%s6332_s28 + $0x44] sm:$0xf] %vm3483_vm4, %v4087_v22  ;;  %v4430_v49 = vpop.f32.mrb[20].mxu0 }
 0x1f1   : > { %v4314_v35 = vpop.f32.mrb[68].mxu1  ;;  %v3276_v60 = vpop.f32.mrb[21].mxu0  ;;  %v4502_v15 = vadd.f32 %v6315_v50, %v3119_v14  ;;  %v2982_v14 = vadd.f32 %v6354_v63, %v6244_v7  ;;  %v2987_v63 = vadd.f32 %v6368_v9, %v6244_v7 }
 0x1f2   : > { %v4315_v42 = vpop.f32.mrb[69].mxu1  ;;  %v4499_v56 = vadd.f32 %v4498_v54, %v3276_v60  ;;  %v4431_v2 = vpop.f32.mrb[22].mxu0 }
 0x1f3   : > { %v4316_v23 = vadd.f32 %v4315_v42, %v4314_v35  ;;  %v4317_v8 = vpop.f32.mrb[70].mxu1  ;;  %v3279_v25 = vpop.f32.mrb[23].mxu0 }
 0x1f4   : > { %v4090_v37 = vpack.c.bf16 %v4499_v56, %v4499_v56  ;;  %v4318_v52 = vpop.f32.mrb[71].mxu1  ;;  %v4503_v16 = vadd.f32 %v4502_v15, %v3279_v25 }
 0x1f5   : > { %v3124_v29 = vadd.f32 %v4316_v23, %v2963_v55  ;;  %v4319_v62 = vadd.f32 %v4318_v52, %v4317_v8  ;;  %v2990_v52 = vadd.f32 %v6374_v27, %v6244_v7  ;;  %v2995_v27 = vadd.f32 %v6390_v51, %v6244_v7 }
 0x1f6   : > { %3504 = vst.msk [vmem:[%s6332_s28 + $0x50] sm:$0xf] %vm3483_vm4, %v4090_v37  ;;  %v4091_v39 = vpack.c.bf16 %v4503_v16, %v4503_v16 }
 0x1f7   : > { %v4496_v19 = vadd.f32 %v6315_v50, %v3124_v29  ;;  %v3127_v61 = vadd.f32 %v4319_v62, %v2966_v58 }
 0x1f8   : > { %3505 = vst.msk [vmem:[%s6332_s28 + $0x54] sm:$0xf] %vm3483_vm4, %v4091_v39  ;;  %v4434_v31 = vpop.f32.mrb[24].mxu0 }
 0x1f9   : > { %v4497_v34 = vadd.f32 %v4496_v19, %v4430_v49  ;;  %v4500_v4 = vadd.f32 %v6315_v50, %v3127_v61  ;;  %v4320_v1 = vpop.f32.mrb[72].mxu1  ;;  %v3292_v45 = vpop.f32.mrb[25].mxu0 }
 0x1fa   : > { %v4321_v12 = vpop.f32.mrb[73].mxu1  ;;  %v4435_v13 = vpop.f32.mrb[26].mxu0 }
 0x1fb   : > { %v4092_v18 = vpack.c.bf16 %v4497_v34, %v4497_v34  ;;  %v4501_v17 = vadd.f32 %v4500_v4, %v4431_v2  ;;  %v4322_v40 = vadd.f32 %v4321_v12, %v4320_v1  ;;  %v4323_v48 = vpop.f32.mrb[74].mxu1  ;;  %v3295_v32 = vpop.f32.mrb[27].mxu0 }
 0x1fc   : > { %v4324_v10 = vpop.f32.mrb[75].mxu1 }
 0x1fd   : > { %3506 = vst.msk [vmem:[%s6332_s28 + $0x58] sm:$0xf] %vm3483_vm4, %v4092_v18  ;;  %v4093_v43 = vpack.c.bf16 %v4501_v17, %v4501_v17  ;;  %v3132_v41 = vadd.f32 %v4322_v40, %v2971_v24  ;;  %v4325_v21 = vadd.f32 %v4324_v10, %v4323_v48 }
 0x1ff   : > { %3507 = vst.msk [vmem:[%s6332_s28 + $0x5c] sm:$0xf] %vm3483_vm4, %v4093_v43  ;;  %v4506_v26 = vadd.f32 %v6315_v50, %v3132_v41  ;;  %v3135_v5 = vadd.f32 %v4325_v21, %v2974_v20 }
 0x200   : > { %v4438_v3 = vpop.f32.mrb[28].mxu0 }
 0x201   : > { %v4507_v33 = vadd.f32 %v4506_v26, %v3292_v45  ;;  %v4510_v46 = vadd.f32 %v6315_v50, %v3135_v5  ;;  %v4326_v0 = vpop.f32.mrb[76].mxu1  ;;  %v3308_v47 = vpop.f32.mrb[29].mxu0 }
 0x202   : > { %v4327_v44 = vpop.f32.mrb[77].mxu1  ;;  %v4439_v38 = vpop.f32.mrb[30].mxu0 }
 0x203   : > { %v4094_v59 = vpack.c.bf16 %v4507_v33, %v4507_v33  ;;  %v4511_v30 = vadd.f32 %v4510_v46, %v3295_v32  ;;  %v4328_v36 = vadd.f32 %v4327_v44, %v4326_v0  ;;  %v4329_v11 = vpop.f32.mrb[78].mxu1  ;;  %v3311_v53 = vpop.f32.mrb[31].mxu0 }
 0x204   : > { %v4330_v22 = vpop.f32.mrb[79].mxu1 }
 0x205   : > { %3508 = vst.msk [vmem:[%s6332_s28 + $0x60] sm:$0xf] %vm3483_vm4, %v4094_v59  ;;  %v4095_v49 = vpack.c.bf16 %v4511_v30, %v4511_v30  ;;  %v3140_v54 = vadd.f32 %v4328_v36, %v2979_v28  ;;  %v4331_v35 = vadd.f32 %v4330_v22, %v4329_v11 }
 0x207   : > { %3509 = vst.msk [vmem:[%s6332_s28 + $0x64] sm:$0xf] %vm3483_vm4, %v4095_v49  ;;  %v4504_v60 = vadd.f32 %v6315_v50, %v3140_v54  ;;  %v3143_v57 = vadd.f32 %v4331_v35, %v2982_v14 }
 0x209   : > { %v4505_v42 = vadd.f32 %v4504_v60, %v4434_v31  ;;  %v4508_v56 = vadd.f32 %v6315_v50, %v3143_v57  ;;  %v4332_v2 = vpop.f32.mrb[80].mxu1 }
 0x20a   : > { %v4333_v15 = vpop.f32.mrb[81].mxu1 }
 0x20b   : > { %v4096_v55 = vpack.c.bf16 %v4505_v42, %v4505_v42  ;;  %v4509_v23 = vadd.f32 %v4508_v56, %v4435_v13  ;;  %v4334_v8 = vadd.f32 %v4333_v15, %v4332_v2  ;;  %v4335_v25 = vpop.f32.mrb[82].mxu1  ;;  %v2998_v13 = vadd.f32 %v6396_v6, %v6244_v7 }
 0x20c   : > { %v4336_v37 = vpop.f32.mrb[83].mxu1 }
 0x20d   : > { %3510 = vst.msk [vmem:[%s6332_s28 + $0x68] sm:$0xf] %vm3483_vm4, %v4096_v55  ;;  %v4097_v16 = vpack.c.bf16 %v4509_v23, %v4509_v23  ;;  %v3148_v58 = vadd.f32 %v4334_v8, %v2987_v63  ;;  %v4337_v29 = vadd.f32 %v4336_v37, %v4335_v25 }
 0x20f   : > { %3511 = vst.msk [vmem:[%s6332_s28 + $0x6c] sm:$0xf] %vm3483_vm4, %v4097_v16  ;;  %v4514_v62 = vadd.f32 %v6315_v50, %v3148_v58  ;;  %v3151_v39 = vadd.f32 %v4337_v29, %v2990_v52 }
 0x211   : > { %v4515_v9 = vadd.f32 %v4514_v62, %v3308_v47  ;;  %v4518_v19 = vadd.f32 %v6315_v50, %v3151_v39  ;;  %v4338_v61 = vpop.f32.mrb[84].mxu1 }
 0x212   : > { %v4339_v31 = vpop.f32.mrb[85].mxu1 }
 0x213   : > { %v4098_v34 = vpack.c.bf16 %v4515_v9, %v4515_v9  ;;  %v4519_v4 = vadd.f32 %v4518_v19, %v3311_v53  ;;  %v4340_v1 = vadd.f32 %v4339_v31, %v4338_v61  ;;  %v4341_v45 = vpop.f32.mrb[86].mxu1 }
 0x214   : > { %v4342_v12 = vpop.f32.mrb[87].mxu1 }
 0x215   : > { %3512 = vst.msk [vmem:[%s6332_s28 + $0x70] sm:$0xf] %vm3483_vm4, %v4098_v34  ;;  %v4099_v24 = vpack.c.bf16 %v4519_v4, %v4519_v4  ;;  %v3156_v18 = vadd.f32 %v4340_v1, %v2995_v27  ;;  %v4343_v17 = vadd.f32 %v4342_v12, %v4341_v45 }
 0x217   : > { %3513 = vst.msk [vmem:[%s6332_s28 + $0x74] sm:$0xf] %vm3483_vm4, %v4099_v24  ;;  %v4512_v40 = vadd.f32 %v6315_v50, %v3156_v18  ;;  %v3159_v51 = vadd.f32 %v4343_v17, %v2998_v13 }
 0x219   : > { %v4513_v48 = vadd.f32 %v4512_v40, %v4438_v3  ;;  %v4516_v32 = vadd.f32 %v6315_v50, %v3159_v51 }
 0x21b   : > { %v4100_v10 = vpack.c.bf16 %v4513_v48, %v4513_v48  ;;  %v4517_v20 = vadd.f32 %v4516_v32, %v4439_v38 }
 0x21d   : > { %3514 = vst.msk [vmem:[%s6332_s28 + $0x78] sm:$0xf] %vm3483_vm4, %v4100_v10  ;;  %v4101_v43 = vpack.c.bf16 %v4517_v20, %v4517_v20 }
 0x21f   : > { %3515 = vst.msk [vmem:[%s6332_s28 + $0x7c] sm:$0xf] %vm3483_vm4, %v4101_v43 }
 0x220 PF: > { %s16_s23 = sadd.s32 1, %s4856_s23   ;;  %s6616_s21 = smov %s4852_s22 }
 0x221   : > { %p13_p5 = scmp.ge.s32.totalorder %s16_s23, 4   ;;  %s6617_s22 = smov %s6619_s24 }
 0x223   :  { %15 = sbr.rel (!%p13_p5) target bundleno = 2 (0x2), region = 91 }

// kernel: down_block_3d.9
= control target key start
LH: loop header
LB: loop body
LE: loop exit
PB: predicated region body
PF: predicated region fallthrough
CT: control target
= control target key end

     0   :  { %s1982_s12 = smov 0   ;;  %s1984_s13 = smov 0   ;;  %s2336_s0 = inlined_call_operand.vmem [shape: bf16[2,36,9,64], index: 0, kind: input, shape index: {}]   ;;  %s2337_s1 = inlined_call_operand.vmem [shape: bf16[576,64], index: 1, kind: input, shape index: {}]   ;;  %s2338_s2 = inlined_call_operand.vmem [shape: f32[1,64], index: 2, kind: input, shape index: {}]   ;;  %s2339_s3 = inlined_call_operand.vmem [shape: bf16[2,8,8,64], index: 3, kind: output, shape index: {}]  }
   0x1   :  { %s1986_s14 = smov 0  }
   0x2 LB: > { %s25_s15 = sadd.s32 1, %s1955_s13  ;;  %p1543_p0 = scmp.ge.s32.totalorder %s1959_s14, 1  ;;  %s1959_s14 = sphi %s1986_s14, %s13_s14   ;;  %s1955_s13 = sphi %s1984_s13, %s2341_s13   ;;  %s1951_s12 = sphi %s1982_s12, %s2340_s12  }
   0x3   : > { %p27_p1 = scmp.ge.s32.totalorder %s25_s15, 2  ;;  %p168_p2 = scmp.lt.s32.totalorder %s1959_s14, 3 }
   0x5   : > { %s2343_s15 = smov (%p27_p1, %s25_s15), 0  ;;  %p169_p3 = pnand %p1543_p0, %p168_p2 }
   0x6   : > { %p202_p4 = scmp.lt.s32.totalorder (!%p169_p3), %s1951_s12, 1  ;;  %v1885_v0 = vld [vmem:[%s2337_s1 + $0x40] sm:$0xff] (!%p169_p3)   ;;  %v1887_v2 = vld [vmem:[%s2337_s1 + $0x48] sm:$0xff] (!%p169_p3)   ;;  %v1889_v4 = vld [vmem:[%s2337_s1 + $0x50] sm:$0xff] (!%p169_p3)   ;;  %s1961_s5 = smov (!%p169_p3), 64   ;;  %vm708_vm0 = vcmask (!%p169_p3), 523264  }
   0x7   : > { %172 = sbr.rel (%p169_p3) target bundleno = 428 (0x1ac), region = 32  ;;  %v1886_v1 = vld [vmem:[%s2337_s1] sm:$0xff] (!%p169_p3)   ;;  %1715 = vmatprep.subr.bf16.mxu0 (!%p169_p3), %v1885_v0  ;;  %v1888_v3 = vld [vmem:[%s2337_s1 + $0x8] sm:$0xff] (!%p169_p3)   ;;  %v1891_v19 = vld [vmem:[%s2337_s1 + $0x10] sm:$0xff] (!%p169_p3)   ;;  %vm1423_vm1 = vcmask (!%p169_p3), 519168  }
   0x8   : > { %1716 = vmatpush3.bf16.msra.mxu0 (!%p169_p3), %v1886_v1  ;;  %v1890_v5 = vld [vmem:[%s2337_s1 + $0xc0] sm:$0xff] (!%p169_p3)   ;;  %v1893_v45 = vld [vmem:[%s2337_s1 + $0x58] sm:$0xff] (!%p169_p3)   ;;  %v1894_v46 = vld [vmem:[%s2337_s1 + $0xc8] sm:$0xff] (!%p169_p3)  }
   0x9   : > { %1717 = vmatprep.subr.bf16.mxu0 (!%p169_p3), %v1887_v2  ;;  %1755 = vmatprep.subr.bf16.mxu1 (!%p169_p3), %v1890_v5  ;;  %v1892_v23 = vld [vmem:[%s2337_s1 + $0x80] sm:$0xff] (!%p169_p3)   ;;  %v1895_v48 = vld [vmem:[%s2337_s1 + $0x18] sm:$0xff] (!%p169_p3)   ;;  %v1896_v49 = vld [vmem:[%s2337_s1 + $0x88] sm:$0xff] (!%p169_p3)  }
   0xa   : > { %1756 = vmatpush3.bf16.msra.mxu1 (!%p169_p3), %v1892_v23  ;;  %v1897_v52 = vld [vmem:[%s2337_s1 + $0x60] sm:$0xff] (!%p169_p3)   ;;  %v1898_v56 = vld [vmem:[%s2337_s1 + $0xd0] sm:$0xff] (!%p169_p3)   ;;  %v1901_v60 = vld [vmem:[%s2337_s1 + $0x68] sm:$0xff] (!%p169_p3)  }
   0xb   : > { %1757 = vmatprep.subr.bf16.mxu1 (!%p169_p3), %v1894_v46  ;;  %v1899_v58 = vld [vmem:[%s2337_s1 + $0x20] sm:$0xff] (!%p169_p3)   ;;  %v1900_v59 = vld [vmem:[%s2337_s1 + $0x90] sm:$0xff] (!%p169_p3)   ;;  %v1902_v63 = vld [vmem:[%s2337_s1 + $0xd8] sm:$0xff] (!%p169_p3)  }
   0xc   : > { %1718 = vmatpush3.bf16.msra.mxu0 (!%p169_p3), %v1888_v3  ;;  %v1903_v2 = vld [vmem:[%s2337_s1 + $0x28] sm:$0xff] (!%p169_p3)   ;;  %v1915_v23 = vld [vmem:[%s2337_s1 + $0x38] sm:$0xff] (!%p169_p3)  }
   0xd   : > { %1719 = vmatprep.subr.bf16.mxu0 (!%p169_p3), %v1889_v4  ;;  %v1904_v4 = vld [vmem:[%s2337_s1 + $0x98] sm:$0xff] (!%p169_p3)  }
   0xe   : > { %s2345_s12 = smov (!%p202_p4, %s1951_s12), 1  ;;  %1758 = vmatpush3.bf16.msra.mxu1 %v1896_v49 }
   0xf   : > { %s1827_s22 = smul.u32 288, %s2345_s12  ;;  %1759 = vmatprep.subr.bf16.mxu1 %v1898_v56  ;;  %s1714_s28 = sshll.u32 %s2345_s12, 5 }
  0x10   : > { %1720 = vmatpush3.bf16.msra.mxu0 %v1891_v19  ;;  %s2309_s6 = scalar_lea.vmem %s2339_s3, %s1714_s28 }
  0x11   : > { %s2021_s29 = scalar_lea.vmem %s2336_s0, %s1827_s22  ;;  %1721 = vmatprep.subr.bf16.mxu0 %v1893_v45 }
  0x12   : > { %v1853_v6 = vld [vmem:[%s2021_s29 + $0x50] ss:$0 sps:$4 sm:$0xff]   ;;  %v1571_v8 = vld [vmem:[%s2021_s29 + $0x94] sm:$0x1]  ;;  %v1856_v10 = vld [vmem:[%s2021_s29 + $0x58] ss:$0 sps:$4 sm:$0xff]   ;;  %1760 = vmatpush3.bf16.msra.mxu1 %v1900_v59 }
  0x13   : > { %v1555_v7 = vld [vmem:[%s2021_s29 + $0x90] sm:$0xf]  ;;  %596 = vrot.lane.b32.xlu1 %v1853_v6, %s1961_s5  ;;  %v1556_v11 = vld [vmem:[%s2021_s29 + $0x98] sm:$0xf]  ;;  %v1572_v12 = vld [vmem:[%s2021_s29 + $0x9c] sm:$0x1]  ;;  %1761 = vmatprep.subr.bf16.mxu1 %v1902_v63 }
  0x14   : > { %v1619_v9 = vcombine.low %v1555_v7, %v1555_v7  ;;  %v1627_v13 = vcombine.low %v1555_v7, %v1571_v8  ;;  %v1620_v14 = vcombine.low %v1556_v11, %v1556_v11  ;;  %v1628_v15 = vcombine.low %v1556_v11, %v1572_v12  ;;  %v1859_v16 = vld [vmem:[%s2021_s29 + $0x50] ss:$0 sps:$4 sm:$0xff]   ;;  %v1860_v17 = vld [vmem:[%s2021_s29 + $0x48] ss:$0 sps:$4 sm:$0xff]   ;;  %v1557_v22 = vld [vmem:[%s2021_s29 + $0xa0] sm:$0xf]  ;;  %1722 = vmatpush3.bf16.msra.mxu0 %v1895_v48 }
  0x15   : > { %v1558_v21 = vld [vmem:[%s2021_s29 + $0xa8] sm:$0xf]  ;;  %v1574_v24 = vld [vmem:[%s2021_s29 + $0xac] sm:$0x1]  ;;  %v1621_v29 = vcombine.low %v1557_v22, %v1557_v22  ;;  %v1573_v31 = vld [vmem:[%s2021_s29 + $0xa4] sm:$0x1]  ;;  %1723 = vmatprep.subr.bf16.mxu0 %v1897_v52 }
  0x16   : > { %460 = vrot.lane.b32.xlu0 %v1619_v9, %s1961_s5  ;;  %v510_v18 = vshll.u32 %v1628_v15, 16  ;;  %v503_v20 = vshll.u32 %v1627_v13, 16  ;;  %v1622_v25 = vcombine.low %v1558_v21, %v1558_v21  ;;  %v508_v26 = vshrl.u32 %v1628_v15, 16  ;;  %v1865_v37 = vld [vmem:[%s2021_s29 + $0x68] ss:$0 sps:$4 sm:$0xff]   ;;  %v1905_v6 = vld [vmem:[%s2337_s1 + $0x70] sm:$0xff]   ;;  %1762 = vmatpush3.bf16.msra.mxu1 %v1904_v4 }
  0x17   : > { %598 = vrot.lane.b32.xlu1 %v1856_v10, %s1961_s5  ;;  %v501_v28 = vshrl.u32 %v1627_v13, 16  ;;  %v1630_v32 = vcombine.low %v1558_v21, %v1574_v24  ;;  %v1629_v34 = vcombine.low %v1557_v22, %v1573_v31  ;;  %v1866_v38 = vld [vmem:[%s2021_s29 + $0x60] ss:$0 sps:$4 sm:$0xff]   ;;  %v1868_v42 = vld [vmem:[%s2021_s29 + $0x58] ss:$0 sps:$4 sm:$0xff]   ;;  %v1907_v10 = vld [vmem:[%s2337_s1 + $0x30] sm:$0xff]  }
  0x18   : > { %v512_v27 = vrot.slane %v510_v18, 1  ;;  %v505_v30 = vrot.slane %v503_v20, 1  ;;  %v1867_v41 = vld [vmem:[%s2021_s29 + $0x60] ss:$0 sps:$4 sm:$0xff]   ;;  %v1560_v50 = vld [vmem:[%s2021_s29 + $0xb8] sm:$0xf]  ;;  %1724 = vmatpush3.bf16.msra.mxu0 %v1899_v58 }
  0x19   : > { %v524_v36 = vshll.u32 %v1630_v32, 16  ;;  %v522_v39 = vshrl.u32 %v1630_v32, 16  ;;  %v517_v40 = vshll.u32 %v1629_v34, 16  ;;  %v515_v44 = vshrl.u32 %v1629_v34, 16  ;;  %v1576_v51 = vld [vmem:[%s2021_s29 + $0xbc] sm:$0x1]  ;;  %1725 = vmatprep.subr.bf16.mxu0 %v1901_v60 }
  0x1a   : > { %462 = vrot.lane.b32.xlu0 %v1620_v14, %s1961_s5  ;;  %v513_v33 = vor.u32 %v512_v27, %v508_v26  ;;  %v506_v35 = vor.u32 %v505_v30, %v501_v28  ;;  %v1559_v54 = vld [vmem:[%s2021_s29 + $0xb0] sm:$0xf]  ;;  %v1575_v55 = vld [vmem:[%s2021_s29 + $0xb4] sm:$0x1]  ;;  %v1624_v61 = vcombine.low %v1560_v50, %v1560_v50  ;;  %v1632_v62 = vcombine.low %v1560_v50, %v1576_v51  ;;  %v1873_v3 = vld [vmem:[%s2021_s29 + $0x78] ss:$0 sps:$4 sm:$0xff]  }
  0x1b   : > { %326 = vrot.lane.b32.xlu1 %v1859_v16, %s1961_s5  ;;  %v526_v43 = vrot.slane %v524_v36, 1  ;;  %v519_v47 = vrot.slane %v517_v40, 1  ;;  %v1623_v0 = vcombine.low %v1559_v54, %v1559_v54  ;;  %v1631_v1 = vcombine.low %v1559_v54, %v1575_v55  ;;  %v1874_v5 = vld [vmem:[%s2021_s29 + $0x70] ss:$0 sps:$4 sm:$0xff]   ;;  %v1906_v8 = vld [vmem:[%s2337_s1 + $0xe0] sm:$0xff]   ;;  %v1909_v13 = vld [vmem:[%s2337_s1 + $0x78] sm:$0xff]  }
  0x1c   : > { %1726 = vmatpush3.bf16.msra.mxu0 %v1903_v2  ;;  %v538_v7 = vshll.u32 %v1632_v62, 16  ;;  %v1875_v11 = vld [vmem:[%s2021_s29 + $0x70] ss:$0 sps:$4 sm:$0xff]   ;;  %1763 = vmatprep.subr.bf16.mxu1 %v1906_v8  ;;  %v1908_v12 = vld [vmem:[%s2337_s1 + $0xa0] sm:$0xff]   ;;  %v536_v14 = vshrl.u32 %v1632_v62, 16  ;;  %v1910_v16 = vld [vmem:[%s2337_s1 + $0xe8] sm:$0xff]  }
  0x1d   : > { %v527_v53 = vor.u32 %v526_v43, %v522_v39  ;;  %v520_v57 = vor.u32 %v519_v47, %v515_v44  ;;  %v531_v9 = vshll.u32 %v1631_v1, 16  ;;  %1727 = vmatprep.subr.bf16.mxu0 %v1905_v6  ;;  %1764 = vmatpush3.bf16.msra.mxu1 %v1908_v12  ;;  %v529_v18 = vshrl.u32 %v1631_v1, 16  ;;  %v1562_v20 = vld [vmem:[%s2021_s29 + $0xc8] sm:$0xf]  ;;  %v1578_v22 = vld [vmem:[%s2021_s29 + $0xcc] sm:$0x1] }
  0x1e   : > { %324 = vrot.lane.b32.xlu0 %v1860_v17, %s1961_s5  ;;  %v540_v15 = vrot.slane %v538_v7, 1  ;;  %v1876_v17 = vld [vmem:[%s2021_s29 + $0x68] ss:$0 sps:$4 sm:$0xff]   ;;  %1765 = vmatprep.subr.bf16.mxu1 %v1910_v16  ;;  %v1561_v26 = vld [vmem:[%s2021_s29 + $0xc0] sm:$0xf]  ;;  %v1917_v28 = vld [vmem:[%s2337_s1 + $0xf0] sm:$0xff]   ;;  %v1634_v30 = vcombine.low %v1562_v20, %v1578_v22 }
  0x1f   : > { %466 = vrot.lane.b32.xlu1 %v1622_v25, %s1961_s5  ;;  %v533_v19 = vrot.slane %v531_v9, 1  ;;  %v1916_v24 = vld [vmem:[%s2337_s1 + $0xa8] sm:$0xff]   ;;  %v1577_v27 = vld [vmem:[%s2021_s29 + $0xc4] sm:$0x1]  ;;  %v1625_v31 = vcombine.low %v1561_v26, %v1561_v26  ;;  %v1921_v34 = vld [vmem:[%s2337_s1 + $0xf8] sm:$0xff]  }
  0x20   : > { %1728 = vmatpush3.bf16.msra.mxu0 %v1907_v10  ;;  %v541_v21 = vor.u32 %v540_v15, %v536_v14  ;;  %v1633_v32 = vcombine.low %v1561_v26, %v1577_v27  ;;  %v1881_v36 = vld [vmem:[%s2021_s29 + $0x88] ss:$0 sps:$4 sm:$0xff]   ;;  %v1882_v39 = vld [vmem:[%s2021_s29 + $0x80] ss:$0 sps:$4 sm:$0xff]   ;;  %v1884_v44 = vld [vmem:[%s2021_s29 + $0x78] ss:$0 sps:$4 sm:$0xff]  }
  0x21   : > { %1729 = vmatprep.subr.bf16.mxu0 %v1909_v13  ;;  %v534_v25 = vor.u32 %v533_v19, %v529_v18  ;;  %1766 = vmatpush3.bf16.msra.mxu1 %v1916_v24  ;;  %v241_v49 = vld [vmem:[%s2021_s29 + $0xc] sm:$0x1]  ;;  %v224_v50 = vld [vmem:[%s2021_s29 + $0x8] sm:$0xf]  ;;  %v240_v51 = vld [vmem:[%s2021_s29 + $0x4] sm:$0x1] }
  0x22   : > { %464 = vrot.lane.b32.xlu0 %v1621_v29, %s1961_s5  ;;  %v1626_v29 = vcombine.low %v1562_v20, %v1562_v20  ;;  %1767 = vmatprep.subr.bf16.mxu1 %v1917_v28  ;;  %v545_v40 = vshll.u32 %v1633_v32, 16  ;;  %v543_v45 = vshrl.u32 %v1633_v32, 16  ;;  %v223_v52 = vld [vmem:[%s2021_s29] sm:$0xf]  ;;  %v2181_v58 = vld [vmem:[%s2021_s29 + $0x18] sm:$0xf] }
  0x23   : > { %558 = vrot.lane.b32.xlu1 %v513_v33, %s1961_s5  ;;  %v1920_v33 = vld [vmem:[%s2337_s1 + $0xb0] sm:$0xff]   ;;  %v1611_v54 = vcombine.low %v223_v52, %v240_v51  ;;  %v2190_v6 = vld [vmem:[%s2021_s29 + $0x8] sm:$0xf] }
  0x24   : > { %1730 = vmatpush3.bf16.msra.mxu0 %v1915_v23  ;;  %v547_v46 = vrot.slane %v545_v40, 1  ;;  %v242_v59 = vld [vmem:[%s2021_s29 + $0x14] sm:$0x1]  ;;  %v2185_v60 = vld [vmem:[%s2021_s29 + $0x10] sm:$0xf] }
  0x25   : > { %1768 = vmatpush3.bf16.msra.mxu1 %v1920_v33  ;;  %v383_v56 = vshll.u32 %v1611_v54, 16  ;;  %v381_v63 = vshrl.u32 %v1611_v54, 16  ;;  %v1613_v2 = vcombine.low %v2185_v60, %v242_v59  ;;  %v2193_v7 = vld [vmem:[%s2021_s29 + $0x10] sm:$0xf] }
  0x26   : > { %556 = vrot.lane.b32.xlu0 %v506_v35, %s1961_s5  ;;  %v1922_v35 = vld [vmem:[%s2337_s1 + $0xb8] sm:$0xff]   ;;  %1769 = vmatprep.subr.bf16.mxu1 %v1921_v34  ;;  %v548_v48 = vor.u32 %v547_v46, %v543_v45  ;;  %v1564_v34 = vld [vmem:[%s2021_s29 + $0xe0] sm:$0xf] }
  0x27   : > { %602 = vrot.lane.b32.xlu1 %v1865_v37, %s1961_s5  ;;  %v552_v37 = vshll.u32 %v1634_v30, 16  ;;  %v397_v10 = vshll.u32 %v1613_v2, 16 }
  0x29   : > { %1770 = vmatpush3.bf16.msra.mxu1 %v1922_v35  ;;  %v554_v43 = vrot.slane %v552_v37, 1  ;;  %v245_v37 = vld [vmem:[%s2021_s29 + $0x2c] sm:$0x1] }
  0x2a   : > { %600 = vrot.lane.b32.xlu0 %v1866_v38, %s1961_s5  ;;  %v2161_v38 = vld [vmem:[%s2337_s1 + $0x100] sm:$0xff]  }
  0x2b   : > { %330 = vrot.lane.b32.xlu1 %v1867_v41, %s1961_s5  ;;  %1803 = vmatprep.subr.bf16.mxu0 %v2161_v38  ;;  %v1883_v41 = vld [vmem:[%s2021_s29 + $0x80] ss:$0 sps:$4 sm:$0xff]  }
  0x2c   : > { %1819 = vmatprep.subr.bf16.mxu1 %v2161_v38 }
  0x2e   : > { %328 = vrot.lane.b32.xlu0 %v1868_v42, %s1961_s5  ;;  %v550_v42 = vshrl.u32 %v1634_v30, 16  ;;  %v1930_v30 = vld [vmem:[%s2337_s1 + $0x108] sm:$0xff]  }
  0x2f   : > { %562 = vrot.lane.b32.xlu1 %v527_v53, %s1961_s5  ;;  %v1612_v53 = vcombine.low %v224_v50, %v241_v49  ;;  %v2226_v49 = vld [vmem:[%s2021_s29 + $0x20] sm:$0xf] }
  0x30   : > { %v555_v47 = vor.u32 %v554_v43, %v550_v42  ;;  %v2217_v42 = vld [vmem:[%s2021_s29 + $0x20] sm:$0xf]  ;;  %v1935_v43 = vld [vmem:[%s2337_s1 + $0x110] sm:$0xff]  }
  0x31   : > { %v390_v55 = vshll.u32 %v1612_v53, 16 }
  0x32   : > { %560 = vrot.lane.b32.xlu0 %v520_v57, %s1961_s5  ;;  %v243_v57 = vld [vmem:[%s2021_s29 + $0x1c] sm:$0x1] }
  0x33   : > { %470 = vrot.lane.b32.xlu1 %v1624_v61, %s1961_s5  ;;  %v388_v61 = vshrl.u32 %v1612_v53, 16  ;;  %v1614_v62 = vcombine.low %v2181_v58, %v243_v57  ;;  %v392_v1 = vrot.slane %v390_v55, 1  ;;  %v1936_v53 = vld [vmem:[%s2337_s1 + $0x118] sm:$0xff]  }
  0x35   : > { %v393_v9 = vor.u32 %v392_v1, %v388_v61  ;;  %v402_v12 = vshrl.u32 %v1614_v62, 16 }
  0x36   : > { %468 = vrot.lane.b32.xlu0 %v1623_v0, %s1961_s5  ;;  %v385_v0 = vrot.slane %v383_v56, 1 }
  0x37   : > { %606 = vrot.lane.b32.xlu1 %v1873_v3, %s1961_s5 }
  0x38   : > { %v386_v8 = vor.u32 %v385_v0, %v381_v63 }
  0x3a   : > { %604 = vrot.lane.b32.xlu0 %v1874_v5, %s1961_s5  ;;  %v404_v5 = vshll.u32 %v1614_v62, 16 }
  0x3b   : > { %334 = vrot.lane.b32.xlu1 %v1875_v11, %s1961_s5 }
  0x3c   : > { %v406_v16 = vrot.slane %v404_v5, 1  ;;  %v1566_v5 = vld [vmem:[%s2021_s29 + $0xf0] sm:$0xf] }
  0x3e   : > { %332 = vrot.lane.b32.xlu0 %v1876_v17, %s1961_s5  ;;  %v395_v17 = vshrl.u32 %v1613_v2, 16  ;;  %v407_v26 = vor.u32 %v406_v16, %v402_v12  ;;  %v2250_v16 = vld [vmem:[%s2021_s29 + $0x38] sm:$0xf] }
  0x3f   : > { %566 = vrot.lane.b32.xlu1 %v541_v21, %s1961_s5  ;;  %v399_v21 = vrot.slane %v397_v10, 1  ;;  %v1565_v10 = vld [vmem:[%s2021_s29 + $0xe8] sm:$0xf] }
  0x41   : > { %v400_v28 = vor.u32 %v399_v21, %v395_v17 }
  0x42   : > { %564 = vrot.lane.b32.xlu0 %v534_v25, %s1961_s5 }
  0x43   : > { %474 = vrot.lane.b32.xlu1 %v1626_v29, %s1961_s5 }
  0x46   : > { %472 = vrot.lane.b32.xlu0 %v1625_v31, %s1961_s5 }
  0x47   : > { %610 = vrot.lane.b32.xlu1 %v1881_v36, %s1961_s5  ;;  %v1563_v36 = vld [vmem:[%s2021_s29 + $0xd8] sm:$0xf] }
  0x4a   : > { %608 = vrot.lane.b32.xlu0 %v1882_v39, %s1961_s5  ;;  %v2212_v39 = vld [vmem:[%s2021_s29 + $0x28] sm:$0xf] }
  0x4b   : > { %338 = vrot.lane.b32.xlu1 %v1883_v41, %s1961_s5  ;;  %v244_v41 = vld [vmem:[%s2021_s29 + $0x24] sm:$0x1] }
  0x4e   : > { %336 = vrot.lane.b32.xlu0 %v1884_v44, %s1961_s5 }
  0x4f   : > { %570 = vrot.lane.b32.xlu1 %v555_v47, %s1961_s5  ;;  %v1616_v47 = vcombine.low %v2212_v39, %v245_v37 }
  0x51   : > { %v418_v57 = vshll.u32 %v1616_v47, 16  ;;  %v416_v2 = vshrl.u32 %v1616_v47, 16 }
  0x52   : > { %568 = vrot.lane.b32.xlu0 %v548_v48, %s1961_s5 }
  0x85   : > { %v597_v3 = vpop.permute.xlu1 %596 }
  0x86   : > { %v783_v14 = vsel %vm708_vm0, %v2190_v6, %v597_v3  ;;  %v420_v3 = vrot.slane %v418_v57, 1 }
  0x88   : > { %v461_v4 = vpop.permute.xlu0 %460 }
  0x89   : > { %v599_v11 = vpop.permute.xlu1 %598  ;;  %v735_v19 = vsel %vm708_vm0, %v386_v8, %v461_v4 }
  0x8a   : > { %v786_v15 = vsel %vm708_vm0, %v2193_v7, %v599_v11 }
  0x8b   : > { %v1655_v18 = vcombine.low %v783_v14, %v786_v15  ;;  %v247_v15 = vld [vmem:[%s2021_s29 + $0x3c] sm:$0x1] }
  0x8c   : > { %v463_v13 = vpop.permute.xlu0 %462 }
  0x8d   : > { %v738_v20 = vsel %vm708_vm0, %v393_v9, %v463_v13  ;;  %1317 = vmatprep.mubr.bf16.mxu1 %v1655_v18  ;;  %v327_v23 = vpop.permute.xlu1 %326  ;;  %v421_v13 = vor.u32 %v420_v3, %v416_v2  ;;  %v246_v18 = vld [vmem:[%s2021_s29 + $0x34] sm:$0x1] }
  0x8e   : > { %v1653_v22 = vcombine.low %v735_v19, %v738_v20  ;;  %v714_v24 = vsel %vm708_vm0, %v224_v50, %v327_v23  ;;  %v1615_v50 = vcombine.low %v2217_v42, %v244_v41  ;;  %v2254_v19 = vld [vmem:[%s2021_s29 + $0x30] sm:$0xf]  ;;  %v1618_v23 = vcombine.low %v2250_v16, %v247_v15 }
  0x90   : > { %v325_v25 = vpop.permute.xlu0 %324  ;;  %1252 = vmatprep.mubr.bf16.mxu0 %v1653_v22  ;;  %v411_v61 = vshll.u32 %v1615_v50, 16  ;;  %v430_v47 = vshrl.u32 %v1618_v23, 16 }
  0x91   : > { %v711_v27 = vsel %vm708_vm0, %v223_v52, %v325_v25  ;;  %v467_v31 = vpop.permute.xlu1 %466  ;;  %v2230_v52 = vld [vmem:[%s2021_s29 + $0x18] sm:$0xf]  ;;  %v1584_v25 = vld [vmem:[%s2021_s29 + $0x30] sm:$0xf] }
  0x92   : > { %v1652_v29 = vcombine.low %v711_v27, %v714_v24  ;;  %v744_v32 = vsel %vm708_vm0, %v407_v26, %v467_v31  ;;  %v413_v8 = vrot.slane %v411_v61, 1  ;;  %v1617_v26 = vcombine.low %v2254_v19, %v246_v18  ;;  %v1596_v31 = vld [vmem:[%s2021_s29 + $0x14] sm:$0x1]  ;;  %v1598_v61 = vld [vmem:[%s2021_s29 + $0x24] sm:$0x1] }
  0x93   : > { %v1644_v41 = vcombine.low %v2193_v7, %v1596_v31  ;;  %v1567_v7 = vld [vmem:[%s2021_s29 + $0xf8] sm:$0xf]  ;;  %v1602_v18 = vld [vmem:[%s2021_s29 + $0x44] sm:$0x1] }
  0x94   : > { %v465_v33 = vpop.permute.xlu0 %464  ;;  %1253 = vmatmul.mubr.bf16.vlgmr.msra.gmra.mrb[0].mxu0 %v1652_v29 }
  0x95   : > { %v741_v35 = vsel %vm708_vm0, %v400_v28, %v465_v33  ;;  %1804 = vmatpush3.bf16.msra.mxu0 %v2161_v38  ;;  %v559_v44 = vpop.permute.xlu1 %558  ;;  %v1583_v28 = vld [vmem:[%s2021_s29 + $0x28] sm:$0xf]  ;;  %v662_v57 = vshll.u32 %v1644_v41, 16 }
  0x96   : > { %v1658_v40 = vcombine.low %v741_v35, %v744_v32  ;;  %1805 = vmatprep.subr.bf16.mxu0 %v1930_v30  ;;  %v762_v45 = vsel %vm708_vm0, %v1564_v34, %v559_v44  ;;  %v432_v34 = vshll.u32 %v1618_v23, 16  ;;  %v1600_v44 = vld [vmem:[%s2021_s29 + $0x34] sm:$0x1] }
  0x98   : > { %v557_v46 = vpop.permute.xlu0 %556  ;;  %1260 = vmatprep.mubr.bf16.mxu0 %v1658_v40 }
  0x99   : > { %v759_v48 = vsel %vm708_vm0, %v1563_v36, %v557_v46  ;;  %1806 = vmatpush3.bf16.msra.mxu0 %v1930_v30  ;;  %v603_v54 = vpop.permute.xlu1 %602  ;;  %v425_v36 = vshll.u32 %v1617_v26, 16 }
  0x9a   : > { %v1654_v51 = vcombine.low %v759_v48, %v762_v45  ;;  %1807 = vmatprep.subr.bf16.mxu0 %v1935_v43  ;;  %v792_v55 = vsel %vm708_vm0, %v2226_v49, %v603_v54  ;;  %v434_v48 = vrot.slane %v432_v34, 1  ;;  %v423_v54 = vshrl.u32 %v1617_v26, 16 }
  0x9c   : > { %1318 = vmatmul.mubr.bf16.vlgmr.msra.gmra.mrb[0].mxu1 %v1654_v51  ;;  %v601_v56 = vpop.permute.xlu0 %600  ;;  %v435_v2 = vor.u32 %v434_v48, %v430_v47 }
  0x9d   : > { %v789_v59 = vsel %vm708_vm0, %v2230_v52, %v601_v56  ;;  %1823 = vmatpush3.bf16.msra.mxu1 %v2161_v38  ;;  %1808 = vmatpush3.bf16.msra.mxu0 %v1935_v43  ;;  %v331_v63 = vpop.permute.xlu1 %330  ;;  %v409_v38 = vshrl.u32 %v1615_v50, 16  ;;  %v1599_v50 = vld [vmem:[%s2021_s29 + $0x2c] sm:$0x1] }
  0x9e   : > { %v1660_v62 = vcombine.low %v789_v59, %v792_v55  ;;  %1820 = vmatprep.subr.bf16.mxu1 %v1930_v30  ;;  %1809 = vmatprep.subr.bf16.mxu0 %v1936_v53  ;;  %v720_v0 = vsel %vm708_vm0, %v2181_v58, %v331_v63  ;;  %v1647_v63 = vcombine.low %v1583_v28, %v1599_v50 }
  0x9f   : > { %v414_v14 = vor.u32 %v413_v8, %v409_v38 }
  0xa0   : > { %1325 = vmatprep.mubr.bf16.mxu1 %v1660_v62  ;;  %v329_v1 = vpop.permute.xlu0 %328  ;;  %v1597_v62 = vld [vmem:[%s2021_s29 + $0x1c] sm:$0x1] }
  0xa1   : > { %v717_v4 = vsel %vm708_vm0, %v2185_v60, %v329_v1  ;;  %1824 = vmatpush3.bf16.msra.mxu1 %v1930_v30  ;;  %1810 = vmatpush3.bf16.msra.mxu0 %v1936_v53  ;;  %v563_v58 = vpop.permute.xlu1 %562  ;;  %v1595_v30 = vld [vmem:[%s2021_s29 + $0xc] sm:$0x1] }
  0xa2   : > { %v1657_v9 = vcombine.low %v717_v4, %v720_v0  ;;  %1821 = vmatprep.subr.bf16.mxu1 %v1935_v43  ;;  %v768_v11 = vsel %vm708_vm0, %v1566_v5, %v563_v58  ;;  %v1643_v40 = vcombine.low %v2190_v6, %v1595_v30  ;;  %v427_v6 = vrot.slane %v425_v36, 1 }
  0xa3   : > { %v660_v5 = vshrl.u32 %v1644_v41, 16  ;;  %v1645_v58 = vcombine.low %v2230_v52, %v1597_v62 }
  0xa4   : > { %v561_v12 = vpop.permute.xlu0 %560  ;;  %1261 = vmatmul.mubr.bf16.gmra.mrb[4].mxu0 %v1657_v9  ;;  %v655_v56 = vshll.u32 %v1643_v40, 16  ;;  %v653_v4 = vshrl.u32 %v1643_v40, 16  ;;  %v664_v9 = vrot.slane %v662_v57, 1 }
  0xa5   : > { %v765_v60 = vsel %vm708_vm0, %v1565_v10, %v561_v12  ;;  %1825 = vmatpush3.bf16.msra.mxu1 %v1935_v43  ;;  %v471_v20 = vpop.permute.xlu1 %470  ;;  %v1646_v10 = vcombine.low %v2226_v49, %v1598_v61  ;;  %v669_v49 = vshll.u32 %v1645_v58, 16  ;;  %v667_v40 = vshrl.u32 %v1645_v58, 16 }
  0xa6   : > { %v1659_v17 = vcombine.low %v765_v60, %v768_v11  ;;  %1822 = vmatprep.subr.bf16.mxu1 %v1936_v53  ;;  %v750_v21 = vsel %vm708_vm0, %v421_v13, %v471_v20  ;;  %v657_v8 = vrot.slane %v655_v56, 1  ;;  %v683_v13 = vshll.u32 %v1647_v63, 16  ;;  %v1601_v20 = vld [vmem:[%s2021_s29 + $0x3c] sm:$0x1] }
  0xa7   : > { %v674_v36 = vshrl.u32 %v1646_v10, 16  ;;  %v671_v41 = vrot.slane %v669_v49, 1 }
  0xa8   : > { %1326 = vmatmul.mubr.bf16.gmra.mrb[4].mxu1 %v1659_v17  ;;  %v469_v22 = vpop.permute.xlu0 %468  ;;  %v1586_v17 = vld [vmem:[%s2021_s29 + $0x40] sm:$0xf]  ;;  %v658_v23 = vor.u32 %v657_v8, %v653_v4 }
  0xa9   : > { %v747_v24 = vsel %vm708_vm0, %v414_v14, %v469_v22  ;;  %1826 = vmatpush3.bf16.msra.mxu1 %v1936_v53  ;;  %v607_v29 = vpop.permute.xlu1 %606  ;;  %v1568_v53 = vld [vmem:[%s2021_s29 + $0x100] sm:$0xf]  ;;  %v1585_v22 = vld [vmem:[%s2021_s29 + $0x38] sm:$0xf]  ;;  %v672_v56 = vor.u32 %v671_v41, %v667_v40 }
  0xaa   : > { %v1663_v27 = vcombine.low %v747_v24, %v750_v21  ;;  %v798_v32 = vsel %vm708_vm0, %v1584_v25, %v607_v29  ;;  %v665_v24 = vor.u32 %v664_v9, %v660_v5  ;;  %v1649_v29 = vcombine.low %v1585_v22, %v1601_v20 }
  0xac   : > { %v605_v33 = vpop.permute.xlu0 %604  ;;  %1268 = vmatprep.mubr.bf16.mxu0 %v1663_v27  ;;  %v1650_v27 = vcombine.low %v1586_v17, %v1602_v18  ;;  %v695_v62 = vshrl.u32 %v1649_v29, 16 }
  0xad   : > { %v795_v35 = vsel %vm708_vm0, %v1583_v28, %v605_v33  ;;  %v335_v43 = vpop.permute.xlu1 %334  ;;  %v685_v33 = vrot.slane %v683_v13, 1 }
  0xae   : > { %v1665_v37 = vcombine.low %v795_v35, %v798_v32  ;;  %v726_v45 = vsel %vm708_vm0, %v2212_v39, %v335_v43  ;;  %v1648_v39 = vcombine.low %v1584_v25, %v1600_v44  ;;  %v676_v25 = vshll.u32 %v1646_v10, 16 }
  0xaf   : > { %v681_v32 = vshrl.u32 %v1647_v63, 16  ;;  %v704_v44 = vshll.u32 %v1650_v27, 16  ;;  %v702_v57 = vshrl.u32 %v1650_v27, 16 }
  0xb0   : > { %1333 = vmatprep.mubr.bf16.mxu1 %v1665_v37  ;;  %v333_v46 = vpop.permute.xlu0 %332  ;;  %v690_v12 = vshll.u32 %v1648_v39, 16  ;;  %v688_v52 = vshrl.u32 %v1648_v39, 16  ;;  %v678_v37 = vrot.slane %v676_v25, 1 }
  0xb1   : > { %v723_v51 = vsel %vm708_vm0, %v2217_v42, %v333_v46  ;;  %v567_v59 = vpop.permute.xlu1 %566  ;;  %v428_v42 = vor.u32 %v427_v6, %v423_v54  ;;  %v686_v50 = vor.u32 %v685_v33, %v681_v32  ;;  %v1656_v54 = vcombine.low %v658_v23, %v665_v24 }
  0xb2   : > { %v1662_v55 = vcombine.low %v723_v51, %v726_v45  ;;  %v774_v0 = vsel %vm708_vm0, %v1568_v53, %v567_v59  ;;  %v692_v31 = vrot.slane %v690_v12, 1  ;;  %v697_v45 = vshll.u32 %v1649_v29, 16  ;;  %v1570_v53 = vld [vmem:[%s2021_s29 + $0x110] sm:$0xf] }
  0xb3   : > { %v706_v61 = vrot.slane %v704_v44, 1 }
  0xb4   : > { %v565_v1 = vpop.permute.xlu0 %564  ;;  %1269 = vmatmul.mubr.bf16.gmra.mrb[8].mxu0 %v1662_v55  ;;  %v693_v48 = vor.u32 %v692_v31, %v688_v52  ;;  %v1569_v55 = vld [vmem:[%s2021_s29 + $0x108] sm:$0xf]  ;;  %v699_v39 = vrot.slane %v697_v45, 1 }
  0xb5   : > { %v771_v3 = vsel %vm708_vm0, %v1567_v7, %v565_v1  ;;  %v475_v11 = vpop.permute.xlu1 %474  ;;  %v679_v7 = vor.u32 %v678_v37, %v674_v36 }
  0xb6   : > { %v1664_v38 = vcombine.low %v771_v3, %v774_v0  ;;  %v756_v60 = vsel %vm708_vm0, %v435_v2, %v475_v11  ;;  %v707_v3 = vor.u32 %v706_v61, %v702_v57  ;;  %v1651_v11 = vld [vmem:[%s2338_s2] ss:$0 sm:$0xff] }
  0xb7   : > { %v1661_v2 = vcombine.low %v672_v56, %v679_v7 }
  0xb8   : > { %1334 = vmatmul.mubr.bf16.gmra.mrb[8].mxu1 %v1664_v38  ;;  %v473_v14 = vpop.permute.xlu0 %472 }
  0xb9   : > { %v753_v15 = vsel %vm708_vm0, %v428_v42, %v473_v14  ;;  %v611_v26 = vpop.permute.xlu1 %610  ;;  %v700_v42 = vor.u32 %v699_v39, %v695_v62 }
  0xba   : > { %v1668_v21 = vcombine.low %v753_v15, %v756_v60  ;;  %v804_v28 = vsel %vm708_vm0, %v1586_v17, %v611_v26 }
  0xbb   : > { %v1671_v4 = vcombine.low %v700_v42, %v707_v3 }
  0xbc   : > { %v609_v30 = vpop.permute.xlu0 %608  ;;  %1276 = vmatprep.mubr.bf16.mxu0 %v1668_v21 }
  0xbd   : > { %v801_v34 = vsel %vm708_vm0, %v1585_v22, %v609_v30  ;;  %v339_v43 = vpop.permute.xlu1 %338 }
  0xbe   : > { %v1670_v35 = vcombine.low %v801_v34, %v804_v28  ;;  %v732_v46 = vsel %vm708_vm0, %v2250_v16, %v339_v43 }
  0xc0   : > { %1341 = vmatprep.mubr.bf16.mxu1 %v1670_v35  ;;  %v337_v47 = vpop.permute.xlu0 %336 }
  0xc1   : > { %v729_v51 = vsel %vm708_vm0, %v2254_v19, %v337_v47  ;;  %v571_v59 = vpop.permute.xlu1 %570  ;;  %v1666_v19 = vcombine.low %v686_v50, %v693_v48 }
  0xc2   : > { %v1667_v6 = vcombine.low %v729_v51, %v732_v46  ;;  %v780_v16 = vsel %vm708_vm0, %v1570_v53, %v571_v59 }
  0xc4   : > { %v569_v63 = vpop.permute.xlu0 %568  ;;  %1277 = vmatmul.mubr.bf16.gmra.mrb[12].mxu0 %v1667_v6 }
  0xc5   : > { %v777_v0 = vsel %vm708_vm0, %v1569_v55, %v569_v63  ;;  %1811 = vmatprep.mubr.msk.bf16.mxu0 %vm708_vm0, %v1656_v54 }
  0xc6   : > { %v1669_v1 = vcombine.low %v777_v0, %v780_v16 }
  0xc8   : > { %1342 = vmatmul.mubr.bf16.gmra.mrb[12].mxu1 %v1669_v1 }
  0xc9   : > { %1815 = vmatprep.mubr.msk.bf16.mxu1 %vm708_vm0, %v1666_v19 }
  0xcc   : > { %1812 = vmatmul.mubr.msk.bf16.vlgmr.msra.gmra.mrb[16].mxu0 %vm708_vm0, %v1661_v2 }
  0xd0   : > { %1816 = vmatmul.mubr.msk.bf16.vlgmr.msra.gmra.mrb[16].mxu1 %vm708_vm0, %v1671_v4 }
 0x167   : > { %v1731_v5 = vpop.f32.mrb[0].mxu0 }
 0x168   : > { %v1732_v38 = vpop.f32.mrb[1].mxu0 }
 0x169   : > { %v1733_v8 = vadd.f32 %v1732_v38, %v1731_v5  ;;  %v1734_v9 = vpop.f32.mrb[2].mxu0 }
 0x16a   : > { %v1735_v10 = vpop.f32.mrb[3].mxu0 }
 0x16b   : > { %v1736_v58 = vadd.f32 %v1735_v10, %v1734_v9  ;;  %v1255_v60 = vadd.f32 %v1733_v8, %v1651_v11 }
 0x16d   : > { %v1258_v18 = vadd.f32 %v1736_v58, %v1651_v11 }
 0x16f   : > { %v1771_v12 = vpop.f32.mrb[0].mxu1 }
 0x170   : > { %v1772_v13 = vpop.f32.mrb[1].mxu1 }
 0x171   : > { %v1773_v14 = vadd.f32 %v1772_v13, %v1771_v12  ;;  %v1774_v15 = vpop.f32.mrb[2].mxu1 }
 0x172   : > { %v1775_v17 = vpop.f32.mrb[3].mxu1 }
 0x173   : > { %v1776_v20 = vadd.f32 %v1775_v17, %v1774_v15  ;;  %v1320_v21 = vadd.f32 %v1773_v14, %v1255_v60 }
 0x175   : > { %v1323_v22 = vadd.f32 %v1776_v20, %v1258_v18 }
 0x177   : > { %v1737_v23 = vpop.f32.mrb[4].mxu0 }
 0x178   : > { %v1738_v24 = vpop.f32.mrb[5].mxu0 }
 0x179   : > { %v1739_v25 = vadd.f32 %v1738_v24, %v1737_v23  ;;  %v1740_v49 = vpop.f32.mrb[6].mxu0 }
 0x17a   : > { %v1741_v26 = vpop.f32.mrb[7].mxu0 }
 0x17b   : > { %v1742_v52 = vadd.f32 %v1741_v26, %v1740_v49  ;;  %v1777_v27 = vpop.f32.mrb[4].mxu1  ;;  %v1263_v29 = vadd.f32 %v1739_v25, %v1651_v11 }
 0x17c   : > { %v1778_v28 = vpop.f32.mrb[5].mxu1 }
 0x17d   : > { %v1779_v30 = vadd.f32 %v1778_v28, %v1777_v27  ;;  %v1780_v31 = vpop.f32.mrb[6].mxu1  ;;  %v1266_v33 = vadd.f32 %v1742_v52, %v1651_v11 }
 0x17e   : > { %v1781_v32 = vpop.f32.mrb[7].mxu1 }
 0x17f   : > { %v1782_v34 = vadd.f32 %v1781_v32, %v1780_v31  ;;  %v1328_v35 = vadd.f32 %v1779_v30, %v1263_v29 }
 0x181   : > { %v1331_v36 = vadd.f32 %v1782_v34, %v1266_v33 }
 0x187   : > { %v1743_v37 = vpop.f32.mrb[8].mxu0 }
 0x188   : > { %v1744_v40 = vpop.f32.mrb[9].mxu0 }
 0x189   : > { %v1745_v41 = vadd.f32 %v1744_v40, %v1743_v37  ;;  %v1746_v43 = vpop.f32.mrb[10].mxu0 }
 0x18a   : > { %v1747_v44 = vpop.f32.mrb[11].mxu0 }
 0x18b   : > { %v1748_v45 = vadd.f32 %v1747_v44, %v1746_v43  ;;  %v1783_v46 = vpop.f32.mrb[8].mxu1  ;;  %v1271_v48 = vadd.f32 %v1745_v41, %v1651_v11 }
 0x18c   : > { %v1784_v47 = vpop.f32.mrb[9].mxu1 }
 0x18d   : > { %v1785_v50 = vadd.f32 %v1784_v47, %v1783_v46  ;;  %v1786_v51 = vpop.f32.mrb[10].mxu1  ;;  %v1274_v54 = vadd.f32 %v1748_v45, %v1651_v11 }
 0x18e   : > { %v1787_v53 = vpop.f32.mrb[11].mxu1 }
 0x18f   : > { %v1788_v6 = vadd.f32 %v1787_v53, %v1786_v51  ;;  %v1336_v55 = vadd.f32 %v1785_v50, %v1271_v48 }
 0x191   : > { %v1339_v7 = vadd.f32 %v1788_v6, %v1274_v54 }
 0x197   : > { %v1749_v56 = vpop.f32.mrb[12].mxu0 }
 0x198   : > { %v1750_v57 = vpop.f32.mrb[13].mxu0 }
 0x199   : > { %v1751_v59 = vadd.f32 %v1750_v57, %v1749_v56  ;;  %v1752_v61 = vpop.f32.mrb[14].mxu0 }
 0x19a   : > { %v1753_v62 = vpop.f32.mrb[15].mxu0 }
 0x19b   : > { %v1754_v39 = vadd.f32 %v1753_v62, %v1752_v61  ;;  %v1789_v16 = vpop.f32.mrb[12].mxu1  ;;  %v1279_v0 = vadd.f32 %v1751_v59, %v1651_v11 }
 0x19c   : > { %v1790_v63 = vpop.f32.mrb[13].mxu1 }
 0x19d   : > { %v1791_v19 = vadd.f32 %v1790_v63, %v1789_v16  ;;  %v1792_v1 = vpop.f32.mrb[14].mxu1  ;;  %v1282_v3 = vadd.f32 %v1754_v39, %v1651_v11 }
 0x19e   : > { %v1793_v2 = vpop.f32.mrb[15].mxu1 }
 0x19f   : > { %v1794_v42 = vadd.f32 %v1793_v2, %v1792_v1  ;;  %v1813_v4 = vpop.f32.mrb[16].mxu0  ;;  %v1344_v5 = vadd.f32 %v1791_v19, %v1279_v0 }
 0x1a0   : > { %v1393_v38 = vadd.f32 %v1813_v4, %v1328_v35  ;;  %v1384_v8 = vpop.f32.mrb[17].mxu0 }
 0x1a1   : > { %v1385_v9 = vadd.f32 %v1384_v8, %v1320_v21  ;;  %v1814_v10 = vpop.f32.mrb[18].mxu0  ;;  %v1347_v58 = vadd.f32 %v1794_v42, %v1282_v3 }
 0x1a2   : > { %v1417_v12 = vpack.c.bf16 %v1393_v38, %v1393_v38  ;;  %v1396_v13 = vadd.f32 %v1814_v10, %v1331_v36  ;;  %v1387_v11 = vpop.f32.mrb[19].mxu0 }
 0x1a3   : > { %v1415_v60 = vpack.c.bf16 %v1385_v9, %v1385_v9  ;;  %v1388_v14 = vadd.f32 %v1387_v11, %v1323_v22  ;;  %v1817_v15 = vpop.f32.mrb[16].mxu1 }
 0x1a4   : > { %1426 = vst.msk [vmem:[%s2309_s6 + $0x8] sm:$0xf] %vm1423_vm1, %v1417_v12  ;;  %v1418_v17 = vpack.c.bf16 %v1396_v13, %v1396_v13  ;;  %v1409_v18 = vadd.f32 %v1817_v15, %v1344_v5  ;;  %v1400_v20 = vpop.f32.mrb[17].mxu1 }
 0x1a5   : > { %1424 = vst.msk [vmem:[%s2309_s6] sm:$0xf] %vm1423_vm1, %v1415_v60  ;;  %v1416_v21 = vpack.c.bf16 %v1388_v14, %v1388_v14  ;;  %v1401_v23 = vadd.f32 %v1400_v20, %v1336_v55  ;;  %v1818_v24 = vpop.f32.mrb[18].mxu1 }
 0x1a6   : > { %1427 = vst.msk [vmem:[%s2309_s6 + $0xc] sm:$0xf] %vm1423_vm1, %v1418_v17  ;;  %v1421_v25 = vpack.c.bf16 %v1409_v18, %v1409_v18  ;;  %v1412_v49 = vadd.f32 %v1818_v24, %v1347_v58  ;;  %v1403_v22 = vpop.f32.mrb[19].mxu1 }
 0x1a7   : > { %1425 = vst.msk [vmem:[%s2309_s6 + $0x4] sm:$0xf] %vm1423_vm1, %v1416_v21  ;;  %v1419_v26 = vpack.c.bf16 %v1401_v23, %v1401_v23  ;;  %v1404_v52 = vadd.f32 %v1403_v22, %v1339_v7 }
 0x1a8   : > { %1430 = vst.msk [vmem:[%s2309_s6 + $0x18] sm:$0xf] %vm1423_vm1, %v1421_v25  ;;  %v1422_v27 = vpack.c.bf16 %v1412_v49, %v1412_v49 }
 0x1a9   : > { %1428 = vst.msk [vmem:[%s2309_s6 + $0x10] sm:$0xf] %vm1423_vm1, %v1419_v26  ;;  %v1420_v28 = vpack.c.bf16 %v1404_v52, %v1404_v52 }
 0x1aa   : > { %1431 = vst.msk [vmem:[%s2309_s6 + $0x1c] sm:$0xf] %vm1423_vm1, %v1422_v27 }
 0x1ab   : > { %1429 = vst.msk [vmem:[%s2309_s6 + $0x14] sm:$0xf] %vm1423_vm1, %v1420_v28 }
 0x1ac PF: > { %s13_s14 = sadd.s32 1, %s1959_s14   ;;  %s2340_s12 = smov %s1955_s13 }
 0x1ad   : > { %p10_p5 = scmp.ge.s32.totalorder %s13_s14, 4   ;;  %s2341_s13 = smov %s2343_s15 }
 0x1af   :  { %12 = sbr.rel (!%p10_p5) target bundleno = 2 (0x2), region = 73 }

</bundles_post_ra>
